<compile_context>
chip_gen: v5e
topology: v5e:2x2
jax: 0.10.0
libtpu: 0.0.40
codegen_flags: <defaults>
</compile_context>

<pallas_src>
import functools

import jax
import jax.numpy as jnp
from jax.experimental import pallas as pl
from jax.experimental.pallas import tpu as pltpu

BN_EPS = 1e-5
_VMEM_LIMIT = 48 * 1024 * 1024  # explicit scoped-VMEM budget (safe on v5e/v6e/v7x)


# ---------------------------------------------------------------------------
# Tiling helper: tile the point axis, padding N up instead of one huge tile.
# ---------------------------------------------------------------------------
def _tiling(n, target=1024):
    if n <= target:
        return n, n                      # single full tile (no (8,128) constraint)
    tm = target                          # multiple of 8
    n_pad = -(-n // tm) * tm
    return tm, n_pad


# ---------------------------------------------------------------------------
# Pallas kernels
# ---------------------------------------------------------------------------
def _stn_kernel(x_ref, w1_ref, b1_ref, w2_ref, b2_ref, w3_ref, b3_ref,
                f1_ref, fb1_ref, f2_ref, fb2_ref, fA_ref, fAb_ref,
                weff_ref, g_acc, *, tm, n_valid, masked):
    """TNet per-point MLP + max-pool + FC head (fused), emitting the per-batch
    effective encoder conv1 weight  w_eff = trans @ W1_enc  (trans@W1 folded
    into fc3 so no in-kernel reshape is needed)."""
    m = pl.program_id(1)

    x = x_ref[0]                                                       # (tm, k) bf16
    h = jnp.maximum(jnp.dot(x, w1_ref[...], preferred_element_type=jnp.float32)
                    + b1_ref[...], 0.0).astype(jnp.bfloat16)
    h = jnp.maximum(jnp.dot(h, w2_ref[...], preferred_element_type=jnp.float32)
                    + b2_ref[...], 0.0).astype(jnp.bfloat16)
    h3 = jnp.maximum(jnp.dot(h, w3_ref[...], preferred_element_type=jnp.float32)
                     + b3_ref[...], 0.0)                               # (tm, 1024) f32
    if masked:
        row = m * tm + jax.lax.broadcasted_iota(jnp.int32, (tm, 1), 0)
        h3 = jnp.where(row < n_valid, h3, -jnp.inf)
    tile_max = jnp.max(h3, axis=0, keepdims=True)                      # (1, 1024)

    @pl.when(m == 0)
    def _():
        g_acc[...] = tile_max

    @pl.when(m != 0)
    def _():
        g_acc[...] = jnp.maximum(g_acc[...], tile_max)

    # FC head fused into the last point tile (runs once per batch element).
    @pl.when(m == pl.num_programs(1) - 1)
    def _():
        g = g_acc[...].astype(jnp.bfloat16)                            # (1, 1024)
        t = jnp.maximum(jnp.dot(g, f1_ref[...], preferred_element_type=jnp.float32)
                        + fb1_ref[...], 0.0).astype(jnp.bfloat16)
        t = jnp.maximum(jnp.dot(t, f2_ref[...], preferred_element_type=jnp.float32)
                        + fb2_ref[...], 0.0).astype(jnp.bfloat16)
        weff = jnp.dot(t, fA_ref[...], preferred_element_type=jnp.float32) + fAb_ref[...]
        weff_ref[0] = weff.astype(jnp.bfloat16)                        # (1, k*64)


def _enc_kernel(x_ref, weff_ref, b1_ref, w2_ref, b2_ref, w3_ref, b3_ref,
                sw1g_ref, sb1_ref, pf_ref, gproj_ref, g_acc,
                *, tm, n_valid, masked):
    """Encoder shared MLP (input transform pre-folded into the per-batch
    effective conv1 weight) + max-pool + global branch of seg conv1 (gproj)."""
    m = pl.program_id(1)

    h1 = jnp.maximum(jnp.dot(x_ref[0], weff_ref[0], preferred_element_type=jnp.float32)
                     + b1_ref[...], 0.0)
    pf_ref[0] = h1.astype(jnp.bfloat16)                                # point features
    h1 = h1.astype(jnp.bfloat16)
    h2 = jnp.maximum(jnp.dot(h1, w2_ref[...], preferred_element_type=jnp.float32)
                     + b2_ref[...], 0.0).astype(jnp.bfloat16)
    h3 = jnp.dot(h2, w3_ref[...], preferred_element_type=jnp.float32) + b3_ref[...]  # bn3, no ReLU
    if masked:
        row = m * tm + jax.lax.broadcasted_iota(jnp.int32, (tm, 1), 0)
        h3 = jnp.where(row < n_valid, h3, -jnp.inf)
    tile_max = jnp.max(h3, axis=0, keepdims=True)

    @pl.when(m == 0)
    def _():
        g_acc[...] = tile_max

    @pl.when(m != 0)
    def _():
        g_acc[...] = jnp.maximum(g_acc[...], tile_max)

    # Global-feature projection (seg conv1, global rows) fused at the tail.
    @pl.when(m == pl.num_programs(1) - 1)
    def _():
        g = g_acc[...].astype(jnp.bfloat16)                            # (1, 1024)
        gproj_ref[0] = (jnp.dot(g, sw1g_ref[...], preferred_element_type=jnp.float32)
                        + sb1_ref[...])                                # (1, 512) f32


def _seg_head_kernel(pf_ref, gp_ref, w1_ref, w2_ref, b2_ref, w3_ref, b3_ref,
                     w4_ref, b4_ref, o_ref):
    # seg conv1 with the global branch pre-projected:  relu(pf @ W1_pf + gproj)
    h = jnp.maximum(jnp.dot(pf_ref[0], w1_ref[...], preferred_element_type=jnp.float32)
                    + gp_ref[0], 0.0).astype(jnp.bfloat16)
    h = jnp.maximum(jnp.dot(h, w2_ref[...], preferred_element_type=jnp.float32)
                    + b2_ref[...], 0.0).astype(jnp.bfloat16)
    h = jnp.maximum(jnp.dot(h, w3_ref[...], preferred_element_type=jnp.float32)
                    + b3_ref[...], 0.0).astype(jnp.bfloat16)
    logits = jnp.dot(h, w4_ref[...], preferred_element_type=jnp.float32) + b4_ref[...]
    # softmax (row-max subtracted; mathematically identical to exp/sum of the ref)
    e = jnp.exp(logits - jnp.max(logits, axis=-1, keepdims=True))
    o_ref[0] = e * pl.reciprocal(jnp.sum(e, axis=-1, keepdims=True), approx=True)


# ---------------------------------------------------------------------------
# pallas_call wrappers
# ---------------------------------------------------------------------------
def stn_weff(x, w1, b1, w2, b2, w3, b3, f1, fb1, f2, fb2, fA, fAb, tm, n_valid):
    B, Np, K = x.shape
    n_m = Np // tm
    out64 = fA.shape[1]
    rep = lambda b, m: (0, 0)
    kern = functools.partial(_stn_kernel, tm=tm, n_valid=n_valid, masked=(Np != n_valid))
    return pl.pallas_call(
        kern,
        out_shape=jax.ShapeDtypeStruct((B, 1, out64), jnp.bfloat16),
        grid=(B, n_m),
        in_specs=[
            pl.BlockSpec((1, tm, K), lambda b, m: (b, m, 0)),
            pl.BlockSpec((K, 64), rep), pl.BlockSpec((1, 64), rep),
            pl.BlockSpec((64, 128), rep), pl.BlockSpec((1, 128), rep),
            pl.BlockSpec((128, 1024), rep), pl.BlockSpec((1, 1024), rep),
            pl.BlockSpec((1024, 512), rep), pl.BlockSpec((1, 512), rep),
            pl.BlockSpec((512, 256), rep), pl.BlockSpec((1, 256), rep),
            pl.BlockSpec((256, out64), rep), pl.BlockSpec((1, out64), rep),
        ],
        out_specs=pl.BlockSpec((1, 1, out64), lambda b, m: (b, 0, 0)),
        scratch_shapes=[pltpu.VMEM((1, 1024), jnp.float32)],
        compiler_params=pltpu.CompilerParams(
            dimension_semantics=("parallel", "arbitrary"),
            vmem_limit_bytes=_VMEM_LIMIT),
    )(x, w1, b1, w2, b2, w3, b3, f1, fb1, f2, fb2, fA, fAb)


def enc_mlp(x, weff, b1, w2, b2, w3, b3, sw1g, sb1, tm, n_valid):
    B, Np, K = x.shape
    n_m = Np // tm
    rep = lambda b, m: (0, 0)
    kern = functools.partial(_enc_kernel, tm=tm, n_valid=n_valid, masked=(Np != n_valid))
    return pl.pallas_call(
        kern,
        out_shape=(
            jax.ShapeDtypeStruct((B, Np, 64), jnp.bfloat16),   # point features
            jax.ShapeDtypeStruct((B, 1, 512), jnp.float32),    # global seg-conv1 proj
        ),
        grid=(B, n_m),
        in_specs=[
            pl.BlockSpec((1, tm, K), lambda b, m: (b, m, 0)),
            pl.BlockSpec((1, K, 64), lambda b, m: (b, 0, 0)),
            pl.BlockSpec((1, 64), rep),
            pl.BlockSpec((64, 128), rep), pl.BlockSpec((1, 128), rep),
            pl.BlockSpec((128, 1024), rep), pl.BlockSpec((1, 1024), rep),
            pl.BlockSpec((1024, 512), rep), pl.BlockSpec((1, 512), rep),
        ],
        out_specs=(
            pl.BlockSpec((1, tm, 64), lambda b, m: (b, m, 0)),
            pl.BlockSpec((1, 1, 512), lambda b, m: (b, 0, 0)),
        ),
        scratch_shapes=[pltpu.VMEM((1, 1024), jnp.float32)],
        compiler_params=pltpu.CompilerParams(
            dimension_semantics=("parallel", "arbitrary"),
            vmem_limit_bytes=_VMEM_LIMIT),
    )(x, weff, b1, w2, b2, w3, b3, sw1g, sb1)


def seg_head(pf, gproj, w1pf, w2, b2, w3, b3, w4, b4, tm, classes):
    B, Np, _ = pf.shape
    n_m = Np // tm
    rep = lambda b, m: (0, 0)
    return pl.pallas_call(
        _seg_head_kernel,
        out_shape=jax.ShapeDtypeStruct((B, Np, classes), jnp.float32),
        grid=(B, n_m),
        in_specs=[
            pl.BlockSpec((1, tm, 64), lambda b, m: (b, m, 0)),
            pl.BlockSpec((1, 1, 512), lambda b, m: (b, 0, 0)),
            pl.BlockSpec((64, 512), rep),
            pl.BlockSpec((512, 256), rep), pl.BlockSpec((1, 256), rep),
            pl.BlockSpec((256, 128), rep), pl.BlockSpec((1, 128), rep),
            pl.BlockSpec((128, classes), rep), pl.BlockSpec((1, classes), rep),
        ],
        out_specs=pl.BlockSpec((1, tm, classes), lambda b, m: (b, m, 0)),
        compiler_params=pltpu.CompilerParams(
            dimension_semantics=("parallel", "parallel"),
            vmem_limit_bytes=_VMEM_LIMIT),
    )(pf, gproj, w1pf, w2, b2, w3, b3, w4, b4)


# ---------------------------------------------------------------------------
# Deterministic synthetic parameters
# ---------------------------------------------------------------------------
def _dense_params(key, cin, cout):
    kw, kb = jax.random.split(key)
    w = jax.random.normal(kw, (cin, cout), jnp.float32) / jnp.sqrt(float(cin))
    b = 0.01 * jax.random.normal(kb, (cout,), jnp.float32)
    return w, b


def _bn_params(key, c):
    k1, k2, k3, k4 = jax.random.split(key, 4)
    gamma = 1.0 + 0.1 * jax.random.normal(k1, (c,), jnp.float32)
    beta = 0.1 * jax.random.normal(k2, (c,), jnp.float32)
    mean = 0.1 * jax.random.normal(k3, (c,), jnp.float32)
    var = 1.0 + 0.1 * jax.random.uniform(k4, (c,), jnp.float32)
    scale = gamma / jnp.sqrt(var + BN_EPS)
    shift = beta - mean * scale
    return scale, shift


def make_params(key, k=9, part_classes=13):
    keys = iter(jax.random.split(key, 64))

    def dense_p(cin, cout):
        return _dense_params(next(keys), cin, cout)

    def bn(c):
        return _bn_params(next(keys), c)

    params = {}

    stn = {}
    stn["conv1_w"], stn["conv1_b"] = dense_p(k, 64)
    stn["conv2_w"], stn["conv2_b"] = dense_p(64, 128)
    stn["conv3_w"], stn["conv3_b"] = dense_p(128, 1024)
    stn["fc1_w"], stn["fc1_b"] = dense_p(1024, 512)
    stn["fc2_w"], stn["fc2_b"] = dense_p(512, 256)
    stn["fc3_w"], stn["fc3_b"] = dense_p(256, k * k)
    stn["bn1_scale"], stn["bn1_shift"] = bn(64)
    stn["bn2_scale"], stn["bn2_shift"] = bn(128)
    stn["bn3_scale"], stn["bn3_shift"] = bn(1024)
    stn["bn4_scale"], stn["bn4_shift"] = bn(512)
    stn["bn5_scale"], stn["bn5_shift"] = bn(256)
    params["stn"] = stn

    enc = {}
    enc["conv1_w"], enc["conv1_b"] = dense_p(k, 64)
    enc["conv2_w"], enc["conv2_b"] = dense_p(64, 128)
    enc["conv3_w"], enc["conv3_b"] = dense_p(128, 1024)
    enc["bn1_scale"], enc["bn1_shift"] = bn(64)
    enc["bn2_scale"], enc["bn2_shift"] = bn(128)
    enc["bn3_scale"], enc["bn3_shift"] = bn(1024)
    params["enc"] = enc

    seg = {}
    seg["conv1_w"], seg["conv1_b"] = dense_p(1088, 512)
    seg["conv2_w"], seg["conv2_b"] = dense_p(512, 256)
    seg["conv3_w"], seg["conv3_b"] = dense_p(256, 128)
    seg["conv4_w"], seg["conv4_b"] = dense_p(128, part_classes)
    seg["bn1_scale"], seg["bn1_shift"] = bn(512)
    seg["bn2_scale"], seg["bn2_shift"] = bn(256)
    seg["bn3_scale"], seg["bn3_shift"] = bn(128)
    params["seg"] = seg

    return params


# ---------------------------------------------------------------------------
# Forward pass
# ---------------------------------------------------------------------------
def _fold(w, b, scale, shift):
    """Fold inference BatchNorm into the preceding linear: y = x @ W' + b'."""
    return w * scale[None, :], (b * scale + shift)[None, :]


def pointnet_seg_forward(x, params, k=9, part_classes=13):
    """x: (B, N, k) float32 -> per-point class probabilities (B, N, part_classes)."""
    B, N, _ = x.shape
    tm, n_pad = _tiling(N)

    xb = x.astype(jnp.bfloat16)
    if n_pad != N:
        xb = jnp.pad(xb, ((0, 0), (0, n_pad - N), (0, 0)))

    bf = lambda a: a.astype(jnp.bfloat16)

    # ---- fold BN into every preceding linear (inference mode) ----
    p = params["stn"]
    w1, b1 = _fold(p["conv1_w"], p["conv1_b"], p["bn1_scale"], p["bn1_shift"])
    w2, b2 = _fold(p["conv2_w"], p["conv2_b"], p["bn2_scale"], p["bn2_shift"])
    w3, b3 = _fold(p["conv3_w"], p["conv3_b"], p["bn3_scale"], p["bn3_shift"])
    f1, fb1 = _fold(p["fc1_w"], p["fc1_b"], p["bn4_scale"], p["bn4_shift"])
    f2, fb2 = _fold(p["fc2_w"], p["fc2_b"], p["bn5_scale"], p["bn5_shift"])
    fb3 = p["fc3_b"] + jnp.eye(k, dtype=jnp.float32).reshape(k * k)   # "+ eye" init

    pe = params["enc"]
    ew1, eb1 = _fold(pe["conv1_w"], pe["conv1_b"], pe["bn1_scale"], pe["bn1_shift"])
    ew2, eb2 = _fold(pe["conv2_w"], pe["conv2_b"], pe["bn2_scale"], pe["bn2_shift"])
    ew3, eb3 = _fold(pe["conv3_w"], pe["conv3_b"], pe["bn3_scale"], pe["bn3_shift"])

    # Fold (trans @ enc_conv1_W) into the TNet fc3 weight so the stn kernel
    # outputs the per-batch effective conv1 weight directly:
    #   w_eff = reshape(h2 @ fc3_w + fb3, (k, k)) @ ew1  =  h2 @ A + Ab
    fA = jnp.einsum("cij,jo->cio",
                    p["fc3_w"].reshape(256, k, k), ew1).reshape(256, k * 64)
    fAb = (fb3.reshape(k, k) @ ew1).reshape(1, k * 64)

    ps = params["seg"]
    sw1, sb1 = _fold(ps["conv1_w"], ps["conv1_b"], ps["bn1_scale"], ps["bn1_shift"])
    sw1_g, sw1_pf = sw1[:1024], sw1[1024:]          # concat order: [global, point]
    sw2, sb2 = _fold(ps["conv2_w"], ps["conv2_b"], ps["bn2_scale"], ps["bn2_shift"])
    sw3, sb3 = _fold(ps["conv3_w"], ps["conv3_b"], ps["bn3_scale"], ps["bn3_shift"])
    sw4, sb4 = ps["conv4_w"], ps["conv4_b"][None, :]

    # ---- kernel 1: TNet MLP + max + FC head -> effective conv1 weight ----
    weff = stn_weff(xb, bf(w1), b1, bf(w2), b2, bf(w3), b3,
                    bf(f1), fb1, bf(f2), fb2, bf(fA), fAb, tm, N)
    weff = weff.reshape(B, k, 64)                    # free row-major bitcast

    # ---- kernel 2: encoder MLP + max + global seg-conv1 projection ----
    pf, gproj = enc_mlp(xb, weff, eb1, bf(ew2), eb2, bf(ew3), eb3,
                        bf(sw1_g), sb1, tm, N)

    # ---- kernel 3: segmentation head + fused softmax ----
    probs = seg_head(pf, gproj, bf(sw1_pf), bf(sw2), sb2, bf(sw3), sb3,
                     bf(sw4), sb4, tm, part_classes)
    if n_pad != N:
        probs = probs[:, :N]
    return probs


if __name__ == "__main__":
    B, N, K, CLASSES = 2, 16, 9, 13
    key = jax.random.PRNGKey(0)
    k_x, k_p = jax.random.split(key)

    x = jax.random.normal(k_x, (B, N, K), jnp.float32)
    params = make_params(k_p, k=K, part_classes=CLASSES)

    fwd = jax.jit(functools.partial(pointnet_seg_forward, k=K, part_classes=CLASSES))
    out = fwd(x, params)
    out = jax.block_until_ready(out)

    assert out.shape == (B, N, CLASSES), out.shape
    assert bool(jnp.all(jnp.isfinite(out)))
    # rows sum to ~1 (softmax; bf16 matmuls + approx reciprocal -> loose tol)
    assert bool(jnp.allclose(jnp.sum(out, axis=-1), 1.0, atol=2e-2))
    print("KERNEL_OK")
</pallas_src>

<mosaic_0001>
module attributes {stable_mosaic.version = 11 : i64} {
  func.func @_stn_kernel(%arg0: i32, %arg1: i32, %arg2: memref<1x16x9xbf16, #tpu.memory_space<vmem>>, %arg3: memref<9x64xbf16, #tpu.memory_space<vmem>>, %arg4: memref<1x64xf32, #tpu.memory_space<vmem>>, %arg5: memref<64x128xbf16, #tpu.memory_space<vmem>>, %arg6: memref<1x128xf32, #tpu.memory_space<vmem>>, %arg7: memref<128x1024xbf16, #tpu.memory_space<vmem>>, %arg8: memref<1x1024xf32, #tpu.memory_space<vmem>>, %arg9: memref<1024x512xbf16, #tpu.memory_space<vmem>>, %arg10: memref<1x512xf32, #tpu.memory_space<vmem>>, %arg11: memref<512x256xbf16, #tpu.memory_space<vmem>>, %arg12: memref<1x256xf32, #tpu.memory_space<vmem>>, %arg13: memref<256x576xbf16, #tpu.memory_space<vmem>>, %arg14: memref<1x576xf32, #tpu.memory_space<vmem>>, %arg15: memref<1x1x576xbf16, #tpu.memory_space<vmem>>, %arg16: memref<1x1024xf32, #tpu.memory_space<vmem>>) attributes {dimension_semantics = [#tpu.dimension_semantics<parallel>, #tpu.dimension_semantics<arbitrary>], iteration_bounds = array<i64: 2, 1>, scalar_prefetch = 0 : i64, scratch_operands = 1 : i64, tpu.core_type = #tpu.core_type<tc>, window_params = [{transform_indices = @transform_0, window_bounds = array<i64: 1, 16, 9>}, {pipeline_mode = #tpu.pipeline_mode<synchronous>, transform_indices = @transform_1, window_bounds = array<i64: 9, 64>}, {pipeline_mode = #tpu.pipeline_mode<synchronous>, transform_indices = @transform_2, window_bounds = array<i64: 1, 64>}, {pipeline_mode = #tpu.pipeline_mode<synchronous>, transform_indices = @transform_3, window_bounds = array<i64: 64, 128>}, {pipeline_mode = #tpu.pipeline_mode<synchronous>, transform_indices = @transform_4, window_bounds = array<i64: 1, 128>}, {pipeline_mode = #tpu.pipeline_mode<synchronous>, transform_indices = @transform_5, window_bounds = array<i64: 128, 1024>}, {pipeline_mode = #tpu.pipeline_mode<synchronous>, transform_indices = @transform_6, window_bounds = array<i64: 1, 1024>}, {pipeline_mode = #tpu.pipeline_mode<synchronous>, transform_indices = @transform_7, window_bounds = array<i64: 1024, 512>}, {pipeline_mode = #tpu.pipeline_mode<synchronous>, transform_indices = @transform_8, window_bounds = array<i64: 1, 512>}, {pipeline_mode = #tpu.pipeline_mode<synchronous>, transform_indices = @transform_9, window_bounds = array<i64: 512, 256>}, {pipeline_mode = #tpu.pipeline_mode<synchronous>, transform_indices = @transform_10, window_bounds = array<i64: 1, 256>}, {pipeline_mode = #tpu.pipeline_mode<synchronous>, transform_indices = @transform_11, window_bounds = array<i64: 256, 576>}, {pipeline_mode = #tpu.pipeline_mode<synchronous>, transform_indices = @transform_12, window_bounds = array<i64: 1, 576>}, {transform_indices = @transform_13, window_bounds = array<i64: 1, 1, 576>}]} {
    %c0 = arith.constant 0 : index
    %c0_0 = arith.constant 0 : index
    %c0_1 = arith.constant 0 : index
    %0 = vector.load %arg2[%c0, %c0_0, %c0_1] : memref<1x16x9xbf16, #tpu.memory_space<vmem>>, vector<1x16x9xbf16>
    %1 = vector.shape_cast %0 : vector<1x16x9xbf16> to vector<16x9xbf16>
    %c0_2 = arith.constant 0 : index
    %c0_3 = arith.constant 0 : index
    %2 = vector.load %arg3[%c0_2, %c0_3] : memref<9x64xbf16, #tpu.memory_space<vmem>>, vector<9x64xbf16>
    %cst = arith.constant dense<0.000000e+00> : vector<16x64xf32>
    %3 = tpu.matmul %1, %2, %cst {dimension_numbers = #tpu.dot_dimension_numbers<[1], [0], [0], [1], [0, 0, 1, 1], [], []>} : vector<16x9xbf16>, vector<9x64xbf16>, vector<16x64xf32> -> vector<16x64xf32>
    %c0_4 = arith.constant 0 : index
    %c0_5 = arith.constant 0 : index
    %4 = vector.load %arg4[%c0_4, %c0_5] : memref<1x64xf32, #tpu.memory_space<vmem>>, vector<1x64xf32>
    %5 = vector.broadcast %4 : vector<1x64xf32> to vector<16x64xf32>
    %6 = arith.addf %3, %5 : vector<16x64xf32>
    %cst_6 = arith.constant 0.000000e+00 : f32
    %7 = vector.broadcast %cst_6 : f32 to vector<16x64xf32>
    %8 = arith.maximumf %6, %7 : vector<16x64xf32>
    %9 = arith.truncf %8 : vector<16x64xf32> to vector<16x64xbf16>
    %c0_7 = arith.constant 0 : index
    %c0_8 = arith.constant 0 : index
    %10 = vector.load %arg5[%c0_7, %c0_8] : memref<64x128xbf16, #tpu.memory_space<vmem>>, vector<64x128xbf16>
    %cst_9 = arith.constant dense<0.000000e+00> : vector<16x128xf32>
    %11 = tpu.matmul %9, %10, %cst_9 {dimension_numbers = #tpu.dot_dimension_numbers<[1], [0], [0], [1], [0, 0, 1, 1], [], []>} : vector<16x64xbf16>, vector<64x128xbf16>, vector<16x128xf32> -> vector<16x128xf32>
    %c0_10 = arith.constant 0 : index
    %c0_11 = arith.constant 0 : index
    %12 = vector.load %arg6[%c0_10, %c0_11] : memref<1x128xf32, #tpu.memory_space<vmem>>, vector<1x128xf32>
    %13 = vector.broadcast %12 : vector<1x128xf32> to vector<16x128xf32>
    %14 = arith.addf %11, %13 : vector<16x128xf32>
    %cst_12 = arith.constant 0.000000e+00 : f32
    %15 = vector.broadcast %cst_12 : f32 to vector<16x128xf32>
    %16 = arith.maximumf %14, %15 : vector<16x128xf32>
    %17 = arith.truncf %16 : vector<16x128xf32> to vector<16x128xbf16>
    %c0_13 = arith.constant 0 : index
    %c0_14 = arith.constant 0 : index
    %18 = vector.load %arg7[%c0_13, %c0_14] : memref<128x1024xbf16, #tpu.memory_space<vmem>>, vector<128x1024xbf16>
    %cst_15 = arith.constant dense<0.000000e+00> : vector<16x1024xf32>
    %19 = tpu.matmul %17, %18, %cst_15 {dimension_numbers = #tpu.dot_dimension_numbers<[1], [0], [0], [1], [0, 0, 1, 1], [], []>} : vector<16x128xbf16>, vector<128x1024xbf16>, vector<16x1024xf32> -> vector<16x1024xf32>
    %c0_16 = arith.constant 0 : index
    %c0_17 = arith.constant 0 : index
    %20 = vector.load %arg8[%c0_16, %c0_17] : memref<1x1024xf32, #tpu.memory_space<vmem>>, vector<1x1024xf32>
    %21 = vector.broadcast %20 : vector<1x1024xf32> to vector<16x1024xf32>
    %22 = arith.addf %19, %21 : vector<16x1024xf32>
    %cst_18 = arith.constant 0.000000e+00 : f32
    %23 = vector.broadcast %cst_18 : f32 to vector<16x1024xf32>
    %24 = arith.maximumf %22, %23 : vector<16x1024xf32>
    %cst_19 = arith.constant dense<0xFF800000> : vector<1024xf32>
    %25 = vector.multi_reduction <maximumf>, %24, %cst_19 [0] : vector<16x1024xf32> to vector<1024xf32>
    %26 = vector.shape_cast %25 : vector<1024xf32> to vector<1x1024xf32>
    %c0_i32 = arith.constant 0 : i32
    %27 = arith.cmpi eq, %arg1, %c0_i32 : i32
    %28 = arith.extui %27 : i1 to i32
    %c0_i32_20 = arith.constant 0 : i32
    %29 = arith.cmpi ne, %28, %c0_i32_20 : i32
    scf.if %29 {
      %c0_25 = arith.constant 0 : index
      %c0_26 = arith.constant 0 : index
      %36 = vector.load %arg16[%c0_25, %c0_26] : memref<1x1024xf32, #tpu.memory_space<vmem>>, vector<1x1024xf32>
      tpu.vector_store %arg16[%c0_25, %c0_26], %26 {strides = array<i32>} : memref<1x1024xf32, #tpu.memory_space<vmem>>, vector<1x1024xf32>,
    } else {
    }
    %c0_i32_21 = arith.constant 0 : i32
    %30 = arith.cmpi ne, %arg1, %c0_i32_21 : i32
    %31 = arith.extui %30 : i1 to i32
    %c0_i32_22 = arith.constant 0 : i32
    %32 = arith.cmpi ne, %31, %c0_i32_22 : i32
    scf.if %32 {
      %c0_25 = arith.constant 0 : index
      %c0_26 = arith.constant 0 : index
      %36 = vector.load %arg16[%c0_25, %c0_26] : memref<1x1024xf32, #tpu.memory_space<vmem>>, vector<1x1024xf32>
      %37 = arith.maximumf %36, %26 : vector<1x1024xf32>
      %c0_27 = arith.constant 0 : index
      %c0_28 = arith.constant 0 : index
      %38 = vector.load %arg16[%c0_27, %c0_28] : memref<1x1024xf32, #tpu.memory_space<vmem>>, vector<1x1024xf32>
      tpu.vector_store %arg16[%c0_27, %c0_28], %37 {strides = array<i32>} : memref<1x1024xf32, #tpu.memory_space<vmem>>, vector<1x1024xf32>,
    } else {
    }
    %c0_i32_23 = arith.constant 0 : i32
    %33 = arith.cmpi eq, %arg1, %c0_i32_23 : i32
    %34 = arith.extui %33 : i1 to i32
    %c0_i32_24 = arith.constant 0 : i32
    %35 = arith.cmpi ne, %34, %c0_i32_24 : i32
    scf.if %35 {
      %c0_25 = arith.constant 0 : index
      %c0_26 = arith.constant 0 : index
      %36 = vector.load %arg16[%c0_25, %c0_26] : memref<1x1024xf32, #tpu.memory_space<vmem>>, vector<1x1024xf32>
      %37 = arith.truncf %36 : vector<1x1024xf32> to vector<1x1024xbf16>
      %c0_27 = arith.constant 0 : index
      %c0_28 = arith.constant 0 : index
      %38 = vector.load %arg9[%c0_27, %c0_28] : memref<1024x512xbf16, #tpu.memory_space<vmem>>, vector<1024x512xbf16>
      %cst_29 = arith.constant dense<0.000000e+00> : vector<1x512xf32>
      %39 = tpu.matmul %37, %38, %cst_29 {dimension_numbers = #tpu.dot_dimension_numbers<[1], [0], [0], [1], [0, 0, 1, 1], [], []>} : vector<1x1024xbf16>, vector<1024x512xbf16>, vector<1x512xf32> -> vector<1x512xf32>
      %c0_30 = arith.constant 0 : index
      %c0_31 = arith.constant 0 : index
      %40 = vector.load %arg10[%c0_30, %c0_31] : memref<1x512xf32, #tpu.memory_space<vmem>>, vector<1x512xf32>
      %41 = arith.addf %39, %40 : vector<1x512xf32>
      %cst_32 = arith.constant 0.000000e+00 : f32
      %42 = vector.broadcast %cst_32 : f32 to vector<1x512xf32>
      %43 = arith.maximumf %41, %42 : vector<1x512xf32>
      %44 = arith.truncf %43 : vector<1x512xf32> to vector<1x512xbf16>
      %c0_33 = arith.constant 0 : index
      %c0_34 = arith.constant 0 : index
      %45 = vector.load %arg11[%c0_33, %c0_34] : memref<512x256xbf16, #tpu.memory_space<vmem>>, vector<512x256xbf16>
      %cst_35 = arith.constant dense<0.000000e+00> : vector<1x256xf32>
      %46 = tpu.matmul %44, %45, %cst_35 {dimension_numbers = #tpu.dot_dimension_numbers<[1], [0], [0], [1], [0, 0, 1, 1], [], []>} : vector<1x512xbf16>, vector<512x256xbf16>, vector<1x256xf32> -> vector<1x256xf32>
      %c0_36 = arith.constant 0 : index
      %c0_37 = arith.constant 0 : index
      %47 = vector.load %arg12[%c0_36, %c0_37] : memref<1x256xf32, #tpu.memory_space<vmem>>, vector<1x256xf32>
      %48 = arith.addf %46, %47 : vector<1x256xf32>
      %cst_38 = arith.constant 0.000000e+00 : f32
      %49 = vector.broadcast %cst_38 : f32 to vector<1x256xf32>
      %50 = arith.maximumf %48, %49 : vector<1x256xf32>
      %51 = arith.truncf %50 : vector<1x256xf32> to vector<1x256xbf16>
      %c0_39 = arith.constant 0 : index
      %c0_40 = arith.constant 0 : index
      %52 = vector.load %arg13[%c0_39, %c0_40] : memref<256x576xbf16, #tpu.memory_space<vmem>>, vector<256x576xbf16>
      %cst_41 = arith.constant dense<0.000000e+00> : vector<1x576xf32>
      %53 = tpu.matmul %51, %52, %cst_41 {dimension_numbers = #tpu.dot_dimension_numbers<[1], [0], [0], [1], [0, 0, 1, 1], [], []>} : vector<1x256xbf16>, vector<256x576xbf16>, vector<1x576xf32> -> vector<1x576xf32>
      %c0_42 = arith.constant 0 : index
      %c0_43 = arith.constant 0 : index
      %54 = vector.load %arg14[%c0_42, %c0_43] : memref<1x576xf32, #tpu.memory_space<vmem>>, vector<1x576xf32>
      %55 = arith.addf %53, %54 : vector<1x576xf32>
      %56 = arith.truncf %55 : vector<1x576xf32> to vector<1x576xbf16>
      %c0_44 = arith.constant 0 : index
      %c0_45 = arith.constant 0 : index
      %c0_46 = arith.constant 0 : index
      %57 = vector.load %arg15[%c0_44, %c0_45, %c0_46] : memref<1x1x576xbf16, #tpu.memory_space<vmem>>, vector<1x1x576xbf16>
      %58 = vector.shape_cast %57 : vector<1x1x576xbf16> to vector<1x576xbf16>
      %59 = vector.shape_cast %56 : vector<1x576xbf16> to vector<1x1x576xbf16>
      tpu.vector_store %arg15[%c0_44, %c0_45, %c0_46], %59 {strides = array<i32>} : memref<1x1x576xbf16, #tpu.memory_space<vmem>>, vector<1x1x576xbf16>,
    } else {
    }
    return
  }
  func.func @transform_0(%arg0: i32, %arg1: i32) -> (i32, i32, i32) {
    %c0_i32 = arith.constant 0 : i32
    %c0_i32_0 = arith.constant 0 : i32
    return %arg0, %arg1, %c0_i32 : i32, i32, i32
  }
  func.func @transform_1(%arg0: i32, %arg1: i32) -> (i32, i32) {
    %c0_i32 = arith.constant 0 : i32
    %c0_i32_0 = arith.constant 0 : i32
    %c0_i32_1 = arith.constant 0 : i32
    return %c0_i32, %c0_i32_0 : i32, i32
  }
  func.func @transform_2(%arg0: i32, %arg1: i32) -> (i32, i32) {
    %c0_i32 = arith.constant 0 : i32
    %c0_i32_0 = arith.constant 0 : i32
    %c0_i32_1 = arith.constant 0 : i32
    return %c0_i32, %c0_i32_0 : i32, i32
  }
  func.func @transform_3(%arg0: i32, %arg1: i32) -> (i32, i32) {
    %c0_i32 = arith.constant 0 : i32
    %c0_i32_0 = arith.constant 0 : i32
    %c0_i32_1 = arith.constant 0 : i32
    return %c0_i32, %c0_i32_0 : i32, i32
  }
  func.func @transform_4(%arg0: i32, %arg1: i32) -> (i32, i32) {
    %c0_i32 = arith.constant 0 : i32
    %c0_i32_0 = arith.constant 0 : i32
    %c0_i32_1 = arith.constant 0 : i32
    return %c0_i32, %c0_i32_0 : i32, i32
  }
  func.func @transform_5(%arg0: i32, %arg1: i32) -> (i32, i32) {
    %c0_i32 = arith.constant 0 : i32
    %c0_i32_0 = arith.constant 0 : i32
    %c0_i32_1 = arith.constant 0 : i32
    return %c0_i32, %c0_i32_0 : i32, i32
  }
  func.func @transform_6(%arg0: i32, %arg1: i32) -> (i32, i32) {
    %c0_i32 = arith.constant 0 : i32
    %c0_i32_0 = arith.constant 0 : i32
    %c0_i32_1 = arith.constant 0 : i32
    return %c0_i32, %c0_i32_0 : i32, i32
  }
  func.func @transform_7(%arg0: i32, %arg1: i32) -> (i32, i32) {
    %c0_i32 = arith.constant 0 : i32
    %c0_i32_0 = arith.constant 0 : i32
    %c0_i32_1 = arith.constant 0 : i32
    return %c0_i32, %c0_i32_0 : i32, i32
  }
  func.func @transform_8(%arg0: i32, %arg1: i32) -> (i32, i32) {
    %c0_i32 = arith.constant 0 : i32
    %c0_i32_0 = arith.constant 0 : i32
    %c0_i32_1 = arith.constant 0 : i32
    return %c0_i32, %c0_i32_0 : i32, i32
  }
  func.func @transform_9(%arg0: i32, %arg1: i32) -> (i32, i32) {
    %c0_i32 = arith.constant 0 : i32
    %c0_i32_0 = arith.constant 0 : i32
    %c0_i32_1 = arith.constant 0 : i32
    return %c0_i32, %c0_i32_0 : i32, i32
  }
  func.func @transform_10(%arg0: i32, %arg1: i32) -> (i32, i32) {
    %c0_i32 = arith.constant 0 : i32
    %c0_i32_0 = arith.constant 0 : i32
    %c0_i32_1 = arith.constant 0 : i32
    return %c0_i32, %c0_i32_0 : i32, i32
  }
  func.func @transform_11(%arg0: i32, %arg1: i32) -> (i32, i32) {
    %c0_i32 = arith.constant 0 : i32
    %c0_i32_0 = arith.constant 0 : i32
    %c0_i32_1 = arith.constant 0 : i32
    return %c0_i32, %c0_i32_0 : i32, i32
  }
  func.func @transform_12(%arg0: i32, %arg1: i32) -> (i32, i32) {
    %c0_i32 = arith.constant 0 : i32
    %c0_i32_0 = arith.constant 0 : i32
    %c0_i32_1 = arith.constant 0 : i32
    return %c0_i32, %c0_i32_0 : i32, i32
  }
  func.func @transform_13(%arg0: i32, %arg1: i32) -> (i32, i32, i32) {
    %c0_i32 = arith.constant 0 : i32
    %c0_i32_0 = arith.constant 0 : i32
    %c0_i32_1 = arith.constant 0 : i32
    return %arg0, %c0_i32, %c0_i32_0 : i32, i32, i32
  }
}

module attributes {stable_mosaic.version = 11 : i64} {
  func.func @_enc_kernel(%arg0: i32, %arg1: i32, %arg2: memref<1x16x9xbf16, #tpu.memory_space<vmem>>, %arg3: memref<1x9x64xbf16, #tpu.memory_space<vmem>>, %arg4: memref<1x64xf32, #tpu.memory_space<vmem>>, %arg5: memref<64x128xbf16, #tpu.memory_space<vmem>>, %arg6: memref<1x128xf32, #tpu.memory_space<vmem>>, %arg7: memref<128x1024xbf16, #tpu.memory_space<vmem>>, %arg8: memref<1x1024xf32, #tpu.memory_space<vmem>>, %arg9: memref<1024x512xbf16, #tpu.memory_space<vmem>>, %arg10: memref<1x512xf32, #tpu.memory_space<vmem>>, %arg11: memref<1x16x64xbf16, #tpu.memory_space<vmem>>, %arg12: memref<1x1x512xf32, #tpu.memory_space<vmem>>, %arg13: memref<1x1024xf32, #tpu.memory_space<vmem>>) attributes {dimension_semantics = [#tpu.dimension_semantics<parallel>, #tpu.dimension_semantics<arbitrary>], iteration_bounds = array<i64: 2, 1>, scalar_prefetch = 0 : i64, scratch_operands = 1 : i64, tpu.core_type = #tpu.core_type<tc>, window_params = [{transform_indices = @transform_0, window_bounds = array<i64: 1, 16, 9>}, {transform_indices = @transform_1, window_bounds = array<i64: 1, 9, 64>}, {pipeline_mode = #tpu.pipeline_mode<synchronous>, transform_indices = @transform_2, window_bounds = array<i64: 1, 64>}, {pipeline_mode = #tpu.pipeline_mode<synchronous>, transform_indices = @transform_3, window_bounds = array<i64: 64, 128>}, {pipeline_mode = #tpu.pipeline_mode<synchronous>, transform_indices = @transform_4, window_bounds = array<i64: 1, 128>}, {pipeline_mode = #tpu.pipeline_mode<synchronous>, transform_indices = @transform_5, window_bounds = array<i64: 128, 1024>}, {pipeline_mode = #tpu.pipeline_mode<synchronous>, transform_indices = @transform_6, window_bounds = array<i64: 1, 1024>}, {pipeline_mode = #tpu.pipeline_mode<synchronous>, transform_indices = @transform_7, window_bounds = array<i64: 1024, 512>}, {pipeline_mode = #tpu.pipeline_mode<synchronous>, transform_indices = @transform_8, window_bounds = array<i64: 1, 512>}, {transform_indices = @transform_9, window_bounds = array<i64: 1, 16, 64>}, {transform_indices = @transform_10, window_bounds = array<i64: 1, 1, 512>}]} {
    %c0 = arith.constant 0 : index
    %c0_0 = arith.constant 0 : index
    %c0_1 = arith.constant 0 : index
    %0 = vector.load %arg2[%c0, %c0_0, %c0_1] : memref<1x16x9xbf16, #tpu.memory_space<vmem>>, vector<1x16x9xbf16>
    %1 = vector.shape_cast %0 : vector<1x16x9xbf16> to vector<16x9xbf16>
    %c0_2 = arith.constant 0 : index
    %c0_3 = arith.constant 0 : index
    %c0_4 = arith.constant 0 : index
    %2 = vector.load %arg3[%c0_2, %c0_3, %c0_4] : memref<1x9x64xbf16, #tpu.memory_space<vmem>>, vector<1x9x64xbf16>
    %3 = vector.shape_cast %2 : vector<1x9x64xbf16> to vector<9x64xbf16>
    %cst = arith.constant dense<0.000000e+00> : vector<16x64xf32>
    %4 = tpu.matmul %1, %3, %cst {dimension_numbers = #tpu.dot_dimension_numbers<[1], [0], [0], [1], [0, 0, 1, 1], [], []>} : vector<16x9xbf16>, vector<9x64xbf16>, vector<16x64xf32> -> vector<16x64xf32>
    %c0_5 = arith.constant 0 : index
    %c0_6 = arith.constant 0 : index
    %5 = vector.load %arg4[%c0_5, %c0_6] : memref<1x64xf32, #tpu.memory_space<vmem>>, vector<1x64xf32>
    %6 = vector.broadcast %5 : vector<1x64xf32> to vector<16x64xf32>
    %7 = arith.addf %4, %6 : vector<16x64xf32>
    %cst_7 = arith.constant 0.000000e+00 : f32
    %8 = vector.broadcast %cst_7 : f32 to vector<16x64xf32>
    %9 = arith.maximumf %7, %8 : vector<16x64xf32>
    %10 = arith.truncf %9 : vector<16x64xf32> to vector<16x64xbf16>
    %c0_8 = arith.constant 0 : index
    %c0_9 = arith.constant 0 : index
    %c0_10 = arith.constant 0 : index
    %11 = vector.load %arg11[%c0_8, %c0_9, %c0_10] : memref<1x16x64xbf16, #tpu.memory_space<vmem>>, vector<1x16x64xbf16>
    %12 = vector.shape_cast %11 : vector<1x16x64xbf16> to vector<16x64xbf16>
    %13 = vector.shape_cast %10 : vector<16x64xbf16> to vector<1x16x64xbf16>
    tpu.vector_store %arg11[%c0_8, %c0_9, %c0_10], %13 {strides = array<i32>} : memref<1x16x64xbf16, #tpu.memory_space<vmem>>, vector<1x16x64xbf16>,
    %14 = arith.truncf %9 : vector<16x64xf32> to vector<16x64xbf16>
    %c0_11 = arith.constant 0 : index
    %c0_12 = arith.constant 0 : index
    %15 = vector.load %arg5[%c0_11, %c0_12] : memref<64x128xbf16, #tpu.memory_space<vmem>>, vector<64x128xbf16>
    %cst_13 = arith.constant dense<0.000000e+00> : vector<16x128xf32>
    %16 = tpu.matmul %14, %15, %cst_13 {dimension_numbers = #tpu.dot_dimension_numbers<[1], [0], [0], [1], [0, 0, 1, 1], [], []>} : vector<16x64xbf16>, vector<64x128xbf16>, vector<16x128xf32> -> vector<16x128xf32>
    %c0_14 = arith.constant 0 : index
    %c0_15 = arith.constant 0 : index
    %17 = vector.load %arg6[%c0_14, %c0_15] : memref<1x128xf32, #tpu.memory_space<vmem>>, vector<1x128xf32>
    %18 = vector.broadcast %17 : vector<1x128xf32> to vector<16x128xf32>
    %19 = arith.addf %16, %18 : vector<16x128xf32>
    %cst_16 = arith.constant 0.000000e+00 : f32
    %20 = vector.broadcast %cst_16 : f32 to vector<16x128xf32>
    %21 = arith.maximumf %19, %20 : vector<16x128xf32>
    %22 = arith.truncf %21 : vector<16x128xf32> to vector<16x128xbf16>
    %c0_17 = arith.constant 0 : index
    %c0_18 = arith.constant 0 : index
    %23 = vector.load %arg7[%c0_17, %c0_18] : memref<128x1024xbf16, #tpu.memory_space<vmem>>, vector<128x1024xbf16>
    %cst_19 = arith.constant dense<0.000000e+00> : vector<16x1024xf32>
    %24 = tpu.matmul %22, %23, %cst_19 {dimension_numbers = #tpu.dot_dimension_numbers<[1], [0], [0], [1], [0, 0, 1, 1], [], []>} : vector<16x128xbf16>, vector<128x1024xbf16>, vector<16x1024xf32> -> vector<16x1024xf32>
    %c0_20 = arith.constant 0 : index
    %c0_21 = arith.constant 0 : index
    %25 = vector.load %arg8[%c0_20, %c0_21] : memref<1x1024xf32, #tpu.memory_space<vmem>>, vector<1x1024xf32>
    %26 = vector.broadcast %25 : vector<1x1024xf32> to vector<16x1024xf32>
    %27 = arith.addf %24, %26 : vector<16x1024xf32>
    %cst_22 = arith.constant dense<0xFF800000> : vector<1024xf32>
    %28 = vector.multi_reduction <maximumf>, %27, %cst_22 [0] : vector<16x1024xf32> to vector<1024xf32>
    %29 = vector.shape_cast %28 : vector<1024xf32> to vector<1x1024xf32>
    %c0_i32 = arith.constant 0 : i32
    %30 = arith.cmpi eq, %arg1, %c0_i32 : i32
    %31 = arith.extui %30 : i1 to i32
    %c0_i32_23 = arith.constant 0 : i32
    %32 = arith.cmpi ne, %31, %c0_i32_23 : i32
    scf.if %32 {
      %c0_28 = arith.constant 0 : index
      %c0_29 = arith.constant 0 : index
      %39 = vector.load %arg13[%c0_28, %c0_29] : memref<1x1024xf32, #tpu.memory_space<vmem>>, vector<1x1024xf32>
      tpu.vector_store %arg13[%c0_28, %c0_29], %29 {strides = array<i32>} : memref<1x1024xf32, #tpu.memory_space<vmem>>, vector<1x1024xf32>,
    } else {
    }
    %c0_i32_24 = arith.constant 0 : i32
    %33 = arith.cmpi ne, %arg1, %c0_i32_24 : i32
    %34 = arith.extui %33 : i1 to i32
    %c0_i32_25 = arith.constant 0 : i32
    %35 = arith.cmpi ne, %34, %c0_i32_25 : i32
    scf.if %35 {
      %c0_28 = arith.constant 0 : index
      %c0_29 = arith.constant 0 : index
      %39 = vector.load %arg13[%c0_28, %c0_29] : memref<1x1024xf32, #tpu.memory_space<vmem>>, vector<1x1024xf32>
      %40 = arith.maximumf %39, %29 : vector<1x1024xf32>
      %c0_30 = arith.constant 0 : index
      %c0_31 = arith.constant 0 : index
      %41 = vector.load %arg13[%c0_30, %c0_31] : memref<1x1024xf32, #tpu.memory_space<vmem>>, vector<1x1024xf32>
      tpu.vector_store %arg13[%c0_30, %c0_31], %40 {strides = array<i32>} : memref<1x1024xf32, #tpu.memory_space<vmem>>, vector<1x1024xf32>,
    } else {
    }
    %c0_i32_26 = arith.constant 0 : i32
    %36 = arith.cmpi eq, %arg1, %c0_i32_26 : i32
    %37 = arith.extui %36 : i1 to i32
    %c0_i32_27 = arith.constant 0 : i32
    %38 = arith.cmpi ne, %37, %c0_i32_27 : i32
    scf.if %38 {
      %c0_28 = arith.constant 0 : index
      %c0_29 = arith.constant 0 : index
      %39 = vector.load %arg13[%c0_28, %c0_29] : memref<1x1024xf32, #tpu.memory_space<vmem>>, vector<1x1024xf32>
      %40 = arith.truncf %39 : vector<1x1024xf32> to vector<1x1024xbf16>
      %c0_30 = arith.constant 0 : index
      %c0_31 = arith.constant 0 : index
      %41 = vector.load %arg9[%c0_30, %c0_31] : memref<1024x512xbf16, #tpu.memory_space<vmem>>, vector<1024x512xbf16>
      %cst_32 = arith.constant dense<0.000000e+00> : vector<1x512xf32>
      %42 = tpu.matmul %40, %41, %cst_32 {dimension_numbers = #tpu.dot_dimension_numbers<[1], [0], [0], [1], [0, 0, 1, 1], [], []>} : vector<1x1024xbf16>, vector<1024x512xbf16>, vector<1x512xf32> -> vector<1x512xf32>
      %c0_33 = arith.constant 0 : index
      %c0_34 = arith.constant 0 : index
      %43 = vector.load %arg10[%c0_33, %c0_34] : memref<1x512xf32, #tpu.memory_space<vmem>>, vector<1x512xf32>
      %44 = arith.addf %42, %43 : vector<1x512xf32>
      %c0_35 = arith.constant 0 : index
      %c0_36 = arith.constant 0 : index
      %c0_37 = arith.constant 0 : index
      %45 = vector.load %arg12[%c0_35, %c0_36, %c0_37] : memref<1x1x512xf32, #tpu.memory_space<vmem>>, vector<1x1x512xf32>
      %46 = vector.shape_cast %45 : vector<1x1x512xf32> to vector<1x512xf32>
      %47 = vector.shape_cast %44 : vector<1x512xf32> to vector<1x1x512xf32>
      tpu.vector_store %arg12[%c0_35, %c0_36, %c0_37], %47 {strides = array<i32>} : memref<1x1x512xf32, #tpu.memory_space<vmem>>, vector<1x1x512xf32>,
    } else {
    }
    return
  }
  func.func @transform_0(%arg0: i32, %arg1: i32) -> (i32, i32, i32) {
    %c0_i32 = arith.constant 0 : i32
    %c0_i32_0 = arith.constant 0 : i32
    return %arg0, %arg1, %c0_i32 : i32, i32, i32
  }
  func.func @transform_1(%arg0: i32, %arg1: i32) -> (i32, i32, i32) {
    %c0_i32 = arith.constant 0 : i32
    %c0_i32_0 = arith.constant 0 : i32
    %c0_i32_1 = arith.constant 0 : i32
    return %arg0, %c0_i32, %c0_i32_0 : i32, i32, i32
  }
  func.func @transform_2(%arg0: i32, %arg1: i32) -> (i32, i32) {
    %c0_i32 = arith.constant 0 : i32
    %c0_i32_0 = arith.constant 0 : i32
    %c0_i32_1 = arith.constant 0 : i32
    return %c0_i32, %c0_i32_0 : i32, i32
  }
  func.func @transform_3(%arg0: i32, %arg1: i32) -> (i32, i32) {
    %c0_i32 = arith.constant 0 : i32
    %c0_i32_0 = arith.constant 0 : i32
    %c0_i32_1 = arith.constant 0 : i32
    return %c0_i32, %c0_i32_0 : i32, i32
  }
  func.func @transform_4(%arg0: i32, %arg1: i32) -> (i32, i32) {
    %c0_i32 = arith.constant 0 : i32
    %c0_i32_0 = arith.constant 0 : i32
    %c0_i32_1 = arith.constant 0 : i32
    return %c0_i32, %c0_i32_0 : i32, i32
  }
  func.func @transform_5(%arg0: i32, %arg1: i32) -> (i32, i32) {
    %c0_i32 = arith.constant 0 : i32
    %c0_i32_0 = arith.constant 0 : i32
    %c0_i32_1 = arith.constant 0 : i32
    return %c0_i32, %c0_i32_0 : i32, i32
  }
  func.func @transform_6(%arg0: i32, %arg1: i32) -> (i32, i32) {
    %c0_i32 = arith.constant 0 : i32
    %c0_i32_0 = arith.constant 0 : i32
    %c0_i32_1 = arith.constant 0 : i32
    return %c0_i32, %c0_i32_0 : i32, i32
  }
  func.func @transform_7(%arg0: i32, %arg1: i32) -> (i32, i32) {
    %c0_i32 = arith.constant 0 : i32
    %c0_i32_0 = arith.constant 0 : i32
    %c0_i32_1 = arith.constant 0 : i32
    return %c0_i32, %c0_i32_0 : i32, i32
  }
  func.func @transform_8(%arg0: i32, %arg1: i32) -> (i32, i32) {
    %c0_i32 = arith.constant 0 : i32
    %c0_i32_0 = arith.constant 0 : i32
    %c0_i32_1 = arith.constant 0 : i32
    return %c0_i32, %c0_i32_0 : i32, i32
  }
  func.func @transform_9(%arg0: i32, %arg1: i32) -> (i32, i32, i32) {
    %c0_i32 = arith.constant 0 : i32
    %c0_i32_0 = arith.constant 0 : i32
    return %arg0, %arg1, %c0_i32 : i32, i32, i32
  }
  func.func @transform_10(%arg0: i32, %arg1: i32) -> (i32, i32, i32) {
    %c0_i32 = arith.constant 0 : i32
    %c0_i32_0 = arith.constant 0 : i32
    %c0_i32_1 = arith.constant 0 : i32
    return %arg0, %c0_i32, %c0_i32_0 : i32, i32, i32
  }
}

module attributes {stable_mosaic.version = 11 : i64} {
  func.func @_seg_head_kernel(%arg0: i32, %arg1: i32, %arg2: memref<1x16x64xbf16, #tpu.memory_space<vmem>>, %arg3: memref<1x1x512xf32, #tpu.memory_space<vmem>>, %arg4: memref<64x512xbf16, #tpu.memory_space<vmem>>, %arg5: memref<512x256xbf16, #tpu.memory_space<vmem>>, %arg6: memref<1x256xf32, #tpu.memory_space<vmem>>, %arg7: memref<256x128xbf16, #tpu.memory_space<vmem>>, %arg8: memref<1x128xf32, #tpu.memory_space<vmem>>, %arg9: memref<128x13xbf16, #tpu.memory_space<vmem>>, %arg10: memref<1x13xf32, #tpu.memory_space<vmem>>, %arg11: memref<1x16x13xf32, #tpu.memory_space<vmem>>) attributes {dimension_semantics = [#tpu.dimension_semantics<parallel>, #tpu.dimension_semantics<parallel>], iteration_bounds = array<i64: 2, 1>, scalar_prefetch = 0 : i64, scratch_operands = 0 : i64, tpu.core_type = #tpu.core_type<tc>, window_params = [{transform_indices = @transform_0, window_bounds = array<i64: 1, 16, 64>}, {transform_indices = @transform_1, window_bounds = array<i64: 1, 1, 512>}, {pipeline_mode = #tpu.pipeline_mode<synchronous>, transform_indices = @transform_2, window_bounds = array<i64: 64, 512>}, {pipeline_mode = #tpu.pipeline_mode<synchronous>, transform_indices = @transform_3, window_bounds = array<i64: 512, 256>}, {pipeline_mode = #tpu.pipeline_mode<synchronous>, transform_indices = @transform_4, window_bounds = array<i64: 1, 256>}, {pipeline_mode = #tpu.pipeline_mode<synchronous>, transform_indices = @transform_5, window_bounds = array<i64: 256, 128>}, {pipeline_mode = #tpu.pipeline_mode<synchronous>, transform_indices = @transform_6, window_bounds = array<i64: 1, 128>}, {pipeline_mode = #tpu.pipeline_mode<synchronous>, transform_indices = @transform_7, window_bounds = array<i64: 128, 13>}, {pipeline_mode = #tpu.pipeline_mode<synchronous>, transform_indices = @transform_8, window_bounds = array<i64: 1, 13>}, {transform_indices = @transform_9, window_bounds = array<i64: 1, 16, 13>}]} {
    %c0 = arith.constant 0 : index
    %c0_0 = arith.constant 0 : index
    %c0_1 = arith.constant 0 : index
    %0 = vector.load %arg2[%c0, %c0_0, %c0_1] : memref<1x16x64xbf16, #tpu.memory_space<vmem>>, vector<1x16x64xbf16>
    %1 = vector.shape_cast %0 : vector<1x16x64xbf16> to vector<16x64xbf16>
    %c0_2 = arith.constant 0 : index
    %c0_3 = arith.constant 0 : index
    %2 = vector.load %arg4[%c0_2, %c0_3] : memref<64x512xbf16, #tpu.memory_space<vmem>>, vector<64x512xbf16>
    %cst = arith.constant dense<0.000000e+00> : vector<16x512xf32>
    %3 = tpu.matmul %1, %2, %cst {dimension_numbers = #tpu.dot_dimension_numbers<[1], [0], [0], [1], [0, 0, 1, 1], [], []>} : vector<16x64xbf16>, vector<64x512xbf16>, vector<16x512xf32> -> vector<16x512xf32>
    %c0_4 = arith.constant 0 : index
    %c0_5 = arith.constant 0 : index
    %c0_6 = arith.constant 0 : index
    %4 = vector.load %arg3[%c0_4, %c0_5, %c0_6] : memref<1x1x512xf32, #tpu.memory_space<vmem>>, vector<1x1x512xf32>
    %5 = vector.shape_cast %4 : vector<1x1x512xf32> to vector<1x512xf32>
    %6 = vector.broadcast %5 : vector<1x512xf32> to vector<16x512xf32>
    %7 = arith.addf %3, %6 : vector<16x512xf32>
    %cst_7 = arith.constant 0.000000e+00 : f32
    %8 = vector.broadcast %cst_7 : f32 to vector<16x512xf32>
    %9 = arith.maximumf %7, %8 : vector<16x512xf32>
    %10 = arith.truncf %9 : vector<16x512xf32> to vector<16x512xbf16>
    %c0_8 = arith.constant 0 : index
    %c0_9 = arith.constant 0 : index
    %11 = vector.load %arg5[%c0_8, %c0_9] : memref<512x256xbf16, #tpu.memory_space<vmem>>, vector<512x256xbf16>
    %cst_10 = arith.constant dense<0.000000e+00> : vector<16x256xf32>
    %12 = tpu.matmul %10, %11, %cst_10 {dimension_numbers = #tpu.dot_dimension_numbers<[1], [0], [0], [1], [0, 0, 1, 1], [], []>} : vector<16x512xbf16>, vector<512x256xbf16>, vector<16x256xf32> -> vector<16x256xf32>
    %c0_11 = arith.constant 0 : index
    %c0_12 = arith.constant 0 : index
    %13 = vector.load %arg6[%c0_11, %c0_12] : memref<1x256xf32, #tpu.memory_space<vmem>>, vector<1x256xf32>
    %14 = vector.broadcast %13 : vector<1x256xf32> to vector<16x256xf32>
    %15 = arith.addf %12, %14 : vector<16x256xf32>
    %cst_13 = arith.constant 0.000000e+00 : f32
    %16 = vector.broadcast %cst_13 : f32 to vector<16x256xf32>
    %17 = arith.maximumf %15, %16 : vector<16x256xf32>
    %18 = arith.truncf %17 : vector<16x256xf32> to vector<16x256xbf16>
    %c0_14 = arith.constant 0 : index
    %c0_15 = arith.constant 0 : index
    %19 = vector.load %arg7[%c0_14, %c0_15] : memref<256x128xbf16, #tpu.memory_space<vmem>>, vector<256x128xbf16>
    %cst_16 = arith.constant dense<0.000000e+00> : vector<16x128xf32>
    %20 = tpu.matmul %18, %19, %cst_16 {dimension_numbers = #tpu.dot_dimension_numbers<[1], [0], [0], [1], [0, 0, 1, 1], [], []>} : vector<16x256xbf16>, vector<256x128xbf16>, vector<16x128xf32> -> vector<16x128xf32>
    %c0_17 = arith.constant 0 : index
    %c0_18 = arith.constant 0 : index
    %21 = vector.load %arg8[%c0_17, %c0_18] : memref<1x128xf32, #tpu.memory_space<vmem>>, vector<1x128xf32>
    %22 = vector.broadcast %21 : vector<1x128xf32> to vector<16x128xf32>
    %23 = arith.addf %20, %22 : vector<16x128xf32>
    %cst_19 = arith.constant 0.000000e+00 : f32
    %24 = vector.broadcast %cst_19 : f32 to vector<16x128xf32>
    %25 = arith.maximumf %23, %24 : vector<16x128xf32>
    %26 = arith.truncf %25 : vector<16x128xf32> to vector<16x128xbf16>
    %c0_20 = arith.constant 0 : index
    %c0_21 = arith.constant 0 : index
    %27 = vector.load %arg9[%c0_20, %c0_21] : memref<128x13xbf16, #tpu.memory_space<vmem>>, vector<128x13xbf16>
    %cst_22 = arith.constant dense<0.000000e+00> : vector<16x13xf32>
    %28 = tpu.matmul %26, %27, %cst_22 {dimension_numbers = #tpu.dot_dimension_numbers<[1], [0], [0], [1], [0, 0, 1, 1], [], []>} : vector<16x128xbf16>, vector<128x13xbf16>, vector<16x13xf32> -> vector<16x13xf32>
    %c0_23 = arith.constant 0 : index
    %c0_24 = arith.constant 0 : index
    %29 = vector.load %arg10[%c0_23, %c0_24] : memref<1x13xf32, #tpu.memory_space<vmem>>, vector<1x13xf32>
    %30 = vector.broadcast %29 : vector<1x13xf32> to vector<16x13xf32>
    %31 = arith.addf %28, %30 : vector<16x13xf32>
    %cst_25 = arith.constant dense<0xFF800000> : vector<16xf32>
    %32 = vector.multi_reduction <maximumf>, %31, %cst_25 [1] : vector<16x13xf32> to vector<16xf32>
    %33 = vector.shape_cast %32 : vector<16xf32> to vector<16x1xf32>
    %34 = vector.broadcast %33 : vector<16x1xf32> to vector<16x13xf32>
    %35 = arith.subf %31, %34 : vector<16x13xf32>
    %36 = math.exp %35 : vector<16x13xf32>
    %cst_26 = arith.constant dense<0.000000e+00> : vector<16xf32>
    %37 = vector.multi_reduction <add>, %36, %cst_26 [1] : vector<16x13xf32> to vector<16xf32>
    %38 = vector.shape_cast %37 : vector<16xf32> to vector<16x1xf32>
    %39 = tpu.reciprocal %38 {approx = true} : vector<16x1xf32> -> vector<16x1xf32>
    %40 = vector.broadcast %39 : vector<16x1xf32> to vector<16x13xf32>
    %41 = arith.mulf %36, %40 : vector<16x13xf32>
    %c0_27 = arith.constant 0 : index
    %c0_28 = arith.constant 0 : index
    %c0_29 = arith.constant 0 : index
    %42 = vector.load %arg11[%c0_27, %c0_28, %c0_29] : memref<1x16x13xf32, #tpu.memory_space<vmem>>, vector<1x16x13xf32>
    %43 = vector.shape_cast %42 : vector<1x16x13xf32> to vector<16x13xf32>
    %44 = vector.shape_cast %41 : vector<16x13xf32> to vector<1x16x13xf32>
    tpu.vector_store %arg11[%c0_27, %c0_28, %c0_29], %44 {strides = array<i32>} : memref<1x16x13xf32, #tpu.memory_space<vmem>>, vector<1x16x13xf32>,
    return
  }
  func.func @transform_0(%arg0: i32, %arg1: i32) -> (i32, i32, i32) {
    %c0_i32 = arith.constant 0 : i32
    %c0_i32_0 = arith.constant 0 : i32
    return %arg0, %arg1, %c0_i32 : i32, i32, i32
  }
  func.func @transform_1(%arg0: i32, %arg1: i32) -> (i32, i32, i32) {
    %c0_i32 = arith.constant 0 : i32
    %c0_i32_0 = arith.constant 0 : i32
    %c0_i32_1 = arith.constant 0 : i32
    return %arg0, %c0_i32, %c0_i32_0 : i32, i32, i32
  }
  func.func @transform_2(%arg0: i32, %arg1: i32) -> (i32, i32) {
    %c0_i32 = arith.constant 0 : i32
    %c0_i32_0 = arith.constant 0 : i32
    %c0_i32_1 = arith.constant 0 : i32
    return %c0_i32, %c0_i32_0 : i32, i32
  }
  func.func @transform_3(%arg0: i32, %arg1: i32) -> (i32, i32) {
    %c0_i32 = arith.constant 0 : i32
    %c0_i32_0 = arith.constant 0 : i32
    %c0_i32_1 = arith.constant 0 : i32
    return %c0_i32, %c0_i32_0 : i32, i32
  }
  func.func @transform_4(%arg0: i32, %arg1: i32) -> (i32, i32) {
    %c0_i32 = arith.constant 0 : i32
    %c0_i32_0 = arith.constant 0 : i32
    %c0_i32_1 = arith.constant 0 : i32
    return %c0_i32, %c0_i32_0 : i32, i32
  }
  func.func @transform_5(%arg0: i32, %arg1: i32) -> (i32, i32) {
    %c0_i32 = arith.constant 0 : i32
    %c0_i32_0 = arith.constant 0 : i32
    %c0_i32_1 = arith.constant 0 : i32
    return %c0_i32, %c0_i32_0 : i32, i32
  }
  func.func @transform_6(%arg0: i32, %arg1: i32) -> (i32, i32) {
    %c0_i32 = arith.constant 0 : i32
    %c0_i32_0 = arith.constant 0 : i32
    %c0_i32_1 = arith.constant 0 : i32
    return %c0_i32, %c0_i32_0 : i32, i32
  }
  func.func @transform_7(%arg0: i32, %arg1: i32) -> (i32, i32) {
    %c0_i32 = arith.constant 0 : i32
    %c0_i32_0 = arith.constant 0 : i32
    %c0_i32_1 = arith.constant 0 : i32
    return %c0_i32, %c0_i32_0 : i32, i32
  }
  func.func @transform_8(%arg0: i32, %arg1: i32) -> (i32, i32) {
    %c0_i32 = arith.constant 0 : i32
    %c0_i32_0 = arith.constant 0 : i32
    %c0_i32_1 = arith.constant 0 : i32
    return %c0_i32, %c0_i32_0 : i32, i32
  }
  func.func @transform_9(%arg0: i32, %arg1: i32) -> (i32, i32, i32) {
    %c0_i32 = arith.constant 0 : i32
    %c0_i32_0 = arith.constant 0 : i32
    return %arg0, %arg1, %c0_i32 : i32, i32, i32
  }
}

</mosaic_0001>

<bundles_post_ra>
// kernel: pointnet_seg_forward.4
= control target key start
LH: loop header
LB: loop body
LE: loop exit
PB: predicated region body
PF: predicated region fallthrough
CT: control target
= control target key end

     0   :  { %s5079_s13 = smov 0   ;;  %s5081_s14 = smov 0   ;;  %s7168_s0 = inlined_call_operand.vmem [shape: bf16[2,16,9], index: 0, kind: input, shape index: {}]   ;;  %s7169_s1 = inlined_call_operand.vmem [shape: bf16[2,9,64], index: 1, kind: input, shape index: {}]   ;;  %s7170_s2 = inlined_call_operand.vmem [shape: f32[1,64], index: 2, kind: input, shape index: {}]   ;;  %s7171_s3 = inlined_call_operand.vmem [shape: bf16[64,128], index: 3, kind: input, shape index: {}]   ;;  %s7172_s4 = inlined_call_operand.vmem [shape: f32[1,128], index: 4, kind: input, shape index: {}]   ;;  %s7173_s5 = inlined_call_operand.vmem [shape: bf16[128,1024], index: 5, kind: input, shape index: {}]   ;;  %s7174_s6 = inlined_call_operand.vmem [shape: f32[1,1024], index: 6, kind: input, shape index: {}]   ;;  %s7175_s7 = inlined_call_operand.vmem [shape: bf16[1024,512], index: 7, kind: input, shape index: {}]   ;;  %s7176_s8 = inlined_call_operand.vmem [shape: f32[1,512], index: 8, kind: input, shape index: {}]   ;;  %s7177_s9 = inlined_call_operand.vmem [shape: bf16[2,16,64], index: 9, kind: output, shape index: {0}]   ;;  %s7178_s10 = inlined_call_operand.vmem [shape: f32[2,1,512], index: 10, kind: output, shape index: {1}]  }
   0x1   :  { %s5083_s15 = smov 0  }
   0x2 LB: > { %s33_s16 = sadd.s32 1, %s5017_s14  ;;  %p3327_p0 = scmp.ge.s32.totalorder %s5021_s15, 1  ;;  %s5021_s15 = sphi %s5083_s15, %s21_s15   ;;  %s5017_s14 = sphi %s5081_s14, %s7180_s14   ;;  %s5013_s13 = sphi %s5079_s13, %s7179_s13  }
   0x3   : > { %p35_p1 = scmp.ge.s32.totalorder %s33_s16, 2  ;;  %p346_p2 = scmp.lt.s32.totalorder %s5021_s15, 3 }
   0x5   : > { %s7182_s16 = smov (%p35_p1, %s33_s16), 0  ;;  %p347_p3 = pnand %p3327_p0, %p346_p2 }
   0x6   : > { %p402_p4 = scmp.lt.s32.totalorder (!%p347_p3), %s5013_s13, 1 }
   0x7   : > { %350 = sbr.rel (%p347_p3) target bundleno = 826 (0x33a), region = 56 }
   0xc   : > { %vm453_vm0 = vcmask 1043456   ;;  %s7184_s13 = smov (!%p402_p4, %s5013_s13), 1  ;;  %vm454_vm1 = vcmask 1044480   ;;  %v5023_v0 = vmov 65535   ;;  %vm449_vm2 = vcmask 72704   ;;  %v4651_v8 = vld [vmem:[%s7171_s3 + $0x18] sm:$0xff] }
   0xd   : > { %v455_v1 = vsel %vm453_vm0, 4294967295, %v5023_v0  ;;  %s5101_s17 = sshll.u32 %s7184_s13, 3  ;;  %530 = vmatpush.bf16.msra.mxu1 %v4651_v8  ;;  %v4650_v9 = vld [vmem:[%s7171_s3 + $0x10] sm:$0xff]  ;;  %v4649_v10 = vld [vmem:[%s7171_s3 + $0x8] sm:$0xff]  ;;  %v4648_v11 = vld [vmem:[%s7171_s3] sm:$0xff]  ;;  %vm478_vm3 = vcmask 519168  }
   0xe   : > { %s415_s20 = scalar_lea.vmem %s7169_s1, %s5101_s17  ;;  %v456_v4 = vsel %vm454_vm1, %v455_v1, 0  ;;  %s409_s23 = scalar_lea.vmem %s7168_s0, %s5101_s17  ;;  %v3587_v12 = vld [vmem:[%s7173_s5 + $0x1c0] sm:$0xf]  ;;  %v4708_v14 = vld [vmem:[%s7173_s5 + $0x1c4] sm:$0xf]  ;;  %vm522_vm4 = vcmask 523264  }
   0xf   : > { %v3341_v2 = vld [vmem:[%s415_s20] sm:$0xf]  ;;  %v4647_v3 = vld [vmem:[%s415_s20] sm:$0x10]  ;;  %v3595_v17 = vld [vmem:[%s7173_s5 + $0x1c8] sm:$0xf]  ;;  %s5259_s12 = scalar_lea.vmem %s7177_s9, %s5101_s17 }
  0x10   : > { %v3342_v5 = vor.u32 %v4647_v3, %v3341_v2  ;;  %v4646_v7 = vld [vmem:[%s409_s23] sm:$0xff]  ;;  %v4713_v18 = vld [vmem:[%s7173_s5 + $0x1e4] sm:$0xf0]  ;;  %v4709_v21 = vld [vmem:[%s7173_s5 + $0x1cc] sm:$0xf]  ;;  %vm1132_vm5 = vcmask 1040384  }
  0x11   : > { %531 = vmatpush.bf16.msra.mxu1 %v4650_v9  ;;  %v4712_v13 = vld [vmem:[%s7173_s5 + $0x1dc] sm:$0xf0]  ;;  %v3589_v16 = vld [vmem:[%s7173_s5 + $0x1e0] sm:$0xf0]  ;;  %v3596_v20 = vor.u32 %v4713_v18, %v3595_v17  ;;  %v3597_v22 = vld [vmem:[%s7173_s5 + $0x1e8] sm:$0xf0] }
  0x12   : > { %v458_v6 = vand.u32 %v3342_v5, %v456_v4  ;;  %v3588_v15 = vor.u32 %v4712_v13, %v3587_v12  ;;  %v3592_v19 = vor.u32 %v4708_v14, %v3589_v16  ;;  %v3555_v23 = vld [vmem:[%s7173_s5 + $0x180] sm:$0xf]  ;;  %v3600_v24 = vor.u32 %v4709_v21, %v3597_v22  ;;  %v4700_v26 = vld [vmem:[%s7173_s5 + $0x184] sm:$0xf]  ;;  %v3563_v30 = vld [vmem:[%s7173_s5 + $0x188] sm:$0xf] }
  0x13   : > { %v4704_v25 = vld [vmem:[%s7173_s5 + $0x19c] sm:$0xf0]  ;;  %v3557_v27 = vld [vmem:[%s7173_s5 + $0x1a0] sm:$0xf0]  ;;  %v4705_v31 = vld [vmem:[%s7173_s5 + $0x1a4] sm:$0xf0] }
  0x14   : > { %467 = vmatpush.bf16.msra.mxu0 %v458_v6  ;;  %945 = vmatpush.bf16.msra.mxu2 %v3588_v15  ;;  %v3556_v28 = vor.u32 %v4704_v25, %v3555_v23  ;;  %v3560_v29 = vor.u32 %v4700_v26, %v3557_v27  ;;  %v4701_v32 = vld [vmem:[%s7173_s5 + $0x18c] sm:$0xf]  ;;  %v3564_v33 = vor.u32 %v4705_v31, %v3563_v30  ;;  %v3523_v35 = vld [vmem:[%s7173_s5 + $0x140] sm:$0xf]  ;;  %v4692_v38 = vld [vmem:[%s7173_s5 + $0x144] sm:$0xf] }
  0x15   : > { %532 = vmatpush.bf16.msra.mxu1 %v4649_v10  ;;  %959 = vmatpush.bf16.msra.mxu3 %v3592_v19  ;;  %v3565_v34 = vld [vmem:[%s7173_s5 + $0x1a8] sm:$0xf0]  ;;  %v4696_v36 = vld [vmem:[%s7173_s5 + $0x15c] sm:$0xf0]  ;;  %v3525_v39 = vld [vmem:[%s7173_s5 + $0x160] sm:$0xf0] }
  0x16   : > { %v3568_v37 = vor.u32 %v4701_v32, %v3565_v34  ;;  %v3531_v40 = vld [vmem:[%s7173_s5 + $0x148] sm:$0xf]  ;;  %v3524_v41 = vor.u32 %v4696_v36, %v3523_v35  ;;  %v4693_v43 = vld [vmem:[%s7173_s5 + $0x14c] sm:$0xf]  ;;  %v3528_v45 = vor.u32 %v4692_v38, %v3525_v39  ;;  %v3491_v47 = vld [vmem:[%s7173_s5 + $0x100] sm:$0xf] }
  0x17   : > { %3343 = vmatmul.msk.bf16.vlgmr.msra.gmra.mxu0 %vm449_vm2, %v4646_v7  ;;  %v4697_v42 = vld [vmem:[%s7173_s5 + $0x164] sm:$0xf0]  ;;  %v3533_v44 = vld [vmem:[%s7173_s5 + $0x168] sm:$0xf0]  ;;  %v4688_v48 = vld [vmem:[%s7173_s5 + $0x11c] sm:$0xf0] }
  0x18   : > { %973 = vmatpush.bf16.msrb.mxu0 %v3596_v20  ;;  %946 = vmatpush.bf16.msra.mxu2 %v3556_v28  ;;  %v3532_v46 = vor.u32 %v4697_v42, %v3531_v40  ;;  %v4684_v49 = vld [vmem:[%s7173_s5 + $0x104] sm:$0xf]  ;;  %v3536_v50 = vor.u32 %v4693_v43, %v3533_v44  ;;  %v3499_v52 = vld [vmem:[%s7173_s5 + $0x108] sm:$0xf]  ;;  %v4997_v54 = vld [vmem:[%s7170_s2] ss:$0 sm:$0xff]  ;;  %v3492_v57 = vor.u32 %v4688_v48, %v3491_v47 }
  0x19   : > { %533 = vmatpush.bf16.msra.mxu1 %v4648_v11  ;;  %960 = vmatpush.bf16.msra.mxu3 %v3560_v29  ;;  %v3493_v51 = vld [vmem:[%s7173_s5 + $0x120] sm:$0xf0]  ;;  %v4689_v53 = vld [vmem:[%s7173_s5 + $0x124] sm:$0xf0]  ;;  %v4685_v55 = vld [vmem:[%s7173_s5 + $0x10c] sm:$0xf] }
  0x1a   : > { %v3501_v56 = vld [vmem:[%s7173_s5 + $0x128] sm:$0xf0]  ;;  %v3496_v58 = vor.u32 %v4684_v49, %v3493_v51  ;;  %v3500_v59 = vor.u32 %v4689_v53, %v3499_v52  ;;  %v3459_v60 = vld [vmem:[%s7173_s5 + $0xc0] sm:$0xf]  ;;  %v4676_v62 = vld [vmem:[%s7173_s5 + $0xc4] sm:$0xf] }
  0x1b   : > { %v4680_v61 = vld [vmem:[%s7173_s5 + $0xdc] sm:$0xf0]  ;;  %v3504_v0 = vor.u32 %v4685_v55, %v3501_v56  ;;  %v3461_v1 = vld [vmem:[%s7173_s5 + $0xe0] sm:$0xf0]  ;;  %v3467_v2 = vld [vmem:[%s7173_s5 + $0xc8] sm:$0xf] }
  0x1c   : > { %974 = vmatpush.bf16.msrb.mxu0 %v3564_v33  ;;  %947 = vmatpush.bf16.msra.mxu2 %v3524_v41  ;;  %v4681_v3 = vld [vmem:[%s7173_s5 + $0xe4] sm:$0xf0]  ;;  %v4677_v5 = vld [vmem:[%s7173_s5 + $0xcc] sm:$0xf]  ;;  %v3460_v7 = vor.u32 %v4680_v61, %v3459_v60  ;;  %v3427_v8 = vld [vmem:[%s7173_s5 + $0x80] sm:$0xf]  ;;  %v3464_v10 = vor.u32 %v4676_v62, %v3461_v1 }
  0x1d   : > { %987 = vmatpush.bf16.msrb.mxu1 %v3600_v24  ;;  %961 = vmatpush.bf16.msra.mxu3 %v3528_v45  ;;  %v3469_v6 = vld [vmem:[%s7173_s5 + $0xe8] sm:$0xf0]  ;;  %v3468_v11 = vor.u32 %v4681_v3, %v3467_v2  ;;  %v4672_v12 = vld [vmem:[%s7173_s5 + $0x9c] sm:$0xf0]  ;;  %v4668_v13 = vld [vmem:[%s7173_s5 + $0x84] sm:$0xf] }
  0x1e   : > { %v3472_v14 = vor.u32 %v4677_v5, %v3469_v6  ;;  %v3429_v15 = vld [vmem:[%s7173_s5 + $0xa0] sm:$0xf0]  ;;  %v3435_v16 = vld [vmem:[%s7173_s5 + $0x88] sm:$0xf]  ;;  %v4669_v19 = vld [vmem:[%s7173_s5 + $0x8c] sm:$0xf]  ;;  %v3428_v21 = vor.u32 %v4672_v12, %v3427_v8 }
  0x1f   : > { %v4673_v17 = vld [vmem:[%s7173_s5 + $0xa4] sm:$0xf0]  ;;  %v3437_v20 = vld [vmem:[%s7173_s5 + $0xa8] sm:$0xf0]  ;;  %v3395_v22 = vld [vmem:[%s7173_s5 + $0x40] sm:$0xf]  ;;  %v3432_v23 = vor.u32 %v4668_v13, %v3429_v15 }
  0x20   : > { %975 = vmatpush.bf16.msrb.mxu0 %v3532_v46  ;;  %948 = vmatpush.bf16.msra.mxu2 %v3492_v57  ;;  %v3436_v24 = vor.u32 %v4673_v17, %v3435_v16  ;;  %v4664_v25 = vld [vmem:[%s7173_s5 + $0x5c] sm:$0xf0]  ;;  %v4660_v26 = vld [vmem:[%s7173_s5 + $0x44] sm:$0xf]  ;;  %v3440_v28 = vor.u32 %v4669_v19, %v3437_v20  ;;  %v3403_v30 = vld [vmem:[%s7173_s5 + $0x48] sm:$0xf] }
  0x21   : > { %988 = vmatpush.bf16.msrb.mxu1 %v3568_v37  ;;  %962 = vmatpush.bf16.msra.mxu3 %v3496_v58  ;;  %v3397_v29 = vld [vmem:[%s7173_s5 + $0x60] sm:$0xf0]  ;;  %v4665_v31 = vld [vmem:[%s7173_s5 + $0x64] sm:$0xf0]  ;;  %v4661_v33 = vld [vmem:[%s7173_s5 + $0x4c] sm:$0xf]  ;;  %v3396_v35 = vor.u32 %v4664_v25, %v3395_v22 }
  0x22   : > { %v3405_v34 = vld [vmem:[%s7173_s5 + $0x68] sm:$0xf0]  ;;  %v3400_v37 = vor.u32 %v4660_v26, %v3397_v29  ;;  %v3404_v38 = vor.u32 %v4665_v31, %v3403_v30  ;;  %v3363_v39 = vld [vmem:[%s7173_s5] sm:$0xf]  ;;  %v4652_v42 = vld [vmem:[%s7173_s5 + $0x4] sm:$0xf] }
  0x23   : > { %v4656_v40 = vld [vmem:[%s7173_s5 + $0x1c] sm:$0xf0]  ;;  %v3408_v41 = vor.u32 %v4661_v33, %v3405_v34  ;;  %v3365_v43 = vld [vmem:[%s7173_s5 + $0x20] sm:$0xf0]  ;;  %v3371_v44 = vld [vmem:[%s7173_s5 + $0x8] sm:$0xf] }
  0x24   : > { %976 = vmatpush.bf16.msrb.mxu0 %v3500_v59  ;;  %949 = vmatpush.bf16.msra.mxu2 %v3460_v7  ;;  %v4657_v46 = vld [vmem:[%s7173_s5 + $0x24] sm:$0xf0]  ;;  %v4653_v47 = vld [vmem:[%s7173_s5 + $0xc] sm:$0xf]  ;;  %v3364_v49 = vor.u32 %v4656_v40, %v3363_v39  ;;  %v3368_v52 = vor.u32 %v4652_v42, %v3365_v43  ;;  %v3603_v56 = vld [vmem:[%s7173_s5 + $0x1d0] sm:$0xf] }
  0x25   : > { %989 = vmatpush.bf16.msrb.mxu1 %v3536_v50  ;;  %963 = vmatpush.bf16.msra.mxu3 %v3464_v10  ;;  %v3373_v48 = vld [vmem:[%s7173_s5 + $0x28] sm:$0xf0]  ;;  %v3372_v53 = vor.u32 %v4657_v46, %v3371_v44  ;;  %v4714_v57 = vld [vmem:[%s7173_s5 + $0x1ec] sm:$0xf0]  ;;  %v4710_v58 = vld [vmem:[%s7173_s5 + $0x1d4] sm:$0xf] }
  0x26   : > { %v3604_v59 = vor.u32 %v4714_v57, %v3603_v56  ;;  %v3605_v60 = vld [vmem:[%s7173_s5 + $0x1f0] sm:$0xf0]  ;;  %v3611_v61 = vld [vmem:[%s7173_s5 + $0x1d8] sm:$0xf]  ;;  %v4711_v1 = vld [vmem:[%s7173_s5 + $0x1dc] sm:$0xf] }
  0x27   : > { %v4715_v62 = vld [vmem:[%s7173_s5 + $0x1f4] sm:$0xf0]  ;;  %v3613_v2 = vld [vmem:[%s7173_s5 + $0x1f8] sm:$0xf0]  ;;  %v4706_v5 = vld [vmem:[%s7173_s5 + $0x1ac] sm:$0xf0] }
  0x28   : > { %977 = vmatpush.bf16.msrb.mxu0 %v3468_v11  ;;  %950 = vmatpush.bf16.msra.mxu2 %v3428_v21  ;;  %v3616_v3 = vor.u32 %v4711_v1, %v3613_v2  ;;  %v4702_v6 = vld [vmem:[%s7173_s5 + $0x194] sm:$0xf]  ;;  %v4707_v10 = vld [vmem:[%s7173_s5 + $0x1b4] sm:$0xf0]  ;;  %v4703_v13 = vld [vmem:[%s7173_s5 + $0x19c] sm:$0xf] }
  0x29   : > { %990 = vmatpush.bf16.msrb.mxu1 %v3504_v0  ;;  %964 = vmatpush.bf16.msra.mxu3 %v3432_v23  ;;  %v3612_v0 = vor.u32 %v4715_v62, %v3611_v61  ;;  %v3573_v8 = vld [vmem:[%s7173_s5 + $0x1b0] sm:$0xf0]  ;;  %v3539_v16 = vld [vmem:[%s7173_s5 + $0x150] sm:$0xf]  ;;  %v3547_v21 = vld [vmem:[%s7173_s5 + $0x158] sm:$0xf] }
  0x2a   : > { %v3576_v11 = vor.u32 %v4702_v6, %v3573_v8  ;;  %v4698_v17 = vld [vmem:[%s7173_s5 + $0x16c] sm:$0xf0]  ;;  %v3541_v20 = vld [vmem:[%s7173_s5 + $0x170] sm:$0xf0]  ;;  %v4699_v22 = vld [vmem:[%s7173_s5 + $0x174] sm:$0xf0] }
  0x2b   : > { %v3540_v19 = vor.u32 %v4698_v17, %v3539_v16  ;;  %v4695_v25 = vld [vmem:[%s7173_s5 + $0x15c] sm:$0xf]  ;;  %v4690_v29 = vld [vmem:[%s7173_s5 + $0x12c] sm:$0xf0]  ;;  %v4686_v30 = vld [vmem:[%s7173_s5 + $0x114] sm:$0xf] }
  0x2c   : > { %978 = vmatpush.bf16.msrb.mxu0 %v3436_v24  ;;  %951 = vmatpush.bf16.msra.mxu2 %v3396_v35  ;;  %v3548_v24 = vor.u32 %v4699_v22, %v3547_v21  ;;  %v3549_v26 = vld [vmem:[%s7173_s5 + $0x178] sm:$0xf0]  ;;  %v3515_v33 = vld [vmem:[%s7173_s5 + $0x118] sm:$0xf]  ;;  %v3475_v40 = vld [vmem:[%s7173_s5 + $0xd0] sm:$0xf] }
  0x2d   : > { %991 = vmatpush.bf16.msrb.mxu1 %v3472_v14  ;;  %965 = vmatpush.bf16.msra.mxu3 %v3400_v37  ;;  %v3581_v14 = vld [vmem:[%s7173_s5 + $0x1b8] sm:$0xf0]  ;;  %v4691_v34 = vld [vmem:[%s7173_s5 + $0x134] sm:$0xf0]  ;;  %v4678_v42 = vld [vmem:[%s7173_s5 + $0xd4] sm:$0xf] }
  0x2e   : > { %v3584_v15 = vor.u32 %v4703_v13, %v3581_v14  ;;  %v4687_v37 = vld [vmem:[%s7173_s5 + $0x11c] sm:$0xf]  ;;  %v3477_v44 = vld [vmem:[%s7173_s5 + $0xf0] sm:$0xf0]  ;;  %v4683_v46 = vld [vmem:[%s7173_s5 + $0xf4] sm:$0xf0] }
  0x2f   : > { %v3453_v62 = vld [vmem:[%s7173_s5 + $0xb8] sm:$0xf0]  ;;  %v4662_v2 = vld [vmem:[%s7173_s5 + $0x54] sm:$0xf]  ;;  %v4667_v6 = vld [vmem:[%s7173_s5 + $0x74] sm:$0xf0] }
  0x30   : > { %979 = vmatpush.bf16.msrb.mxu0 %v3404_v38  ;;  %952 = vmatpush.bf16.msra.mxu2 %v3364_v49  ;;  %v3517_v38 = vld [vmem:[%s7173_s5 + $0x138] sm:$0xf0]  ;;  %v4654_v13 = vld [vmem:[%s7173_s5 + $0x14] sm:$0xf]  ;;  %v3387_v16 = vld [vmem:[%s7173_s5 + $0x18] sm:$0xf] }
  0x31   : > { %992 = vmatpush.bf16.msrb.mxu1 %v3440_v28  ;;  %966 = vmatpush.bf16.msra.mxu3 %v3368_v52  ;;  %v3507_v28 = vld [vmem:[%s7173_s5 + $0x110] sm:$0xf]  ;;  %v3520_v39 = vor.u32 %v4687_v37, %v3517_v38  ;;  %v4679_v49 = vld [vmem:[%s7173_s5 + $0xdc] sm:$0xf]  ;;  %v4659_v17 = vld [vmem:[%s7173_s5 + $0x34] sm:$0xf0] }
  0x32   : > { %v3508_v31 = vor.u32 %v4690_v29, %v3507_v28  ;;  %v3421_v8 = vld [vmem:[%s7173_s5 + $0x78] sm:$0xf0]  ;;  %v3388_v22 = vor.u32 %v4659_v17, %v3387_v16  ;;  %v3731_v29 = vld [vmem:[%s7175_s7 + $0xe0] sm:$0xf]  ;;  %v4842_v38 = vld [vmem:[%s7175_s7 + $0x3ec] sm:$0xf0] }
  0x33   : > { %v4115_v37 = vld [vmem:[%s7175_s7 + $0x3e0] sm:$0xf]  ;;  %v4730_v17 = vld [vmem:[%s7175_s7 + $0x6c] sm:$0xf0]  ;;  %vm1134_vm6 = vcmask 1042434   ;;  %vm1136_vm7 = vcmask 1041408  }
  0x34   : > { %980 = vmatpush.bf16.msrb.mxu0 %v3372_v53  ;;  %1001 = vmatpush.bf16.msrb.mxu2 %v3604_v59  ;;  %v4674_v53 = vld [vmem:[%s7173_s5 + $0xac] sm:$0xf0]  ;;  %v4675_v59 = vld [vmem:[%s7173_s5 + $0xb4] sm:$0xf0]  ;;  %v3667_v16 = vld [vmem:[%s7175_s7 + $0x60] sm:$0xf] }
  0x35   : > { %993 = vmatpush.bf16.msrb.mxu1 %v3408_v41  ;;  %v4682_v41 = vld [vmem:[%s7173_s5 + $0xec] sm:$0xf0]  ;;  %vm1140_vm8 = vcmask 1046534   ;;  %vm1138_vm9 = vcmask 1044484   ;;  %vm1142_vm10 = vcmask 1045508   ;;  %s3334_s20 = sshll.u32 %s7184_s13, 2 }
  0x36   : > { %v3476_v43 = vor.u32 %v4682_v41, %v3475_v40  ;;  %s429_s23 = scalar_lea.vmem %s7178_s10, %s3334_s20 }
  0x38   : > { %1029 = vmatpush.bf16.msra.mxu0 %v3612_v0  ;;  %v4666_v0 = vld [vmem:[%s7173_s5 + $0x6c] sm:$0xf0] }
  0x94   : > { %v469_v63 = vpop.f32.mrf.mxu0 }
  0x95   : > { %v470_v4 = vadd.f32 %v4997_v54, %v469_v63  ;;  %v3608_v63 = vor.u32 %v4710_v58, %v3605_v60  ;;  %v3451_v58 = vld [vmem:[%s7173_s5 + $0x98] sm:$0xf]  ;;  %v4671_v60 = vld [vmem:[%s7173_s5 + $0x9c] sm:$0xf] }
  0x96   : > { %v3452_v61 = vor.u32 %v4675_v59, %v3451_v58  ;;  %v3456_v1 = vor.u32 %v4671_v60, %v3453_v62  ;;  %v3827_v58 = vld [vmem:[%s7175_s7 + $0x1a0] sm:$0xf]  ;;  %v4770_v60 = vld [vmem:[%s7175_s7 + $0x1ac] sm:$0xf0] }
  0x97   : > { %v474_v9 = vmax.f32 %v470_v4, 0.0  ;;  %1015 = vmatpush.bf16.msrb.mxu3 %v3608_v63  ;;  %v3571_v4 = vld [vmem:[%s7173_s5 + $0x190] sm:$0xf] }
  0x98   : > { %v3572_v7 = vor.u32 %v4706_v5, %v3571_v4  ;;  %v3411_v63 = vld [vmem:[%s7173_s5 + $0x50] sm:$0xf]  ;;  %v3419_v4 = vld [vmem:[%s7173_s5 + $0x58] sm:$0xf] }
  0x99   : > { %v476_v18 = vpack.c.bf16 %v474_v9, %v474_v9  ;;  %v3579_v9 = vld [vmem:[%s7173_s5 + $0x198] sm:$0xf]  ;;  %v3412_v5 = vor.u32 %v4666_v0, %v3411_v63  ;;  %v4802_v62 = vld [vmem:[%s7175_s7 + $0x2ac] sm:$0xf0]  ;;  %v3828_v63 = vor.u32 %v4770_v60, %v3827_v58 }
  0x9a   : > { %v3580_v12 = vor.u32 %v4707_v10, %v3579_v9  ;;  %1002 = vmatpush.bf16.msrb.mxu2 %v3572_v7  ;;  %v4663_v7 = vld [vmem:[%s7173_s5 + $0x5c] sm:$0xf]  ;;  %v3420_v10 = vor.u32 %v4667_v6, %v3419_v4  ;;  %v3683_v4 = vld [vmem:[%s7175_s7 + $0x80] sm:$0xf]  ;;  %v4782_v58 = vld [vmem:[%s7175_s7 + $0x20c] sm:$0xf0] }
  0x9b   : > { %479 = vst.msk [vmem:[%s5259_s12] sm:$0xf] %vm478_vm3, %v476_v18  ;;  %v495_v50 = vunpack.c.l.b16 %v476_v18  ;;  %1016 = vmatpush.bf16.msrb.mxu3 %v3576_v11  ;;  %v4694_v18 = vld [vmem:[%s7173_s5 + $0x154] sm:$0xf]  ;;  %v3379_v11 = vld [vmem:[%s7173_s5 + $0x10] sm:$0xf]  ;;  %v3424_v14 = vor.u32 %v4663_v7, %v3421_v8 }
  0x9c   : > { %v471_v27 = vpop.f32.mrf.mxu0  ;;  %1030 = vmatpush.bf16.msra.mxu0 %v3580_v12  ;;  %v3544_v23 = vor.u32 %v4694_v18, %v3541_v20  ;;  %v4658_v12 = vld [vmem:[%s7173_s5 + $0x2c] sm:$0xf0]  ;;  %v4655_v18 = vld [vmem:[%s7173_s5 + $0x1c] sm:$0xf]  ;;  %v3811_v6 = vld [vmem:[%s7175_s7 + $0x180] sm:$0xf] }
  0x9d   : > { %v472_v32 = vadd.f32 %v4997_v54, %v471_v27  ;;  %v3376_v54 = vor.u32 %v4653_v47, %v3373_v48  ;;  %v3552_v27 = vor.u32 %v4695_v25, %v3549_v26  ;;  %v3480_v47 = vor.u32 %v4678_v42, %v3477_v44  ;;  %v4998_v25 = vld [vmem:[%s7172_s4] ss:$0 sm:$0xff]  ;;  %v4766_v8 = vld [vmem:[%s7175_s7 + $0x18c] sm:$0xf0] }
  0x9e   : > { %1003 = vmatpush.bf16.msrb.mxu2 %v3540_v19  ;;  %v3389_v19 = vld [vmem:[%s7173_s5 + $0x38] sm:$0xf0]  ;;  %v3380_v20 = vor.u32 %v4658_v12, %v3379_v11  ;;  %v3715_v44 = vld [vmem:[%s7175_s7 + $0xc0] sm:$0xf]  ;;  %v3812_v11 = vor.u32 %v4766_v8, %v3811_v6  ;;  %v4938_v6 = vld [vmem:[%s7175_s7 + $0x6ec] sm:$0xf0] }
  0x9f   : > { %v475_v36 = vmax.f32 %v472_v32, 0.0  ;;  %994 = vmatpush.bf16.msrb.mxu1 %v3376_v54  ;;  %1017 = vmatpush.bf16.msrb.mxu3 %v3544_v23  ;;  %v3509_v32 = vld [vmem:[%s7173_s5 + $0x130] sm:$0xf0]  ;;  %v3392_v23 = vor.u32 %v4655_v18, %v3389_v19  ;;  %v3795_v18 = vld [vmem:[%s7175_s7 + $0x160] sm:$0xf]  ;;  %v3668_v19 = vor.u32 %v4730_v17, %v3667_v16 }
  0xa0   : > { %1031 = vmatpush.bf16.msra.mxu0 %v3548_v24  ;;  %v3512_v35 = vor.u32 %v4686_v30, %v3509_v32  ;;  %v4670_v54 = vld [vmem:[%s7173_s5 + $0x94] sm:$0xf]  ;;  %v4746_v30 = vld [vmem:[%s7175_s7 + $0xec] sm:$0xf0] }
  0xa1   : > { %v477_v45 = vpack.c.bf16 %v475_v36, %v475_v36  ;;  %v3516_v36 = vor.u32 %v4691_v34, %v3515_v33  ;;  %v4778_v32 = vld [vmem:[%s7175_s7 + $0x1ec] sm:$0xf0]  ;;  %v3987_v33 = vld [vmem:[%s7175_s7 + $0x2e0] sm:$0xf]  ;;  %v3732_v40 = vor.u32 %v4746_v30, %v3731_v29 }
  0xa2   : > { %1004 = vmatpush.bf16.msrb.mxu2 %v3508_v31  ;;  %v3859_v31 = vld [vmem:[%s7175_s7 + $0x1e0] sm:$0xf]  ;;  %v4810_v34 = vld [vmem:[%s7175_s7 + $0x2ec] sm:$0xf0] }
  0xa3   : > { %480 = vst.msk [vmem:[%s5259_s12 + $0x4] sm:$0xf] %vm478_vm3, %v477_v45  ;;  %v496_v51 = vunpack.c.l.b16 %v477_v45  ;;  %1018 = vmatpush.bf16.msrb.mxu3 %v3512_v35  ;;  %v3483_v45 = vld [vmem:[%s7173_s5 + $0xd8] sm:$0xf]  ;;  %v3860_v41 = vor.u32 %v4778_v32, %v3859_v31  ;;  %v3988_v42 = vor.u32 %v4810_v34, %v3987_v33  ;;  %v4726_v29 = vld [vmem:[%s7175_s7 + $0x4c] sm:$0xf0] }
  0xa4   : > { %1032 = vmatpush.bf16.msra.mxu0 %v3516_v36  ;;  %v3484_v48 = vor.u32 %v4683_v46, %v3483_v45  ;;  %v4742_v45 = vld [vmem:[%s7175_s7 + $0xcc] sm:$0xf0]  ;;  %v3779_v31 = vld [vmem:[%s7175_s7 + $0x140] sm:$0xf] }
  0xa5   : > { %v497_v55 = vpack.c.b16 %v496_v51, %v495_v50  ;;  %v3485_v50 = vld [vmem:[%s7173_s5 + $0xf8] sm:$0xf0]  ;;  %v3443_v51 = vld [vmem:[%s7173_s5 + $0x90] sm:$0xf]  ;;  %v3716_v46 = vor.u32 %v4742_v45, %v3715_v44  ;;  %v3907_v33 = vld [vmem:[%s7175_s7 + $0x240] sm:$0xf] }
  0xa6   : > { %1005 = vmatpush.bf16.msrb.mxu2 %v3476_v43  ;;  %v3488_v52 = vor.u32 %v4679_v49, %v3485_v50  ;;  %v3444_v56 = vor.u32 %v4674_v53, %v3443_v51  ;;  %v4116_v43 = vor.u32 %v4842_v38, %v4115_v37  ;;  %v3971_v49 = vld [vmem:[%s7175_s7 + $0x2c0] sm:$0xf]  ;;  %v4806_v51 = vld [vmem:[%s7175_s7 + $0x2cc] sm:$0xf0] }
  0xa7   : > { %3360 = vmatmul.msk.bf16.vlgmr.msra.gmra.mxu1 %vm522_vm4, %v497_v55  ;;  %v3445_v55 = vld [vmem:[%s7173_s5 + $0xb0] sm:$0xf0]  ;;  %1019 = vmatpush.bf16.msrb.mxu3 %v3480_v47  ;;  %v3843_v47 = vld [vmem:[%s7175_s7 + $0x1c0] sm:$0xf]  ;;  %v4838_v53 = vld [vmem:[%s7175_s7 + $0x3cc] sm:$0xf0] }
  0xa8   : > { %1043 = vmatpush.bf16.msra.mxu1 %v3616_v3  ;;  %1033 = vmatpush.bf16.msra.mxu0 %v3484_v48  ;;  %v3448_v57 = vor.u32 %v4670_v54, %v3445_v55  ;;  %v3413_v3 = vld [vmem:[%s7173_s5 + $0x70] sm:$0xf0]  ;;  %v4774_v48 = vld [vmem:[%s7175_s7 + $0x1cc] sm:$0xf0]  ;;  %v3972_v54 = vor.u32 %v4806_v51, %v3971_v49  ;;  %v3891_v45 = vld [vmem:[%s7175_s7 + $0x220] sm:$0xf] }
  0xa9   : > { %v3416_v9 = vor.u32 %v4662_v2, %v3413_v3  ;;  %v3844_v50 = vor.u32 %v4774_v48, %v3843_v47  ;;  %v4834_v2 = vld [vmem:[%s7175_s7 + $0x3ac] sm:$0xf0]  ;;  %v4019_v49 = vld [vmem:[%s7175_s7 + $0x320] sm:$0xf] }
  0xaa   : > { %1006 = vmatpush.bf16.msrb.mxu2 %v3444_v56  ;;  %v3699_v56 = vld [vmem:[%s7175_s7 + $0xa0] sm:$0xf]  ;;  %v4758_v32 = vld [vmem:[%s7175_s7 + $0x14c] sm:$0xf0] }
  0xab   : > { %1020 = vmatpush.bf16.msrb.mxu3 %v3448_v57  ;;  %v4738_v57 = vld [vmem:[%s7175_s7 + $0xac] sm:$0xf0]  ;;  %v3780_v34 = vor.u32 %v4758_v32, %v3779_v31  ;;  %v4467_v31 = vld [vmem:[%s7175_s7 + $0x6a0] sm:$0xf] }
  0xac   : > { %1044 = vmatpush.bf16.msra.mxu1 %v3584_v15  ;;  %1034 = vmatpush.bf16.msra.mxu0 %v3452_v61  ;;  %v3381_v15 = vld [vmem:[%s7173_s5 + $0x30] sm:$0xf0]  ;;  %v3700_v59 = vor.u32 %v4738_v57, %v3699_v56  ;;  %v3955_v61 = vld [vmem:[%s7175_s7 + $0x2a0] sm:$0xf]  ;;  %v4822_v37 = vld [vmem:[%s7175_s7 + $0x34c] sm:$0xf0] }
  0xad   : > { %v3384_v21 = vor.u32 %v4654_v13, %v3381_v15  ;;  %v3956_v0 = vor.u32 %v4802_v62, %v3955_v61  ;;  %v4067_v13 = vld [vmem:[%s7175_s7 + $0x380] sm:$0xf]  ;;  %v4754_v44 = vld [vmem:[%s7175_s7 + $0x12c] sm:$0xf0] }
  0xae   : > { %1007 = vmatpush.bf16.msrb.mxu2 %v3412_v5  ;;  %v4734_v5 = vld [vmem:[%s7175_s7 + $0x8c] sm:$0xf0]  ;;  %v3875_v57 = vld [vmem:[%s7175_s7 + $0x200] sm:$0xf] }
  0xaf   : > { %1021 = vmatpush.bf16.msrb.mxu3 %v3416_v9  ;;  %v3684_v7 = vor.u32 %v4734_v5, %v3683_v4  ;;  %v3939_v9 = vld [vmem:[%s7175_s7 + $0x280] sm:$0xf]  ;;  %v4750_v56 = vld [vmem:[%s7175_s7 + $0x10c] sm:$0xf0]  ;;  %v3876_v60 = vor.u32 %v4782_v58, %v3875_v57 }
  0xb0   : > { %1045 = vmatpush.bf16.msra.mxu1 %v3552_v27  ;;  %1035 = vmatpush.bf16.msra.mxu0 %v3420_v10  ;;  %v4798_v10 = vld [vmem:[%s7175_s7 + $0x28c] sm:$0xf0]  ;;  %v4003_v61 = vld [vmem:[%s7175_s7 + $0x300] sm:$0xf] }
  0xb1   : > { %v3940_v12 = vor.u32 %v4798_v10, %v3939_v9  ;;  %v4814_v62 = vld [vmem:[%s7175_s7 + $0x30c] sm:$0xf0]  ;;  %v4499_v5 = vld [vmem:[%s7175_s7 + $0x6e0] sm:$0xf] }
  0xb2   : > { %1008 = vmatpush.bf16.msrb.mxu2 %v3380_v20  ;;  %v4762_v20 = vld [vmem:[%s7175_s7 + $0x16c] sm:$0xf0]  ;;  %v4500_v8 = vor.u32 %v4938_v6, %v4499_v5  ;;  %v4627_v9 = vld [vmem:[%s7175_s7 + $0x7e0] sm:$0xf] }
  0xb3   : > { %1022 = vmatpush.bf16.msrb.mxu3 %v3384_v21  ;;  %v3923_v21 = vld [vmem:[%s7175_s7 + $0x260] sm:$0xf]  ;;  %v4906_v4 = vld [vmem:[%s7175_s7 + $0x5ec] sm:$0xf0] }
  0xb4   : > { %1046 = vmatpush.bf16.msra.mxu1 %v3520_v39  ;;  %1036 = vmatpush.bf16.msra.mxu0 %v3388_v22  ;;  %v4794_v22 = vld [vmem:[%s7175_s7 + $0x26c] sm:$0xf0]  ;;  %v4179_v57 = vld [vmem:[%s7175_s7 + $0x460] sm:$0xf] }
  0xb5   : > { %v4970_v10 = vld [vmem:[%s7175_s7 + $0x7ec] sm:$0xf0]  ;;  %v4563_v5 = vld [vmem:[%s7175_s7 + $0x760] sm:$0xf] }
  0xb6   : > { %v4858_v58 = vld [vmem:[%s7175_s7 + $0x46c] sm:$0xf0] }
  0xb7   : > { %v4954_v6 = vld [vmem:[%s7175_s7 + $0x76c] sm:$0xf0] }
  0xb8   : > { %1047 = vmatpush.bf16.msra.mxu1 %v3488_v52  ;;  %v4099_v52 = vld [vmem:[%s7175_s7 + $0x3c0] sm:$0xf] }
  0xb9   : > { %v4100_v55 = vor.u32 %v4838_v53, %v4099_v52  ;;  %v3619_v52 = vld [vmem:[%s7175_s7] sm:$0xf]  ;;  %v4718_v53 = vld [vmem:[%s7175_s7 + $0xc] sm:$0xf0] }
  0xbc   : > { %1048 = vmatpush.bf16.msra.mxu1 %v3456_v1  ;;  %v4083_v1 = vld [vmem:[%s7175_s7 + $0x3a0] sm:$0xf] }
  0xbd   : > { %v4084_v3 = vor.u32 %v4834_v2, %v4083_v1  ;;  %v4874_v1 = vld [vmem:[%s7175_s7 + $0x4ec] sm:$0xf0]  ;;  %v4371_v2 = vld [vmem:[%s7175_s7 + $0x5e0] sm:$0xf] }
  0xc0   : > { %1049 = vmatpush.bf16.msra.mxu1 %v3424_v14  ;;  %v4830_v14 = vld [vmem:[%s7175_s7 + $0x38c] sm:$0xf0] }
  0xc1   : > { %v4068_v15 = vor.u32 %v4830_v14, %v4067_v13  ;;  %v4870_v13 = vld [vmem:[%s7175_s7 + $0x4cc] sm:$0xf0]  ;;  %v4355_v14 = vld [vmem:[%s7175_s7 + $0x5c0] sm:$0xf] }
  0xc4   : > { %1050 = vmatpush.bf16.msra.mxu1 %v3392_v23  ;;  %v3796_v23 = vor.u32 %v4762_v20, %v3795_v18  ;;  %v4483_v18 = vld [vmem:[%s7175_s7 + $0x6c0] sm:$0xf] }
 0x124   : > { %v535_v24 = vpop.f32.mrf.mxu1 }
 0x125   : > { %v536_v26 = vadd.f32 %v4998_v25, %v535_v24  ;;  %v3924_v24 = vor.u32 %v4794_v22, %v3923_v21  ;;  %v4611_v21 = vld [vmem:[%s7175_s7 + $0x7c0] sm:$0xf]  ;;  %v4966_v22 = vld [vmem:[%s7175_s7 + $0x7cc] sm:$0xf0] }
 0x127   : > { %v540_v35 = vmax.f32 %v536_v26, 0.0  ;;  %v4826_v26 = vld [vmem:[%s7175_s7 + $0x36c] sm:$0xf0] }
 0x12c   : > { %v537_v27 = vpop.f32.mrf.mxu1 }
 0x12d   : > { %v538_v28 = vadd.f32 %v4998_v25, %v537_v27  ;;  %v4051_v25 = vld [vmem:[%s7175_s7 + $0x360] sm:$0xf] }
 0x12e   : > { %v4052_v27 = vor.u32 %v4826_v26, %v4051_v25  ;;  %v4612_v25 = vor.u32 %v4966_v22, %v4611_v21  ;;  %v4211_v26 = vld [vmem:[%s7175_s7 + $0x4a0] sm:$0xf] }
 0x12f   : > { %v541_v36 = vmax.f32 %v538_v28, 0.0  ;;  %v3651_v28 = vld [vmem:[%s7175_s7 + $0x40] sm:$0xf] }
 0x130   : > { %v3652_v30 = vor.u32 %v4726_v29, %v3651_v28  ;;  %v4339_v29 = vld [vmem:[%s7175_s7 + $0x5a0] sm:$0xf] }
 0x131   : > { %v542_v39 = vpack.c.bf16 %v541_v36, %v540_v35  ;;  %v4790_v35 = vld [vmem:[%s7175_s7 + $0x24c] sm:$0xf0]  ;;  %v4035_v36 = vld [vmem:[%s7175_s7 + $0x340] sm:$0xf] }
 0x132   : > { %v3908_v38 = vor.u32 %v4790_v35, %v3907_v33  ;;  %v4930_v33 = vld [vmem:[%s7175_s7 + $0x6ac] sm:$0xf0] }
 0x133   : > { %953 = vmatmul.bf16.vlgmr.msra.gmra.mxu2 %v542_v39  ;;  %967 = vmatmul.bf16.vlgmr.msra.gmra.mxu3 %v542_v39  ;;  %v4962_v35 = vld [vmem:[%s7175_s7 + $0x7ac] sm:$0xf0] }
 0x134   : > { %981 = vmatmul.bf16.vlgmr.msrb.gmra.mxu0 %v542_v39  ;;  %995 = vmatmul.bf16.vlgmr.msrb.gmra.mxu1 %v542_v39 }
 0x135   : > { %2758 = vmatpush.bf16.msra.mxu2 %v3732_v40  ;;  %2771 = vmatpush.bf16.msra.mxu3 %v3860_v41  ;;  %v3635_v40 = vld [vmem:[%s7175_s7 + $0x20] sm:$0xf]  ;;  %v4722_v41 = vld [vmem:[%s7175_s7 + $0x2c] sm:$0xf0] }
 0x136   : > { %2784 = vmatpush.bf16.msrb.mxu0 %v3988_v42  ;;  %2797 = vmatpush.bf16.msrb.mxu1 %v4116_v43  ;;  %v3763_v42 = vld [vmem:[%s7175_s7 + $0x120] sm:$0xf]  ;;  %v3636_v43 = vor.u32 %v4722_v41, %v3635_v40  ;;  %v4862_v40 = vld [vmem:[%s7175_s7 + $0x48c] sm:$0xf0] }
 0x137   : > { %v3764_v47 = vor.u32 %v4754_v44, %v3763_v42  ;;  %v4323_v41 = vld [vmem:[%s7175_s7 + $0x580] sm:$0xf] }
 0x139   : > { %2759 = vmatpush.bf16.msra.mxu2 %v3716_v46  ;;  %2772 = vmatpush.bf16.msra.mxu3 %v3844_v50  ;;  %v4786_v46 = vld [vmem:[%s7175_s7 + $0x22c] sm:$0xf0] }
 0x13a   : > { %2785 = vmatpush.bf16.msrb.mxu0 %v3972_v54  ;;  %2798 = vmatpush.bf16.msrb.mxu1 %v4100_v55  ;;  %v3892_v48 = vor.u32 %v4786_v46, %v3891_v45  ;;  %v4818_v50 = vld [vmem:[%s7175_s7 + $0x32c] sm:$0xf0]  ;;  %v3747_v54 = vld [vmem:[%s7175_s7 + $0x100] sm:$0xf]  ;;  %v3620_v55 = vor.u32 %v4718_v53, %v3619_v52 }
 0x13b   : > { %v4020_v51 = vor.u32 %v4818_v50, %v4019_v49  ;;  %v4894_v45 = vld [vmem:[%s7175_s7 + $0x58c] sm:$0xf0]  ;;  %v4451_v46 = vld [vmem:[%s7175_s7 + $0x680] sm:$0xf] }
 0x13c   : > { %v4324_v49 = vor.u32 %v4894_v45, %v4323_v41  ;;  %v4579_v50 = vld [vmem:[%s7175_s7 + $0x780] sm:$0xf] }
 0x13d   : > { %2760 = vmatpush.bf16.msra.mxu2 %v3700_v59  ;;  %2773 = vmatpush.bf16.msra.mxu3 %v3828_v63  ;;  %v3748_v59 = vor.u32 %v4750_v56, %v3747_v54  ;;  %v4004_v63 = vor.u32 %v4814_v62, %v4003_v61  ;;  %v4180_v62 = vor.u32 %v4858_v58, %v4179_v57  ;;  %v4403_v45 = vld [vmem:[%s7175_s7 + $0x620] sm:$0xf] }
 0x13e   : > { %2786 = vmatpush.bf16.msrb.mxu0 %v3956_v0  ;;  %2799 = vmatpush.bf16.msrb.mxu1 %v4084_v3  ;;  %v4243_v0 = vld [vmem:[%s7175_s7 + $0x4e0] sm:$0xf] }
 0x13f   : > { %v4244_v3 = vor.u32 %v4874_v1, %v4243_v0  ;;  %v4435_v0 = vld [vmem:[%s7175_s7 + $0x660] sm:$0xf] }
 0x141   : > { %2761 = vmatpush.bf16.msra.mxu2 %v3684_v7  ;;  %2774 = vmatpush.bf16.msra.mxu3 %v3812_v11  ;;  %v4372_v7 = vor.u32 %v4906_v4, %v4371_v2  ;;  %v4227_v11 = vld [vmem:[%s7175_s7 + $0x4c0] sm:$0xf]  ;;  %v4922_v4 = vld [vmem:[%s7175_s7 + $0x66c] sm:$0xf0] }
 0x142   : > { %2787 = vmatpush.bf16.msrb.mxu0 %v3940_v12  ;;  %2800 = vmatpush.bf16.msrb.mxu1 %v4068_v15  ;;  %v4628_v12 = vor.u32 %v4970_v10, %v4627_v9  ;;  %v4902_v15 = vld [vmem:[%s7175_s7 + $0x5cc] sm:$0xf0]  ;;  %v4228_v16 = vor.u32 %v4870_v13, %v4227_v11  ;;  %v4163_v11 = vld [vmem:[%s7175_s7 + $0x440] sm:$0xf] }
 0x143   : > { %1009 = vmatmul.bf16.vlgmr.msrb.gmra.mxu2 %v542_v39  ;;  %1023 = vmatmul.bf16.vlgmr.msrb.gmra.mxu3 %v542_v39  ;;  %v4356_v17 = vor.u32 %v4902_v15, %v4355_v14  ;;  %v4291_v13 = vld [vmem:[%s7175_s7 + $0x540] sm:$0xf] }
 0x144   : > { %1037 = vmatmul.bf16.vlgmr.msra.gmra.mxu0 %v542_v39  ;;  %1051 = vmatmul.bf16.vlgmr.msra.gmra.mxu1 %v542_v39  ;;  %v4036_v39 = vor.u32 %v4822_v37, %v4035_v36  ;;  %v5790_v36 = vld [vmem:[%s7174_s6] sm:$0xff]  ;;  %v4468_v37 = vor.u32 %v4930_v33, %v4467_v31 }
 0x145   : > { %2762 = vmatpush.bf16.msra.mxu2 %v3668_v19  ;;  %2775 = vmatpush.bf16.msra.mxu3 %v3796_v23  ;;  %v4934_v19 = vld [vmem:[%s7175_s7 + $0x6cc] sm:$0xf0]  ;;  %v612_v52 = vperm.slane %v5790_v36, 3  ;;  %v609_v14 = vperm.slane %v5790_v36, 0  ;;  %v616_v57 = vperm.slane %v5790_v36, 7 }
 0x146   : > { %2788 = vmatpush.bf16.msrb.mxu0 %v3924_v24  ;;  %2801 = vmatpush.bf16.msrb.mxu1 %v4052_v27  ;;  %v4484_v20 = vor.u32 %v4934_v19, %v4483_v18  ;;  %v4866_v27 = vld [vmem:[%s7175_s7 + $0x4ac] sm:$0xf0] }
 0x147   : > { %v4212_v28 = vor.u32 %v4866_v27, %v4211_v26  ;;  %v4886_v19 = vld [vmem:[%s7175_s7 + $0x54c] sm:$0xf0] }
 0x149   : > { %2763 = vmatpush.bf16.msra.mxu2 %v3652_v30  ;;  %2776 = vmatpush.bf16.msra.mxu3 %v3780_v34  ;;  %v4898_v30 = vld [vmem:[%s7175_s7 + $0x5ac] sm:$0xf0]  ;;  %v4595_v34 = vld [vmem:[%s7175_s7 + $0x7a0] sm:$0xf] }
 0x14a   : > { %2789 = vmatpush.bf16.msrb.mxu0 %v3908_v38  ;;  %2802 = vmatpush.bf16.msrb.mxu1 %v4036_v39  ;;  %v4340_v32 = vor.u32 %v4898_v30, %v4339_v29  ;;  %v4596_v38 = vor.u32 %v4962_v35, %v4595_v34  ;;  %v4195_v39 = vld [vmem:[%s7175_s7 + $0x480] sm:$0xf]  ;;  %v4850_v35 = vld [vmem:[%s7175_s7 + $0x42c] sm:$0xf0] }
 0x14b   : > { %v4196_v44 = vor.u32 %v4862_v40, %v4195_v39  ;;  %v4147_v34 = vld [vmem:[%s7175_s7 + $0x420] sm:$0xf]  ;;  %v4882_v39 = vld [vmem:[%s7175_s7 + $0x52c] sm:$0xf0] }
 0x14d   : > { %2764 = vmatpush.bf16.msra.mxu2 %v3636_v43  ;;  %2777 = vmatpush.bf16.msra.mxu3 %v3764_v47  ;;  %v4926_v47 = vld [vmem:[%s7175_s7 + $0x68c] sm:$0xf0] }
 0x14e   : > { %2790 = vmatpush.bf16.msrb.mxu0 %v3892_v48  ;;  %2803 = vmatpush.bf16.msrb.mxu1 %v4020_v51  ;;  %v611_v48 = vperm.slane %v5790_v36, 2  ;;  %v4958_v51 = vld [vmem:[%s7175_s7 + $0x78c] sm:$0xf0]  ;;  %v4452_v53 = vor.u32 %v4926_v47, %v4451_v46 }
 0x14f   : > { %v4580_v54 = vor.u32 %v4958_v51, %v4579_v50  ;;  %v4131_v50 = vld [vmem:[%s7175_s7 + $0x400] sm:$0xf] }
 0x151   : > { %2765 = vmatpush.bf16.msra.mxu2 %v3620_v55  ;;  %2778 = vmatpush.bf16.msra.mxu3 %v3748_v59  ;;  %v4307_v59 = vld [vmem:[%s7175_s7 + $0x560] sm:$0xf] }
 0x152   : > { %2791 = vmatpush.bf16.msrb.mxu0 %v3876_v60  ;;  %2804 = vmatpush.bf16.msrb.mxu1 %v4004_v63  ;;  %v610_v60 = vperm.slane %v5790_v36, 1  ;;  %v4890_v63 = vld [vmem:[%s7175_s7 + $0x56c] sm:$0xf0] }
 0x155   : > { %2810 = vmatpush.bf16.msrb.mxu2 %v4244_v3  ;;  %2823 = vmatpush.bf16.msrb.mxu3 %v4372_v7  ;;  %v4308_v3 = vor.u32 %v4890_v63, %v4307_v59  ;;  %v4436_v7 = vor.u32 %v4922_v4, %v4435_v0 }
 0x156   : > { %2836 = vmatpush.bf16.msra.mxu0 %v4500_v8  ;;  %2849 = vmatpush.bf16.msra.mxu1 %v4628_v12  ;;  %v4564_v8 = vor.u32 %v4954_v6, %v4563_v5  ;;  %v4854_v12 = vld [vmem:[%s7175_s7 + $0x44c] sm:$0xf0] }
 0x157   : > { %v4164_v18 = vor.u32 %v4854_v12, %v4163_v11 }
 0x159   : > { %2811 = vmatpush.bf16.msrb.mxu2 %v4228_v16  ;;  %2824 = vmatpush.bf16.msrb.mxu3 %v4356_v17 }
 0x15a   : > { %2837 = vmatpush.bf16.msra.mxu0 %v4484_v20  ;;  %2850 = vmatpush.bf16.msra.mxu1 %v4612_v25  ;;  %v4419_v20 = vld [vmem:[%s7175_s7 + $0x640] sm:$0xf] }
 0x15b   : > { %v4547_v25 = vld [vmem:[%s7175_s7 + $0x740] sm:$0xf] }
 0x15d   : > { %2812 = vmatpush.bf16.msrb.mxu2 %v4212_v28  ;;  %2825 = vmatpush.bf16.msrb.mxu3 %v4340_v32  ;;  %v4950_v28 = vld [vmem:[%s7175_s7 + $0x74c] sm:$0xf0] }
 0x15e   : > { %2838 = vmatpush.bf16.msra.mxu0 %v4468_v37  ;;  %2851 = vmatpush.bf16.msra.mxu1 %v4596_v38  ;;  %v4548_v33 = vor.u32 %v4950_v28, %v4547_v25  ;;  %v4275_v38 = vld [vmem:[%s7175_s7 + $0x520] sm:$0xf] }
 0x161   : > { %2813 = vmatpush.bf16.msrb.mxu2 %v4196_v44  ;;  %2826 = vmatpush.bf16.msrb.mxu3 %v4324_v49  ;;  %v4276_v44 = vor.u32 %v4882_v39, %v4275_v38  ;;  %v4946_v49 = vld [vmem:[%s7175_s7 + $0x72c] sm:$0xf0] }
 0x162   : > { %2839 = vmatpush.bf16.msra.mxu0 %v4452_v53  ;;  %2852 = vmatpush.bf16.msra.mxu1 %v4580_v54  ;;  %v4846_v53 = vld [vmem:[%s7175_s7 + $0x40c] sm:$0xf0]  ;;  %v4259_v54 = vld [vmem:[%s7175_s7 + $0x500] sm:$0xf] }
 0x165   : > { %2814 = vmatpush.bf16.msrb.mxu2 %v4180_v62  ;;  %2827 = vmatpush.bf16.msrb.mxu3 %v4308_v3  ;;  %v4910_v62 = vld [vmem:[%s7175_s7 + $0x60c] sm:$0xf0] }
 0x166   : > { %2840 = vmatpush.bf16.msra.mxu0 %v4436_v7  ;;  %2853 = vmatpush.bf16.msra.mxu1 %v4564_v8  ;;  %v613_v8 = vperm.slane %v5790_v36, 4 }
 0x169   : > { %2815 = vmatpush.bf16.msrb.mxu2 %v4164_v18 }
 0x16a   : > { %2854 = vmatpush.bf16.msra.mxu1 %v4548_v33 }
 0x1b1   : > { %v982_v23 = vpop.f32.mrf.mxu0  ;;  %v996_v24 = vpop.f32.mrf.mxu1 }
 0x1b2   : > { %v983_v1 = vadd.f32 %v982_v23, %v611_v48  ;;  %v997_v9 = vadd.f32 %v996_v24, %v612_v52  ;;  %v4292_v23 = vor.u32 %v4886_v19, %v4291_v13  ;;  %v4918_v24 = vld [vmem:[%s7175_s7 + $0x64c] sm:$0xf0] }
 0x1b3   : > { %v4420_v27 = vor.u32 %v4918_v24, %v4419_v20 }
 0x1b4   : > { %2828 = vmatpush.bf16.msrb.mxu3 %v4292_v23 }
 0x1b5   : > { %2841 = vmatpush.bf16.msra.mxu0 %v4420_v27 }
 0x1b6   : > { %v5801_v42 = vpop.f32.mrf.mxu2  ;;  %v968_v43 = vpop.f32.mrf.mxu3 }
 0x1b7   : > { %v969_v15 = vadd.f32 %v968_v43, %v610_v60  ;;  %v955_v37 = vadd.f32 %v5801_v42, %v609_v14  ;;  %v4148_v43 = vor.u32 %v4850_v35, %v4147_v34  ;;  %v4914_v42 = vld [vmem:[%s7175_s7 + $0x62c] sm:$0xf0] }
 0x1b8   : > { %v4404_v47 = vor.u32 %v4914_v42, %v4403_v45  ;;  %2829 = vmatpush.bf16.msrb.mxu3 %v4276_v44 }
 0x1b9   : > { %v984_v55 = vpop.f32.mrf.mxu0  ;;  %v998_v56 = vpop.f32.mrf.mxu1  ;;  %2816 = vmatpush.bf16.msrb.mxu2 %v4148_v43 }
 0x1ba   : > { %v985_v61 = vadd.f32 %v984_v55, %v611_v48  ;;  %v999_v2 = vadd.f32 %v998_v56, %v612_v52  ;;  %v4531_v48 = vld [vmem:[%s7175_s7 + $0x720] sm:$0xf]  ;;  %v4878_v55 = vld [vmem:[%s7175_s7 + $0x50c] sm:$0xf0]  ;;  %v615_v56 = vperm.slane %v5790_v36, 6  ;;  %2842 = vmatpush.bf16.msra.mxu0 %v4404_v47 }
 0x1bb   : > { %v4532_v52 = vor.u32 %v4946_v49, %v4531_v48  ;;  %v4260_v0 = vor.u32 %v4878_v55, %v4259_v54 }
 0x1bc   : > { %v1071_v10 = vmax.f32 %v983_v1, %v985_v61  ;;  %v1078_v21 = vmax.f32 %v997_v9, %v999_v2  ;;  %v4387_v61 = vld [vmem:[%s7175_s7 + $0x600] sm:$0xf]  ;;  %v4942_v2 = vld [vmem:[%s7175_s7 + $0x70c] sm:$0xf0] }
 0x1bd   : > { %v4515_v1 = vld [vmem:[%s7175_s7 + $0x700] sm:$0xf]  ;;  %2855 = vmatpush.bf16.msra.mxu1 %v4532_v52  ;;  %v4388_v5 = vor.u32 %v4910_v62, %v4387_v61  ;;  %2830 = vmatpush.bf16.msrb.mxu3 %v4260_v0 }
 0x1be   : > { %v956_v16 = vpop.f32.mrf.mxu2  ;;  %v970_v17 = vpop.f32.mrf.mxu3  ;;  %v1072_v29 = vrot.slane %v1071_v10, 4  ;;  %v1079_v40 = vrot.slane %v1078_v21, 4  ;;  %v4516_v6 = vor.u32 %v4942_v2, %v4515_v1 }
 0x1bf   : > { %v971_v22 = vadd.f32 %v970_v17, %v610_v60  ;;  %v957_v26 = vadd.f32 %v956_v16, %v609_v14  ;;  %v4132_v60 = vor.u32 %v4846_v53, %v4131_v50  ;;  %v614_v16 = vperm.slane %v5790_v36, 5  ;;  %2843 = vmatpush.bf16.msra.mxu0 %v4388_v5 }
 0x1c0   : > { %v1073_v51 = vmax.f32 %v1071_v10, %v1072_v29  ;;  %v1080_v3 = vmax.f32 %v1078_v21, %v1079_v40 }
 0x1c1   : > { %v1064_v30 = vmax.f32 %v969_v15, %v971_v22  ;;  %v1038_v31 = vpop.f32.mrf.mxu0  ;;  %v1052_v32 = vpop.f32.mrf.mxu1  ;;  %v1057_v46 = vmax.f32 %v955_v37, %v957_v26  ;;  %2817 = vmatpush.bf16.msrb.mxu2 %v4132_v60  ;;  %2856 = vmatpush.bf16.msra.mxu1 %v4516_v6 }
 0x1c2   : > { %v1074_v7 = vrot.slane %v1073_v51, 2  ;;  %v1039_v11 = vadd.f32 %v1038_v31, %v615_v56  ;;  %v1053_v12 = vadd.f32 %v1052_v32, %v616_v57  ;;  %v1081_v17 = vrot.slane %v1080_v3, 2 }
 0x1c3   : > { %v1065_v41 = vrot.slane %v1064_v30, 4  ;;  %v1058_v4 = vrot.slane %v1057_v46, 4 }
 0x1c4   : > { %v1075_v21 = vmax.f32 %v1073_v51, %v1074_v7  ;;  %v1082_v31 = vmax.f32 %v1080_v3, %v1081_v17  ;;  %v4776_v17 = vld [vmem:[%s7175_s7 + $0x1e4] sm:$0xf] }
 0x1c5   : > { %v1066_v63 = vmax.f32 %v1064_v30, %v1065_v41  ;;  %v1059_v18 = vmax.f32 %v1057_v46, %v1058_v4 }
 0x1c6   : > { %v1010_v58 = vpop.f32.mrf.mxu2  ;;  %v1024_v59 = vpop.f32.mrf.mxu3  ;;  %v1076_v39 = vrot.slane %v1075_v21, 1  ;;  %v1083_v44 = vrot.slane %v1082_v31, 1 }
 0x1c7   : > { %v1067_v15 = vrot.slane %v1066_v63, 2  ;;  %v1011_v22 = vadd.f32 %v1010_v58, %v613_v8  ;;  %v1025_v28 = vadd.f32 %v1024_v59, %v614_v16  ;;  %v1060_v32 = vrot.slane %v1059_v18, 2 }
 0x1c8   : > { %v1077_v54 = vmax.f32 %v1075_v21, %v1076_v39  ;;  %v1084_v55 = vmax.f32 %v1082_v31, %v1083_v44  ;;  %v3989_v21 = vld [vmem:[%s7175_s7 + $0x2f0] sm:$0xf0] }
 0x1c9   : > { %v1040_v9 = vpop.f32.mrf.mxu0  ;;  %v1054_v10 = vpop.f32.mrf.mxu1  ;;  %v1068_v27 = vmax.f32 %v1066_v63, %v1067_v15  ;;  %v1061_v45 = vmax.f32 %v1059_v18, %v1060_v32  ;;  %v3861_v18 = vld [vmem:[%s7175_s7 + $0x1f0] sm:$0xf0] }
 0x1ca   : > { %v1041_v13 = vadd.f32 %v1040_v9, %v615_v56  ;;  %v1055_v14 = vadd.f32 %v1054_v10, %v616_v57  ;;  %v1126_v0 = vrot.slane %v1077_v54, 6  ;;  %v1127_v1 = vrot.slane %v1084_v55, 5  ;;  %v3845_v39 = vld [vmem:[%s7175_s7 + $0x1d0] sm:$0xf0]  ;;  %v4832_v54 = vld [vmem:[%s7175_s7 + $0x3a4] sm:$0xf] }
 0x1cb   : > { %v1069_v40 = vrot.slane %v1068_v27, 1  ;;  %v1062_v56 = vrot.slane %v1061_v45, 1  ;;  %v4101_v44 = vld [vmem:[%s7175_s7 + $0x3d0] sm:$0xf0] }
 0x1cc   : > { %v1099_v19 = vmax.f32 %v1039_v11, %v1041_v13  ;;  %v1106_v20 = vmax.f32 %v1053_v12, %v1055_v14  ;;  %v1135_v10 = vsel %vm1134_vm6, %v1126_v0, %v1127_v1  ;;  %v4744_v13 = vld [vmem:[%s7175_s7 + $0xe4] sm:$0xf]  ;;  %v4085_v55 = vld [vmem:[%s7175_s7 + $0x3b0] sm:$0xf0] }
 0x1cd   : > { %v1070_v51 = vmax.f32 %v1068_v27, %v1069_v40  ;;  %v1063_v2 = vmax.f32 %v1061_v45, %v1062_v56  ;;  %v4117_v27 = vld [vmem:[%s7175_s7 + $0x3f0] sm:$0xf0]  ;;  %v4804_v40 = vld [vmem:[%s7175_s7 + $0x2c4] sm:$0xf] }
 0x1ce   : > { %v1100_v23 = vrot.slane %v1099_v19, 4  ;;  %v1107_v24 = vrot.slane %v1106_v20, 4  ;;  %v1012_v25 = vpop.f32.mrf.mxu2  ;;  %v1026_v26 = vpop.f32.mrf.mxu3  ;;  %v4796_v0 = vld [vmem:[%s7175_s7 + $0x284] sm:$0xf]  ;;  %v3941_v1 = vld [vmem:[%s7175_s7 + $0x290] sm:$0xf0] }
 0x1cf   : > { %v1013_v29 = vadd.f32 %v1012_v25, %v613_v8  ;;  %v1027_v30 = vadd.f32 %v1026_v26, %v614_v16  ;;  %v1125_v61 = vrot.slane %v1070_v51, 7  ;;  %v3733_v16 = vld [vmem:[%s7175_s7 + $0xf0] sm:$0xf0] }
 0x1d0   : > { %v1101_v36 = vmax.f32 %v1099_v19, %v1100_v23  ;;  %v1108_v33 = vmax.f32 %v1106_v20, %v1107_v24  ;;  %v4808_v20 = vld [vmem:[%s7175_s7 + $0x2e4] sm:$0xf]  ;;  %v3829_v51 = vld [vmem:[%s7175_s7 + $0x1b0] sm:$0xf0] }
 0x1d1   : > { %v1085_v34 = vmax.f32 %v1011_v22, %v1013_v29  ;;  %v1092_v35 = vmax.f32 %v1025_v28, %v1027_v30  ;;  %v1133_v7 = vsel %vm1132_vm5, %v1063_v2, %v1125_v61  ;;  %v4840_v22 = vld [vmem:[%s7175_s7 + $0x3e4] sm:$0xf]  ;;  %v3736_v28 = vor.u32 %v4744_v13, %v3733_v16 }
 0x1d2   : > { %v1102_v37 = vrot.slane %v1101_v36, 2  ;;  %v1109_v38 = vrot.slane %v1108_v33, 2  ;;  %v1137_v14 = vsel %vm1136_vm7, %v1133_v7, %v1135_v10  ;;  %v3864_v29 = vor.u32 %v4776_v17, %v3861_v18  ;;  %v4828_v2 = vld [vmem:[%s7175_s7 + $0x384] sm:$0xf]  ;;  %v3925_v17 = vld [vmem:[%s7175_s7 + $0x270] sm:$0xf0] }
 0x1d3   : > { %v1086_v41 = vrot.slane %v1085_v34, 4  ;;  %v1093_v43 = vrot.slane %v1092_v35, 4  ;;  %v4088_v61 = vor.u32 %v4832_v54, %v4085_v55  ;;  %v4760_v10 = vld [vmem:[%s7175_s7 + $0x164] sm:$0xf]  ;;  %v3621_v55 = vld [vmem:[%s7175_s7 + $0x10] sm:$0xf0] }
 0x1d4   : > { %v1103_v42 = vmax.f32 %v1101_v36, %v1102_v37  ;;  %v1110_v46 = vmax.f32 %v1108_v33, %v1109_v38  ;;  %v4740_v33 = vld [vmem:[%s7175_s7 + $0xc4] sm:$0xf]  ;;  %v4120_v37 = vor.u32 %v4840_v22, %v4117_v27 }
 0x1d5   : > { %v1087_v47 = vmax.f32 %v1085_v34, %v1086_v41  ;;  %v1094_v48 = vmax.f32 %v1092_v35, %v1093_v43  ;;  %v3717_v34 = vld [vmem:[%s7175_s7 + $0xd0] sm:$0xf0]  ;;  %v3992_v35 = vor.u32 %v4808_v20, %v3989_v21  ;;  %v4772_v38 = vld [vmem:[%s7175_s7 + $0x1c4] sm:$0xf] }
 0x1d6   : > { %v1104_v49 = vrot.slane %v1103_v42, 1  ;;  %v1111_v50 = vrot.slane %v1110_v46, 1  ;;  %v3973_v41 = vld [vmem:[%s7175_s7 + $0x2d0] sm:$0xf0]  ;;  %v4836_v43 = vld [vmem:[%s7175_s7 + $0x3c4] sm:$0xf]  ;;  %v3720_v45 = vor.u32 %v4740_v33, %v3717_v34 }
 0x1d7   : > { %v1088_v52 = vrot.slane %v1087_v47, 2  ;;  %v1095_v53 = vrot.slane %v1094_v48, 2  ;;  %v4792_v16 = vld [vmem:[%s7175_s7 + $0x264] sm:$0xf]  ;;  %v4053_v20 = vld [vmem:[%s7175_s7 + $0x370] sm:$0xf0] }
 0x1d8   : > { %v1105_v57 = vmax.f32 %v1103_v42, %v1104_v49  ;;  %v1112_v58 = vmax.f32 %v1110_v46, %v1111_v50  ;;  %v3848_v42 = vor.u32 %v4772_v38, %v3845_v39  ;;  %v4736_v46 = vld [vmem:[%s7175_s7 + $0xa4] sm:$0xf]  ;;  %v4104_v49 = vor.u32 %v4836_v43, %v4101_v44  ;;  %v3781_v34 = vld [vmem:[%s7175_s7 + $0x150] sm:$0xf0] }
 0x1d9   : > { %v1089_v59 = vmax.f32 %v1087_v47, %v1088_v52  ;;  %v1096_v60 = vmax.f32 %v1094_v48, %v1095_v53  ;;  %v3701_v47 = vld [vmem:[%s7175_s7 + $0xb0] sm:$0xf0]  ;;  %v3976_v48 = vor.u32 %v4804_v40, %v3973_v41  ;;  %v4768_v50 = vld [vmem:[%s7175_s7 + $0x1a4] sm:$0xf] }
 0x1da   : > { %v1130_v3 = vrot.slane %v1105_v57, 2  ;;  %v1131_v4 = vrot.slane %v1112_v58, 1  ;;  %v4800_v52 = vld [vmem:[%s7175_s7 + $0x2a4] sm:$0xf]  ;;  %v3957_v53 = vld [vmem:[%s7175_s7 + $0x2b0] sm:$0xf0]  ;;  %v3704_v56 = vor.u32 %v4736_v46, %v3701_v47  ;;  %v3832_v57 = vor.u32 %v4768_v50, %v3829_v51 }
 0x1db   : > { %v1090_v62 = vrot.slane %v1089_v59, 1  ;;  %v1097_v63 = vrot.slane %v1096_v60, 1  ;;  %v4732_v58 = vld [vmem:[%s7175_s7 + $0x84] sm:$0xf]  ;;  %v4037_v39 = vld [vmem:[%s7175_s7 + $0x350] sm:$0xf0] }
 0x1dc   : > { %v1141_v11 = vsel %vm1140_vm8, %v1130_v3, %v1131_v4  ;;  %v4069_v3 = vld [vmem:[%s7175_s7 + $0x390] sm:$0xf0]  ;;  %v4728_v4 = vld [vmem:[%s7175_s7 + $0x64] sm:$0xf] }
 0x1dd   : > { %v1091_v5 = vmax.f32 %v1089_v59, %v1090_v62  ;;  %v1098_v6 = vmax.f32 %v1096_v60, %v1097_v63  ;;  %v3685_v59 = vld [vmem:[%s7175_s7 + $0x90] sm:$0xf0]  ;;  %v3960_v60 = vor.u32 %v4800_v52, %v3957_v53  ;;  %v4764_v62 = vld [vmem:[%s7175_s7 + $0x184] sm:$0xf]  ;;  %v4072_v13 = vor.u32 %v4828_v2, %v4069_v3 }
 0x1de   : > { %v3813_v63 = vld [vmem:[%s7175_s7 + $0x190] sm:$0xf0]  ;;  %v4824_v18 = vld [vmem:[%s7175_s7 + $0x364] sm:$0xf] }
 0x1df   : > { %v1128_v8 = vrot.slane %v1091_v5, 4  ;;  %v1129_v9 = vrot.slane %v1098_v6, 3  ;;  %v3669_v5 = vld [vmem:[%s7175_s7 + $0x70] sm:$0xf0]  ;;  %v3688_v6 = vor.u32 %v4732_v58, %v3685_v59  ;;  %v3816_v7 = vor.u32 %v4764_v62, %v3813_v63  ;;  %v4756_v33 = vld [vmem:[%s7175_s7 + $0x144] sm:$0xf] }
 0x1e0   : > { %v3672_v21 = vor.u32 %v4728_v4, %v3669_v5  ;;  %v4820_v38 = vld [vmem:[%s7175_s7 + $0x344] sm:$0xf]  ;;  %v3784_v41 = vor.u32 %v4756_v33, %v3781_v34  ;;  %v3637_v44 = vld [vmem:[%s7175_s7 + $0x30] sm:$0xf0] }
 0x1e1   : > { %v1139_v12 = vsel %vm1138_vm9, %v1128_v8, %v1129_v9  ;;  %v4720_v43 = vld [vmem:[%s7175_s7 + $0x24] sm:$0xf]  ;;  %v3765_v47 = vld [vmem:[%s7175_s7 + $0x130] sm:$0xf0] }
 0x1e2   : > { %v1143_v15 = vsel %vm1142_vm10, %v1139_v12, %v1141_v11  ;;  %v3797_v11 = vld [vmem:[%s7175_s7 + $0x170] sm:$0xf0]  ;;  %v3944_v12 = vor.u32 %v4796_v0, %v3941_v1  ;;  %v4752_v46 = vld [vmem:[%s7175_s7 + $0x124] sm:$0xf]  ;;  %v3640_v53 = vor.u32 %v4720_v43, %v3637_v44 }
 0x1e3   : > { %v5939_v19 = vsel %vm453_vm0, %v1137_v14, %v1143_v15  ;;  %v3800_v22 = vor.u32 %v4760_v10, %v3797_v11  ;;  %v4816_v50 = vld [vmem:[%s7175_s7 + $0x324] sm:$0xf]  ;;  %v4021_v51 = vld [vmem:[%s7175_s7 + $0x330] sm:$0xf0]  ;;  %v3768_v54 = vor.u32 %v4752_v46, %v3765_v47 }
 0x1e4   : > { %v1188_v23 = vperm.slane %v5939_v19, 0  ;;  %v1189_v24 = vperm.slane %v5939_v19, 1  ;;  %v1190_v25 = vperm.slane %v5939_v19, 2  ;;  %v1191_v26 = vperm.slane %v5939_v19, 3  ;;  %v4716_v52 = vld [vmem:[%s7175_s7 + $0x4] sm:$0xf] }
 0x1e5   : > { %v1192_v8 = vperm.slane %v5939_v19, 4  ;;  %v1193_v9 = vperm.slane %v5939_v19, 5  ;;  %v1194_v14 = vperm.slane %v5939_v19, 6  ;;  %v1195_v15 = vperm.slane %v5939_v19, 7  ;;  %v4812_v62 = vld [vmem:[%s7175_s7 + $0x304] sm:$0xf] }
 0x1e6   : > { %v5957_v30 = vpack.c.bf16 %v1188_v23, %v1188_v23  ;;  %v5959_v31 = vpack.c.bf16 %v1189_v24, %v1189_v24  ;;  %v5961_v32 = vpack.c.bf16 %v1190_v25, %v1190_v25  ;;  %v5963_v36 = vpack.c.bf16 %v1191_v26, %v1191_v26  ;;  %v4724_v25 = vld [vmem:[%s7175_s7 + $0x44] sm:$0xf]  ;;  %v3653_v26 = vld [vmem:[%s7175_s7 + $0x50] sm:$0xf0] }
 0x1e7   : > { %v6069_v19 = vpack.c.bf16 %v1192_v8, %v1192_v8  ;;  %v6071_v23 = vpack.c.bf16 %v1193_v9, %v1193_v9  ;;  %v3928_v24 = vor.u32 %v4792_v16, %v3925_v17  ;;  %v6079_v27 = vpack.c.bf16 %v1194_v14, %v1194_v14  ;;  %v4005_v63 = vld [vmem:[%s7175_s7 + $0x310] sm:$0xf0]  ;;  %v4872_v0 = vld [vmem:[%s7175_s7 + $0x4e4] sm:$0xf] }
 0x1e8   : > { %2766 = vmatmul.bf16.vlgmr.msra.gmra.mxu2 %v5957_v30  ;;  %2779 = vmatmul.bf16.vlgmr.msra.gmra.mxu3 %v5959_v31  ;;  %v3656_v40 = vor.u32 %v4724_v25, %v3653_v26  ;;  %v4024_v59 = vor.u32 %v4816_v50, %v4021_v51  ;;  %v4245_v1 = vld [vmem:[%s7175_s7 + $0x4f0] sm:$0xf0]  ;;  %v4904_v2 = vld [vmem:[%s7175_s7 + $0x5e4] sm:$0xf]  ;;  %v3624_v5 = vor.u32 %v4716_v52, %v3621_v55 }
 0x1e9   : > { %2792 = vmatmul.bf16.vlgmr.msrb.gmra.mxu0 %v5961_v32  ;;  %2805 = vmatmul.bf16.vlgmr.msrb.gmra.mxu1 %v5963_v36  ;;  %v4373_v3 = vld [vmem:[%s7175_s7 + $0x5f0] sm:$0xf0]  ;;  %v4936_v4 = vld [vmem:[%s7175_s7 + $0x6e4] sm:$0xf]  ;;  %v4008_v11 = vor.u32 %v4812_v62, %v4005_v63 }
 0x1ea   : > { %2862 = vmatpush.bf16.msra.mxu2 %v3736_v28  ;;  %2875 = vmatpush.bf16.msra.mxu3 %v3864_v29  ;;  %v6081_v28 = vpack.c.bf16 %v1195_v15, %v1195_v15  ;;  %v4056_v29 = vor.u32 %v4824_v18, %v4053_v20  ;;  %v4968_v8 = vld [vmem:[%s7175_s7 + $0x7e4] sm:$0xf]  ;;  %v4629_v9 = vld [vmem:[%s7175_s7 + $0x7f0] sm:$0xf0] }
 0x1eb   : > { %2888 = vmatpush.bf16.msrb.mxu0 %v3992_v35  ;;  %2901 = vmatpush.bf16.msrb.mxu1 %v4120_v37  ;;  %v4788_v35 = vld [vmem:[%s7175_s7 + $0x244] sm:$0xf]  ;;  %v3909_v37 = vld [vmem:[%s7175_s7 + $0x250] sm:$0xf0]  ;;  %v4632_v17 = vor.u32 %v4968_v8, %v4629_v9 }
 0x1ec   : > { %v4868_v14 = vld [vmem:[%s7175_s7 + $0x4c4] sm:$0xf]  ;;  %v4229_v15 = vld [vmem:[%s7175_s7 + $0x4d0] sm:$0xf0] }
 0x1ed   : > { %v4900_v18 = vld [vmem:[%s7175_s7 + $0x5c4] sm:$0xf]  ;;  %v4357_v20 = vld [vmem:[%s7175_s7 + $0x5d0] sm:$0xf0]  ;;  %v4232_v26 = vor.u32 %v4868_v14, %v4229_v15 }
 0x1ee   : > { %2863 = vmatpush.bf16.msra.mxu2 %v3720_v45  ;;  %2876 = vmatpush.bf16.msra.mxu3 %v3848_v42  ;;  %v3912_v45 = vor.u32 %v4788_v35, %v3909_v37  ;;  %v4040_v42 = vor.u32 %v4820_v38, %v4037_v39  ;;  %v4613_v25 = vld [vmem:[%s7175_s7 + $0x7d0] sm:$0xf0]  ;;  %v4864_v33 = vld [vmem:[%s7175_s7 + $0x4a4] sm:$0xf] }
 0x1ef   : > { %2889 = vmatpush.bf16.msrb.mxu0 %v3976_v48  ;;  %2902 = vmatpush.bf16.msrb.mxu1 %v4104_v49  ;;  %v4784_v48 = vld [vmem:[%s7175_s7 + $0x224] sm:$0xf]  ;;  %v3893_v49 = vld [vmem:[%s7175_s7 + $0x230] sm:$0xf0] }
 0x1f0   : > { %v3896_v58 = vor.u32 %v4784_v48, %v3893_v49  ;;  %v4213_v34 = vld [vmem:[%s7175_s7 + $0x4b0] sm:$0xf0]  ;;  %v4896_v38 = vld [vmem:[%s7175_s7 + $0x5a4] sm:$0xf] }
 0x1f1   : > { %v4341_v39 = vld [vmem:[%s7175_s7 + $0x5b0] sm:$0xf0]  ;;  %v4960_v43 = vld [vmem:[%s7175_s7 + $0x7a4] sm:$0xf] }
 0x1f2   : > { %2864 = vmatpush.bf16.msra.mxu2 %v3704_v56  ;;  %2877 = vmatpush.bf16.msra.mxu3 %v3832_v57  ;;  %v4748_v56 = vld [vmem:[%s7175_s7 + $0x104] sm:$0xf]  ;;  %v3749_v57 = vld [vmem:[%s7175_s7 + $0x110] sm:$0xf0] }
 0x1f3   : > { %2890 = vmatpush.bf16.msrb.mxu0 %v3960_v60  ;;  %2903 = vmatpush.bf16.msrb.mxu1 %v4088_v61  ;;  %v4780_v60 = vld [vmem:[%s7175_s7 + $0x204] sm:$0xf]  ;;  %v3877_v61 = vld [vmem:[%s7175_s7 + $0x210] sm:$0xf0] }
 0x1f4   : > { %v3880_v10 = vor.u32 %v4780_v60, %v3877_v61  ;;  %v4597_v44 = vld [vmem:[%s7175_s7 + $0x7b0] sm:$0xf0]  ;;  %v4860_v46 = vld [vmem:[%s7175_s7 + $0x484] sm:$0xf] }
 0x1f5   : > { %v4197_v47 = vld [vmem:[%s7175_s7 + $0x490] sm:$0xf0]  ;;  %v4600_v49 = vor.u32 %v4960_v43, %v4597_v44  ;;  %v4892_v50 = vld [vmem:[%s7175_s7 + $0x584] sm:$0xf] }
 0x1f6   : > { %2865 = vmatpush.bf16.msra.mxu2 %v3688_v6  ;;  %2878 = vmatpush.bf16.msra.mxu3 %v3816_v7  ;;  %v3752_v6 = vor.u32 %v4748_v56, %v3749_v57  ;;  %v4501_v7 = vld [vmem:[%s7175_s7 + $0x6f0] sm:$0xf0]  ;;  %v4924_v52 = vld [vmem:[%s7175_s7 + $0x684] sm:$0xf]  ;;  %v4200_v56 = vor.u32 %v4860_v46, %v4197_v47 }
 0x1f7   : > { %2891 = vmatpush.bf16.msrb.mxu0 %v3944_v12  ;;  %2904 = vmatpush.bf16.msrb.mxu1 %v4072_v13  ;;  %v4248_v12 = vor.u32 %v4872_v0, %v4245_v1  ;;  %v4376_v13 = vor.u32 %v4904_v2, %v4373_v3  ;;  %v4504_v16 = vor.u32 %v4936_v4, %v4501_v7  ;;  %v4325_v51 = vld [vmem:[%s7175_s7 + $0x590] sm:$0xf0]  ;;  %v4888_v62 = vld [vmem:[%s7175_s7 + $0x564] sm:$0xf] }
 0x1f8   : > { %2818 = vmatmul.bf16.vlgmr.msrb.gmra.mxu2 %v6069_v19  ;;  %2831 = vmatmul.bf16.vlgmr.msrb.gmra.mxu3 %v6071_v23  ;;  %v4581_v55 = vld [vmem:[%s7175_s7 + $0x790] sm:$0xf0]  ;;  %v4328_v57 = vor.u32 %v4892_v50, %v4325_v51  ;;  %v4920_v0 = vld [vmem:[%s7175_s7 + $0x664] sm:$0xf]  ;;  %v3867_v50 = vld [vmem:[%s7175_s7 + $0x1e8] sm:$0xf] }
 0x1f9   : > { %2844 = vmatmul.bf16.vlgmr.msra.gmra.mxu0 %v6079_v27  ;;  %2857 = vmatmul.bf16.vlgmr.msra.gmra.mxu1 %v6081_v28  ;;  %v4309_v63 = vld [vmem:[%s7175_s7 + $0x570] sm:$0xf0]  ;;  %v4952_v2 = vld [vmem:[%s7175_s7 + $0x764] sm:$0xf]  ;;  %v4779_v51 = vld [vmem:[%s7175_s7 + $0x1f4] sm:$0xf0] }
 0x1fa   : > { %2866 = vmatpush.bf16.msra.mxu2 %v3672_v21  ;;  %2879 = vmatpush.bf16.msra.mxu3 %v3800_v22  ;;  %v4932_v21 = vld [vmem:[%s7175_s7 + $0x6c4] sm:$0xf]  ;;  %v4485_v22 = vld [vmem:[%s7175_s7 + $0x6d0] sm:$0xf0] }
 0x1fb   : > { %2892 = vmatpush.bf16.msrb.mxu0 %v3928_v24  ;;  %2905 = vmatpush.bf16.msrb.mxu1 %v4056_v29  ;;  %v4964_v24 = vld [vmem:[%s7175_s7 + $0x7c4] sm:$0xf]  ;;  %v4360_v29 = vor.u32 %v4900_v18, %v4357_v20  ;;  %v4488_v35 = vor.u32 %v4932_v21, %v4485_v22  ;;  %v4437_v1 = vld [vmem:[%s7175_s7 + $0x670] sm:$0xf0] }
 0x1fc   : > { %v4616_v37 = vor.u32 %v4964_v24, %v4613_v25  ;;  %v4565_v3 = vld [vmem:[%s7175_s7 + $0x770] sm:$0xf0]  ;;  %v4440_v8 = vor.u32 %v4920_v0, %v4437_v1  ;;  %v4948_v14 = vld [vmem:[%s7175_s7 + $0x744] sm:$0xf] }
 0x1fd   : > { %v4165_v7 = vld [vmem:[%s7175_s7 + $0x450] sm:$0xf0]  ;;  %v4568_v9 = vor.u32 %v4952_v2, %v4565_v3  ;;  %v4848_v18 = vld [vmem:[%s7175_s7 + $0x424] sm:$0xf]  ;;  %v3851_v2 = vld [vmem:[%s7175_s7 + $0x1c8] sm:$0xf] }
 0x1fe   : > { %2867 = vmatpush.bf16.msra.mxu2 %v3656_v40  ;;  %2880 = vmatpush.bf16.msra.mxu3 %v3784_v41  ;;  %v4928_v40 = vld [vmem:[%s7175_s7 + $0x6a4] sm:$0xf]  ;;  %v4469_v41 = vld [vmem:[%s7175_s7 + $0x6b0] sm:$0xf0]  ;;  %v4775_v3 = vld [vmem:[%s7175_s7 + $0x1d4] sm:$0xf0] }
 0x1ff   : > { %2893 = vmatpush.bf16.msrb.mxu0 %v3912_v45  ;;  %2906 = vmatpush.bf16.msrb.mxu1 %v4040_v42  ;;  %v4216_v45 = vor.u32 %v4864_v33, %v4213_v34  ;;  %v4344_v42 = vor.u32 %v4896_v38, %v4341_v39  ;;  %v4472_v48 = vor.u32 %v4928_v40, %v4469_v41  ;;  %v4549_v15 = vld [vmem:[%s7175_s7 + $0x750] sm:$0xf0]  ;;  %v4880_v24 = vld [vmem:[%s7175_s7 + $0x524] sm:$0xf] }
 0x200   : > { %v4149_v20 = vld [vmem:[%s7175_s7 + $0x430] sm:$0xf0]  ;;  %v4552_v22 = vor.u32 %v4948_v14, %v4549_v15  ;;  %v4944_v33 = vld [vmem:[%s7175_s7 + $0x724] sm:$0xf]  ;;  %v3835_v14 = vld [vmem:[%s7175_s7 + $0x1a8] sm:$0xf] }
 0x201   : > { %v4277_v25 = vld [vmem:[%s7175_s7 + $0x530] sm:$0xf0]  ;;  %v4876_v40 = vld [vmem:[%s7175_s7 + $0x504] sm:$0xf]  ;;  %v4771_v15 = vld [vmem:[%s7175_s7 + $0x1b4] sm:$0xf0] }
 0x202   : > { %2868 = vmatpush.bf16.msra.mxu2 %v3640_v53  ;;  %2881 = vmatpush.bf16.msra.mxu3 %v3768_v54  ;;  %v4453_v53 = vld [vmem:[%s7175_s7 + $0x690] sm:$0xf0]  ;;  %v4956_v54 = vld [vmem:[%s7175_s7 + $0x784] sm:$0xf]  ;;  %v4280_v38 = vor.u32 %v4880_v24, %v4277_v25  ;;  %v3691_v24 = vld [vmem:[%s7175_s7 + $0x88] sm:$0xf] }
 0x203   : > { %2894 = vmatpush.bf16.msrb.mxu0 %v3896_v58  ;;  %2907 = vmatpush.bf16.msrb.mxu1 %v4024_v59  ;;  %v4856_v58 = vld [vmem:[%s7175_s7 + $0x464] sm:$0xf]  ;;  %v4181_v59 = vld [vmem:[%s7175_s7 + $0x470] sm:$0xf0]  ;;  %v4456_v60 = vor.u32 %v4924_v52, %v4453_v53  ;;  %v4584_v61 = vor.u32 %v4956_v54, %v4581_v55  ;;  %v3995_v52 = vld [vmem:[%s7175_s7 + $0x2e8] sm:$0xf] }
 0x204   : > { %v4184_v4 = vor.u32 %v4856_v58, %v4181_v59  ;;  %v4533_v34 = vld [vmem:[%s7175_s7 + $0x730] sm:$0xf0]  ;;  %v4940_v46 = vld [vmem:[%s7175_s7 + $0x704] sm:$0xf]  ;;  %v4811_v55 = vld [vmem:[%s7175_s7 + $0x2f4] sm:$0xf0] }
 0x205   : > { %v4133_v39 = vld [vmem:[%s7175_s7 + $0x410] sm:$0xf0]  ;;  %v4536_v44 = vor.u32 %v4944_v33, %v4533_v34  ;;  %v3996_v0 = vor.u32 %v4811_v55, %v3995_v52  ;;  %v4735_v25 = vld [vmem:[%s7175_s7 + $0x94] sm:$0xf0]  ;;  %v3819_v33 = vld [vmem:[%s7175_s7 + $0x188] sm:$0xf] }
 0x206   : > { %2869 = vmatpush.bf16.msra.mxu2 %v3624_v5  ;;  %2882 = vmatpush.bf16.msra.mxu3 %v3752_v6  ;;  %v4312_v5 = vor.u32 %v4888_v62, %v4309_v63  ;;  %v4852_v6 = vld [vmem:[%s7175_s7 + $0x444] sm:$0xf]  ;;  %v4261_v41 = vld [vmem:[%s7175_s7 + $0x510] sm:$0xf0]  ;;  %v3723_v62 = vld [vmem:[%s7175_s7 + $0xc8] sm:$0xf] }
 0x207   : > { %2895 = vmatpush.bf16.msrb.mxu0 %v3880_v10  ;;  %2908 = vmatpush.bf16.msrb.mxu1 %v4008_v11  ;;  %v4884_v10 = vld [vmem:[%s7175_s7 + $0x544] sm:$0xf]  ;;  %v4293_v11 = vld [vmem:[%s7175_s7 + $0x550] sm:$0xf0]  ;;  %v4264_v54 = vor.u32 %v4876_v40, %v4261_v41  ;;  %v4743_v63 = vld [vmem:[%s7175_s7 + $0xd4] sm:$0xf0]  ;;  %v3692_v40 = vor.u32 %v4735_v25, %v3691_v24 }
 0x208   : > { %v4517_v47 = vld [vmem:[%s7175_s7 + $0x710] sm:$0xf0]  ;;  %v4767_v34 = vld [vmem:[%s7175_s7 + $0x194] sm:$0xf0]  ;;  %v4011_v24 = vld [vmem:[%s7175_s7 + $0x308] sm:$0xf] }
 0x209   : > { %2870 = vmatmul.bf16.vlgmr.msra.gmra.mxu2 %v5957_v30  ;;  %2883 = vmatmul.bf16.vlgmr.msra.gmra.mxu3 %v5959_v31  ;;  %v4520_v59 = vor.u32 %v4940_v46, %v4517_v47  ;;  %v3820_v41 = vor.u32 %v4767_v34, %v3819_v33  ;;  %v3803_v46 = vld [vmem:[%s7175_s7 + $0x168] sm:$0xf]  ;;  %v4763_v47 = vld [vmem:[%s7175_s7 + $0x174] sm:$0xf0] }
 0x20a   : > { %2914 = vmatpush.bf16.msrb.mxu2 %v4248_v12  ;;  %2927 = vmatpush.bf16.msrb.mxu3 %v4376_v13  ;;  %v4916_v12 = vld [vmem:[%s7175_s7 + $0x644] sm:$0xf]  ;;  %v4421_v13 = vld [vmem:[%s7175_s7 + $0x650] sm:$0xf0]  ;;  %v4727_v55 = vld [vmem:[%s7175_s7 + $0x54] sm:$0xf0] }
 0x20b   : > { %2940 = vmatpush.bf16.msra.mxu0 %v4504_v16  ;;  %2953 = vmatpush.bf16.msra.mxu1 %v4632_v17  ;;  %v4168_v16 = vor.u32 %v4852_v6, %v4165_v7  ;;  %v4296_v17 = vor.u32 %v4884_v10, %v4293_v11  ;;  %v4424_v21 = vor.u32 %v4916_v12, %v4421_v13  ;;  %v4107_v6 = vld [vmem:[%s7175_s7 + $0x3c8] sm:$0xf]  ;;  %v4839_v7 = vld [vmem:[%s7175_s7 + $0x3d4] sm:$0xf0] }
 0x20c   : > { %2896 = vmatmul.bf16.vlgmr.msrb.gmra.mxu0 %v5961_v32  ;;  %2909 = vmatmul.bf16.vlgmr.msrb.gmra.mxu1 %v5963_v36  ;;  %v3707_v10 = vld [vmem:[%s7175_s7 + $0xa8] sm:$0xf]  ;;  %v4739_v11 = vld [vmem:[%s7175_s7 + $0xb4] sm:$0xf0]  ;;  %v4108_v13 = vor.u32 %v4839_v7, %v4107_v6 }
 0x20d   : > { %v3771_v6 = vld [vmem:[%s7175_s7 + $0x128] sm:$0xf]  ;;  %v4755_v7 = vld [vmem:[%s7175_s7 + $0x134] sm:$0xf0] }
 0x20e   : > { %2915 = vmatpush.bf16.msrb.mxu2 %v4232_v26  ;;  %2928 = vmatpush.bf16.msrb.mxu3 %v4360_v29  ;;  %v4912_v26 = vld [vmem:[%s7175_s7 + $0x624] sm:$0xf]  ;;  %v4405_v29 = vld [vmem:[%s7175_s7 + $0x630] sm:$0xf0]  ;;  %v4815_v25 = vld [vmem:[%s7175_s7 + $0x314] sm:$0xf0] }
 0x20f   : > { %2941 = vmatpush.bf16.msra.mxu0 %v4488_v35  ;;  %2954 = vmatpush.bf16.msra.mxu1 %v4616_v37  ;;  %v4844_v35 = vld [vmem:[%s7175_s7 + $0x404] sm:$0xf]  ;;  %v4152_v37 = vor.u32 %v4848_v18, %v4149_v20  ;;  %v4408_v43 = vor.u32 %v4912_v26, %v4405_v29  ;;  %v4091_v18 = vld [vmem:[%s7175_s7 + $0x3a8] sm:$0xf]  ;;  %v4835_v20 = vld [vmem:[%s7175_s7 + $0x3b4] sm:$0xf0] }
 0x210   : > { %v4136_v53 = vor.u32 %v4844_v35, %v4133_v39  ;;  %v4092_v29 = vor.u32 %v4835_v20, %v4091_v18  ;;  %v3947_v35 = vld [vmem:[%s7175_s7 + $0x288] sm:$0xf]  ;;  %v4831_v39 = vld [vmem:[%s7175_s7 + $0x394] sm:$0xf0] }
 0x211   : > { %v4379_v33 = vld [vmem:[%s7175_s7 + $0x5e8] sm:$0xf]  ;;  %v4907_v34 = vld [vmem:[%s7175_s7 + $0x5f4] sm:$0xf0] }
 0x212   : > { %2916 = vmatpush.bf16.msrb.mxu2 %v4216_v45  ;;  %2929 = vmatpush.bf16.msrb.mxu3 %v4344_v42  ;;  %v4908_v45 = vld [vmem:[%s7175_s7 + $0x604] sm:$0xf]  ;;  %v4389_v42 = vld [vmem:[%s7175_s7 + $0x610] sm:$0xf0] }
 0x213   : > { %2942 = vmatpush.bf16.msra.mxu0 %v4472_v48  ;;  %2955 = vmatpush.bf16.msra.mxu1 %v4600_v49  ;;  %v3739_v48 = vld [vmem:[%s7175_s7 + $0xe8] sm:$0xf]  ;;  %v4747_v49 = vld [vmem:[%s7175_s7 + $0xf4] sm:$0xf0]  ;;  %v4392_v58 = vor.u32 %v4908_v45, %v4389_v42 }
 0x216   : > { %2917 = vmatpush.bf16.msrb.mxu2 %v4200_v56  ;;  %2930 = vmatpush.bf16.msrb.mxu3 %v4328_v57  ;;  %v4123_v56 = vld [vmem:[%s7175_s7 + $0x3e8] sm:$0xf]  ;;  %v4843_v57 = vld [vmem:[%s7175_s7 + $0x3f4] sm:$0xf0] }
 0x217   : > { %2943 = vmatpush.bf16.msra.mxu0 %v4456_v60  ;;  %2956 = vmatpush.bf16.msra.mxu1 %v4584_v61  ;;  %v3740_v60 = vor.u32 %v4747_v49, %v3739_v48  ;;  %v3868_v61 = vor.u32 %v4779_v51, %v3867_v50  ;;  %v4124_v1 = vor.u32 %v4843_v57, %v4123_v56  ;;  %v3931_v48 = vld [vmem:[%s7175_s7 + $0x268] sm:$0xf]  ;;  %v4795_v49 = vld [vmem:[%s7175_s7 + $0x274] sm:$0xf0] }
 0x218   : > { %v4059_v50 = vld [vmem:[%s7175_s7 + $0x368] sm:$0xf]  ;;  %v4827_v51 = vld [vmem:[%s7175_s7 + $0x374] sm:$0xf0]  ;;  %v3932_v56 = vor.u32 %v4795_v49, %v3931_v48 }
 0x219   : > { %v4060_v57 = vor.u32 %v4827_v51, %v4059_v50  ;;  %v4363_v50 = vld [vmem:[%s7175_s7 + $0x5c8] sm:$0xf]  ;;  %v4903_v51 = vld [vmem:[%s7175_s7 + $0x5d4] sm:$0xf0] }
 0x21a   : > { %2918 = vmatpush.bf16.msrb.mxu2 %v4184_v4  ;;  %2931 = vmatpush.bf16.msrb.mxu3 %v4312_v5  ;;  %v3979_v4 = vld [vmem:[%s7175_s7 + $0x2c8] sm:$0xf]  ;;  %v4807_v5 = vld [vmem:[%s7175_s7 + $0x2d4] sm:$0xf0] }
 0x21b   : > { %2944 = vmatpush.bf16.msra.mxu0 %v4440_v8  ;;  %2957 = vmatpush.bf16.msra.mxu1 %v4568_v9  ;;  %v3724_v8 = vor.u32 %v4743_v63, %v3723_v62  ;;  %v3852_v9 = vor.u32 %v4775_v3, %v3851_v2  ;;  %v3980_v12 = vor.u32 %v4807_v5, %v3979_v4  ;;  %v4043_v62 = vld [vmem:[%s7175_s7 + $0x348] sm:$0xf]  ;;  %v4823_v63 = vld [vmem:[%s7175_s7 + $0x354] sm:$0xf0] }
 0x21c   : > { %v3643_v2 = vld [vmem:[%s7175_s7 + $0x28] sm:$0xf]  ;;  %v4723_v3 = vld [vmem:[%s7175_s7 + $0x34] sm:$0xf0]  ;;  %v4044_v5 = vor.u32 %v4823_v63, %v4043_v62 }
 0x21d   : > { %v4347_v62 = vld [vmem:[%s7175_s7 + $0x5a8] sm:$0xf]  ;;  %v4899_v63 = vld [vmem:[%s7175_s7 + $0x5b4] sm:$0xf0] }
 0x21e   : > { %2919 = vmatpush.bf16.msrb.mxu2 %v4168_v16  ;;  %2932 = vmatpush.bf16.msrb.mxu3 %v4296_v17  ;;  %v3963_v16 = vld [vmem:[%s7175_s7 + $0x2a8] sm:$0xf]  ;;  %v4803_v17 = vld [vmem:[%s7175_s7 + $0x2b4] sm:$0xf0] }
 0x21f   : > { %2945 = vmatpush.bf16.msra.mxu0 %v4424_v21  ;;  %2958 = vmatpush.bf16.msra.mxu1 %v4552_v22  ;;  %v3708_v21 = vor.u32 %v4739_v11, %v3707_v10  ;;  %v3836_v22 = vor.u32 %v4771_v15, %v3835_v14  ;;  %v3964_v26 = vor.u32 %v4803_v17, %v3963_v16  ;;  %v4027_v10 = vld [vmem:[%s7175_s7 + $0x328] sm:$0xf]  ;;  %v4819_v11 = vld [vmem:[%s7175_s7 + $0x334] sm:$0xf0] }
 0x220   : > { %v3772_v14 = vor.u32 %v4755_v7, %v3771_v6  ;;  %v4719_v15 = vld [vmem:[%s7175_s7 + $0x14] sm:$0xf0]  ;;  %v3755_v16 = vld [vmem:[%s7175_s7 + $0x108] sm:$0xf]  ;;  %v4028_v20 = vor.u32 %v4819_v11, %v4027_v10 }
 0x221   : > { %v4751_v17 = vld [vmem:[%s7175_s7 + $0x114] sm:$0xf0]  ;;  %v4203_v6 = vld [vmem:[%s7175_s7 + $0x488] sm:$0xf] }
 0x222   : > { %2920 = vmatpush.bf16.msrb.mxu2 %v4152_v37  ;;  %2933 = vmatpush.bf16.msrb.mxu3 %v4280_v38  ;;  %v4799_v37 = vld [vmem:[%s7175_s7 + $0x294] sm:$0xf0]  ;;  %v4075_v38 = vld [vmem:[%s7175_s7 + $0x388] sm:$0xf] }
 0x223   : > { %2946 = vmatpush.bf16.msra.mxu0 %v4408_v43  ;;  %2959 = vmatpush.bf16.msra.mxu1 %v4536_v44  ;;  %v3675_v43 = vld [vmem:[%s7175_s7 + $0x68] sm:$0xf]  ;;  %v4731_v44 = vld [vmem:[%s7175_s7 + $0x74] sm:$0xf0]  ;;  %v3948_v45 = vor.u32 %v4799_v37, %v3947_v35  ;;  %v4076_v42 = vor.u32 %v4831_v39, %v4075_v38  ;;  %v3756_v38 = vor.u32 %v4751_v17, %v3755_v16 }
 0x224   : > { %v3676_v52 = vor.u32 %v4731_v44, %v3675_v43  ;;  %v4507_v35 = vld [vmem:[%s7175_s7 + $0x6e8] sm:$0xf]  ;;  %v4939_v39 = vld [vmem:[%s7175_s7 + $0x6f4] sm:$0xf0]  ;;  %v4012_v44 = vor.u32 %v4815_v25, %v4011_v24 }
 0x225   : > { %v4508_v48 = vor.u32 %v4939_v39, %v4507_v35  ;;  %v4863_v7 = vld [vmem:[%s7175_s7 + $0x494] sm:$0xf0]  ;;  %v4331_v10 = vld [vmem:[%s7175_s7 + $0x588] sm:$0xf] }
 0x226   : > { %2921 = vmatpush.bf16.msrb.mxu2 %v4136_v53  ;;  %2934 = vmatpush.bf16.msrb.mxu3 %v4264_v54  ;;  %v3804_v53 = vor.u32 %v4763_v47, %v3803_v46  ;;  %v3659_v54 = vld [vmem:[%s7175_s7 + $0x48] sm:$0xf]  ;;  %v4871_v47 = vld [vmem:[%s7175_s7 + $0x4d4] sm:$0xf0]  ;;  %v4204_v16 = vor.u32 %v4863_v7, %v4203_v6 }
 0x227   : > { %2947 = vmatpush.bf16.msra.mxu0 %v4392_v58  ;;  %2960 = vmatpush.bf16.msra.mxu1 %v4520_v59  ;;  %v3787_v58 = vld [vmem:[%s7175_s7 + $0x148] sm:$0xf]  ;;  %v4759_v59 = vld [vmem:[%s7175_s7 + $0x154] sm:$0xf0] }
 0x228   : > { %v4235_v46 = vld [vmem:[%s7175_s7 + $0x4c8] sm:$0xf]  ;;  %v4895_v11 = vld [vmem:[%s7175_s7 + $0x594] sm:$0xf0] }
 0x229   : > { %2922 = vmatmul.bf16.vlgmr.msrb.gmra.mxu2 %v6069_v19  ;;  %2935 = vmatmul.bf16.vlgmr.msrb.gmra.mxu3 %v6071_v23  ;;  %v4332_v17 = vor.u32 %v4895_v11, %v4331_v10  ;;  %v4315_v24 = vld [vmem:[%s7175_s7 + $0x568] sm:$0xf]  ;;  %v4891_v25 = vld [vmem:[%s7175_s7 + $0x574] sm:$0xf0]  ;;  %v4777_v10 = vld [vmem:[%s7175_s7 + $0x1ec] sm:$0xf] }
 0x22a   : > { %2966 = vmatpush.bf16.msra.mxu2 %v3740_v60  ;;  %2979 = vmatpush.bf16.msra.mxu3 %v3868_v61  ;;  %v3915_v60 = vld [vmem:[%s7175_s7 + $0x248] sm:$0xf]  ;;  %v4791_v61 = vld [vmem:[%s7175_s7 + $0x254] sm:$0xf0]  ;;  %v3869_v11 = vld [vmem:[%s7175_s7 + $0x1f8] sm:$0xf0] }
 0x22b   : > { %2992 = vmatpush.bf16.msrb.mxu0 %v3996_v0  ;;  %3005 = vmatpush.bf16.msrb.mxu1 %v4124_v1  ;;  %v3660_v0 = vor.u32 %v4727_v55, %v3659_v54  ;;  %v3788_v1 = vor.u32 %v4759_v59, %v3787_v58  ;;  %v3916_v4 = vor.u32 %v4791_v61, %v3915_v60  ;;  %v4619_v54 = vld [vmem:[%s7175_s7 + $0x7c8] sm:$0xf]  ;;  %v4967_v55 = vld [vmem:[%s7175_s7 + $0x7d4] sm:$0xf0] }
 0x22c   : > { %2948 = vmatmul.bf16.vlgmr.msra.gmra.mxu0 %v6079_v27  ;;  %2961 = vmatmul.bf16.vlgmr.msra.gmra.mxu1 %v6081_v28  ;;  %v4219_v58 = vld [vmem:[%s7175_s7 + $0x4a8] sm:$0xf]  ;;  %v4867_v59 = vld [vmem:[%s7175_s7 + $0x4b4] sm:$0xf0]  ;;  %v4620_v61 = vor.u32 %v4967_v55, %v4619_v54 }
 0x22d   : > { %v4855_v39 = vld [vmem:[%s7175_s7 + $0x454] sm:$0xf0]  ;;  %v4283_v54 = vld [vmem:[%s7175_s7 + $0x528] sm:$0xf] }
 0x22e   : > { %2967 = vmatpush.bf16.msra.mxu2 %v3724_v8  ;;  %2980 = vmatpush.bf16.msra.mxu3 %v3852_v9  ;;  %v3899_v8 = vld [vmem:[%s7175_s7 + $0x228] sm:$0xf]  ;;  %v4787_v9 = vld [vmem:[%s7175_s7 + $0x234] sm:$0xf0] }
 0x22f   : > { %2993 = vmatpush.bf16.msrb.mxu0 %v3980_v12  ;;  %3006 = vmatpush.bf16.msrb.mxu1 %v4108_v13  ;;  %v3627_v12 = vld [vmem:[%s7175_s7 + $0x8] sm:$0xf]  ;;  %v3644_v13 = vor.u32 %v4723_v3, %v3643_v2  ;;  %v3900_v18 = vor.u32 %v4787_v9, %v3899_v8  ;;  %v4963_v3 = vld [vmem:[%s7175_s7 + $0x7b4] sm:$0xf0] }
 0x230   : > { %v3628_v37 = vor.u32 %v4719_v15, %v3627_v12  ;;  %v4603_v2 = vld [vmem:[%s7175_s7 + $0x7a8] sm:$0xf]  ;;  %v4959_v15 = vld [vmem:[%s7175_s7 + $0x794] sm:$0xf0] }
 0x231   : > { %v4604_v9 = vor.u32 %v4963_v3, %v4603_v2  ;;  %v4459_v12 = vld [vmem:[%s7175_s7 + $0x688] sm:$0xf]  ;;  %v4883_v55 = vld [vmem:[%s7175_s7 + $0x534] sm:$0xf0] }
 0x232   : > { %2968 = vmatpush.bf16.msra.mxu2 %v3708_v21  ;;  %2981 = vmatpush.bf16.msra.mxu3 %v3836_v22  ;;  %v3883_v21 = vld [vmem:[%s7175_s7 + $0x208] sm:$0xf]  ;;  %v4783_v22 = vld [vmem:[%s7175_s7 + $0x214] sm:$0xf0] }
 0x233   : > { %2994 = vmatpush.bf16.msrb.mxu0 %v3964_v26  ;;  %3007 = vmatpush.bf16.msrb.mxu1 %v4092_v29  ;;  %v4251_v26 = vld [vmem:[%s7175_s7 + $0x4e8] sm:$0xf]  ;;  %v4875_v29 = vld [vmem:[%s7175_s7 + $0x4f4] sm:$0xf0]  ;;  %v3884_v43 = vor.u32 %v4783_v22, %v3883_v21 }
 0x234   : > { %v4523_v6 = vld [vmem:[%s7175_s7 + $0x708] sm:$0xf]  ;;  %v4943_v7 = vld [vmem:[%s7175_s7 + $0x714] sm:$0xf0] }
 0x236   : > { %2969 = vmatpush.bf16.msra.mxu2 %v3692_v40  ;;  %2982 = vmatpush.bf16.msra.mxu3 %v3820_v41  ;;  %v4635_v40 = vld [vmem:[%s7175_s7 + $0x7e8] sm:$0xf]  ;;  %v4971_v41 = vld [vmem:[%s7175_s7 + $0x7f4] sm:$0xf0] }
 0x237   : > { %2995 = vmatpush.bf16.msrb.mxu0 %v3948_v45  ;;  %3008 = vmatpush.bf16.msrb.mxu1 %v4076_v42  ;;  %v4252_v45 = vor.u32 %v4875_v29, %v4251_v26  ;;  %v4380_v42 = vor.u32 %v4907_v34, %v4379_v33  ;;  %v4636_v49 = vor.u32 %v4971_v41, %v4635_v40  ;;  %v4443_v26 = vld [vmem:[%s7175_s7 + $0x668] sm:$0xf]  ;;  %v4923_v29 = vld [vmem:[%s7175_s7 + $0x674] sm:$0xf0] }
 0x238   : > { %v4571_v33 = vld [vmem:[%s7175_s7 + $0x768] sm:$0xf]  ;;  %v4955_v34 = vld [vmem:[%s7175_s7 + $0x774] sm:$0xf0]  ;;  %v4444_v40 = vor.u32 %v4923_v29, %v4443_v26 }
 0x239   : > { %v4572_v41 = vor.u32 %v4955_v34, %v4571_v33  ;;  %v4773_v33 = vld [vmem:[%s7175_s7 + $0x1cc] sm:$0xf]  ;;  %v3853_v34 = vld [vmem:[%s7175_s7 + $0x1d8] sm:$0xf0] }
 0x23a   : > { %2970 = vmatpush.bf16.msra.mxu2 %v3676_v52  ;;  %2983 = vmatpush.bf16.msra.mxu3 %v3804_v53  ;;  %v4491_v52 = vld [vmem:[%s7175_s7 + $0x6c8] sm:$0xf]  ;;  %v4935_v53 = vld [vmem:[%s7175_s7 + $0x6d4] sm:$0xf0] }
 0x23b   : > { %2996 = vmatpush.bf16.msrb.mxu0 %v3932_v56  ;;  %3009 = vmatpush.bf16.msrb.mxu1 %v4060_v57  ;;  %v4236_v56 = vor.u32 %v4871_v47, %v4235_v46  ;;  %v4364_v57 = vor.u32 %v4903_v51, %v4363_v50  ;;  %v4492_v60 = vor.u32 %v4935_v53, %v4491_v52  ;;  %v4555_v46 = vld [vmem:[%s7175_s7 + $0x748] sm:$0xf]  ;;  %v4951_v47 = vld [vmem:[%s7175_s7 + $0x754] sm:$0xf0] }
 0x23c   : > { %v4155_v50 = vld [vmem:[%s7175_s7 + $0x428] sm:$0xf]  ;;  %v4851_v51 = vld [vmem:[%s7175_s7 + $0x434] sm:$0xf0]  ;;  %v4556_v53 = vor.u32 %v4951_v47, %v4555_v46  ;;  %v4769_v46 = vld [vmem:[%s7175_s7 + $0x1ac] sm:$0xf] }
 0x23d   : > { %v3837_v47 = vld [vmem:[%s7175_s7 + $0x1b8] sm:$0xf0] }
 0x23e   : > { %2971 = vmatpush.bf16.msra.mxu2 %v3660_v0  ;;  %2984 = vmatpush.bf16.msra.mxu3 %v3788_v1  ;;  %v4475_v0 = vld [vmem:[%s7175_s7 + $0x6a8] sm:$0xf]  ;;  %v4931_v1 = vld [vmem:[%s7175_s7 + $0x6b4] sm:$0xf0] }
 0x23f   : > { %2997 = vmatpush.bf16.msrb.mxu0 %v3916_v4  ;;  %3010 = vmatpush.bf16.msrb.mxu1 %v4044_v5  ;;  %v4220_v4 = vor.u32 %v4867_v59, %v4219_v58  ;;  %v4348_v5 = vor.u32 %v4899_v63, %v4347_v62  ;;  %v4476_v8 = vor.u32 %v4931_v1, %v4475_v0  ;;  %v4539_v58 = vld [vmem:[%s7175_s7 + $0x728] sm:$0xf]  ;;  %v4947_v59 = vld [vmem:[%s7175_s7 + $0x734] sm:$0xf0] }
 0x240   : > { %v4284_v62 = vor.u32 %v4883_v55, %v4283_v54  ;;  %v4847_v63 = vld [vmem:[%s7175_s7 + $0x414] sm:$0xf0]  ;;  %v4267_v0 = vld [vmem:[%s7175_s7 + $0x508] sm:$0xf]  ;;  %v4540_v3 = vor.u32 %v4947_v59, %v4539_v58  ;;  %v3840_v54 = vor.u32 %v4769_v46, %v3837_v47  ;;  %v3693_v58 = vld [vmem:[%s7175_s7 + $0x98] sm:$0xf0] }
 0x241   : > { %v4879_v1 = vld [vmem:[%s7175_s7 + $0x514] sm:$0xf0]  ;;  %v4765_v59 = vld [vmem:[%s7175_s7 + $0x18c] sm:$0xf]  ;;  %v3645_v46 = vld [vmem:[%s7175_s7 + $0x38] sm:$0xf0] }
 0x242   : > { %2972 = vmatpush.bf16.msra.mxu2 %v3644_v13  ;;  %2985 = vmatpush.bf16.msra.mxu3 %v3772_v14  ;;  %v4927_v13 = vld [vmem:[%s7175_s7 + $0x694] sm:$0xf0]  ;;  %v4587_v14 = vld [vmem:[%s7175_s7 + $0x788] sm:$0xf] }
 0x243   : > { %2998 = vmatpush.bf16.msrb.mxu0 %v3900_v18  ;;  %3011 = vmatpush.bf16.msrb.mxu1 %v4028_v20  ;;  %v4187_v18 = vld [vmem:[%s7175_s7 + $0x468] sm:$0xf]  ;;  %v4859_v20 = vld [vmem:[%s7175_s7 + $0x474] sm:$0xf0]  ;;  %v4460_v21 = vor.u32 %v4927_v13, %v4459_v12  ;;  %v4588_v22 = vor.u32 %v4959_v15, %v4587_v14  ;;  %v4809_v12 = vld [vmem:[%s7175_s7 + $0x2ec] sm:$0xf]  ;;  %v4268_v14 = vor.u32 %v4879_v1, %v4267_v0 }
 0x244   : > { %v4188_v35 = vor.u32 %v4859_v20, %v4187_v18  ;;  %v3997_v15 = vld [vmem:[%s7175_s7 + $0x2f8] sm:$0xf0]  ;;  %v4524_v20 = vor.u32 %v4943_v7, %v4523_v6  ;;  %v4829_v1 = vld [vmem:[%s7175_s7 + $0x38c] sm:$0xf] }
 0x245   : > { %v4000_v26 = vor.u32 %v4809_v12, %v3997_v15  ;;  %v3949_v0 = vld [vmem:[%s7175_s7 + $0x298] sm:$0xf0]  ;;  %v4729_v6 = vld [vmem:[%s7175_s7 + $0x6c] sm:$0xf] }
 0x246   : > { %2973 = vmatpush.bf16.msra.mxu2 %v3628_v37  ;;  %2986 = vmatpush.bf16.msra.mxu3 %v3756_v38  ;;  %v4316_v37 = vor.u32 %v4891_v25, %v4315_v24  ;;  %v4171_v38 = vld [vmem:[%s7175_s7 + $0x448] sm:$0xf]  ;;  %v4741_v24 = vld [vmem:[%s7175_s7 + $0xcc] sm:$0xf]  ;;  %v3725_v25 = vld [vmem:[%s7175_s7 + $0xd8] sm:$0xf0] }
 0x247   : > { %2999 = vmatpush.bf16.msrb.mxu0 %v3884_v43  ;;  %3012 = vmatpush.bf16.msrb.mxu1 %v4012_v44  ;;  %v4299_v43 = vld [vmem:[%s7175_s7 + $0x548] sm:$0xf]  ;;  %v4887_v44 = vld [vmem:[%s7175_s7 + $0x554] sm:$0xf0]  ;;  %v3677_v7 = vld [vmem:[%s7175_s7 + $0x78] sm:$0xf0] }
 0x248   : > { %v4761_v12 = vld [vmem:[%s7175_s7 + $0x16c] sm:$0xf] }
 0x249   : > { %2974 = vmatmul.bf16.vlgmr.msra.gmra.mxu2 %v5957_v30  ;;  %2987 = vmatmul.bf16.vlgmr.msra.gmra.mxu3 %v5959_v31 }
 0x24a   : > { %3018 = vmatpush.bf16.msrb.mxu2 %v4252_v45  ;;  %3031 = vmatpush.bf16.msrb.mxu3 %v4380_v42  ;;  %v4427_v45 = vld [vmem:[%s7175_s7 + $0x648] sm:$0xf]  ;;  %v4919_v42 = vld [vmem:[%s7175_s7 + $0x654] sm:$0xf0] }
 0x24b   : > { %3044 = vmatpush.bf16.msra.mxu0 %v4508_v48  ;;  %3057 = vmatpush.bf16.msra.mxu1 %v4636_v49  ;;  %v4172_v48 = vor.u32 %v4855_v39, %v4171_v38  ;;  %v4300_v49 = vor.u32 %v4887_v44, %v4299_v43  ;;  %v4428_v52 = vor.u32 %v4919_v42, %v4427_v45  ;;  %v4837_v38 = vld [vmem:[%s7175_s7 + $0x3cc] sm:$0xf]  ;;  %v4109_v39 = vld [vmem:[%s7175_s7 + $0x3d8] sm:$0xf0] }
 0x24c   : > { %3000 = vmatmul.bf16.vlgmr.msrb.gmra.mxu0 %v5961_v32  ;;  %3013 = vmatmul.bf16.vlgmr.msrb.gmra.mxu1 %v5963_v36  ;;  %v4737_v43 = vld [vmem:[%s7175_s7 + $0xac] sm:$0xf]  ;;  %v3709_v44 = vld [vmem:[%s7175_s7 + $0xb8] sm:$0xf0]  ;;  %v4112_v42 = vor.u32 %v4837_v38, %v4109_v39 }
 0x24d   : > { %v4789_v38 = vld [vmem:[%s7175_s7 + $0x24c] sm:$0xf] }
 0x24e   : > { %3019 = vmatpush.bf16.msrb.mxu2 %v4236_v56  ;;  %3032 = vmatpush.bf16.msrb.mxu3 %v4364_v57  ;;  %v4411_v56 = vld [vmem:[%s7175_s7 + $0x628] sm:$0xf]  ;;  %v4915_v57 = vld [vmem:[%s7175_s7 + $0x634] sm:$0xf0] }
 0x24f   : > { %3045 = vmatpush.bf16.msra.mxu0 %v4492_v60  ;;  %3058 = vmatpush.bf16.msra.mxu1 %v4620_v61  ;;  %v4139_v60 = vld [vmem:[%s7175_s7 + $0x408] sm:$0xf]  ;;  %v4156_v61 = vor.u32 %v4851_v51, %v4155_v50  ;;  %v4412_v2 = vor.u32 %v4915_v57, %v4411_v56  ;;  %v4833_v50 = vld [vmem:[%s7175_s7 + $0x3ac] sm:$0xf]  ;;  %v4093_v51 = vld [vmem:[%s7175_s7 + $0x3b8] sm:$0xf0] }
 0x250   : > { %v4140_v13 = vor.u32 %v4847_v63, %v4139_v60  ;;  %v4733_v57 = vld [vmem:[%s7175_s7 + $0x8c] sm:$0xf] }
 0x251   : > { %v4797_v63 = vld [vmem:[%s7175_s7 + $0x28c] sm:$0xf] }
 0x252   : > { %3020 = vmatpush.bf16.msrb.mxu2 %v4220_v4  ;;  %3033 = vmatpush.bf16.msrb.mxu3 %v4348_v5  ;;  %v4395_v4 = vld [vmem:[%s7175_s7 + $0x608] sm:$0xf]  ;;  %v4911_v5 = vld [vmem:[%s7175_s7 + $0x614] sm:$0xf0] }
 0x253   : > { %3046 = vmatpush.bf16.msra.mxu0 %v4476_v8  ;;  %3059 = vmatpush.bf16.msra.mxu1 %v4604_v9  ;;  %v4745_v8 = vld [vmem:[%s7175_s7 + $0xec] sm:$0xf]  ;;  %v3741_v9 = vld [vmem:[%s7175_s7 + $0xf8] sm:$0xf0]  ;;  %v4396_v18 = vor.u32 %v4911_v5, %v4395_v4  ;;  %v3696_v4 = vor.u32 %v4733_v57, %v3693_v58 }
 0x254   : > { %v4817_v57 = vld [vmem:[%s7175_s7 + $0x32c] sm:$0xf]  ;;  %v4029_v58 = vld [vmem:[%s7175_s7 + $0x338] sm:$0xf0] }
 0x256   : > { %3021 = vmatpush.bf16.msrb.mxu2 %v4204_v16  ;;  %3034 = vmatpush.bf16.msrb.mxu3 %v4332_v17  ;;  %v4841_v16 = vld [vmem:[%s7175_s7 + $0x3ec] sm:$0xf]  ;;  %v4125_v17 = vld [vmem:[%s7175_s7 + $0x3f8] sm:$0xf0] }
 0x257   : > { %3047 = vmatpush.bf16.msra.mxu0 %v4460_v21  ;;  %3060 = vmatpush.bf16.msra.mxu1 %v4588_v22  ;;  %v3744_v21 = vor.u32 %v4745_v8, %v3741_v9  ;;  %v3872_v22 = vor.u32 %v4777_v10, %v3869_v11  ;;  %v4128_v29 = vor.u32 %v4841_v16, %v4125_v17  ;;  %v3933_v16 = vld [vmem:[%s7175_s7 + $0x278] sm:$0xf0]  ;;  %v4825_v17 = vld [vmem:[%s7175_s7 + $0x36c] sm:$0xf] }
 0x258   : > { %v3952_v8 = vor.u32 %v4797_v63, %v3949_v0  ;;  %v3629_v0 = vld [vmem:[%s7175_s7 + $0x18] sm:$0xf0] }
 0x25a   : > { %3022 = vmatpush.bf16.msrb.mxu2 %v4188_v35  ;;  %3035 = vmatpush.bf16.msrb.mxu3 %v4316_v37  ;;  %v4805_v35 = vld [vmem:[%s7175_s7 + $0x2cc] sm:$0xf]  ;;  %v3981_v37 = vld [vmem:[%s7175_s7 + $0x2d8] sm:$0xf0] }
 0x25b   : > { %3048 = vmatpush.bf16.msra.mxu0 %v4444_v40  ;;  %3061 = vmatpush.bf16.msra.mxu1 %v4572_v41  ;;  %v3728_v40 = vor.u32 %v4741_v24, %v3725_v25  ;;  %v3856_v41 = vor.u32 %v4773_v33, %v3853_v34  ;;  %v3984_v45 = vor.u32 %v4805_v35, %v3981_v37  ;;  %v4757_v35 = vld [vmem:[%s7175_s7 + $0x14c] sm:$0xf]  ;;  %v3789_v37 = vld [vmem:[%s7175_s7 + $0x158] sm:$0xf0] }
 0x25e   : > { %3023 = vmatpush.bf16.msrb.mxu2 %v4172_v48  ;;  %3036 = vmatpush.bf16.msrb.mxu3 %v4300_v49  ;;  %v4801_v48 = vld [vmem:[%s7175_s7 + $0x2ac] sm:$0xf]  ;;  %v3965_v49 = vld [vmem:[%s7175_s7 + $0x2b8] sm:$0xf0] }
 0x25f   : > { %3049 = vmatpush.bf16.msra.mxu0 %v4428_v52  ;;  %3062 = vmatpush.bf16.msra.mxu1 %v4556_v53  ;;  %v6820_v52 = vld [vmem:[%s7176_s8] sm:$0xf]  ;;  %v3712_v53 = vor.u32 %v4737_v43, %v3709_v44  ;;  %v3968_v60 = vor.u32 %v4801_v48, %v3965_v49  ;;  %v4045_v43 = vld [vmem:[%s7175_s7 + $0x358] sm:$0xf0] }
 0x262   : > { %3024 = vmatpush.bf16.msrb.mxu2 %v4156_v61  ;;  %3037 = vmatpush.bf16.msrb.mxu3 %v4284_v62  ;;  %v4096_v61 = vor.u32 %v4833_v50, %v4093_v51  ;;  %v3821_v62 = vld [vmem:[%s7175_s7 + $0x198] sm:$0xf0] }
 0x263   : > { %3050 = vmatpush.bf16.msra.mxu0 %v4412_v2  ;;  %3063 = vmatpush.bf16.msra.mxu1 %v4540_v3  ;;  %v4077_v2 = vld [vmem:[%s7175_s7 + $0x398] sm:$0xf0]  ;;  %v2750_v3 = vperm.slane %v6820_v52, 0  ;;  %v3824_v5 = vor.u32 %v4765_v59, %v3821_v62  ;;  %v4717_v59 = vld [vmem:[%s7175_s7 + $0xc] sm:$0xf] }
 0x264   : > { %v4080_v9 = vor.u32 %v4829_v1, %v4077_v2  ;;  %v4749_v1 = vld [vmem:[%s7175_s7 + $0x10c] sm:$0xf]  ;;  %v3757_v2 = vld [vmem:[%s7175_s7 + $0x118] sm:$0xf0] }
 0x266   : > { %3025 = vmatpush.bf16.msrb.mxu2 %v4140_v13  ;;  %3038 = vmatpush.bf16.msrb.mxu3 %v4268_v14  ;;  %v2793_v55 = vpop.f32.mrf.mxu0  ;;  %v2806_v56 = vpop.f32.mrf.mxu1  ;;  %v3805_v13 = vld [vmem:[%s7175_s7 + $0x178] sm:$0xf0]  ;;  %v4793_v14 = vld [vmem:[%s7175_s7 + $0x26c] sm:$0xf] }
 0x267   : > { %3051 = vmatpush.bf16.msra.mxu0 %v4396_v18  ;;  %3064 = vmatpush.bf16.msra.mxu1 %v4524_v20  ;;  %v4061_v18 = vld [vmem:[%s7175_s7 + $0x378] sm:$0xf0]  ;;  %v3936_v33 = vor.u32 %v4793_v14, %v3933_v16  ;;  %v3632_v14 = vor.u32 %v4717_v59, %v3629_v0  ;;  %v4861_v0 = vld [vmem:[%s7175_s7 + $0x48c] sm:$0xf] }
 0x268   : > { %v4064_v34 = vor.u32 %v4825_v17, %v4061_v18  ;;  %v4509_v16 = vld [vmem:[%s7175_s7 + $0x6f8] sm:$0xf0]  ;;  %v4969_v17 = vld [vmem:[%s7175_s7 + $0x7ec] sm:$0xf] }
 0x269   : > { %3026 = vmatmul.bf16.vlgmr.msrb.gmra.mxu2 %v6069_v19  ;;  %3039 = vmatmul.bf16.vlgmr.msrb.gmra.mxu3 %v6071_v23  ;;  %v4637_v18 = vld [vmem:[%s7175_s7 + $0x7f8] sm:$0xf0] }
 0x26a   : > { %3070 = vmatpush.bf16.msra.mxu2 %v3744_v21  ;;  %3083 = vmatpush.bf16.msra.mxu3 %v3872_v22  ;;  %v3680_v21 = vor.u32 %v4729_v6, %v3677_v7  ;;  %v3808_v22 = vor.u32 %v4761_v12, %v3805_v13  ;;  %v3885_v6 = vld [vmem:[%s7175_s7 + $0x218] sm:$0xf0]  ;;  %v4813_v7 = vld [vmem:[%s7175_s7 + $0x30c] sm:$0xf] }
 0x26b   : > { %3096 = vmatpush.bf16.msrb.mxu0 %v4000_v26  ;;  %3109 = vmatpush.bf16.msrb.mxu1 %v4128_v29  ;;  %v2767_v10 = vpop.f32.mrf.mxu2  ;;  %v2780_v11 = vpop.f32.mrf.mxu3  ;;  %v4725_v26 = vld [vmem:[%s7175_s7 + $0x4c] sm:$0xf]  ;;  %v3661_v29 = vld [vmem:[%s7175_s7 + $0x58] sm:$0xf0] }
 0x26c   : > { %3052 = vmatmul.bf16.vlgmr.msra.gmra.mxu0 %v6079_v27  ;;  %3065 = vmatmul.bf16.vlgmr.msra.gmra.mxu1 %v6081_v28  ;;  %v2768_v15 = vadd.f32 %v2767_v10, %v2750_v3  ;;  %v3664_v44 = vor.u32 %v4725_v26, %v3661_v29  ;;  %v4253_v10 = vld [vmem:[%s7175_s7 + $0x4f8] sm:$0xf0]  ;;  %v4937_v13 = vld [vmem:[%s7175_s7 + $0x6ec] sm:$0xf] }
 0x26d   : > { %v4381_v12 = vld [vmem:[%s7175_s7 + $0x5f8] sm:$0xf0] }
 0x26e   : > { %3071 = vmatpush.bf16.msra.mxu2 %v3728_v40  ;;  %3084 = vmatpush.bf16.msra.mxu3 %v3856_v41  ;;  %v2781_v20 = vadd.f32 %v2780_v11, %v2768_v15  ;;  %v2795_v24 = vpop.f32.mrf.mxu0  ;;  %v2808_v25 = vpop.f32.mrf.mxu1  ;;  %v3917_v40 = vld [vmem:[%s7175_s7 + $0x258] sm:$0xf0]  ;;  %v4821_v41 = vld [vmem:[%s7175_s7 + $0x34c] sm:$0xf]  ;;  %v3760_v15 = vor.u32 %v4749_v1, %v3757_v2 }
 0x26f   : > { %3097 = vmatpush.bf16.msrb.mxu0 %v3984_v45  ;;  %3110 = vmatpush.bf16.msrb.mxu1 %v4112_v42  ;;  %v3792_v45 = vor.u32 %v4757_v35, %v3789_v37  ;;  %v4721_v42 = vld [vmem:[%s7175_s7 + $0x2c] sm:$0xf]  ;;  %v3920_v48 = vor.u32 %v4789_v38, %v3917_v40  ;;  %v4048_v49 = vor.u32 %v4821_v41, %v4045_v43  ;;  %v4477_v59 = vld [vmem:[%s7175_s7 + $0x6b8] sm:$0xf0] }
 0x270   : > { %v2794_v39 = vadd.f32 %v2793_v55, %v2781_v20  ;;  %v4785_v55 = vld [vmem:[%s7175_s7 + $0x22c] sm:$0xf]  ;;  %v4512_v35 = vor.u32 %v4937_v13, %v4509_v16  ;;  %v4640_v37 = vor.u32 %v4969_v17, %v4637_v18  ;;  %v4205_v1 = vld [vmem:[%s7175_s7 + $0x498] sm:$0xf0] }
 0x271   : > { %v4905_v11 = vld [vmem:[%s7175_s7 + $0x5ec] sm:$0xf]  ;;  %v4189_v13 = vld [vmem:[%s7175_s7 + $0x478] sm:$0xf0] }
 0x272   : > { %3072 = vmatpush.bf16.msra.mxu2 %v3712_v53  ;;  %3085 = vmatpush.bf16.msra.mxu3 %v3840_v54  ;;  %v2807_v47 = vadd.f32 %v2806_v56, %v2794_v39  ;;  %v4753_v53 = vld [vmem:[%s7175_s7 + $0x12c] sm:$0xf]  ;;  %v3773_v54 = vld [vmem:[%s7175_s7 + $0x138] sm:$0xf0]  ;;  %v4384_v26 = vor.u32 %v4905_v11, %v4381_v12 }
 0x273   : > { %3098 = vmatpush.bf16.msrb.mxu0 %v3968_v60  ;;  %3111 = vmatpush.bf16.msrb.mxu1 %v4096_v61  ;;  %v2769_v50 = vpop.f32.mrf.mxu2  ;;  %v2782_v51 = vpop.f32.mrf.mxu3  ;;  %v3901_v56 = vld [vmem:[%s7175_s7 + $0x238] sm:$0xf0]  ;;  %v3648_v60 = vor.u32 %v4721_v42, %v3645_v46  ;;  %v3776_v61 = vor.u32 %v4753_v53, %v3773_v54  ;;  %v4901_v38 = vld [vmem:[%s7175_s7 + $0x5cc] sm:$0xf] }
 0x274   : > { %v3904_v3 = vor.u32 %v4785_v55, %v3901_v56  ;;  %v4365_v39 = vld [vmem:[%s7175_s7 + $0x5d8] sm:$0xf0]  ;;  %v4933_v40 = vld [vmem:[%s7175_s7 + $0x6cc] sm:$0xf] }
 0x275   : > { %v4965_v42 = vld [vmem:[%s7175_s7 + $0x7cc] sm:$0xf]  ;;  %v4621_v46 = vld [vmem:[%s7175_s7 + $0x7d8] sm:$0xf0] }
 0x276   : > { %3073 = vmatpush.bf16.msra.mxu2 %v3696_v4  ;;  %3086 = vmatpush.bf16.msra.mxu3 %v3824_v5  ;;  %v2845_v62 = vpop.f32.mrf.mxu0  ;;  %v6922_v63 = vpop.f32.mrf.mxu1  ;;  %v4032_v4 = vor.u32 %v4817_v57, %v4029_v58  ;;  %v4781_v5 = vld [vmem:[%s7175_s7 + $0x20c] sm:$0xf]  ;;  %v4221_v51 = vld [vmem:[%s7175_s7 + $0x4b8] sm:$0xf0]  ;;  %v4624_v54 = vor.u32 %v4965_v42, %v4621_v46 }
 0x277   : > { %3099 = vmatpush.bf16.msrb.mxu0 %v3952_v8  ;;  %3112 = vmatpush.bf16.msrb.mxu1 %v4080_v9  ;;  %v4013_v8 = vld [vmem:[%s7175_s7 + $0x318] sm:$0xf0]  ;;  %v4873_v9 = vld [vmem:[%s7175_s7 + $0x4ec] sm:$0xf]  ;;  %v3888_v20 = vor.u32 %v4781_v5, %v3885_v6 }
 0x278   : > { %v4256_v25 = vor.u32 %v4873_v9, %v4253_v10  ;;  %v4865_v50 = vld [vmem:[%s7175_s7 + $0x4ac] sm:$0xf]  ;;  %v4349_v56 = vld [vmem:[%s7175_s7 + $0x5b8] sm:$0xf0]  ;;  %v4208_v10 = vor.u32 %v4861_v0, %v4205_v1 }
 0x279   : > { %v4897_v55 = vld [vmem:[%s7175_s7 + $0x5ac] sm:$0xf]  ;;  %v4461_v5 = vld [vmem:[%s7175_s7 + $0x698] sm:$0xf0] }
 0x27a   : > { %3074 = vmatpush.bf16.msra.mxu2 %v3680_v21  ;;  %3087 = vmatpush.bf16.msra.mxu3 %v3808_v22  ;;  %v4016_v21 = vor.u32 %v4813_v7, %v4013_v8  ;;  %v4929_v57 = vld [vmem:[%s7175_s7 + $0x6ac] sm:$0xf]  ;;  %v4589_v7 = vld [vmem:[%s7175_s7 + $0x798] sm:$0xf0] }
 0x27b   : > { %3100 = vmatpush.bf16.msrb.mxu0 %v3936_v33  ;;  %3113 = vmatpush.bf16.msrb.mxu1 %v4064_v34  ;;  %v2819_v22 = vpop.f32.mrf.mxu2  ;;  %v2832_v24 = vpop.f32.mrf.mxu3  ;;  %v4869_v33 = vld [vmem:[%s7175_s7 + $0x4cc] sm:$0xf]  ;;  %v4237_v34 = vld [vmem:[%s7175_s7 + $0x4d8] sm:$0xf0]  ;;  %v4480_v2 = vor.u32 %v4929_v57, %v4477_v59 }
 0x27c   : > { %v2820_v29 = vadd.f32 %v2819_v22, %v2807_v47  ;;  %v4957_v6 = vld [vmem:[%s7175_s7 + $0x78c] sm:$0xf]  ;;  %v4317_v17 = vld [vmem:[%s7175_s7 + $0x578] sm:$0xf0] }
 0x27d   : > { %v4857_v12 = vld [vmem:[%s7175_s7 + $0x46c] sm:$0xf]  ;;  %v4592_v16 = vor.u32 %v4957_v6, %v4589_v7  ;;  %v4573_v22 = vld [vmem:[%s7175_s7 + $0x778] sm:$0xf0] }
 0x27e   : > { %3075 = vmatpush.bf16.msra.mxu2 %v3664_v44  ;;  %3088 = vmatpush.bf16.msra.mxu3 %v3792_v45  ;;  %v2833_v41 = vadd.f32 %v2832_v24, %v2820_v29  ;;  %v2847_v43 = vpop.f32.mrf.mxu0  ;;  %v2860_v44 = vpop.f32.mrf.mxu1  ;;  %v4493_v45 = vld [vmem:[%s7175_s7 + $0x6d8] sm:$0xf0]  ;;  %v4921_v18 = vld [vmem:[%s7175_s7 + $0x66c] sm:$0xf]  ;;  %v2751_v24 = vperm.slane %v6820_v52, 1 }
 0x27f   : > { %3101 = vmatpush.bf16.msrb.mxu0 %v3920_v48  ;;  %3114 = vmatpush.bf16.msrb.mxu1 %v4048_v49  ;;  %v4240_v48 = vor.u32 %v4869_v33, %v4237_v34  ;;  %v4368_v49 = vor.u32 %v4901_v38, %v4365_v39  ;;  %v4496_v53 = vor.u32 %v4933_v40, %v4493_v45  ;;  %v4853_v29 = vld [vmem:[%s7175_s7 + $0x44c] sm:$0xf]  ;;  %v4173_v33 = vld [vmem:[%s7175_s7 + $0x458] sm:$0xf0] }
 0x280   : > { %v2846_v47 = vadd.f32 %v2845_v62, %v2833_v41  ;;  %v4885_v39 = vld [vmem:[%s7175_s7 + $0x54c] sm:$0xf]  ;;  %v4301_v40 = vld [vmem:[%s7175_s7 + $0x558] sm:$0xf0] }
 0x281   : > { %v4917_v41 = vld [vmem:[%s7175_s7 + $0x64c] sm:$0xf]  ;;  %v4429_v44 = vld [vmem:[%s7175_s7 + $0x658] sm:$0xf0] }
 0x282   : > { %3076 = vmatpush.bf16.msra.mxu2 %v3648_v60  ;;  %3089 = vmatpush.bf16.msra.mxu3 %v3776_v61  ;;  %v7009_v58 = vadd.f32 %v6922_v63, %v2846_v47  ;;  %v4961_v60 = vld [vmem:[%s7175_s7 + $0x7ac] sm:$0xf]  ;;  %v4605_v61 = vld [vmem:[%s7175_s7 + $0x7b8] sm:$0xf0]  ;;  %v4352_v63 = vor.u32 %v4897_v55, %v4349_v56 }
 0x283   : > { %3102 = vmatpush.bf16.msrb.mxu0 %v3904_v3  ;;  %3115 = vmatpush.bf16.msrb.mxu1 %v4032_v4  ;;  %v2821_v62 = vpop.f32.mrf.mxu2  ;;  %v4333_v3 = vld [vmem:[%s7175_s7 + $0x598] sm:$0xf0]  ;;  %v4925_v4 = vld [vmem:[%s7175_s7 + $0x68c] sm:$0xf] }
 0x284   : > { %v4949_v45 = vld [vmem:[%s7175_s7 + $0x74c] sm:$0xf]  ;;  %v4557_v42 = vld [vmem:[%s7175_s7 + $0x758] sm:$0xf0] }
 0x285   : > { %v4560_v55 = vor.u32 %v4949_v45, %v4557_v42  ;;  %v4881_v56 = vld [vmem:[%s7175_s7 + $0x52c] sm:$0xf]  ;;  %v4285_v57 = vld [vmem:[%s7175_s7 + $0x538] sm:$0xf0] }
 0x286   : > { %3077 = vmatpush.bf16.msra.mxu2 %v3632_v14  ;;  %3090 = vmatpush.bf16.msra.mxu3 %v3760_v15  ;;  %v4889_v14 = vld [vmem:[%s7175_s7 + $0x56c] sm:$0xf]  ;;  %v4464_v15 = vor.u32 %v4925_v4, %v4461_v5  ;;  %v4141_v1 = vld [vmem:[%s7175_s7 + $0x418] sm:$0xf0] }
 0x287   : > { %3103 = vmatpush.bf16.msrb.mxu0 %v3888_v20  ;;  %3116 = vmatpush.bf16.msrb.mxu1 %v4016_v21  ;;  %v4445_v20 = vld [vmem:[%s7175_s7 + $0x678] sm:$0xf0]  ;;  %v4953_v21 = vld [vmem:[%s7175_s7 + $0x76c] sm:$0xf] }
 0x288   : > { %v4448_v34 = vor.u32 %v4921_v18, %v4445_v20  ;;  %v4913_v59 = vld [vmem:[%s7175_s7 + $0x62c] sm:$0xf]  ;;  %v4269_v6 = vld [vmem:[%s7175_s7 + $0x518] sm:$0xf0] }
 0x289   : > { %3078 = vmatmul.bf16.vlgmr.msra.gmra.mxu2 %v5957_v30  ;;  %3091 = vmatmul.bf16.vlgmr.msra.gmra.mxu3 %v5959_v31  ;;  %v2834_v30 = vpop.f32.mrf.mxu3  ;;  %v4224_v31 = vor.u32 %v4865_v50, %v4221_v51  ;;  %v2897_v8 = vpop.f32.mrf.mxu0  ;;  %v4304_v50 = vor.u32 %v4885_v39, %v4301_v40  ;;  %v4849_v51 = vld [vmem:[%s7175_s7 + $0x42c] sm:$0xf] }
 0x28a   : > { %3122 = vmatpush.bf16.msrb.mxu2 %v4256_v25  ;;  %3135 = vmatpush.bf16.msrb.mxu3 %v4384_v26  ;;  %v2910_v9 = vpop.f32.mrf.mxu1  ;;  %v4192_v25 = vor.u32 %v4857_v12, %v4189_v13  ;;  %v4320_v26 = vor.u32 %v4889_v14, %v4317_v17  ;;  %v4945_v62 = vld [vmem:[%s7175_s7 + $0x72c] sm:$0xf]  ;;  %v4541_v30 = vld [vmem:[%s7175_s7 + $0x738] sm:$0xf0] }
 0x28b   : > { %3148 = vmatpush.bf16.msra.mxu0 %v4512_v35  ;;  %3161 = vmatpush.bf16.msra.mxu1 %v4640_v37  ;;  %v4576_v35 = vor.u32 %v4953_v21, %v4573_v22  ;;  %v4845_v0 = vld [vmem:[%s7175_s7 + $0x40c] sm:$0xf] }
 0x28c   : > { %3104 = vmatmul.bf16.vlgmr.msrb.gmra.mxu0 %v5961_v32  ;;  %3117 = vmatmul.bf16.vlgmr.msrb.gmra.mxu1 %v5963_v36  ;;  %v4608_v32 = vor.u32 %v4961_v60, %v4605_v61  ;;  %v4893_v36 = vld [vmem:[%s7175_s7 + $0x58c] sm:$0xf]  ;;  %v2871_v37 = vpop.f32.mrf.mxu2  ;;  %v4413_v61 = vld [vmem:[%s7175_s7 + $0x638] sm:$0xf0] }
 0x28d   : > { %v4336_v11 = vor.u32 %v4893_v36, %v4333_v3  ;;  %v2872_v43 = vadd.f32 %v2871_v37, %v2751_v24  ;;  %v4544_v36 = vor.u32 %v4945_v62, %v4541_v30  ;;  %v4877_v5 = vld [vmem:[%s7175_s7 + $0x50c] sm:$0xf] }
 0x28e   : > { %3123 = vmatpush.bf16.msrb.mxu2 %v4240_v48  ;;  %3136 = vmatpush.bf16.msrb.mxu3 %v4368_v49  ;;  %v4176_v49 = vor.u32 %v4853_v29, %v4173_v33  ;;  %v4909_v7 = vld [vmem:[%s7175_s7 + $0x60c] sm:$0xf]  ;;  %v4272_v12 = vor.u32 %v4877_v5, %v4269_v6 }
 0x28f   : > { %3149 = vmatpush.bf16.msra.mxu0 %v4496_v53  ;;  %3162 = vmatpush.bf16.msra.mxu1 %v4624_v54  ;;  %v4157_v53 = vld [vmem:[%s7175_s7 + $0x438] sm:$0xf0]  ;;  %v4432_v54 = vor.u32 %v4917_v41, %v4429_v44 }
 0x291   : > { %v2884_v38 = vpop.f32.mrf.mxu3  ;;  %v2899_v47 = vpop.f32.mrf.mxu0 }
 0x292   : > { %3124 = vmatpush.bf16.msrb.mxu2 %v4224_v31  ;;  %3137 = vmatpush.bf16.msrb.mxu3 %v4352_v63  ;;  %v2885_v46 = vadd.f32 %v2884_v38, %v2872_v43  ;;  %v2912_v48 = vpop.f32.mrf.mxu1  ;;  %v4160_v31 = vor.u32 %v4849_v51, %v4157_v53  ;;  %v4288_v63 = vor.u32 %v4881_v56, %v4285_v57 }
 0x293   : > { %3150 = vmatpush.bf16.msra.mxu0 %v4480_v2  ;;  %3163 = vmatpush.bf16.msra.mxu1 %v4608_v32  ;;  %v4416_v32 = vor.u32 %v4913_v59, %v4413_v61 }
 0x294   : > { %v2898_v60 = vadd.f32 %v2897_v8, %v2885_v46  ;;  %v2873_v3 = vpop.f32.mrf.mxu2  ;;  %v4397_v8 = vld [vmem:[%s7175_s7 + $0x618] sm:$0xf0] }
 0x295   : > { %v4400_v13 = vor.u32 %v4909_v7, %v4397_v8 }
 0x296   : > { %3125 = vmatpush.bf16.msrb.mxu2 %v4208_v10  ;;  %3138 = vmatpush.bf16.msrb.mxu3 %v4336_v11  ;;  %v2911_v2 = vadd.f32 %v2910_v9, %v2898_v60  ;;  %v4941_v9 = vld [vmem:[%s7175_s7 + $0x70c] sm:$0xf]  ;;  %v4525_v10 = vld [vmem:[%s7175_s7 + $0x718] sm:$0xf0]  ;;  %v4144_v11 = vor.u32 %v4845_v0, %v4141_v1  ;;  %v2753_v1 = vperm.slane %v6820_v52, 3 }
 0x297   : > { %3151 = vmatpush.bf16.msra.mxu0 %v4464_v15  ;;  %3164 = vmatpush.bf16.msra.mxu1 %v4592_v16  ;;  %v4528_v14 = vor.u32 %v4941_v9, %v4525_v10 }
 0x299   : > { %v2886_v4 = vpop.f32.mrf.mxu3 }
 0x29a   : > { %3126 = vmatpush.bf16.msrb.mxu2 %v4192_v25  ;;  %3139 = vmatpush.bf16.msrb.mxu3 %v4320_v26 }
 0x29b   : > { %3152 = vmatpush.bf16.msra.mxu0 %v4448_v34  ;;  %3165 = vmatpush.bf16.msra.mxu1 %v4576_v35 }
 0x29e   : > { %3127 = vmatpush.bf16.msrb.mxu2 %v4176_v49  ;;  %3140 = vmatpush.bf16.msrb.mxu3 %v4304_v50 }
 0x29f   : > { %3153 = vmatpush.bf16.msra.mxu0 %v4432_v54  ;;  %3166 = vmatpush.bf16.msra.mxu1 %v4560_v55 }
 0x2a2   : > { %3128 = vmatpush.bf16.msrb.mxu2 %v4160_v31  ;;  %3141 = vmatpush.bf16.msrb.mxu3 %v4288_v63 }
 0x2a3   : > { %3154 = vmatpush.bf16.msra.mxu0 %v4416_v32  ;;  %3167 = vmatpush.bf16.msra.mxu1 %v4544_v36 }
 0x2a6   : > { %3129 = vmatpush.bf16.msrb.mxu2 %v4144_v11  ;;  %3142 = vmatpush.bf16.msrb.mxu3 %v4272_v12 }
 0x2a7   : > { %3155 = vmatpush.bf16.msra.mxu0 %v4400_v13  ;;  %3168 = vmatpush.bf16.msra.mxu1 %v4528_v14  ;;  %v3188_v13 = vlaneseq }
 0x2a9   : > { %3130 = vmatmul.bf16.vlgmr.msrb.gmra.mxu2 %v6069_v19  ;;  %3143 = vmatmul.bf16.vlgmr.msrb.gmra.mxu3 %v6071_v23  ;;  %v2949_v15 = vpop.f32.mrf.mxu0  ;;  %v2962_v16 = vpop.f32.mrf.mxu1  ;;  %vm3190_vm11 = vcmp.lt.s32.totalorder %v3188_v13, 512 }
 0x2aa   : > { %3156 = vmatmul.bf16.vlgmr.msra.gmra.mxu0 %v6079_v27  ;;  %3169 = vmatmul.bf16.vlgmr.msra.gmra.mxu1 %v6081_v28  ;;  %v2752_v28 = vperm.slane %v6820_v52, 2 }
 0x2ac   : > { %v2923_v17 = vpop.f32.mrf.mxu2  ;;  %v2936_v18 = vpop.f32.mrf.mxu3 }
 0x2ad   : > { %v2924_v20 = vadd.f32 %v2923_v17, %v2911_v2 }
 0x2af   : > { %v2937_v21 = vadd.f32 %v2936_v18, %v2924_v20 }
 0x2b1   : > { %v2951_v22 = vpop.f32.mrf.mxu0  ;;  %v2964_v24 = vpop.f32.mrf.mxu1  ;;  %v2950_v25 = vadd.f32 %v2949_v15, %v2937_v21 }
 0x2b3   : > { %v2963_v26 = vadd.f32 %v2962_v16, %v2950_v25 }
 0x2b4   : > { %v2925_v29 = vpop.f32.mrf.mxu2  ;;  %v2938_v33 = vpop.f32.mrf.mxu3 }
 0x2b5   : > { %v3178_v34 = vrot.slane %v2963_v26, 7 }
 0x2b7   : > { %v3182_v19 = vsel %vm1132_vm5, %v7009_v58, %v3178_v34 }
 0x2c9   : > { %v3001_v23 = vpop.f32.mrf.mxu0  ;;  %v3014_v27 = vpop.f32.mrf.mxu1 }
 0x2cc   : > { %v2975_v35 = vpop.f32.mrf.mxu2  ;;  %v2988_v37 = vpop.f32.mrf.mxu3 }
 0x2cd   : > { %v2976_v38 = vadd.f32 %v2975_v35, %v2752_v28 }
 0x2cf   : > { %v2989_v39 = vadd.f32 %v2988_v37, %v2976_v38 }
 0x2d1   : > { %v3003_v40 = vpop.f32.mrf.mxu0  ;;  %v3016_v41 = vpop.f32.mrf.mxu1  ;;  %v3002_v43 = vadd.f32 %v3001_v23, %v2989_v39 }
 0x2d3   : > { %v3015_v44 = vadd.f32 %v3014_v27, %v3002_v43 }
 0x2d4   : > { %v2977_v45 = vpop.f32.mrf.mxu2  ;;  %v2990_v42 = vpop.f32.mrf.mxu3 }
 0x2e9   : > { %v3053_v46 = vpop.f32.mrf.mxu0  ;;  %v3066_v47 = vpop.f32.mrf.mxu1 }
 0x2ec   : > { %v3027_v48 = vpop.f32.mrf.mxu2  ;;  %v3040_v49 = vpop.f32.mrf.mxu3 }
 0x2ed   : > { %v3028_v50 = vadd.f32 %v3027_v48, %v3015_v44 }
 0x2ef   : > { %v3041_v58 = vadd.f32 %v3040_v49, %v3028_v50 }
 0x2f1   : > { %v3055_v51 = vpop.f32.mrf.mxu0  ;;  %v3068_v53 = vpop.f32.mrf.mxu1  ;;  %v3054_v54 = vadd.f32 %v3053_v46, %v3041_v58 }
 0x2f3   : > { %v3067_v55 = vadd.f32 %v3066_v47, %v3054_v54 }
 0x2f4   : > { %v3029_v56 = vpop.f32.mrf.mxu2  ;;  %v3042_v57 = vpop.f32.mrf.mxu3 }
 0x2f5   : > { %v3179_v17 = vrot.slane %v3067_v55, 6 }
 0x309   : > { %v3105_v59 = vpop.f32.mrf.mxu0  ;;  %v3118_v60 = vpop.f32.mrf.mxu1 }
 0x30c   : > { %v3079_v61 = vpop.f32.mrf.mxu2  ;;  %v3092_v62 = vpop.f32.mrf.mxu3 }
 0x30d   : > { %v3080_v2 = vadd.f32 %v3079_v61, %v2753_v1 }
 0x30f   : > { %v3093_v32 = vadd.f32 %v3092_v62, %v3080_v2 }
 0x311   : > { %v3107_v30 = vpop.f32.mrf.mxu0  ;;  %v3120_v31 = vpop.f32.mrf.mxu1  ;;  %v3106_v36 = vadd.f32 %v3105_v59, %v3093_v32 }
 0x313   : > { %v3119_v5 = vadd.f32 %v3118_v60, %v3106_v36 }
 0x314   : > { %v3081_v63 = vpop.f32.mrf.mxu2  ;;  %v3094_v0 = vpop.f32.mrf.mxu3 }
 0x327   : > { %v3157_v3 = vpop.f32.mrf.mxu0  ;;  %v3170_v4 = vpop.f32.mrf.mxu1 }
 0x32c   : > { %v3131_v6 = vpop.f32.mrf.mxu2  ;;  %v3144_v7 = vpop.f32.mrf.mxu3 }
 0x32d   : > { %v3132_v8 = vadd.f32 %v3131_v6, %v3119_v5 }
 0x32f   : > { %v3145_v9 = vadd.f32 %v3144_v7, %v3132_v8  ;;  %v3159_v10 = vpop.f32.mrf.mxu0  ;;  %v3172_v11 = vpop.f32.mrf.mxu1 }
 0x331   : > { %v3158_v12 = vadd.f32 %v3157_v3, %v3145_v9 }
 0x333   : > { %v3171_v14 = vadd.f32 %v3170_v4, %v3158_v12 }
 0x334   : > { %v3133_v15 = vpop.f32.mrf.mxu2  ;;  %v3146_v16 = vpop.f32.mrf.mxu3 }
 0x335   : > { %v3180_v52 = vrot.slane %v3171_v14, 5 }
 0x337   : > { %v3184_v18 = vsel %vm1134_vm6, %v3179_v17, %v3180_v52 }
 0x338   : > { %v3186_v20 = vsel %vm1136_vm7, %v3182_v19, %v3184_v18 }
 0x339   : > { %3192 = vst.msk [vmem:[%s429_s23] sm:$0xf] %vm3190_vm11, %v3186_v20 }
 0x33a PF: > { %s21_s15 = sadd.s32 1, %s5021_s15   ;;  %s7179_s13 = smov %s5017_s14 }
 0x33b   : > { %p18_p5 = scmp.ge.s32.totalorder %s21_s15, 4   ;;  %s7180_s14 = smov %s7182_s16 }
 0x33d   :  { %20 = sbr.rel (!%p18_p5) target bundleno = 2 (0x2), region = 113 }

// kernel: pointnet_seg_forward.3
= control target key start
LH: loop header
LB: loop body
LE: loop exit
PB: predicated region body
PF: predicated region fallthrough
CT: control target
= control target key end

     0   :  { %s6981_s25 = smov 0   ;;  %s6983_s26 = smov 0   ;;  %s10000_s0 = inlined_call_operand.vmem [shape: bf16[2,16,9], index: 0, kind: input, shape index: {}]   ;;  %s10001_s1 = inlined_call_operand.vmem [shape: bf16[9,64], index: 1, kind: input, shape index: {}]   ;;  %s10002_s2 = inlined_call_operand.vmem [shape: f32[1,64], index: 2, kind: input, shape index: {}]   ;;  %s10003_s3 = inlined_call_operand.vmem [shape: bf16[64,128], index: 3, kind: input, shape index: {}]   ;;  %s10004_s4 = inlined_call_operand.vmem [shape: f32[1,128], index: 4, kind: input, shape index: {}]   ;;  %s10005_s5 = inlined_call_operand.vmem [shape: bf16[128,1024], index: 5, kind: input, shape index: {}]   ;;  %s10006_s6 = inlined_call_operand.vmem [shape: f32[1,1024], index: 6, kind: input, shape index: {}]   ;;  %s10007_s7 = inlined_call_operand.vmem [shape: bf16[1024,512], index: 7, kind: input, shape index: {}]   ;;  %s10008_s8 = inlined_call_operand.vmem [shape: f32[1,512], index: 8, kind: input, shape index: {}]   ;;  %s10009_s9 = inlined_call_operand.vmem [shape: bf16[512,256], index: 9, kind: input, shape index: {}]   ;;  %s10010_s10 = inlined_call_operand.vmem [shape: f32[1,256], index: 10, kind: input, shape index: {}]   ;;  %s10011_s11 = inlined_call_operand.vmem [shape: bf16[256,576], index: 11, kind: input, shape index: {}]   ;;  %s10012_s12 = inlined_call_operand.vmem [shape: f32[1,576], index: 12, kind: input, shape index: {}]   ;;  %s10013_s13 = inlined_call_operand.vmem [shape: bf16[2,1,576], index: 13, kind: output, shape index: {}]  }
   0x1   :  { %s6985_s27 = smov 0  }
   0x2 LB: > { %s35_s28 = sadd.s32 1, %s6904_s26  ;;  %p4499_p0 = scmp.ge.s32.totalorder %s6908_s27, 1  ;;  %s6908_s27 = sphi %s6985_s27, %s23_s27   ;;  %s6904_s26 = sphi %s6983_s26, %s10023_s26   ;;  %s6900_s25 = sphi %s6981_s25, %s10022_s25  }
   0x3   : > { %p37_p1 = scmp.ge.s32.totalorder %s35_s28, 2  ;;  %p406_p2 = scmp.lt.s32.totalorder %s6908_s27, 3 }
   0x5   : > { %s10025_s28 = smov (%p37_p1, %s35_s28), 0  ;;  %p407_p3 = pnand %p4499_p0, %p406_p2 }
   0x6   : > { %p454_p4 = scmp.lt.s32.totalorder (!%p407_p3), %s6900_s25, 1 }
   0x7   : > { %410 = sbr.rel (%p407_p3) target bundleno = 1145 (0x479), region = 72 }
   0xc   : > { %v4508_v0 = vld [vmem:[%s10001_s1] sm:$0xf]  ;;  %v6388_v1 = vld [vmem:[%s10001_s1] sm:$0x10]  ;;  %vm490_vm0 = vcmask 1043456   ;;  %vm491_vm1 = vcmask 1044480  }
   0xd   : > { %v4509_v2 = vor.u32 %v6388_v1, %v4508_v0  ;;  %v6910_v3 = vmov 65535   ;;  %s10027_s25 = smov (!%p454_p4, %s6900_s25), 1  ;;  %vm486_vm2 = vcmask 72704   ;;  %v6392_v8 = vld [vmem:[%s10003_s3 + $0x18] sm:$0xff]  ;;  %v6391_v9 = vld [vmem:[%s10003_s3 + $0x10] sm:$0xff]  ;;  %v6390_v10 = vld [vmem:[%s10003_s3 + $0x8] sm:$0xff] }
   0xe   : > { %v492_v4 = vsel %vm490_vm0, 4294967295, %v6910_v3  ;;  %s6386_s16 = sshll.u32 %s10027_s25, 3  ;;  %558 = vmatpush.bf16.msra.mxu1 %v6392_v8  ;;  %v6389_v11 = vld [vmem:[%s10003_s3] sm:$0xff]  ;;  %v4762_v17 = vld [vmem:[%s10005_s5 + $0x1c8] sm:$0xf]  ;;  %vm550_vm3 = vcmask 523264  }
   0xf   : > { %v493_v5 = vsel %vm491_vm1, %v492_v4, 0  ;;  %s461_s19 = scalar_lea.vmem %s10000_s0, %s6386_s16  ;;  %v4754_v12 = vld [vmem:[%s10005_s5 + $0x1c0] sm:$0xf]  ;;  %v6449_v14 = vld [vmem:[%s10005_s5 + $0x1c4] sm:$0xf]  ;;  %vm1176_vm4 = vcmask 1040384  }
  0x10   : > { %v495_v6 = vand.u32 %v4509_v2, %v493_v5  ;;  %v6387_v7 = vld [vmem:[%s461_s19] sm:$0xff]  ;;  %v6454_v18 = vld [vmem:[%s10005_s5 + $0x1e4] sm:$0xf0]  ;;  %v6450_v21 = vld [vmem:[%s10005_s5 + $0x1cc] sm:$0xf]  ;;  %vm1178_vm5 = vcmask 1042434  }
  0x11   : > { %v6453_v13 = vld [vmem:[%s10005_s5 + $0x1dc] sm:$0xf0]  ;;  %v4756_v16 = vld [vmem:[%s10005_s5 + $0x1e0] sm:$0xf0]  ;;  %v4763_v20 = vor.u32 %v6454_v18, %v4762_v17  ;;  %v4764_v22 = vld [vmem:[%s10005_s5 + $0x1e8] sm:$0xf0] }
  0x12   : > { %504 = vmatpush.bf16.msra.mxu0 %v495_v6  ;;  %559 = vmatpush.bf16.msra.mxu1 %v6391_v9  ;;  %v4755_v15 = vor.u32 %v6453_v13, %v4754_v12  ;;  %v4759_v19 = vor.u32 %v6449_v14, %v4756_v16  ;;  %v4722_v23 = vld [vmem:[%s10005_s5 + $0x180] sm:$0xf]  ;;  %v4767_v24 = vor.u32 %v6450_v21, %v4764_v22  ;;  %v6441_v26 = vld [vmem:[%s10005_s5 + $0x184] sm:$0xf]  ;;  %v4730_v30 = vld [vmem:[%s10005_s5 + $0x188] sm:$0xf] }
  0x13   : > { %v6445_v25 = vld [vmem:[%s10005_s5 + $0x19c] sm:$0xf0]  ;;  %v4724_v27 = vld [vmem:[%s10005_s5 + $0x1a0] sm:$0xf0]  ;;  %v6446_v31 = vld [vmem:[%s10005_s5 + $0x1a4] sm:$0xf0] }
  0x14   : > { %973 = vmatpush.bf16.msra.mxu2 %v4755_v15  ;;  %987 = vmatpush.bf16.msra.mxu3 %v4759_v19  ;;  %v4723_v28 = vor.u32 %v6445_v25, %v4722_v23  ;;  %v4727_v29 = vor.u32 %v6441_v26, %v4724_v27  ;;  %v6442_v32 = vld [vmem:[%s10005_s5 + $0x18c] sm:$0xf]  ;;  %v4731_v33 = vor.u32 %v6446_v31, %v4730_v30  ;;  %v4690_v35 = vld [vmem:[%s10005_s5 + $0x140] sm:$0xf]  ;;  %v6433_v38 = vld [vmem:[%s10005_s5 + $0x144] sm:$0xf] }
  0x15   : > { %4510 = vmatmul.msk.bf16.vlgmr.msra.gmra.mxu0 %vm486_vm2, %v6387_v7  ;;  %v4732_v34 = vld [vmem:[%s10005_s5 + $0x1a8] sm:$0xf0]  ;;  %v6437_v36 = vld [vmem:[%s10005_s5 + $0x15c] sm:$0xf0]  ;;  %v4692_v39 = vld [vmem:[%s10005_s5 + $0x160] sm:$0xf0] }
  0x16   : > { %560 = vmatpush.bf16.msra.mxu1 %v6390_v10  ;;  %1001 = vmatpush.bf16.msrb.mxu0 %v4763_v20  ;;  %v4735_v37 = vor.u32 %v6442_v32, %v4732_v34  ;;  %v4698_v40 = vld [vmem:[%s10005_s5 + $0x148] sm:$0xf]  ;;  %v4691_v41 = vor.u32 %v6437_v36, %v4690_v35  ;;  %v6434_v43 = vld [vmem:[%s10005_s5 + $0x14c] sm:$0xf]  ;;  %v4695_v45 = vor.u32 %v6433_v38, %v4692_v39  ;;  %v4658_v47 = vld [vmem:[%s10005_s5 + $0x100] sm:$0xf] }
  0x17   : > { %v6438_v42 = vld [vmem:[%s10005_s5 + $0x164] sm:$0xf0]  ;;  %v4700_v44 = vld [vmem:[%s10005_s5 + $0x168] sm:$0xf0]  ;;  %v6429_v48 = vld [vmem:[%s10005_s5 + $0x11c] sm:$0xf0] }
  0x18   : > { %974 = vmatpush.bf16.msra.mxu2 %v4723_v28  ;;  %988 = vmatpush.bf16.msra.mxu3 %v4727_v29  ;;  %v4699_v46 = vor.u32 %v6438_v42, %v4698_v40  ;;  %v6425_v49 = vld [vmem:[%s10005_s5 + $0x104] sm:$0xf]  ;;  %v4703_v50 = vor.u32 %v6434_v43, %v4700_v44  ;;  %v4666_v52 = vld [vmem:[%s10005_s5 + $0x108] sm:$0xf]  ;;  %v6426_v54 = vld [vmem:[%s10005_s5 + $0x10c] sm:$0xf]  ;;  %v4659_v56 = vor.u32 %v6429_v48, %v4658_v47 }
  0x19   : > { %v4660_v51 = vld [vmem:[%s10005_s5 + $0x120] sm:$0xf0]  ;;  %v6430_v53 = vld [vmem:[%s10005_s5 + $0x124] sm:$0xf0]  ;;  %v4668_v55 = vld [vmem:[%s10005_s5 + $0x128] sm:$0xf0] }
  0x1a   : > { %561 = vmatpush.bf16.msra.mxu1 %v6389_v11  ;;  %1002 = vmatpush.bf16.msrb.mxu0 %v4731_v33  ;;  %v4663_v57 = vor.u32 %v6425_v49, %v4660_v51  ;;  %v4667_v58 = vor.u32 %v6430_v53, %v4666_v52  ;;  %v4626_v59 = vld [vmem:[%s10005_s5 + $0xc0] sm:$0xf]  ;;  %v6417_v61 = vld [vmem:[%s10005_s5 + $0xc4] sm:$0xf]  ;;  %v4671_v62 = vor.u32 %v6426_v54, %v4668_v55  ;;  %v4634_v0 = vld [vmem:[%s10005_s5 + $0xc8] sm:$0xf] }
  0x1b   : > { %v6421_v60 = vld [vmem:[%s10005_s5 + $0xdc] sm:$0xf0]  ;;  %v4628_v63 = vld [vmem:[%s10005_s5 + $0xe0] sm:$0xf0]  ;;  %v6422_v1 = vld [vmem:[%s10005_s5 + $0xe4] sm:$0xf0] }
  0x1c   : > { %975 = vmatpush.bf16.msra.mxu2 %v4691_v41  ;;  %989 = vmatpush.bf16.msra.mxu3 %v4695_v45  ;;  %v6418_v2 = vld [vmem:[%s10005_s5 + $0xcc] sm:$0xf]  ;;  %v4627_v4 = vor.u32 %v6421_v60, %v4626_v59  ;;  %v4631_v5 = vor.u32 %v6417_v61, %v4628_v63  ;;  %v4635_v6 = vor.u32 %v6422_v1, %v4634_v0  ;;  %v4594_v7 = vld [vmem:[%s10005_s5 + $0x80] sm:$0xf]  ;;  %v6409_v9 = vld [vmem:[%s10005_s5 + $0x84] sm:$0xf] }
  0x1d   : > { %v4636_v3 = vld [vmem:[%s10005_s5 + $0xe8] sm:$0xf0]  ;;  %v6413_v8 = vld [vmem:[%s10005_s5 + $0x9c] sm:$0xf0]  ;;  %v4596_v12 = vld [vmem:[%s10005_s5 + $0xa0] sm:$0xf0] }
  0x1e   : > { %1015 = vmatpush.bf16.msrb.mxu1 %v4767_v24  ;;  %1003 = vmatpush.bf16.msrb.mxu0 %v4699_v46  ;;  %v4639_v11 = vor.u32 %v6418_v2, %v4636_v3  ;;  %v4602_v13 = vld [vmem:[%s10005_s5 + $0x88] sm:$0xf]  ;;  %v6410_v15 = vld [vmem:[%s10005_s5 + $0x8c] sm:$0xf]  ;;  %v6883_v17 = vld [vmem:[%s10002_s2] ss:$0 sm:$0xff]  ;;  %v4595_v18 = vor.u32 %v6413_v8, %v4594_v7  ;;  %v4599_v19 = vor.u32 %v6409_v9, %v4596_v12 }
  0x1f   : > { %v6414_v14 = vld [vmem:[%s10005_s5 + $0xa4] sm:$0xf0]  ;;  %v4604_v16 = vld [vmem:[%s10005_s5 + $0xa8] sm:$0xf0]  ;;  %v4562_v21 = vld [vmem:[%s10005_s5 + $0x40] sm:$0xf] }
  0x20   : > { %976 = vmatpush.bf16.msra.mxu2 %v4659_v56  ;;  %990 = vmatpush.bf16.msra.mxu3 %v4663_v57  ;;  %v4603_v20 = vor.u32 %v6414_v14, %v4602_v13  ;;  %v6405_v22 = vld [vmem:[%s10005_s5 + $0x5c] sm:$0xf0]  ;;  %v6401_v23 = vld [vmem:[%s10005_s5 + $0x44] sm:$0xf]  ;;  %v4607_v24 = vor.u32 %v6410_v15, %v4604_v16  ;;  %v4570_v26 = vld [vmem:[%s10005_s5 + $0x48] sm:$0xf] }
  0x21   : > { %v4564_v25 = vld [vmem:[%s10005_s5 + $0x60] sm:$0xf0]  ;;  %v6406_v27 = vld [vmem:[%s10005_s5 + $0x64] sm:$0xf0]  ;;  %v6402_v28 = vld [vmem:[%s10005_s5 + $0x4c] sm:$0xf]  ;;  %v4563_v30 = vor.u32 %v6405_v22, %v4562_v21 }
  0x22   : > { %1016 = vmatpush.bf16.msrb.mxu1 %v4735_v37  ;;  %1004 = vmatpush.bf16.msrb.mxu0 %v4667_v58  ;;  %v4572_v29 = vld [vmem:[%s10005_s5 + $0x68] sm:$0xf0]  ;;  %v4567_v32 = vor.u32 %v6401_v23, %v4564_v25  ;;  %v4571_v33 = vor.u32 %v6406_v27, %v4570_v26  ;;  %v4530_v34 = vld [vmem:[%s10005_s5] sm:$0xf]  ;;  %v6393_v38 = vld [vmem:[%s10005_s5 + $0x4] sm:$0xf] }
  0x23   : > { %v6397_v35 = vld [vmem:[%s10005_s5 + $0x1c] sm:$0xf0]  ;;  %v4575_v37 = vor.u32 %v6402_v28, %v4572_v29  ;;  %v4532_v39 = vld [vmem:[%s10005_s5 + $0x20] sm:$0xf0]  ;;  %v4538_v40 = vld [vmem:[%s10005_s5 + $0x8] sm:$0xf] }
  0x24   : > { %977 = vmatpush.bf16.msra.mxu2 %v4627_v4  ;;  %991 = vmatpush.bf16.msra.mxu3 %v4631_v5  ;;  %v6398_v42 = vld [vmem:[%s10005_s5 + $0x24] sm:$0xf0]  ;;  %v6394_v43 = vld [vmem:[%s10005_s5 + $0xc] sm:$0xf]  ;;  %v4531_v45 = vor.u32 %v6397_v35, %v4530_v34  ;;  %v4535_v48 = vor.u32 %v6393_v38, %v4532_v39  ;;  %v4770_v52 = vld [vmem:[%s10005_s5 + $0x1d0] sm:$0xf] }
  0x25   : > { %v4540_v44 = vld [vmem:[%s10005_s5 + $0x28] sm:$0xf0]  ;;  %v4539_v49 = vor.u32 %v6398_v42, %v4538_v40  ;;  %v6455_v53 = vld [vmem:[%s10005_s5 + $0x1ec] sm:$0xf0]  ;;  %v6451_v54 = vld [vmem:[%s10005_s5 + $0x1d4] sm:$0xf] }
  0x26   : > { %1017 = vmatpush.bf16.msrb.mxu1 %v4703_v50  ;;  %1005 = vmatpush.bf16.msrb.mxu0 %v4635_v6  ;;  %v4543_v50 = vor.u32 %v6394_v43, %v4540_v44  ;;  %v4771_v55 = vor.u32 %v6455_v53, %v4770_v52  ;;  %v4772_v56 = vld [vmem:[%s10005_s5 + $0x1f0] sm:$0xf0]  ;;  %v4778_v57 = vld [vmem:[%s10005_s5 + $0x1d8] sm:$0xf]  ;;  %v6452_v61 = vld [vmem:[%s10005_s5 + $0x1dc] sm:$0xf] }
  0x27   : > { %v6456_v58 = vld [vmem:[%s10005_s5 + $0x1f4] sm:$0xf0]  ;;  %v4775_v59 = vor.u32 %v6451_v54, %v4772_v56  ;;  %v4738_v0 = vld [vmem:[%s10005_s5 + $0x190] sm:$0xf]  ;;  %v6443_v2 = vld [vmem:[%s10005_s5 + $0x194] sm:$0xf] }
  0x28   : > { %978 = vmatpush.bf16.msra.mxu2 %v4595_v18  ;;  %992 = vmatpush.bf16.msra.mxu3 %v4599_v19  ;;  %v4779_v60 = vor.u32 %v6456_v58, %v4778_v57  ;;  %v6447_v1 = vld [vmem:[%s10005_s5 + $0x1ac] sm:$0xf0]  ;;  %v4740_v4 = vld [vmem:[%s10005_s5 + $0x1b0] sm:$0xf0]  ;;  %v4746_v5 = vld [vmem:[%s10005_s5 + $0x198] sm:$0xf] }
  0x29   : > { %v4739_v3 = vor.u32 %v6447_v1, %v4738_v0  ;;  %v6448_v6 = vld [vmem:[%s10005_s5 + $0x1b4] sm:$0xf0]  ;;  %v4743_v7 = vor.u32 %v6443_v2, %v4740_v4  ;;  %v6444_v9 = vld [vmem:[%s10005_s5 + $0x19c] sm:$0xf]  ;;  %v4706_v12 = vld [vmem:[%s10005_s5 + $0x150] sm:$0xf] }
  0x2a   : > { %1018 = vmatpush.bf16.msrb.mxu1 %v4671_v62  ;;  %1006 = vmatpush.bf16.msrb.mxu0 %v4603_v20  ;;  %v4780_v62 = vld [vmem:[%s10005_s5 + $0x1f8] sm:$0xf0]  ;;  %v4747_v8 = vor.u32 %v6448_v6, %v4746_v5  ;;  %v6439_v13 = vld [vmem:[%s10005_s5 + $0x16c] sm:$0xf0]  ;;  %v6435_v14 = vld [vmem:[%s10005_s5 + $0x154] sm:$0xf] }
  0x2b   : > { %v4783_v63 = vor.u32 %v6452_v61, %v4780_v62  ;;  %v4707_v15 = vor.u32 %v6439_v13, %v4706_v12  ;;  %v4708_v16 = vld [vmem:[%s10005_s5 + $0x170] sm:$0xf0]  ;;  %v6440_v18 = vld [vmem:[%s10005_s5 + $0x174] sm:$0xf0]  ;;  %v6436_v21 = vld [vmem:[%s10005_s5 + $0x15c] sm:$0xf] }
  0x2c   : > { %979 = vmatpush.bf16.msra.mxu2 %v4563_v30  ;;  %993 = vmatpush.bf16.msra.mxu3 %v4567_v32  ;;  %v4711_v19 = vor.u32 %v6435_v14, %v4708_v16  ;;  %v4716_v22 = vld [vmem:[%s10005_s5 + $0x178] sm:$0xf0]  ;;  %v6431_v25 = vld [vmem:[%s10005_s5 + $0x12c] sm:$0xf0]  ;;  %v6427_v26 = vld [vmem:[%s10005_s5 + $0x114] sm:$0xf] }
  0x2d   : > { %v4719_v23 = vor.u32 %v6436_v21, %v4716_v22  ;;  %v4676_v28 = vld [vmem:[%s10005_s5 + $0x130] sm:$0xf0]  ;;  %v4682_v29 = vld [vmem:[%s10005_s5 + $0x118] sm:$0xf]  ;;  %v4684_v34 = vld [vmem:[%s10005_s5 + $0x138] sm:$0xf0] }
  0x2e   : > { %1019 = vmatpush.bf16.msrb.mxu1 %v4639_v11  ;;  %1007 = vmatpush.bf16.msrb.mxu0 %v4571_v33  ;;  %v6432_v30 = vld [vmem:[%s10005_s5 + $0x134] sm:$0xf0]  ;;  %v6428_v33 = vld [vmem:[%s10005_s5 + $0x11c] sm:$0xf]  ;;  %v6419_v38 = vld [vmem:[%s10005_s5 + $0xd4] sm:$0xf] }
  0x2f   : > { %v4683_v32 = vor.u32 %v6432_v30, %v4682_v29  ;;  %v4687_v35 = vor.u32 %v6428_v33, %v4684_v34  ;;  %v4644_v40 = vld [vmem:[%s10005_s5 + $0xf0] sm:$0xf0]  ;;  %v6424_v42 = vld [vmem:[%s10005_s5 + $0xf4] sm:$0xf0]  ;;  %v6412_v56 = vld [vmem:[%s10005_s5 + $0x9c] sm:$0xf] }
  0x30   : > { %980 = vmatpush.bf16.msra.mxu2 %v4531_v45  ;;  %994 = vmatpush.bf16.msra.mxu3 %v4535_v48  ;;  %v4647_v43 = vor.u32 %v6419_v38, %v4644_v40  ;;  %v6420_v45 = vld [vmem:[%s10005_s5 + $0xdc] sm:$0xf]  ;;  %v4618_v54 = vld [vmem:[%s10005_s5 + $0x98] sm:$0xf]  ;;  %v6403_v62 = vld [vmem:[%s10005_s5 + $0x54] sm:$0xf] }
  0x31   : > { %v4620_v58 = vld [vmem:[%s10005_s5 + $0xb8] sm:$0xf0]  ;;  %v4586_v0 = vld [vmem:[%s10005_s5 + $0x58] sm:$0xf]  ;;  %v6884_v21 = vld [vmem:[%s10004_s4] ss:$0 sm:$0xff] }
  0x32   : > { %1020 = vmatpush.bf16.msrb.mxu1 %v4607_v24  ;;  %1008 = vmatpush.bf16.msrb.mxu0 %v4539_v49  ;;  %v4674_v24 = vld [vmem:[%s10005_s5 + $0x110] sm:$0xf]  ;;  %v4623_v61 = vor.u32 %v6412_v56, %v4620_v58  ;;  %v6408_v2 = vld [vmem:[%s10005_s5 + $0x74] sm:$0xf0]  ;;  %v4588_v4 = vld [vmem:[%s10005_s5 + $0x78] sm:$0xf0] }
  0x33   : > { %v4675_v27 = vor.u32 %v6431_v25, %v4674_v24  ;;  %v6415_v49 = vld [vmem:[%s10005_s5 + $0xac] sm:$0xf0]  ;;  %v4587_v6 = vor.u32 %v6408_v2, %v4586_v0  ;;  %v4554_v12 = vld [vmem:[%s10005_s5 + $0x18] sm:$0xf]  ;;  %v6396_v14 = vld [vmem:[%s10005_s5 + $0x1c] sm:$0xf] }
  0x34   : > { %1029 = vmatpush.bf16.msrb.mxu2 %v4771_v55  ;;  %1043 = vmatpush.bf16.msrb.mxu3 %v4775_v59  ;;  %v6416_v55 = vld [vmem:[%s10005_s5 + $0xb4] sm:$0xf0]  ;;  %v4578_v59 = vld [vmem:[%s10005_s5 + $0x50] sm:$0xf]  ;;  %v5026_v30 = vld [vmem:[%s10007_s7 + $0x1e0] sm:$0xf] }
  0x35   : > { %v4619_v57 = vor.u32 %v6416_v55, %v4618_v54  ;;  %v6400_v13 = vld [vmem:[%s10005_s5 + $0x34] sm:$0xf0]  ;;  %v6487_v29 = vld [vmem:[%s10007_s7 + $0xec] sm:$0xf0]  ;;  %v5154_v33 = vld [vmem:[%s10007_s7 + $0x2e0] sm:$0xf] }
  0x36   : > { %1021 = vmatpush.bf16.msrb.mxu1 %v4575_v37  ;;  %1057 = vmatpush.bf16.msra.mxu0 %v4779_v60  ;;  %v6423_v37 = vld [vmem:[%s10005_s5 + $0xec] sm:$0xf0]  ;;  %v4882_v40 = vld [vmem:[%s10007_s7 + $0xc0] sm:$0xf]  ;;  %vm1180_vm6 = vcmask 1041408   ;;  %vm1184_vm7 = vcmask 1046534  }
  0x37   : > { %v6407_v60 = vld [vmem:[%s10005_s5 + $0x6c] sm:$0xf0]  ;;  %v4994_v55 = vld [vmem:[%s10007_s7 + $0x1a0] sm:$0xf]  ;;  %vm1182_vm8 = vcmask 1044484   ;;  %vm1186_vm9 = vcmask 1045508  }
  0x38   : > { %1030 = vmatpush.bf16.msrb.mxu2 %v4739_v3  ;;  %1044 = vmatpush.bf16.msrb.mxu3 %v4743_v7  ;;  %v4579_v1 = vor.u32 %v6407_v60, %v4578_v59  ;;  %v6404_v3 = vld [vmem:[%s10005_s5 + $0x5c] sm:$0xf]  ;;  %v4546_v7 = vld [vmem:[%s10005_s5 + $0x10] sm:$0xf]  ;;  %v5250_v60 = vld [vmem:[%s10007_s7 + $0x3a0] sm:$0xf] }
  0x39   : > { %v6551_v34 = vld [vmem:[%s10007_s7 + $0x2ec] sm:$0xf0]  ;;  %v4850_v0 = vld [vmem:[%s10007_s7 + $0x80] sm:$0xf]  ;;  %vm4407_vm10 = vsmask.f32 256 }
  0x3a   : > { %1022 = vmatpush.bf16.msrb.mxu1 %v4543_v50  ;;  %1058 = vmatpush.bf16.msra.mxu0 %v4747_v8  ;;  %v6411_v50 = vld [vmem:[%s10005_s5 + $0x94] sm:$0xf]  ;;  %v6399_v8 = vld [vmem:[%s10005_s5 + $0x2c] sm:$0xf0]  ;;  %v4978_v2 = vld [vmem:[%s10007_s7 + $0x180] sm:$0xf] }
  0x3b   : > { %v4547_v16 = vor.u32 %v6399_v8, %v4546_v7  ;;  %v6583_v38 = vld [vmem:[%s10007_s7 + $0x3ec] sm:$0xf0]  ;;  %vm4409_vm11 = vcmask 1041409   ;;  %vm4410_vm12 = vsmask.f32 1280  ;;  %vm9958_vm13 = vmand %vm1176_vm4, %vm4407_vm10  ;;  %vm4396_vm2 = vcmask 1043459  }
  0x3c   : > { %1031 = vmatpush.bf16.msrb.mxu2 %v4707_v15  ;;  %1045 = vmatpush.bf16.msrb.mxu3 %v4711_v19  ;;  %v4556_v15 = vld [vmem:[%s10005_s5 + $0x38] sm:$0xf0]  ;;  %v6511_v56 = vld [vmem:[%s10007_s7 + $0x1ac] sm:$0xf0]  ;;  %vm9962_vm14 = vmand %vm4409_vm11, %vm4410_vm12  ;;  %vm4414_vm15 = vsmask.f32 2304 }
  0x3d   : > { %v4559_v19 = vor.u32 %v6396_v14, %v4556_v15  ;;  %v4995_v58 = vor.u32 %v6511_v56, %v4994_v55  ;;  %v6543_v59 = vld [vmem:[%s10007_s7 + $0x2ac] sm:$0xf0]  ;;  %v4962_v14 = vld [vmem:[%s10007_s7 + $0x160] sm:$0xf]  ;;  %vm4415_vm1 = vmand %vm1178_vm5, %vm4414_vm15  ;;  %s6857_s30 = smul.u32 5, %s10027_s25  ;;  %vm4400_vm12 = vcmask 1044483  }
  0x3f   : > { %s466_s25 = scalar_lea.vmem %s10013_s13, %s6857_s30 }
  0x40   : > { %1032 = vmatpush.bf16.msrb.mxu2 %v4675_v27 }
  0x92   : > { %v506_v10 = vpop.f32.mrf.mxu0 }
  0x93   : > { %v507_v31 = vadd.f32 %v6883_v17, %v506_v10  ;;  %v4748_v10 = vld [vmem:[%s10005_s5 + $0x1b8] sm:$0xf0] }
  0x94   : > { %v4751_v11 = vor.u32 %v6444_v9, %v4748_v10  ;;  %v6395_v9 = vld [vmem:[%s10005_s5 + $0x14] sm:$0xf]  ;;  %v4591_v10 = vor.u32 %v6404_v3, %v4588_v4  ;;  %v6507_v4 = vld [vmem:[%s10007_s7 + $0x18c] sm:$0xf0] }
  0x95   : > { %v511_v46 = vmax.f32 %v507_v31, 0.0  ;;  %v4679_v31 = vor.u32 %v6427_v26, %v4676_v28  ;;  %v4898_v28 = vld [vmem:[%s10007_s7 + $0xe0] sm:$0xf]  ;;  %v4979_v7 = vor.u32 %v6507_v4, %v4978_v2  ;;  %v6679_v2 = vld [vmem:[%s10007_s7 + $0x6ec] sm:$0xf0] }
  0x97   : > { %1046 = vmatpush.bf16.msrb.mxu3 %v4679_v31  ;;  %v4899_v31 = vor.u32 %v6487_v29, %v4898_v28  ;;  %v6499_v28 = vld [vmem:[%s10007_s7 + $0x14c] sm:$0xf0]  ;;  %v5074_v29 = vld [vmem:[%s10007_s7 + $0x240] sm:$0xf] }
  0x9a   : > { %v508_v36 = vpop.f32.mrf.mxu0 }
  0x9b   : > { %v509_v41 = vadd.f32 %v6883_v17, %v508_v36  ;;  %v4714_v17 = vld [vmem:[%s10005_s5 + $0x158] sm:$0xf]  ;;  %v4642_v36 = vld [vmem:[%s10005_s5 + $0xd0] sm:$0xf]  ;;  %1047 = vmatpush.bf16.msrb.mxu3 %v4647_v43 }
  0x9c   : > { %v4715_v20 = vor.u32 %v6440_v18, %v4714_v17  ;;  %v4643_v39 = vor.u32 %v6423_v37, %v4642_v36  ;;  %v4555_v18 = vor.u32 %v6400_v13, %v4554_v12  ;;  %v5155_v36 = vor.u32 %v6551_v34, %v5154_v33  ;;  %v5282_v37 = vld [vmem:[%s10007_s7 + $0x3e0] sm:$0xf]  ;;  %v6471_v13 = vld [vmem:[%s10007_s7 + $0x6c] sm:$0xf0] }
  0x9d   : > { %v512_v47 = vmax.f32 %v509_v41, 0.0  ;;  %v4650_v41 = vld [vmem:[%s10005_s5 + $0xd8] sm:$0xf]  ;;  %v4834_v12 = vld [vmem:[%s10007_s7 + $0x60] sm:$0xf] }
  0x9e   : > { %1059 = vmatpush.bf16.msra.mxu0 %v4715_v20  ;;  %v4651_v44 = vor.u32 %v6424_v42, %v4650_v41  ;;  %1033 = vmatpush.bf16.msrb.mxu2 %v4643_v39  ;;  %v5283_v39 = vor.u32 %v6583_v38, %v5282_v37  ;;  %v6483_v41 = vld [vmem:[%s10007_s7 + $0xcc] sm:$0xf0]  ;;  %v5010_v42 = vld [vmem:[%s10007_s7 + $0x1c0] sm:$0xf]  ;;  %v4835_v15 = vor.u32 %v6471_v13, %v4834_v12 }
  0x9f   : > { %v513_v51 = vpack.c.bf16 %v512_v47, %v511_v46  ;;  %v4652_v46 = vld [vmem:[%s10005_s5 + $0xf8] sm:$0xf0]  ;;  %v4610_v47 = vld [vmem:[%s10005_s5 + $0x90] sm:$0xf]  ;;  %v4883_v43 = vor.u32 %v6483_v41, %v4882_v40  ;;  %v5202_v33 = vld [vmem:[%s10007_s7 + $0x340] sm:$0xf] }
  0xa0   : > { %v4655_v48 = vor.u32 %v6420_v45, %v4652_v46  ;;  %v4611_v52 = vor.u32 %v6415_v49, %v4610_v47  ;;  %v5138_v45 = vld [vmem:[%s10007_s7 + $0x2c0] sm:$0xf]  ;;  %v6547_v46 = vld [vmem:[%s10007_s7 + $0x2cc] sm:$0xf0] }
  0xa1   : > { %4527 = vmatmul.msk.bf16.vlgmr.msra.gmra.mxu1 %vm550_vm3, %v513_v51  ;;  %v4612_v51 = vld [vmem:[%s10005_s5 + $0xb0] sm:$0xf0]  ;;  %v5266_v49 = vld [vmem:[%s10007_s7 + $0x3c0] sm:$0xf]  ;;  %v6563_v34 = vld [vmem:[%s10007_s7 + $0x34c] sm:$0xf0] }
  0xa2   : > { %1071 = vmatpush.bf16.msra.mxu1 %v4783_v63  ;;  %1060 = vmatpush.bf16.msra.mxu0 %v4683_v32  ;;  %v4615_v53 = vor.u32 %v6411_v50, %v4612_v51  ;;  %v4580_v63 = vld [vmem:[%s10005_s5 + $0x70] sm:$0xf0]  ;;  %v6519_v32 = vld [vmem:[%s10007_s7 + $0x1ec] sm:$0xf0]  ;;  %v5058_v41 = vld [vmem:[%s10007_s7 + $0x220] sm:$0xf] }
  0xa3   : > { %1034 = vmatpush.bf16.msrb.mxu2 %v4611_v52  ;;  %v4583_v5 = vor.u32 %v6403_v62, %v4580_v63  ;;  %v6579_v50 = vld [vmem:[%s10007_s7 + $0x3cc] sm:$0xf0]  ;;  %v4866_v52 = vld [vmem:[%s10007_s7 + $0xa0] sm:$0xf]  ;;  %vm4418_vm3 = vsmask.f32 3328 }
  0xa4   : > { %1048 = vmatpush.bf16.msrb.mxu3 %v4615_v53  ;;  %v5267_v51 = vor.u32 %v6579_v50, %v5266_v49  ;;  %v6479_v53 = vld [vmem:[%s10007_s7 + $0xac] sm:$0xf0]  ;;  %v4914_v50 = vld [vmem:[%s10007_s7 + $0x100] sm:$0xf] }
  0xa5   : > { %v4867_v54 = vor.u32 %v6479_v53, %v4866_v52  ;;  %v6463_v37 = vld [vmem:[%s10007_s7 + $0x2c] sm:$0xf0]  ;;  %v5042_v53 = vld [vmem:[%s10007_s7 + $0x200] sm:$0xf] }
  0xa6   : > { %1072 = vmatpush.bf16.msra.mxu1 %v4751_v11  ;;  %1061 = vmatpush.bf16.msra.mxu0 %v4651_v44  ;;  %v4548_v11 = vld [vmem:[%s10005_s5 + $0x30] sm:$0xf0]  ;;  %v6515_v44 = vld [vmem:[%s10007_s7 + $0x1cc] sm:$0xf0]  ;;  %v7645_v12 = vld [vmem:[%s10006_s6] sm:$0xff] }
  0xa7   : > { %1035 = vmatpush.bf16.msrb.mxu2 %v4579_v1  ;;  %v4551_v17 = vor.u32 %v6395_v9, %v4548_v11  ;;  %v5011_v47 = vor.u32 %v6515_v44, %v5010_v42  ;;  %v6475_v1 = vld [vmem:[%s10007_s7 + $0x8c] sm:$0xf0]  ;;  %v5234_v9 = vld [vmem:[%s10007_s7 + $0x380] sm:$0xf] }
  0xa8   : > { %1049 = vmatpush.bf16.msrb.mxu3 %v4583_v5  ;;  %v4851_v3 = vor.u32 %v6475_v1, %v4850_v0  ;;  %v5106_v5 = vld [vmem:[%s10007_s7 + $0x280] sm:$0xf]  ;;  %v6495_v40 = vld [vmem:[%s10007_s7 + $0x12c] sm:$0xf0] }
  0xa9   : > { %v5186_v44 = vld [vmem:[%s10007_s7 + $0x320] sm:$0xf]  ;;  %v6459_v49 = vld [vmem:[%s10007_s7 + $0xc] sm:$0xf0] }
  0xaa   : > { %1073 = vmatpush.bf16.msra.mxu1 %v4719_v23  ;;  %1062 = vmatpush.bf16.msra.mxu0 %v4619_v57  ;;  %v5122_v57 = vld [vmem:[%s10007_s7 + $0x2a0] sm:$0xf]  ;;  %v6491_v52 = vld [vmem:[%s10007_s7 + $0x10c] sm:$0xf0] }
  0xab   : > { %1036 = vmatpush.bf16.msrb.mxu2 %v4547_v16  ;;  %v5123_v62 = vor.u32 %v6543_v59, %v5122_v57  ;;  %v6503_v16 = vld [vmem:[%s10007_s7 + $0x16c] sm:$0xf0]  ;;  %v4915_v55 = vor.u32 %v6491_v52, %v4914_v50  ;;  %v5170_v57 = vld [vmem:[%s10007_s7 + $0x300] sm:$0xf] }
  0xac   : > { %1050 = vmatpush.bf16.msrb.mxu3 %v4551_v17  ;;  %v5090_v17 = vld [vmem:[%s10007_s7 + $0x260] sm:$0xf]  ;;  %v6647_v0 = vld [vmem:[%s10007_s7 + $0x5ec] sm:$0xf0] }
  0xad   : > { %v5666_v1 = vld [vmem:[%s10007_s7 + $0x6e0] sm:$0xf] }
  0xae   : > { %1074 = vmatpush.bf16.msra.mxu1 %v4687_v35  ;;  %1063 = vmatpush.bf16.msra.mxu0 %v4587_v6  ;;  %v5027_v35 = vor.u32 %v6519_v32, %v5026_v30  ;;  %v6539_v6 = vld [vmem:[%s10007_s7 + $0x28c] sm:$0xf0]  ;;  %v5667_v4 = vor.u32 %v6679_v2, %v5666_v1 }
  0xaf   : > { %v5107_v8 = vor.u32 %v6539_v6, %v5106_v5  ;;  %v6531_v30 = vld [vmem:[%s10007_s7 + $0x24c] sm:$0xf0]  ;;  %v5794_v5 = vld [vmem:[%s10007_s7 + $0x7e0] sm:$0xf] }
  0xb0   : > { %v5075_v32 = vor.u32 %v6531_v30, %v5074_v29  ;;  %v6711_v6 = vld [vmem:[%s10007_s7 + $0x7ec] sm:$0xf0]  ;;  %v5634_v30 = vld [vmem:[%s10007_s7 + $0x6a0] sm:$0xf] }
  0xb1   : > { %v6631_v2 = vld [vmem:[%s10007_s7 + $0x56c] sm:$0xf0] }
  0xb2   : > { %1075 = vmatpush.bf16.msra.mxu1 %v4655_v48  ;;  %1064 = vmatpush.bf16.msra.mxu0 %v4555_v18  ;;  %v5139_v48 = vor.u32 %v6547_v46, %v5138_v45  ;;  %v6535_v18 = vld [vmem:[%s10007_s7 + $0x26c] sm:$0xf0] }
  0xb3   : > { %v6559_v45 = vld [vmem:[%s10007_s7 + $0x32c] sm:$0xf0] }
  0xb6   : > { %1076 = vmatpush.bf16.msra.mxu1 %v4623_v61  ;;  %v6575_v61 = vld [vmem:[%s10007_s7 + $0x3ac] sm:$0xf0] }
  0xb7   : > { %v5251_v63 = vor.u32 %v6575_v61, %v5250_v60  ;;  %v5410_v60 = vld [vmem:[%s10007_s7 + $0x4e0] sm:$0xf]  ;;  %v6615_v61 = vld [vmem:[%s10007_s7 + $0x4ec] sm:$0xf0] }
  0xba   : > { %1077 = vmatpush.bf16.msra.mxu1 %v4591_v10  ;;  %v6571_v10 = vld [vmem:[%s10007_s7 + $0x38c] sm:$0xf0] }
  0xbb   : > { %v5235_v11 = vor.u32 %v6571_v10, %v5234_v9  ;;  %v6611_v9 = vld [vmem:[%s10007_s7 + $0x4cc] sm:$0xf0]  ;;  %v5522_v10 = vld [vmem:[%s10007_s7 + $0x5c0] sm:$0xf] }
  0xbe   : > { %1078 = vmatpush.bf16.msra.mxu1 %v4559_v19  ;;  %v4963_v19 = vor.u32 %v6503_v16, %v4962_v14 }
 0x11e   : > { %v563_v20 = vpop.f32.mrf.mxu1 }
 0x11f   : > { %v564_v22 = vadd.f32 %v6884_v21, %v563_v20  ;;  %v5091_v20 = vor.u32 %v6535_v18, %v5090_v17  ;;  %v5650_v17 = vld [vmem:[%s10007_s7 + $0x6c0] sm:$0xf]  ;;  %v6675_v18 = vld [vmem:[%s10007_s7 + $0x6cc] sm:$0xf0] }
 0x121   : > { %v568_v25 = vmax.f32 %v564_v22, 0.0  ;;  %v6567_v22 = vld [vmem:[%s10007_s7 + $0x36c] sm:$0xf0] }
 0x126   : > { %v565_v23 = vpop.f32.mrf.mxu1 }
 0x127   : > { %v566_v24 = vadd.f32 %v6884_v21, %v565_v23  ;;  %v5218_v21 = vld [vmem:[%s10007_s7 + $0x360] sm:$0xf] }
 0x128   : > { %v5219_v23 = vor.u32 %v6567_v22, %v5218_v21  ;;  %v6707_v21 = vld [vmem:[%s10007_s7 + $0x7cc] sm:$0xf0] }
 0x129   : > { %v569_v26 = vmax.f32 %v566_v24, 0.0  ;;  %v4818_v24 = vld [vmem:[%s10007_s7 + $0x40] sm:$0xf] }
 0x12b   : > { %v570_v27 = vpack.c.bf16 %v569_v26, %v568_v25  ;;  %v6467_v25 = vld [vmem:[%s10007_s7 + $0x4c] sm:$0xf0]  ;;  %v4946_v26 = vld [vmem:[%s10007_s7 + $0x140] sm:$0xf] }
 0x12d   : > { %981 = vmatmul.bf16.vlgmr.msra.gmra.mxu2 %v570_v27  ;;  %995 = vmatmul.bf16.vlgmr.msra.gmra.mxu3 %v570_v27 }
 0x12e   : > { %1009 = vmatmul.bf16.vlgmr.msrb.gmra.mxu0 %v570_v27  ;;  %1023 = vmatmul.bf16.vlgmr.msrb.gmra.mxu1 %v570_v27 }
 0x12f   : > { %2802 = vmatpush.bf16.msra.mxu2 %v4899_v31  ;;  %2815 = vmatpush.bf16.msra.mxu3 %v5027_v35  ;;  %v4947_v31 = vor.u32 %v6499_v28, %v4946_v26  ;;  %v5203_v35 = vor.u32 %v6563_v34, %v5202_v33  ;;  %v6639_v28 = vld [vmem:[%s10007_s7 + $0x5ac] sm:$0xf0]  ;;  %v640_v33 = vperm.slane %v7645_v12, 3 }
 0x130   : > { %2828 = vmatpush.bf16.msrb.mxu0 %v5155_v36  ;;  %2841 = vmatpush.bf16.msrb.mxu1 %v5283_v39  ;;  %v4802_v36 = vld [vmem:[%s10007_s7 + $0x20] sm:$0xf] }
 0x131   : > { %v4803_v38 = vor.u32 %v6463_v37, %v4802_v36  ;;  %v4930_v39 = vld [vmem:[%s10007_s7 + $0x120] sm:$0xf]  ;;  %v6703_v37 = vld [vmem:[%s10007_s7 + $0x7ac] sm:$0xf0] }
 0x132   : > { %v4931_v42 = vor.u32 %v6495_v40, %v4930_v39  ;;  %v5362_v39 = vld [vmem:[%s10007_s7 + $0x480] sm:$0xf]  ;;  %v6603_v40 = vld [vmem:[%s10007_s7 + $0x48c] sm:$0xf0] }
 0x133   : > { %2803 = vmatpush.bf16.msra.mxu2 %v4883_v43  ;;  %2816 = vmatpush.bf16.msra.mxu3 %v5011_v47  ;;  %v6527_v43 = vld [vmem:[%s10007_s7 + $0x22c] sm:$0xf0]  ;;  %v5187_v47 = vor.u32 %v6559_v45, %v5186_v44  ;;  %v5618_v45 = vld [vmem:[%s10007_s7 + $0x680] sm:$0xf] }
 0x134   : > { %2829 = vmatpush.bf16.msrb.mxu0 %v5139_v48  ;;  %2842 = vmatpush.bf16.msrb.mxu1 %v5267_v51  ;;  %v5059_v46 = vor.u32 %v6527_v43, %v5058_v41  ;;  %v4786_v48 = vld [vmem:[%s10007_s7] sm:$0xf]  ;;  %v5363_v43 = vor.u32 %v6603_v40, %v5362_v39  ;;  %v6635_v44 = vld [vmem:[%s10007_s7 + $0x58c] sm:$0xf0] }
 0x135   : > { %v4787_v51 = vor.u32 %v6459_v49, %v4786_v48  ;;  %v5490_v41 = vld [vmem:[%s10007_s7 + $0x580] sm:$0xf]  ;;  %v638_v48 = vperm.slane %v7645_v12, 1 }
 0x136   : > { %v5314_v40 = vld [vmem:[%s10007_s7 + $0x420] sm:$0xf] }
 0x137   : > { %2804 = vmatpush.bf16.msra.mxu2 %v4867_v54  ;;  %2817 = vmatpush.bf16.msra.mxu3 %v4995_v58  ;;  %v6523_v54 = vld [vmem:[%s10007_s7 + $0x20c] sm:$0xf0] }
 0x138   : > { %2830 = vmatpush.bf16.msrb.mxu0 %v5123_v62  ;;  %2843 = vmatpush.bf16.msrb.mxu1 %v5251_v63  ;;  %v5043_v56 = vor.u32 %v6523_v54, %v5042_v53  ;;  %v6555_v58 = vld [vmem:[%s10007_s7 + $0x30c] sm:$0xf0]  ;;  %v5538_v62 = vld [vmem:[%s10007_s7 + $0x5e0] sm:$0xf]  ;;  %v5411_v63 = vor.u32 %v6615_v61, %v5410_v60 }
 0x139   : > { %v5171_v59 = vor.u32 %v6555_v58, %v5170_v57  ;;  %v5746_v53 = vld [vmem:[%s10007_s7 + $0x780] sm:$0xf]  ;;  %v6699_v54 = vld [vmem:[%s10007_s7 + $0x78c] sm:$0xf0] }
 0x13a   : > { %v5747_v58 = vor.u32 %v6699_v54, %v5746_v53  ;;  %v6599_v60 = vld [vmem:[%s10007_s7 + $0x46c] sm:$0xf0]  ;;  %v5474_v61 = vld [vmem:[%s10007_s7 + $0x560] sm:$0xf] }
 0x13b   : > { %2805 = vmatpush.bf16.msra.mxu2 %v4851_v3  ;;  %2818 = vmatpush.bf16.msra.mxu3 %v4979_v7  ;;  %v5539_v3 = vor.u32 %v6647_v0, %v5538_v62  ;;  %v5394_v7 = vld [vmem:[%s10007_s7 + $0x4c0] sm:$0xf]  ;;  %v6655_v54 = vld [vmem:[%s10007_s7 + $0x62c] sm:$0xf0] }
 0x13c   : > { %2831 = vmatpush.bf16.msrb.mxu0 %v5107_v8  ;;  %2844 = vmatpush.bf16.msrb.mxu1 %v5235_v11  ;;  %v5795_v8 = vor.u32 %v6711_v6, %v5794_v5  ;;  %v6643_v11 = vld [vmem:[%s10007_s7 + $0x5cc] sm:$0xf0]  ;;  %v5602_v5 = vld [vmem:[%s10007_s7 + $0x660] sm:$0xf] }
 0x13d   : > { %1037 = vmatmul.bf16.vlgmr.msrb.gmra.mxu2 %v570_v27  ;;  %1051 = vmatmul.bf16.vlgmr.msrb.gmra.mxu3 %v570_v27  ;;  %v5523_v16 = vor.u32 %v6643_v11, %v5522_v10  ;;  %v6663_v6 = vld [vmem:[%s10007_s7 + $0x66c] sm:$0xf0] }
 0x13e   : > { %1065 = vmatmul.bf16.vlgmr.msra.gmra.mxu0 %v570_v27  ;;  %1079 = vmatmul.bf16.vlgmr.msra.gmra.mxu1 %v570_v27  ;;  %v4819_v27 = vor.u32 %v6467_v25, %v4818_v24  ;;  %v6607_v24 = vld [vmem:[%s10007_s7 + $0x4ac] sm:$0xf0]  ;;  %v639_v25 = vperm.slane %v7645_v12, 2 }
 0x13f   : > { %2806 = vmatpush.bf16.msra.mxu2 %v4835_v15  ;;  %2819 = vmatpush.bf16.msra.mxu3 %v4963_v19  ;;  %v5395_v15 = vor.u32 %v6611_v9, %v5394_v7  ;;  %v5651_v19 = vor.u32 %v6675_v18, %v5650_v17  ;;  %v5730_v7 = vld [vmem:[%s10007_s7 + $0x760] sm:$0xf] }
 0x140   : > { %2832 = vmatpush.bf16.msrb.mxu0 %v5091_v20  ;;  %2845 = vmatpush.bf16.msrb.mxu1 %v5219_v23  ;;  %v5778_v20 = vld [vmem:[%s10007_s7 + $0x7c0] sm:$0xf] }
 0x141   : > { %v5779_v22 = vor.u32 %v6707_v21, %v5778_v20  ;;  %v5378_v23 = vld [vmem:[%s10007_s7 + $0x4a0] sm:$0xf]  ;;  %v6595_v20 = vld [vmem:[%s10007_s7 + $0x44c] sm:$0xf0] }
 0x142   : > { %v5379_v26 = vor.u32 %v6607_v24, %v5378_v23  ;;  %v5458_v21 = vld [vmem:[%s10007_s7 + $0x540] sm:$0xf]  ;;  %v6627_v24 = vld [vmem:[%s10007_s7 + $0x54c] sm:$0xf0] }
 0x143   : > { %2807 = vmatpush.bf16.msra.mxu2 %v4819_v27  ;;  %2820 = vmatpush.bf16.msra.mxu3 %v4947_v31  ;;  %v5506_v27 = vld [vmem:[%s10007_s7 + $0x5a0] sm:$0xf]  ;;  %v6671_v31 = vld [vmem:[%s10007_s7 + $0x6ac] sm:$0xf0] }
 0x144   : > { %2833 = vmatpush.bf16.msrb.mxu0 %v5075_v32  ;;  %2846 = vmatpush.bf16.msrb.mxu1 %v5203_v35  ;;  %v5507_v29 = vor.u32 %v6639_v28, %v5506_v27  ;;  %v5762_v32 = vld [vmem:[%s10007_s7 + $0x7a0] sm:$0xf]  ;;  %v5635_v36 = vor.u32 %v6671_v31, %v5634_v30  ;;  %v5459_v31 = vor.u32 %v6627_v24, %v5458_v21 }
 0x147   : > { %2808 = vmatpush.bf16.msra.mxu2 %v4803_v38  ;;  %2821 = vmatpush.bf16.msra.mxu3 %v4931_v42  ;;  %v5763_v38 = vor.u32 %v6703_v37, %v5762_v32  ;;  %v6659_v32 = vld [vmem:[%s10007_s7 + $0x64c] sm:$0xf0] }
 0x148   : > { %2834 = vmatpush.bf16.msrb.mxu0 %v5059_v46  ;;  %2847 = vmatpush.bf16.msrb.mxu1 %v5187_v47  ;;  %v6667_v46 = vld [vmem:[%s10007_s7 + $0x68c] sm:$0xf0]  ;;  %v637_v47 = vperm.slane %v7645_v12, 0 }
 0x149   : > { %v5619_v52 = vor.u32 %v6667_v46, %v5618_v45 }
 0x14b   : > { %2809 = vmatpush.bf16.msra.mxu2 %v4787_v51  ;;  %2822 = vmatpush.bf16.msra.mxu3 %v4915_v55  ;;  %v5491_v51 = vor.u32 %v6635_v44, %v5490_v41  ;;  %v6591_v41 = vld [vmem:[%s10007_s7 + $0x42c] sm:$0xf0]  ;;  %v5442_v44 = vld [vmem:[%s10007_s7 + $0x520] sm:$0xf] }
 0x14c   : > { %2835 = vmatpush.bf16.msrb.mxu0 %v5043_v56  ;;  %2848 = vmatpush.bf16.msrb.mxu1 %v5171_v59  ;;  %v5346_v59 = vld [vmem:[%s10007_s7 + $0x460] sm:$0xf] }
 0x14d   : > { %v5347_v1 = vor.u32 %v6599_v60, %v5346_v59  ;;  %v641_v59 = vperm.slane %v7645_v12, 4  ;;  %v5298_v60 = vld [vmem:[%s10007_s7 + $0x400] sm:$0xf] }
 0x14f   : > { %2854 = vmatpush.bf16.msrb.mxu2 %v5411_v63  ;;  %2867 = vmatpush.bf16.msrb.mxu3 %v5539_v3 }
 0x150   : > { %2880 = vmatpush.bf16.msra.mxu0 %v5667_v4  ;;  %2893 = vmatpush.bf16.msra.mxu1 %v5795_v8  ;;  %v5475_v4 = vor.u32 %v6631_v2, %v5474_v61  ;;  %v6619_v2 = vld [vmem:[%s10007_s7 + $0x50c] sm:$0xf0] }
 0x153   : > { %2855 = vmatpush.bf16.msrb.mxu2 %v5395_v15  ;;  %2868 = vmatpush.bf16.msrb.mxu3 %v5523_v16 }
 0x154   : > { %2881 = vmatpush.bf16.msra.mxu0 %v5651_v19  ;;  %2894 = vmatpush.bf16.msra.mxu1 %v5779_v22  ;;  %v5330_v19 = vld [vmem:[%s10007_s7 + $0x440] sm:$0xf] }
 0x155   : > { %v5331_v23 = vor.u32 %v6595_v20, %v5330_v19 }
 0x157   : > { %2856 = vmatpush.bf16.msrb.mxu2 %v5379_v26  ;;  %2869 = vmatpush.bf16.msrb.mxu3 %v5507_v29 }
 0x158   : > { %2882 = vmatpush.bf16.msra.mxu0 %v5635_v36  ;;  %2895 = vmatpush.bf16.msra.mxu1 %v5763_v38 }
 0x15b   : > { %2857 = vmatpush.bf16.msrb.mxu2 %v5363_v43  ;;  %2870 = vmatpush.bf16.msrb.mxu3 %v5491_v51  ;;  %v644_v43 = vperm.slane %v7645_v12, 7 }
 0x15c   : > { %2883 = vmatpush.bf16.msra.mxu0 %v5619_v52  ;;  %2896 = vmatpush.bf16.msra.mxu1 %v5747_v58 }
 0x15f   : > { %2858 = vmatpush.bf16.msrb.mxu2 %v5347_v1  ;;  %2871 = vmatpush.bf16.msrb.mxu3 %v5475_v4  ;;  %v5426_v1 = vld [vmem:[%s10007_s7 + $0x500] sm:$0xf] }
 0x163   : > { %2859 = vmatpush.bf16.msrb.mxu2 %v5331_v23  ;;  %2872 = vmatpush.bf16.msrb.mxu3 %v5459_v31 }
 0x1ab   : > { %v1010_v13 = vpop.f32.mrf.mxu0  ;;  %v1024_v14 = vpop.f32.mrf.mxu1 }
 0x1ac   : > { %v1011_v42 = vadd.f32 %v1010_v13, %v639_v25  ;;  %v1025_v55 = vadd.f32 %v1024_v14, %v640_v33  ;;  %v5603_v13 = vor.u32 %v6663_v6, %v5602_v5  ;;  %v6695_v14 = vld [vmem:[%s10007_s7 + $0x76c] sm:$0xf0]  ;;  %v642_v5 = vperm.slane %v7645_v12, 5 }
 0x1ad   : > { %v5731_v18 = vor.u32 %v6695_v14, %v5730_v7  ;;  %v5682_v14 = vld [vmem:[%s10007_s7 + $0x700] sm:$0xf] }
 0x1ae   : > { %v1087_v62 = vmax.f32 %v1011_v42, 0.0  ;;  %v1088_v8 = vmax.f32 %v1025_v55, 0.0  ;;  %2884 = vmatpush.bf16.msra.mxu0 %v5603_v13  ;;  %v5698_v55 = vld [vmem:[%s10007_s7 + $0x720] sm:$0xf]  ;;  %v6651_v13 = vld [vmem:[%s10007_s7 + $0x60c] sm:$0xf0] }
 0x1af   : > { %2897 = vmatpush.bf16.msra.mxu1 %v5731_v18  ;;  %v5427_v18 = vor.u32 %v6619_v2, %v5426_v1 }
 0x1b0   : > { %v982_v34 = vpop.f32.mrf.mxu2  ;;  %v996_v35 = vpop.f32.mrf.mxu3 }
 0x1b1   : > { %v997_v3 = vadd.f32 %v996_v35, %v638_v48  ;;  %v983_v9 = vadd.f32 %v982_v34, %v637_v47  ;;  %v5714_v34 = vld [vmem:[%s10007_s7 + $0x740] sm:$0xf]  ;;  %v6691_v35 = vld [vmem:[%s10007_s7 + $0x74c] sm:$0xf0] }
 0x1b3   : > { %v1012_v49 = vpop.f32.mrf.mxu0  ;;  %v1026_v50 = vpop.f32.mrf.mxu1  ;;  %v1086_v26 = vmax.f32 %v997_v3, 0.0  ;;  %v1085_v36 = vmax.f32 %v983_v9, 0.0 }
 0x1b4   : > { %v1013_v56 = vadd.f32 %v1012_v49, %v639_v25  ;;  %v1027_v57 = vadd.f32 %v1026_v50, %v640_v33  ;;  %v5586_v25 = vld [vmem:[%s10007_s7 + $0x640] sm:$0xf]  ;;  %v643_v33 = vperm.slane %v7645_v12, 6  ;;  %v6623_v49 = vld [vmem:[%s10007_s7 + $0x52c] sm:$0xf0] }
 0x1b5   : > { %v5587_v39 = vor.u32 %v6659_v32, %v5586_v25  ;;  %v5570_v50 = vld [vmem:[%s10007_s7 + $0x620] sm:$0xf]  ;;  %v5443_v53 = vor.u32 %v6623_v49, %v5442_v44  ;;  %v6683_v12 = vld [vmem:[%s10007_s7 + $0x70c] sm:$0xf0] }
 0x1b6   : > { %v1095_v63 = vmax.f32 %v1013_v56, 0.0  ;;  %v1096_v0 = vmax.f32 %v1027_v57, 0.0  ;;  %v6687_v56 = vld [vmem:[%s10007_s7 + $0x72c] sm:$0xf0] }
 0x1b7   : > { %2885 = vmatpush.bf16.msra.mxu0 %v5587_v39  ;;  %2873 = vmatpush.bf16.msrb.mxu3 %v5443_v53 }
 0x1b8   : > { %v984_v10 = vpop.f32.mrf.mxu2  ;;  %v998_v11 = vpop.f32.mrf.mxu3  ;;  %v1115_v15 = vmax.f32 %v1087_v62, %v1095_v63  ;;  %v1122_v22 = vmax.f32 %v1088_v8, %v1096_v0  ;;  %v5571_v62 = vor.u32 %v6655_v54, %v5570_v50  ;;  %v5699_v63 = vor.u32 %v6687_v56, %v5698_v55  ;;  %v6587_v0 = vld [vmem:[%s10007_s7 + $0x40c] sm:$0xf0]  ;;  %v5554_v8 = vld [vmem:[%s10007_s7 + $0x600] sm:$0xf] }
 0x1b9   : > { %v985_v16 = vadd.f32 %v984_v10, %v637_v47  ;;  %v999_v17 = vadd.f32 %v998_v11, %v638_v48  ;;  %v5715_v47 = vor.u32 %v6691_v35, %v5714_v34  ;;  %v5315_v48 = vor.u32 %v6591_v41, %v5314_v40 }
 0x1ba   : > { %v1116_v37 = vrot.slane %v1115_v15, 4  ;;  %v1123_v42 = vrot.slane %v1122_v22, 4  ;;  %v5555_v25 = vor.u32 %v6651_v13, %v5554_v8 }
 0x1bb   : > { %v1093_v27 = vmax.f32 %v985_v16, 0.0  ;;  %v1094_v28 = vmax.f32 %v999_v17, 0.0  ;;  %v1066_v29 = vpop.f32.mrf.mxu0  ;;  %v1080_v30 = vpop.f32.mrf.mxu1  ;;  %2898 = vmatpush.bf16.msra.mxu1 %v5715_v47  ;;  %2860 = vmatpush.bf16.msrb.mxu2 %v5315_v48  ;;  %v5299_v17 = vor.u32 %v6587_v0, %v5298_v60 }
 0x1bc   : > { %v1117_v57 = vmax.f32 %v1115_v15, %v1116_v37  ;;  %v1067_v58 = vadd.f32 %v1066_v29, %v643_v33  ;;  %v1081_v61 = vadd.f32 %v1080_v30, %v644_v43  ;;  %v1124_v9 = vmax.f32 %v1122_v22, %v1123_v42  ;;  %2886 = vmatpush.bf16.msra.mxu0 %v5571_v62 }
 0x1bd   : > { %v1108_v38 = vmax.f32 %v1086_v26, %v1094_v28  ;;  %v1101_v45 = vmax.f32 %v1085_v36, %v1093_v27  ;;  %2874 = vmatpush.bf16.msrb.mxu3 %v5427_v18  ;;  %v5683_v26 = vor.u32 %v6683_v12, %v5682_v14 }
 0x1be   : > { %v1118_v15 = vrot.slane %v1117_v57, 2  ;;  %v1091_v16 = vmax.f32 %v1067_v58, 0.0  ;;  %v1092_v19 = vmax.f32 %v1081_v61, 0.0  ;;  %v1125_v27 = vrot.slane %v1124_v9, 2 }
 0x1bf   : > { %v1109_v46 = vrot.slane %v1108_v38, 4  ;;  %v1102_v3 = vrot.slane %v1101_v45, 4  ;;  %2899 = vmatpush.bf16.msra.mxu1 %v5699_v63  ;;  %2861 = vmatpush.bf16.msrb.mxu2 %v5299_v17 }
 0x1c0   : > { %v1038_v51 = vpop.f32.mrf.mxu2  ;;  %v1052_v52 = vpop.f32.mrf.mxu3  ;;  %2887 = vmatpush.bf16.msra.mxu0 %v5555_v25  ;;  %v1119_v35 = vmax.f32 %v1117_v57, %v1118_v15  ;;  %v6485_v25 = vld [vmem:[%s10007_s7 + $0xe4] sm:$0xf] }
 0x1c1   : > { %v1110_v4 = vmax.f32 %v1108_v38, %v1109_v46  ;;  %v1039_v20 = vadd.f32 %v1038_v51, %v641_v59  ;;  %v1053_v24 = vadd.f32 %v1052_v52, %v642_v5  ;;  %v1103_v28 = vmax.f32 %v1101_v45, %v1102_v3 }
 0x1c2   : > { %v1120_v51 = vrot.slane %v1119_v35, 1 }
 0x1c3   : > { %v1068_v6 = vpop.f32.mrf.mxu0  ;;  %v1082_v7 = vpop.f32.mrf.mxu1  ;;  %v1111_v23 = vrot.slane %v1110_v4, 2  ;;  %v1089_v36 = vmax.f32 %v1039_v20, 0.0  ;;  %2900 = vmatpush.bf16.msra.mxu1 %v5683_v26  ;;  %v1090_v40 = vmax.f32 %v1053_v24, 0.0  ;;  %v1104_v44 = vrot.slane %v1103_v28, 2 }
 0x1c4   : > { %v1069_v10 = vadd.f32 %v1068_v6, %v643_v33  ;;  %v1083_v11 = vadd.f32 %v1082_v7, %v644_v43  ;;  %v1126_v43 = vmax.f32 %v1124_v9, %v1125_v27  ;;  %v1121_v2 = vmax.f32 %v1119_v35, %v1120_v51  ;;  %v5012_v51 = vld [vmem:[%s10007_s7 + $0x1d0] sm:$0xf0] }
 0x1c5   : > { %v1112_v39 = vmax.f32 %v1110_v4, %v1111_v23  ;;  %v1105_v56 = vmax.f32 %v1103_v28, %v1104_v44  ;;  %v4900_v28 = vld [vmem:[%s10007_s7 + $0xf0] sm:$0xf0] }
 0x1c6   : > { %v1099_v21 = vmax.f32 %v1069_v10, 0.0  ;;  %v1100_v22 = vmax.f32 %v1083_v11, 0.0  ;;  %v1127_v55 = vrot.slane %v1126_v43, 1  ;;  %v1170_v13 = vrot.slane %v1121_v2, 6  ;;  %v6573_v2 = vld [vmem:[%s10007_s7 + $0x3a4] sm:$0xf] }
 0x1c7   : > { %v1113_v52 = vrot.slane %v1112_v39, 1  ;;  %v1106_v4 = vrot.slane %v1105_v56, 1 }
 0x1c8   : > { %v1143_v29 = vmax.f32 %v1091_v16, %v1099_v21  ;;  %v1150_v30 = vmax.f32 %v1092_v19, %v1100_v22  ;;  %v1040_v31 = vpop.f32.mrf.mxu2  ;;  %v1054_v32 = vpop.f32.mrf.mxu3  ;;  %v1128_v3 = vmax.f32 %v1126_v43, %v1127_v55  ;;  %v5268_v55 = vld [vmem:[%s10007_s7 + $0x3d0] sm:$0xf0] }
 0x1c9   : > { %v1041_v33 = vadd.f32 %v1040_v31, %v641_v59  ;;  %v1055_v34 = vadd.f32 %v1054_v32, %v642_v5  ;;  %v1114_v63 = vmax.f32 %v1112_v39, %v1113_v52  ;;  %v1107_v12 = vmax.f32 %v1105_v56, %v1106_v4  ;;  %v6549_v32 = vld [vmem:[%s10007_s7 + $0x2e4] sm:$0xf]  ;;  %v5284_v39 = vld [vmem:[%s10007_s7 + $0x3f0] sm:$0xf0] }
 0x1ca   : > { %v1144_v37 = vrot.slane %v1143_v29, 4  ;;  %v1151_v38 = vrot.slane %v1150_v30, 4  ;;  %v1171_v14 = vrot.slane %v1128_v3, 5  ;;  %v6545_v52 = vld [vmem:[%s10007_s7 + $0x2c4] sm:$0xf] }
 0x1cb   : > { %v1097_v41 = vmax.f32 %v1041_v33, 0.0  ;;  %v1098_v42 = vmax.f32 %v1055_v34, 0.0  ;;  %v1169_v9 = vrot.slane %v1114_v63, 7  ;;  %v5156_v33 = vld [vmem:[%s10007_s7 + $0x2f0] sm:$0xf0] }
 0x1cc   : > { %v1145_v46 = vmax.f32 %v1143_v29, %v1144_v37  ;;  %v1152_v45 = vmax.f32 %v1150_v30, %v1151_v38  ;;  %v1179_v22 = vsel %vm1178_vm5, %v1170_v13, %v1171_v14  ;;  %v6517_v29 = vld [vmem:[%s10007_s7 + $0x1e4] sm:$0xf]  ;;  %v5028_v30 = vld [vmem:[%s10007_s7 + $0x1f0] sm:$0xf0]  ;;  %vm4421_vm5 = vcmask 520196  }
 0x1cd   : > { %v1129_v47 = vmax.f32 %v1089_v36, %v1097_v41  ;;  %v1136_v48 = vmax.f32 %v1090_v40, %v1098_v42  ;;  %v1177_v19 = vsel %vm1176_vm4, %v1107_v12, %v1169_v9  ;;  %v6581_v34 = vld [vmem:[%s10007_s7 + $0x3e4] sm:$0xf]  ;;  %v4903_v40 = vor.u32 %v6485_v25, %v4900_v28  ;;  %v4996_v63 = vld [vmem:[%s10007_s7 + $0x1b0] sm:$0xf0] }
 0x1ce   : > { %v1146_v49 = vrot.slane %v1145_v46, 2  ;;  %v1153_v50 = vrot.slane %v1152_v45, 2  ;;  %v1181_v26 = vsel %vm1180_vm6, %v1177_v19, %v1179_v22  ;;  %v5031_v41 = vor.u32 %v6517_v29, %v5028_v30  ;;  %v5252_v3 = vld [vmem:[%s10007_s7 + $0x3b0] sm:$0xf0]  ;;  %v6537_v13 = vld [vmem:[%s10007_s7 + $0x284] sm:$0xf] }
 0x1cf   : > { %v1130_v53 = vrot.slane %v1129_v47, 4  ;;  %v1137_v54 = vrot.slane %v1136_v48, 4  ;;  %v5255_v9 = vor.u32 %v6573_v2, %v5252_v3  ;;  %v5108_v14 = vld [vmem:[%s10007_s7 + $0x290] sm:$0xf0]  ;;  %v6569_v12 = vld [vmem:[%s10007_s7 + $0x384] sm:$0xf] }
 0x1d0   : > { %v1147_v57 = vmax.f32 %v1145_v46, %v1146_v49  ;;  %v1154_v58 = vmax.f32 %v1152_v45, %v1153_v50  ;;  %v6481_v45 = vld [vmem:[%s10007_s7 + $0xc4] sm:$0xf]  ;;  %v5287_v49 = vor.u32 %v6581_v34, %v5284_v39  ;;  %v5092_v29 = vld [vmem:[%s10007_s7 + $0x270] sm:$0xf0] }
 0x1d1   : > { %v1131_v59 = vmax.f32 %v1129_v47, %v1130_v53  ;;  %v1138_v60 = vmax.f32 %v1136_v48, %v1137_v54  ;;  %v4884_v47 = vld [vmem:[%s10007_s7 + $0xd0] sm:$0xf0]  ;;  %v5159_v48 = vor.u32 %v6549_v32, %v5156_v33  ;;  %v6513_v50 = vld [vmem:[%s10007_s7 + $0x1c4] sm:$0xf] }
 0x1d2   : > { %v1148_v61 = vrot.slane %v1147_v57, 1  ;;  %v1155_v62 = vrot.slane %v1154_v58, 1  ;;  %v5140_v53 = vld [vmem:[%s10007_s7 + $0x2d0] sm:$0xf0]  ;;  %v6577_v54 = vld [vmem:[%s10007_s7 + $0x3c4] sm:$0xf]  ;;  %v4887_v56 = vor.u32 %v6481_v45, %v4884_v47 }
 0x1d3   : > { %v1132_v0 = vrot.slane %v1131_v59, 2  ;;  %v1139_v1 = vrot.slane %v1138_v60, 2  ;;  %v6501_v22 = vld [vmem:[%s10007_s7 + $0x164] sm:$0xf]  ;;  %v5220_v32 = vld [vmem:[%s10007_s7 + $0x370] sm:$0xf0] }
 0x1d4   : > { %v1149_v5 = vmax.f32 %v1147_v57, %v1148_v61  ;;  %v1156_v6 = vmax.f32 %v1154_v58, %v1155_v62  ;;  %v5015_v57 = vor.u32 %v6513_v50, %v5012_v51  ;;  %v6477_v58 = vld [vmem:[%s10007_s7 + $0xa4] sm:$0xf]  ;;  %v5271_v61 = vor.u32 %v6577_v54, %v5268_v55  ;;  %v4948_v47 = vld [vmem:[%s10007_s7 + $0x150] sm:$0xf0] }
 0x1d5   : > { %v1133_v7 = vmax.f32 %v1131_v59, %v1132_v0  ;;  %v1140_v8 = vmax.f32 %v1138_v60, %v1139_v1  ;;  %v4868_v59 = vld [vmem:[%s10007_s7 + $0xb0] sm:$0xf0]  ;;  %v5143_v60 = vor.u32 %v6545_v52, %v5140_v53  ;;  %v6509_v62 = vld [vmem:[%s10007_s7 + $0x1a4] sm:$0xf] }
 0x1d6   : > { %v1174_v15 = vrot.slane %v1149_v5, 2  ;;  %v1175_v16 = vrot.slane %v1156_v6, 1  ;;  %v6541_v0 = vld [vmem:[%s10007_s7 + $0x2a4] sm:$0xf]  ;;  %v5124_v1 = vld [vmem:[%s10007_s7 + $0x2b0] sm:$0xf0]  ;;  %v4871_v4 = vor.u32 %v6477_v58, %v4868_v59  ;;  %v4999_v5 = vor.u32 %v6509_v62, %v4996_v63 }
 0x1d7   : > { %v1134_v10 = vrot.slane %v1133_v7, 1  ;;  %v1141_v11 = vrot.slane %v1140_v8, 1  ;;  %v6473_v6 = vld [vmem:[%s10007_s7 + $0x84] sm:$0xf]  ;;  %v5204_v51 = vld [vmem:[%s10007_s7 + $0x350] sm:$0xf0] }
 0x1d8   : > { %v1185_v23 = vsel %vm1184_vm7, %v1174_v15, %v1175_v16  ;;  %v5236_v15 = vld [vmem:[%s10007_s7 + $0x390] sm:$0xf0]  ;;  %v6469_v16 = vld [vmem:[%s10007_s7 + $0x64] sm:$0xf] }
 0x1d9   : > { %v1135_v17 = vmax.f32 %v1133_v7, %v1134_v10  ;;  %v1142_v18 = vmax.f32 %v1140_v8, %v1141_v11  ;;  %v4852_v7 = vld [vmem:[%s10007_s7 + $0x90] sm:$0xf0]  ;;  %v5127_v8 = vor.u32 %v6541_v0, %v5124_v1  ;;  %v6505_v10 = vld [vmem:[%s10007_s7 + $0x184] sm:$0xf]  ;;  %v5239_v25 = vor.u32 %v6569_v12, %v5236_v15 }
 0x1da   : > { %v4980_v11 = vld [vmem:[%s10007_s7 + $0x190] sm:$0xf0]  ;;  %v6533_v28 = vld [vmem:[%s10007_s7 + $0x264] sm:$0xf] }
 0x1db   : > { %v1172_v20 = vrot.slane %v1135_v17, 4  ;;  %v1173_v21 = vrot.slane %v1142_v18, 3  ;;  %v4836_v17 = vld [vmem:[%s10007_s7 + $0x70] sm:$0xf0]  ;;  %v4855_v18 = vor.u32 %v6473_v6, %v4852_v7  ;;  %v4983_v19 = vor.u32 %v6505_v10, %v4980_v11  ;;  %v6565_v30 = vld [vmem:[%s10007_s7 + $0x364] sm:$0xf] }
 0x1dc   : > { %v4839_v33 = vor.u32 %v6469_v16, %v4836_v17  ;;  %v6497_v45 = vld [vmem:[%s10007_s7 + $0x144] sm:$0xf]  ;;  %v4804_v55 = vld [vmem:[%s10007_s7 + $0x30] sm:$0xf0] }
 0x1dd   : > { %v1183_v24 = vsel %vm1182_vm8, %v1172_v20, %v1173_v21  ;;  %v6561_v50 = vld [vmem:[%s10007_s7 + $0x344] sm:$0xf]  ;;  %v4951_v53 = vor.u32 %v6497_v45, %v4948_v47  ;;  %v4932_v59 = vld [vmem:[%s10007_s7 + $0x130] sm:$0xf0]  ;;  %vm9977_vm8 = vmand %vm4396_vm2, %vm4418_vm3 }
 0x1de   : > { %v1187_v27 = vsel %vm1186_vm9, %v1183_v24, %v1185_v23  ;;  %v4964_v23 = vld [vmem:[%s10007_s7 + $0x170] sm:$0xf0]  ;;  %v5111_v24 = vor.u32 %v6537_v13, %v5108_v14  ;;  %v6461_v54 = vld [vmem:[%s10007_s7 + $0x24] sm:$0xf]  ;;  %vm4422_vm9 = vsmask.f32 4352 }
 0x1df   : > { %v7827_v31 = vsel %vm490_vm0, %v1181_v26, %v1187_v27  ;;  %v4967_v34 = vor.u32 %v6501_v22, %v4964_v23  ;;  %v6493_v58 = vld [vmem:[%s10007_s7 + $0x124] sm:$0xf]  ;;  %v5188_v63 = vld [vmem:[%s10007_s7 + $0x330] sm:$0xf0]  ;;  %v4807_v1 = vor.u32 %v6461_v54, %v4804_v55  ;;  %vm4412_vm0 = vmor %vm9962_vm14, %vm9958_vm13  ;;  %vm4403_vm13 = vcmask 1042432  }
 0x1e0   : > { %v1232_v35 = vperm.slane %v7827_v31, 0  ;;  %v1233_v36 = vperm.slane %v7827_v31, 1  ;;  %v1234_v37 = vperm.slane %v7827_v31, 2  ;;  %v1235_v38 = vperm.slane %v7827_v31, 3  ;;  %v6557_v62 = vld [vmem:[%s10007_s7 + $0x324] sm:$0xf]  ;;  %vm9971_vm7 = vmor %vm4415_vm1, %vm4412_vm0 }
 0x1e1   : > { %v1236_v20 = vperm.slane %v7827_v31, 4  ;;  %v1237_v21 = vperm.slane %v7827_v31, 5  ;;  %v1238_v26 = vperm.slane %v7827_v31, 6  ;;  %v1239_v27 = vperm.slane %v7827_v31, 7  ;;  %v6457_v0 = vld [vmem:[%s10007_s7 + $0x4] sm:$0xf]  ;;  %vm4420_vm10 = vmor %vm9977_vm8, %vm9971_vm7 }
 0x1e2   : > { %v7845_v42 = vpack.c.bf16 %v1232_v35, %v1232_v35  ;;  %v7847_v43 = vpack.c.bf16 %v1233_v36, %v1233_v36  ;;  %v7849_v44 = vpack.c.bf16 %v1234_v37, %v1234_v37  ;;  %v7851_v46 = vpack.c.bf16 %v1235_v38, %v1235_v38  ;;  %v6465_v37 = vld [vmem:[%s10007_s7 + $0x44] sm:$0xf]  ;;  %v4820_v38 = vld [vmem:[%s10007_s7 + $0x50] sm:$0xf0]  ;;  %vm4423_vm11 = vmand %vm4421_vm5, %vm4422_vm9 }
 0x1e3   : > { %v7957_v31 = vpack.c.bf16 %v1236_v20, %v1236_v20  ;;  %v7959_v35 = vpack.c.bf16 %v1237_v21, %v1237_v21  ;;  %v5095_v36 = vor.u32 %v6533_v28, %v5092_v29  ;;  %v7967_v39 = vpack.c.bf16 %v1238_v26, %v1238_v26  ;;  %v4788_v3 = vld [vmem:[%s10007_s7 + $0x10] sm:$0xf0]  ;;  %v6553_v10 = vld [vmem:[%s10007_s7 + $0x304] sm:$0xf]  ;;  %vm4424_vm14 = vmor %vm4423_vm11, %vm4420_vm10 }
 0x1e4   : > { %2810 = vmatmul.bf16.vlgmr.msra.gmra.mxu2 %v7845_v42  ;;  %2823 = vmatmul.bf16.vlgmr.msra.gmra.mxu3 %v7847_v43  ;;  %v4823_v52 = vor.u32 %v6465_v37, %v4820_v38  ;;  %v4935_v2 = vor.u32 %v6493_v58, %v4932_v59  ;;  %v5191_v7 = vor.u32 %v6557_v62, %v5188_v63  ;;  %v5172_v11 = vld [vmem:[%s10007_s7 + $0x310] sm:$0xf0]  ;;  %v6613_v13 = vld [vmem:[%s10007_s7 + $0x4e4] sm:$0xf] }
 0x1e5   : > { %2836 = vmatmul.bf16.vlgmr.msrb.gmra.mxu0 %v7849_v44  ;;  %2849 = vmatmul.bf16.vlgmr.msrb.gmra.mxu1 %v7851_v46  ;;  %v5412_v14 = vld [vmem:[%s10007_s7 + $0x4f0] sm:$0xf0]  ;;  %v6645_v12 = vld [vmem:[%s10007_s7 + $0x5e4] sm:$0xf]  ;;  %v4791_v17 = vor.u32 %v6457_v0, %v4788_v3  ;;  %v5175_v23 = vor.u32 %v6553_v10, %v5172_v11 }
 0x1e6   : > { %2906 = vmatpush.bf16.msra.mxu2 %v4903_v40  ;;  %2919 = vmatpush.bf16.msra.mxu3 %v5031_v41  ;;  %v7969_v40 = vpack.c.bf16 %v1239_v27, %v1239_v27  ;;  %v5223_v41 = vor.u32 %v6565_v30, %v5220_v32  ;;  %v5540_v15 = vld [vmem:[%s10007_s7 + $0x5f0] sm:$0xf0]  ;;  %v6677_v16 = vld [vmem:[%s10007_s7 + $0x6e4] sm:$0xf] }
 0x1e7   : > { %2932 = vmatpush.bf16.msrb.mxu0 %v5159_v48  ;;  %2945 = vmatpush.bf16.msrb.mxu1 %v5287_v49  ;;  %v6529_v48 = vld [vmem:[%s10007_s7 + $0x244] sm:$0xf]  ;;  %v5076_v49 = vld [vmem:[%s10007_s7 + $0x250] sm:$0xf0] }
 0x1e8   : > { %v6709_v20 = vld [vmem:[%s10007_s7 + $0x7e4] sm:$0xf]  ;;  %v5796_v21 = vld [vmem:[%s10007_s7 + $0x7f0] sm:$0xf0] }
 0x1e9   : > { %v6609_v26 = vld [vmem:[%s10007_s7 + $0x4c4] sm:$0xf]  ;;  %v5396_v27 = vld [vmem:[%s10007_s7 + $0x4d0] sm:$0xf0]  ;;  %v5799_v29 = vor.u32 %v6709_v20, %v5796_v21 }
 0x1ea   : > { %2907 = vmatpush.bf16.msra.mxu2 %v4887_v56  ;;  %2920 = vmatpush.bf16.msra.mxu3 %v5015_v57  ;;  %v5079_v56 = vor.u32 %v6529_v48, %v5076_v49  ;;  %v5207_v57 = vor.u32 %v6561_v50, %v5204_v51  ;;  %v6641_v30 = vld [vmem:[%s10007_s7 + $0x5c4] sm:$0xf]  ;;  %v5524_v32 = vld [vmem:[%s10007_s7 + $0x5d0] sm:$0xf0]  ;;  %v5399_v38 = vor.u32 %v6609_v26, %v5396_v27 }
 0x1eb   : > { %2933 = vmatpush.bf16.msrb.mxu0 %v5143_v60  ;;  %2946 = vmatpush.bf16.msrb.mxu1 %v5271_v61  ;;  %v6525_v60 = vld [vmem:[%s10007_s7 + $0x224] sm:$0xf]  ;;  %v5060_v61 = vld [vmem:[%s10007_s7 + $0x230] sm:$0xf0] }
 0x1ec   : > { %v5063_v6 = vor.u32 %v6525_v60, %v5060_v61  ;;  %v5780_v37 = vld [vmem:[%s10007_s7 + $0x7d0] sm:$0xf0]  ;;  %v6605_v45 = vld [vmem:[%s10007_s7 + $0x4a4] sm:$0xf] }
 0x1ed   : > { %v5380_v47 = vld [vmem:[%s10007_s7 + $0x4b0] sm:$0xf0]  ;;  %v6637_v50 = vld [vmem:[%s10007_s7 + $0x5a4] sm:$0xf] }
 0x1ee   : > { %2908 = vmatpush.bf16.msra.mxu2 %v4871_v4  ;;  %2921 = vmatpush.bf16.msra.mxu3 %v4999_v5  ;;  %v6489_v4 = vld [vmem:[%s10007_s7 + $0x104] sm:$0xf]  ;;  %v4916_v5 = vld [vmem:[%s10007_s7 + $0x110] sm:$0xf0] }
 0x1ef   : > { %2934 = vmatpush.bf16.msrb.mxu0 %v5127_v8  ;;  %2947 = vmatpush.bf16.msrb.mxu1 %v5255_v9  ;;  %v6521_v8 = vld [vmem:[%s10007_s7 + $0x204] sm:$0xf]  ;;  %v5044_v9 = vld [vmem:[%s10007_s7 + $0x210] sm:$0xf0] }
 0x1f0   : > { %v5047_v22 = vor.u32 %v6521_v8, %v5044_v9  ;;  %v5508_v51 = vld [vmem:[%s10007_s7 + $0x5b0] sm:$0xf0]  ;;  %v6701_v54 = vld [vmem:[%s10007_s7 + $0x7a4] sm:$0xf] }
 0x1f1   : > { %v5764_v55 = vld [vmem:[%s10007_s7 + $0x7b0] sm:$0xf0]  ;;  %v6601_v58 = vld [vmem:[%s10007_s7 + $0x484] sm:$0xf] }
 0x1f2   : > { %2909 = vmatpush.bf16.msra.mxu2 %v4855_v18  ;;  %2922 = vmatpush.bf16.msra.mxu3 %v4983_v19  ;;  %v4919_v18 = vor.u32 %v6489_v4, %v4916_v5  ;;  %v5668_v19 = vld [vmem:[%s10007_s7 + $0x6f0] sm:$0xf0]  ;;  %v5767_v61 = vor.u32 %v6701_v54, %v5764_v55  ;;  %v6633_v62 = vld [vmem:[%s10007_s7 + $0x584] sm:$0xf] }
 0x1f3   : > { %2935 = vmatpush.bf16.msrb.mxu0 %v5111_v24  ;;  %2948 = vmatpush.bf16.msrb.mxu1 %v5239_v25  ;;  %v5415_v24 = vor.u32 %v6613_v13, %v5412_v14  ;;  %v5543_v25 = vor.u32 %v6645_v12, %v5540_v15  ;;  %v5671_v28 = vor.u32 %v6677_v16, %v5668_v19  ;;  %v5364_v59 = vld [vmem:[%s10007_s7 + $0x490] sm:$0xf0]  ;;  %v6665_v0 = vld [vmem:[%s10007_s7 + $0x684] sm:$0xf] }
 0x1f4   : > { %2862 = vmatmul.bf16.vlgmr.msrb.gmra.mxu2 %v7957_v31  ;;  %2875 = vmatmul.bf16.vlgmr.msrb.gmra.mxu3 %v7959_v35  ;;  %v5492_v63 = vld [vmem:[%s10007_s7 + $0x590] sm:$0xf0]  ;;  %v5367_v4 = vor.u32 %v6601_v58, %v5364_v59  ;;  %v6629_v10 = vld [vmem:[%s10007_s7 + $0x564] sm:$0xf] }
 0x1f5   : > { %2888 = vmatmul.bf16.vlgmr.msra.gmra.mxu0 %v7967_v39  ;;  %2901 = vmatmul.bf16.vlgmr.msra.gmra.mxu1 %v7969_v40  ;;  %v5748_v3 = vld [vmem:[%s10007_s7 + $0x790] sm:$0xf0]  ;;  %v5495_v5 = vor.u32 %v6633_v62, %v5492_v63  ;;  %v6661_v13 = vld [vmem:[%s10007_s7 + $0x664] sm:$0xf]  ;;  %v5034_v62 = vld [vmem:[%s10007_s7 + $0x1e8] sm:$0xf] }
 0x1f6   : > { %2910 = vmatpush.bf16.msra.mxu2 %v4839_v33  ;;  %2923 = vmatpush.bf16.msra.mxu3 %v4967_v34  ;;  %v6673_v33 = vld [vmem:[%s10007_s7 + $0x6c4] sm:$0xf]  ;;  %v5652_v34 = vld [vmem:[%s10007_s7 + $0x6d0] sm:$0xf0]  ;;  %v6520_v63 = vld [vmem:[%s10007_s7 + $0x1f4] sm:$0xf0] }
 0x1f7   : > { %2936 = vmatpush.bf16.msrb.mxu0 %v5095_v36  ;;  %2949 = vmatpush.bf16.msrb.mxu1 %v5223_v41  ;;  %v6705_v36 = vld [vmem:[%s10007_s7 + $0x7c4] sm:$0xf]  ;;  %v5527_v41 = vor.u32 %v6641_v30, %v5524_v32  ;;  %v5655_v48 = vor.u32 %v6673_v33, %v5652_v34  ;;  %v5476_v11 = vld [vmem:[%s10007_s7 + $0x570] sm:$0xf0] }
 0x1f8   : > { %v5783_v49 = vor.u32 %v6705_v36, %v5780_v37  ;;  %v5604_v14 = vld [vmem:[%s10007_s7 + $0x670] sm:$0xf0]  ;;  %v6693_v12 = vld [vmem:[%s10007_s7 + $0x764] sm:$0xf] }
 0x1f9   : > { %v5732_v15 = vld [vmem:[%s10007_s7 + $0x770] sm:$0xf0]  ;;  %v5607_v20 = vor.u32 %v6661_v13, %v5604_v14  ;;  %v6689_v26 = vld [vmem:[%s10007_s7 + $0x744] sm:$0xf] }
 0x1fa   : > { %2911 = vmatpush.bf16.msra.mxu2 %v4823_v52  ;;  %2924 = vmatpush.bf16.msra.mxu3 %v4951_v53  ;;  %v6669_v52 = vld [vmem:[%s10007_s7 + $0x6a4] sm:$0xf]  ;;  %v5636_v53 = vld [vmem:[%s10007_s7 + $0x6b0] sm:$0xf0]  ;;  %v5735_v21 = vor.u32 %v6693_v12, %v5732_v15  ;;  %v5018_v12 = vld [vmem:[%s10007_s7 + $0x1c8] sm:$0xf] }
 0x1fb   : > { %2937 = vmatpush.bf16.msrb.mxu0 %v5079_v56  ;;  %2950 = vmatpush.bf16.msrb.mxu1 %v5207_v57  ;;  %v5383_v56 = vor.u32 %v6605_v45, %v5380_v47  ;;  %v5511_v57 = vor.u32 %v6637_v50, %v5508_v51  ;;  %v5639_v60 = vor.u32 %v6669_v52, %v5636_v53  ;;  %v5332_v19 = vld [vmem:[%s10007_s7 + $0x450] sm:$0xf0]  ;;  %v6589_v30 = vld [vmem:[%s10007_s7 + $0x424] sm:$0xf]  ;;  %v6516_v15 = vld [vmem:[%s10007_s7 + $0x1d4] sm:$0xf0] }
 0x1fc   : > { %v5716_v27 = vld [vmem:[%s10007_s7 + $0x750] sm:$0xf0]  ;;  %v6621_v36 = vld [vmem:[%s10007_s7 + $0x524] sm:$0xf] }
 0x1fd   : > { %v5316_v32 = vld [vmem:[%s10007_s7 + $0x430] sm:$0xf0]  ;;  %v5719_v34 = vor.u32 %v6689_v26, %v5716_v27  ;;  %v6685_v45 = vld [vmem:[%s10007_s7 + $0x724] sm:$0xf]  ;;  %v5002_v26 = vld [vmem:[%s10007_s7 + $0x1a8] sm:$0xf] }
 0x1fe   : > { %2912 = vmatpush.bf16.msra.mxu2 %v4807_v1  ;;  %2925 = vmatpush.bf16.msra.mxu3 %v4935_v2  ;;  %v5620_v1 = vld [vmem:[%s10007_s7 + $0x690] sm:$0xf0]  ;;  %v6697_v2 = vld [vmem:[%s10007_s7 + $0x784] sm:$0xf]  ;;  %v6512_v27 = vld [vmem:[%s10007_s7 + $0x1b4] sm:$0xf0] }
 0x1ff   : > { %2938 = vmatpush.bf16.msrb.mxu0 %v5063_v6  ;;  %2951 = vmatpush.bf16.msrb.mxu1 %v5191_v7  ;;  %v6597_v6 = vld [vmem:[%s10007_s7 + $0x464] sm:$0xf]  ;;  %v5348_v7 = vld [vmem:[%s10007_s7 + $0x470] sm:$0xf0]  ;;  %v5623_v8 = vor.u32 %v6665_v0, %v5620_v1  ;;  %v5751_v9 = vor.u32 %v6697_v2, %v5748_v3  ;;  %v5162_v0 = vld [vmem:[%s10007_s7 + $0x2e8] sm:$0xf] }
 0x200   : > { %v5351_v16 = vor.u32 %v6597_v6, %v5348_v7  ;;  %v5444_v37 = vld [vmem:[%s10007_s7 + $0x530] sm:$0xf0]  ;;  %v6617_v52 = vld [vmem:[%s10007_s7 + $0x504] sm:$0xf]  ;;  %v6552_v3 = vld [vmem:[%s10007_s7 + $0x2f4] sm:$0xf0] }
 0x201   : > { %v5700_v47 = vld [vmem:[%s10007_s7 + $0x730] sm:$0xf0]  ;;  %v5447_v50 = vor.u32 %v6621_v36, %v5444_v37  ;;  %v6681_v58 = vld [vmem:[%s10007_s7 + $0x704] sm:$0xf]  ;;  %v5163_v13 = vor.u32 %v6552_v3, %v5162_v0  ;;  %v4858_v36 = vld [vmem:[%s10007_s7 + $0x88] sm:$0xf] }
 0x202   : > { %2913 = vmatpush.bf16.msra.mxu2 %v4791_v17  ;;  %2926 = vmatpush.bf16.msra.mxu3 %v4919_v18  ;;  %v5479_v17 = vor.u32 %v6629_v10, %v5476_v11  ;;  %v6593_v18 = vld [vmem:[%s10007_s7 + $0x444] sm:$0xf]  ;;  %v5300_v51 = vld [vmem:[%s10007_s7 + $0x410] sm:$0xf0]  ;;  %v5703_v55 = vor.u32 %v6685_v45, %v5700_v47  ;;  %v4890_v10 = vld [vmem:[%s10007_s7 + $0xc8] sm:$0xf] }
 0x203   : > { %2939 = vmatpush.bf16.msrb.mxu0 %v5047_v22  ;;  %2952 = vmatpush.bf16.msrb.mxu1 %v5175_v23  ;;  %v6625_v22 = vld [vmem:[%s10007_s7 + $0x544] sm:$0xf]  ;;  %v5460_v23 = vld [vmem:[%s10007_s7 + $0x550] sm:$0xf0]  ;;  %v6484_v11 = vld [vmem:[%s10007_s7 + $0xd4] sm:$0xf0] }
 0x204   : > { %v5428_v53 = vld [vmem:[%s10007_s7 + $0x510] sm:$0xf0]  ;;  %v6476_v37 = vld [vmem:[%s10007_s7 + $0x94] sm:$0xf0]  ;;  %v4986_v45 = vld [vmem:[%s10007_s7 + $0x188] sm:$0xf] }
 0x205   : > { %2914 = vmatmul.bf16.vlgmr.msra.gmra.mxu2 %v7845_v42  ;;  %2927 = vmatmul.bf16.vlgmr.msra.gmra.mxu3 %v7847_v43  ;;  %v5684_v59 = vld [vmem:[%s10007_s7 + $0x710] sm:$0xf0]  ;;  %v5431_v2 = vor.u32 %v6617_v52, %v5428_v53  ;;  %v6508_v47 = vld [vmem:[%s10007_s7 + $0x194] sm:$0xf0]  ;;  %v4859_v52 = vor.u32 %v6476_v37, %v4858_v36  ;;  %v5178_v36 = vld [vmem:[%s10007_s7 + $0x308] sm:$0xf] }
 0x206   : > { %2958 = vmatpush.bf16.msrb.mxu2 %v5415_v24  ;;  %2971 = vmatpush.bf16.msrb.mxu3 %v5543_v25  ;;  %v6657_v24 = vld [vmem:[%s10007_s7 + $0x644] sm:$0xf]  ;;  %v5588_v25 = vld [vmem:[%s10007_s7 + $0x650] sm:$0xf0]  ;;  %v5687_v7 = vor.u32 %v6681_v58, %v5684_v59  ;;  %v4987_v53 = vor.u32 %v6508_v47, %v4986_v45  ;;  %v4970_v58 = vld [vmem:[%s10007_s7 + $0x168] sm:$0xf] }
 0x207   : > { %2984 = vmatpush.bf16.msra.mxu0 %v5671_v28  ;;  %2997 = vmatpush.bf16.msra.mxu1 %v5799_v29  ;;  %v5335_v28 = vor.u32 %v6593_v18, %v5332_v19  ;;  %v5463_v29 = vor.u32 %v6625_v22, %v5460_v23  ;;  %v5591_v33 = vor.u32 %v6657_v24, %v5588_v25  ;;  %v5274_v18 = vld [vmem:[%s10007_s7 + $0x3c8] sm:$0xf]  ;;  %v6580_v19 = vld [vmem:[%s10007_s7 + $0x3d4] sm:$0xf0] }
 0x208   : > { %2940 = vmatmul.bf16.vlgmr.msrb.gmra.mxu0 %v7849_v44  ;;  %2953 = vmatmul.bf16.vlgmr.msrb.gmra.mxu1 %v7851_v46  ;;  %v4874_v22 = vld [vmem:[%s10007_s7 + $0xa8] sm:$0xf]  ;;  %v6480_v23 = vld [vmem:[%s10007_s7 + $0xb4] sm:$0xf0]  ;;  %v5275_v25 = vor.u32 %v6580_v19, %v5274_v18 }
 0x209   : > { %v6504_v59 = vld [vmem:[%s10007_s7 + $0x174] sm:$0xf0]  ;;  %v4938_v18 = vld [vmem:[%s10007_s7 + $0x128] sm:$0xf] }
 0x20a   : > { %2959 = vmatpush.bf16.msrb.mxu2 %v5399_v38  ;;  %2972 = vmatpush.bf16.msrb.mxu3 %v5527_v41  ;;  %v6653_v38 = vld [vmem:[%s10007_s7 + $0x624] sm:$0xf]  ;;  %v5572_v41 = vld [vmem:[%s10007_s7 + $0x630] sm:$0xf0]  ;;  %v6468_v3 = vld [vmem:[%s10007_s7 + $0x54] sm:$0xf0] }
 0x20b   : > { %2985 = vmatpush.bf16.msra.mxu0 %v5655_v48  ;;  %2998 = vmatpush.bf16.msra.mxu1 %v5783_v49  ;;  %v6585_v48 = vld [vmem:[%s10007_s7 + $0x404] sm:$0xf]  ;;  %v5319_v49 = vor.u32 %v6589_v30, %v5316_v32  ;;  %v5575_v54 = vor.u32 %v6653_v38, %v5572_v41  ;;  %v5258_v30 = vld [vmem:[%s10007_s7 + $0x3a8] sm:$0xf]  ;;  %v6576_v32 = vld [vmem:[%s10007_s7 + $0x3b4] sm:$0xf0] }
 0x20c   : > { %v5303_v1 = vor.u32 %v6585_v48, %v5300_v51  ;;  %v5259_v41 = vor.u32 %v6576_v32, %v5258_v30  ;;  %v5114_v48 = vld [vmem:[%s10007_s7 + $0x288] sm:$0xf]  ;;  %v6572_v51 = vld [vmem:[%s10007_s7 + $0x394] sm:$0xf0] }
 0x20d   : > { %v6496_v19 = vld [vmem:[%s10007_s7 + $0x134] sm:$0xf0]  ;;  %v5546_v45 = vld [vmem:[%s10007_s7 + $0x5e8] sm:$0xf] }
 0x20e   : > { %2960 = vmatpush.bf16.msrb.mxu2 %v5383_v56  ;;  %2973 = vmatpush.bf16.msrb.mxu3 %v5511_v57  ;;  %v6649_v56 = vld [vmem:[%s10007_s7 + $0x604] sm:$0xf]  ;;  %v5556_v57 = vld [vmem:[%s10007_s7 + $0x610] sm:$0xf0]  ;;  %v6556_v37 = vld [vmem:[%s10007_s7 + $0x314] sm:$0xf0] }
 0x20f   : > { %2986 = vmatpush.bf16.msra.mxu0 %v5639_v60  ;;  %2999 = vmatpush.bf16.msra.mxu1 %v5767_v61  ;;  %v4906_v60 = vld [vmem:[%s10007_s7 + $0xe8] sm:$0xf]  ;;  %v6488_v61 = vld [vmem:[%s10007_s7 + $0xf4] sm:$0xf0]  ;;  %v5559_v6 = vor.u32 %v6649_v56, %v5556_v57 }
 0x210   : > { %v6648_v47 = vld [vmem:[%s10007_s7 + $0x5f4] sm:$0xf0] }
 0x212   : > { %2961 = vmatpush.bf16.msrb.mxu2 %v5367_v4  ;;  %2974 = vmatpush.bf16.msrb.mxu3 %v5495_v5  ;;  %v5290_v4 = vld [vmem:[%s10007_s7 + $0x3e8] sm:$0xf]  ;;  %v6584_v5 = vld [vmem:[%s10007_s7 + $0x3f4] sm:$0xf0] }
 0x213   : > { %2987 = vmatpush.bf16.msra.mxu0 %v5623_v8  ;;  %3000 = vmatpush.bf16.msra.mxu1 %v5751_v9  ;;  %v4907_v8 = vor.u32 %v6488_v61, %v4906_v60  ;;  %v5035_v9 = vor.u32 %v6520_v63, %v5034_v62  ;;  %v5291_v14 = vor.u32 %v6584_v5, %v5290_v4  ;;  %v5098_v60 = vld [vmem:[%s10007_s7 + $0x268] sm:$0xf]  ;;  %v6536_v61 = vld [vmem:[%s10007_s7 + $0x274] sm:$0xf0] }
 0x214   : > { %v5226_v62 = vld [vmem:[%s10007_s7 + $0x368] sm:$0xf]  ;;  %v6568_v63 = vld [vmem:[%s10007_s7 + $0x374] sm:$0xf0]  ;;  %v5099_v4 = vor.u32 %v6536_v61, %v5098_v60 }
 0x215   : > { %v5227_v5 = vor.u32 %v6568_v63, %v5226_v62  ;;  %v5530_v62 = vld [vmem:[%s10007_s7 + $0x5c8] sm:$0xf]  ;;  %v6644_v63 = vld [vmem:[%s10007_s7 + $0x5d4] sm:$0xf0] }
 0x216   : > { %2962 = vmatpush.bf16.msrb.mxu2 %v5351_v16  ;;  %2975 = vmatpush.bf16.msrb.mxu3 %v5479_v17  ;;  %v5146_v16 = vld [vmem:[%s10007_s7 + $0x2c8] sm:$0xf]  ;;  %v6548_v17 = vld [vmem:[%s10007_s7 + $0x2d4] sm:$0xf0] }
 0x217   : > { %2988 = vmatpush.bf16.msra.mxu0 %v5607_v20  ;;  %3001 = vmatpush.bf16.msra.mxu1 %v5735_v21  ;;  %v4891_v20 = vor.u32 %v6484_v11, %v4890_v10  ;;  %v5019_v21 = vor.u32 %v6516_v15, %v5018_v12  ;;  %v5147_v24 = vor.u32 %v6548_v17, %v5146_v16  ;;  %v5210_v10 = vld [vmem:[%s10007_s7 + $0x348] sm:$0xf]  ;;  %v6564_v11 = vld [vmem:[%s10007_s7 + $0x354] sm:$0xf0] }
 0x218   : > { %v4810_v12 = vld [vmem:[%s10007_s7 + $0x28] sm:$0xf]  ;;  %v6464_v15 = vld [vmem:[%s10007_s7 + $0x34] sm:$0xf0]  ;;  %v5211_v17 = vor.u32 %v6564_v11, %v5210_v10 }
 0x219   : > { %v5514_v10 = vld [vmem:[%s10007_s7 + $0x5a8] sm:$0xf]  ;;  %v6640_v11 = vld [vmem:[%s10007_s7 + $0x5b4] sm:$0xf0] }
 0x21a   : > { %2963 = vmatpush.bf16.msrb.mxu2 %v5335_v28  ;;  %2976 = vmatpush.bf16.msrb.mxu3 %v5463_v29  ;;  %v5130_v28 = vld [vmem:[%s10007_s7 + $0x2a8] sm:$0xf]  ;;  %v6544_v29 = vld [vmem:[%s10007_s7 + $0x2b4] sm:$0xf0] }
 0x21b   : > { %2989 = vmatpush.bf16.msra.mxu0 %v5591_v33  ;;  %3002 = vmatpush.bf16.msra.mxu1 %v5719_v34  ;;  %v4875_v33 = vor.u32 %v6480_v23, %v4874_v22  ;;  %v5003_v34 = vor.u32 %v6512_v27, %v5002_v26  ;;  %v5131_v38 = vor.u32 %v6544_v29, %v5130_v28  ;;  %v5194_v22 = vld [vmem:[%s10007_s7 + $0x328] sm:$0xf]  ;;  %v6560_v23 = vld [vmem:[%s10007_s7 + $0x334] sm:$0xf0] }
 0x21c   : > { %v4939_v26 = vor.u32 %v6496_v19, %v4938_v18  ;;  %v6460_v27 = vld [vmem:[%s10007_s7 + $0x14] sm:$0xf0]  ;;  %v4922_v28 = vld [vmem:[%s10007_s7 + $0x108] sm:$0xf]  ;;  %v5195_v32 = vor.u32 %v6560_v23, %v5194_v22 }
 0x21d   : > { %v6492_v29 = vld [vmem:[%s10007_s7 + $0x114] sm:$0xf0]  ;;  %v5370_v18 = vld [vmem:[%s10007_s7 + $0x488] sm:$0xf] }
 0x21e   : > { %2964 = vmatpush.bf16.msrb.mxu2 %v5319_v49  ;;  %2977 = vmatpush.bf16.msrb.mxu3 %v5447_v50  ;;  %v6540_v49 = vld [vmem:[%s10007_s7 + $0x294] sm:$0xf0]  ;;  %v5242_v50 = vld [vmem:[%s10007_s7 + $0x388] sm:$0xf] }
 0x21f   : > { %2990 = vmatpush.bf16.msra.mxu0 %v5575_v54  ;;  %3003 = vmatpush.bf16.msra.mxu1 %v5703_v55  ;;  %v4842_v54 = vld [vmem:[%s10007_s7 + $0x68] sm:$0xf]  ;;  %v6472_v55 = vld [vmem:[%s10007_s7 + $0x74] sm:$0xf0]  ;;  %v5115_v56 = vor.u32 %v6540_v49, %v5114_v48  ;;  %v5243_v57 = vor.u32 %v6572_v51, %v5242_v50  ;;  %v4923_v50 = vor.u32 %v6492_v29, %v4922_v28 }
 0x220   : > { %v4843_v0 = vor.u32 %v6472_v55, %v4842_v54  ;;  %v5674_v48 = vld [vmem:[%s10007_s7 + $0x6e8] sm:$0xf]  ;;  %v6680_v51 = vld [vmem:[%s10007_s7 + $0x6f4] sm:$0xf0]  ;;  %v5179_v55 = vor.u32 %v6556_v37, %v5178_v36 }
 0x221   : > { %v5675_v60 = vor.u32 %v6680_v51, %v5674_v48  ;;  %v6604_v19 = vld [vmem:[%s10007_s7 + $0x494] sm:$0xf0]  ;;  %v5498_v22 = vld [vmem:[%s10007_s7 + $0x588] sm:$0xf] }
 0x222   : > { %2965 = vmatpush.bf16.msrb.mxu2 %v5303_v1  ;;  %2978 = vmatpush.bf16.msrb.mxu3 %v5431_v2  ;;  %v4971_v1 = vor.u32 %v6504_v59, %v4970_v58  ;;  %v4826_v2 = vld [vmem:[%s10007_s7 + $0x48] sm:$0xf]  ;;  %v6612_v59 = vld [vmem:[%s10007_s7 + $0x4d4] sm:$0xf0]  ;;  %v5371_v28 = vor.u32 %v6604_v19, %v5370_v18 }
 0x223   : > { %2991 = vmatpush.bf16.msra.mxu0 %v5559_v6  ;;  %3004 = vmatpush.bf16.msra.mxu1 %v5687_v7  ;;  %v4954_v6 = vld [vmem:[%s10007_s7 + $0x148] sm:$0xf]  ;;  %v6500_v7 = vld [vmem:[%s10007_s7 + $0x154] sm:$0xf0] }
 0x224   : > { %v5402_v58 = vld [vmem:[%s10007_s7 + $0x4c8] sm:$0xf]  ;;  %v6636_v23 = vld [vmem:[%s10007_s7 + $0x594] sm:$0xf0] }
 0x225   : > { %2966 = vmatmul.bf16.vlgmr.msrb.gmra.mxu2 %v7957_v31  ;;  %2979 = vmatmul.bf16.vlgmr.msrb.gmra.mxu3 %v7959_v35  ;;  %v5499_v29 = vor.u32 %v6636_v23, %v5498_v22  ;;  %v5482_v36 = vld [vmem:[%s10007_s7 + $0x568] sm:$0xf]  ;;  %v6632_v37 = vld [vmem:[%s10007_s7 + $0x574] sm:$0xf0]  ;;  %v6518_v22 = vld [vmem:[%s10007_s7 + $0x1ec] sm:$0xf] }
 0x226   : > { %3010 = vmatpush.bf16.msra.mxu2 %v4907_v8  ;;  %3023 = vmatpush.bf16.msra.mxu3 %v5035_v9  ;;  %v5082_v8 = vld [vmem:[%s10007_s7 + $0x248] sm:$0xf]  ;;  %v6532_v9 = vld [vmem:[%s10007_s7 + $0x254] sm:$0xf0]  ;;  %v5036_v23 = vld [vmem:[%s10007_s7 + $0x1f8] sm:$0xf0] }
 0x227   : > { %3036 = vmatpush.bf16.msrb.mxu0 %v5163_v13  ;;  %3049 = vmatpush.bf16.msrb.mxu1 %v5291_v14  ;;  %v4827_v13 = vor.u32 %v6468_v3, %v4826_v2  ;;  %v4955_v14 = vor.u32 %v6500_v7, %v4954_v6  ;;  %v5083_v16 = vor.u32 %v6532_v9, %v5082_v8  ;;  %v5786_v2 = vld [vmem:[%s10007_s7 + $0x7c8] sm:$0xf]  ;;  %v6708_v3 = vld [vmem:[%s10007_s7 + $0x7d4] sm:$0xf0] }
 0x228   : > { %2992 = vmatmul.bf16.vlgmr.msra.gmra.mxu0 %v7967_v39  ;;  %3005 = vmatmul.bf16.vlgmr.msra.gmra.mxu1 %v7969_v40  ;;  %v5386_v6 = vld [vmem:[%s10007_s7 + $0x4a8] sm:$0xf]  ;;  %v6608_v7 = vld [vmem:[%s10007_s7 + $0x4b4] sm:$0xf0]  ;;  %v5787_v9 = vor.u32 %v6708_v3, %v5786_v2 }
 0x229   : > { %v6596_v51 = vld [vmem:[%s10007_s7 + $0x454] sm:$0xf0]  ;;  %v5450_v2 = vld [vmem:[%s10007_s7 + $0x528] sm:$0xf] }
 0x22a   : > { %3011 = vmatpush.bf16.msra.mxu2 %v4891_v20  ;;  %3024 = vmatpush.bf16.msra.mxu3 %v5019_v21  ;;  %v5066_v20 = vld [vmem:[%s10007_s7 + $0x228] sm:$0xf]  ;;  %v6528_v21 = vld [vmem:[%s10007_s7 + $0x234] sm:$0xf0] }
 0x22b   : > { %3037 = vmatpush.bf16.msrb.mxu0 %v5147_v24  ;;  %3050 = vmatpush.bf16.msrb.mxu1 %v5275_v25  ;;  %v4794_v24 = vld [vmem:[%s10007_s7 + $0x8] sm:$0xf]  ;;  %v4811_v25 = vor.u32 %v6464_v15, %v4810_v12  ;;  %v5067_v30 = vor.u32 %v6528_v21, %v5066_v20  ;;  %v6704_v15 = vld [vmem:[%s10007_s7 + $0x7b4] sm:$0xf0] }
 0x22c   : > { %v4795_v49 = vor.u32 %v6460_v27, %v4794_v24  ;;  %v5770_v12 = vld [vmem:[%s10007_s7 + $0x7a8] sm:$0xf]  ;;  %v6700_v27 = vld [vmem:[%s10007_s7 + $0x794] sm:$0xf0] }
 0x22d   : > { %v5771_v21 = vor.u32 %v6704_v15, %v5770_v12  ;;  %v5626_v24 = vld [vmem:[%s10007_s7 + $0x688] sm:$0xf]  ;;  %v6624_v3 = vld [vmem:[%s10007_s7 + $0x534] sm:$0xf0] }
 0x22e   : > { %3012 = vmatpush.bf16.msra.mxu2 %v4875_v33  ;;  %3025 = vmatpush.bf16.msra.mxu3 %v5003_v34  ;;  %v5050_v33 = vld [vmem:[%s10007_s7 + $0x208] sm:$0xf]  ;;  %v6524_v34 = vld [vmem:[%s10007_s7 + $0x214] sm:$0xf0] }
 0x22f   : > { %3038 = vmatpush.bf16.msrb.mxu0 %v5131_v38  ;;  %3051 = vmatpush.bf16.msrb.mxu1 %v5259_v41  ;;  %v5418_v38 = vld [vmem:[%s10007_s7 + $0x4e8] sm:$0xf]  ;;  %v6616_v41 = vld [vmem:[%s10007_s7 + $0x4f4] sm:$0xf0]  ;;  %v5051_v54 = vor.u32 %v6524_v34, %v5050_v33 }
 0x230   : > { %v5690_v18 = vld [vmem:[%s10007_s7 + $0x708] sm:$0xf]  ;;  %v6684_v19 = vld [vmem:[%s10007_s7 + $0x714] sm:$0xf0] }
 0x232   : > { %3013 = vmatpush.bf16.msra.mxu2 %v4859_v52  ;;  %3026 = vmatpush.bf16.msra.mxu3 %v4987_v53  ;;  %v5802_v52 = vld [vmem:[%s10007_s7 + $0x7e8] sm:$0xf]  ;;  %v6712_v53 = vld [vmem:[%s10007_s7 + $0x7f4] sm:$0xf0] }
 0x233   : > { %3039 = vmatpush.bf16.msrb.mxu0 %v5115_v56  ;;  %3052 = vmatpush.bf16.msrb.mxu1 %v5243_v57  ;;  %v5419_v56 = vor.u32 %v6616_v41, %v5418_v38  ;;  %v5547_v57 = vor.u32 %v6648_v47, %v5546_v45  ;;  %v5803_v61 = vor.u32 %v6712_v53, %v5802_v52  ;;  %v5610_v38 = vld [vmem:[%s10007_s7 + $0x668] sm:$0xf]  ;;  %v6664_v41 = vld [vmem:[%s10007_s7 + $0x674] sm:$0xf0] }
 0x234   : > { %v5738_v45 = vld [vmem:[%s10007_s7 + $0x768] sm:$0xf]  ;;  %v6696_v47 = vld [vmem:[%s10007_s7 + $0x774] sm:$0xf0]  ;;  %v5611_v52 = vor.u32 %v6664_v41, %v5610_v38 }
 0x235   : > { %v5739_v53 = vor.u32 %v6696_v47, %v5738_v45  ;;  %v6514_v45 = vld [vmem:[%s10007_s7 + $0x1cc] sm:$0xf]  ;;  %v5020_v47 = vld [vmem:[%s10007_s7 + $0x1d8] sm:$0xf0] }
 0x236   : > { %3014 = vmatpush.bf16.msra.mxu2 %v4843_v0  ;;  %3027 = vmatpush.bf16.msra.mxu3 %v4971_v1  ;;  %v5658_v0 = vld [vmem:[%s10007_s7 + $0x6c8] sm:$0xf]  ;;  %v6676_v1 = vld [vmem:[%s10007_s7 + $0x6d4] sm:$0xf0] }
 0x237   : > { %3040 = vmatpush.bf16.msrb.mxu0 %v5099_v4  ;;  %3053 = vmatpush.bf16.msrb.mxu1 %v5227_v5  ;;  %v5403_v4 = vor.u32 %v6612_v59, %v5402_v58  ;;  %v5531_v5 = vor.u32 %v6644_v63, %v5530_v62  ;;  %v5659_v8 = vor.u32 %v6676_v1, %v5658_v0  ;;  %v5722_v58 = vld [vmem:[%s10007_s7 + $0x748] sm:$0xf]  ;;  %v6692_v59 = vld [vmem:[%s10007_s7 + $0x754] sm:$0xf0] }
 0x238   : > { %v5322_v62 = vld [vmem:[%s10007_s7 + $0x428] sm:$0xf]  ;;  %v6592_v63 = vld [vmem:[%s10007_s7 + $0x434] sm:$0xf0]  ;;  %v5723_v1 = vor.u32 %v6692_v59, %v5722_v58  ;;  %v6510_v58 = vld [vmem:[%s10007_s7 + $0x1ac] sm:$0xf] }
 0x239   : > { %v5004_v59 = vld [vmem:[%s10007_s7 + $0x1b8] sm:$0xf0] }
 0x23a   : > { %3015 = vmatpush.bf16.msra.mxu2 %v4827_v13  ;;  %3028 = vmatpush.bf16.msra.mxu3 %v4955_v14  ;;  %v5642_v13 = vld [vmem:[%s10007_s7 + $0x6a8] sm:$0xf]  ;;  %v6672_v14 = vld [vmem:[%s10007_s7 + $0x6b4] sm:$0xf0] }
 0x23b   : > { %3041 = vmatpush.bf16.msrb.mxu0 %v5083_v16  ;;  %3054 = vmatpush.bf16.msrb.mxu1 %v5211_v17  ;;  %v5387_v16 = vor.u32 %v6608_v7, %v5386_v6  ;;  %v5515_v17 = vor.u32 %v6640_v11, %v5514_v10  ;;  %v5643_v20 = vor.u32 %v6672_v14, %v5642_v13  ;;  %v5706_v6 = vld [vmem:[%s10007_s7 + $0x728] sm:$0xf]  ;;  %v6688_v7 = vld [vmem:[%s10007_s7 + $0x734] sm:$0xf0] }
 0x23c   : > { %v5451_v10 = vor.u32 %v6624_v3, %v5450_v2  ;;  %v6588_v11 = vld [vmem:[%s10007_s7 + $0x414] sm:$0xf0]  ;;  %v5434_v13 = vld [vmem:[%s10007_s7 + $0x508] sm:$0xf]  ;;  %v5707_v15 = vor.u32 %v6688_v7, %v5706_v6  ;;  %v5007_v2 = vor.u32 %v6510_v58, %v5004_v59  ;;  %v4860_v6 = vld [vmem:[%s10007_s7 + $0x98] sm:$0xf0] }
 0x23d   : > { %v6620_v14 = vld [vmem:[%s10007_s7 + $0x514] sm:$0xf0]  ;;  %v6506_v7 = vld [vmem:[%s10007_s7 + $0x18c] sm:$0xf]  ;;  %v4812_v58 = vld [vmem:[%s10007_s7 + $0x38] sm:$0xf0] }
 0x23e   : > { %3016 = vmatpush.bf16.msra.mxu2 %v4811_v25  ;;  %3029 = vmatpush.bf16.msra.mxu3 %v4939_v26  ;;  %v6668_v25 = vld [vmem:[%s10007_s7 + $0x694] sm:$0xf0]  ;;  %v5754_v26 = vld [vmem:[%s10007_s7 + $0x788] sm:$0xf] }
 0x23f   : > { %3042 = vmatpush.bf16.msrb.mxu0 %v5067_v30  ;;  %3055 = vmatpush.bf16.msrb.mxu1 %v5195_v32  ;;  %v5354_v30 = vld [vmem:[%s10007_s7 + $0x468] sm:$0xf]  ;;  %v6600_v32 = vld [vmem:[%s10007_s7 + $0x474] sm:$0xf0]  ;;  %v5627_v33 = vor.u32 %v6668_v25, %v5626_v24  ;;  %v5755_v34 = vor.u32 %v6700_v27, %v5754_v26  ;;  %v6550_v24 = vld [vmem:[%s10007_s7 + $0x2ec] sm:$0xf]  ;;  %v5435_v26 = vor.u32 %v6620_v14, %v5434_v13 }
 0x240   : > { %v5355_v48 = vor.u32 %v6600_v32, %v5354_v30  ;;  %v5164_v27 = vld [vmem:[%s10007_s7 + $0x2f8] sm:$0xf0]  ;;  %v5691_v32 = vor.u32 %v6684_v19, %v5690_v18  ;;  %v6570_v14 = vld [vmem:[%s10007_s7 + $0x38c] sm:$0xf] }
 0x241   : > { %v5167_v38 = vor.u32 %v6550_v24, %v5164_v27  ;;  %v5116_v13 = vld [vmem:[%s10007_s7 + $0x298] sm:$0xf0]  ;;  %v6470_v18 = vld [vmem:[%s10007_s7 + $0x6c] sm:$0xf] }
 0x242   : > { %3017 = vmatpush.bf16.msra.mxu2 %v4795_v49  ;;  %3030 = vmatpush.bf16.msra.mxu3 %v4923_v50  ;;  %v5483_v49 = vor.u32 %v6632_v37, %v5482_v36  ;;  %v5338_v50 = vld [vmem:[%s10007_s7 + $0x448] sm:$0xf]  ;;  %v6482_v36 = vld [vmem:[%s10007_s7 + $0xcc] sm:$0xf]  ;;  %v4892_v37 = vld [vmem:[%s10007_s7 + $0xd8] sm:$0xf0] }
 0x243   : > { %3043 = vmatpush.bf16.msrb.mxu0 %v5051_v54  ;;  %3056 = vmatpush.bf16.msrb.mxu1 %v5179_v55  ;;  %v5466_v54 = vld [vmem:[%s10007_s7 + $0x548] sm:$0xf]  ;;  %v6628_v55 = vld [vmem:[%s10007_s7 + $0x554] sm:$0xf0]  ;;  %v4844_v19 = vld [vmem:[%s10007_s7 + $0x78] sm:$0xf0] }
 0x244   : > { %v6502_v24 = vld [vmem:[%s10007_s7 + $0x16c] sm:$0xf] }
 0x245   : > { %3018 = vmatmul.bf16.vlgmr.msra.gmra.mxu2 %v7845_v42  ;;  %3031 = vmatmul.bf16.vlgmr.msra.gmra.mxu3 %v7847_v43 }
 0x246   : > { %3062 = vmatpush.bf16.msrb.mxu2 %v5419_v56  ;;  %3075 = vmatpush.bf16.msrb.mxu3 %v5547_v57  ;;  %v5594_v56 = vld [vmem:[%s10007_s7 + $0x648] sm:$0xf]  ;;  %v6660_v57 = vld [vmem:[%s10007_s7 + $0x654] sm:$0xf0] }
 0x247   : > { %3088 = vmatpush.bf16.msra.mxu0 %v5675_v60  ;;  %3101 = vmatpush.bf16.msra.mxu1 %v5803_v61  ;;  %v5339_v60 = vor.u32 %v6596_v51, %v5338_v50  ;;  %v5467_v61 = vor.u32 %v6628_v55, %v5466_v54  ;;  %v5595_v0 = vor.u32 %v6660_v57, %v5594_v56  ;;  %v6578_v50 = vld [vmem:[%s10007_s7 + $0x3cc] sm:$0xf]  ;;  %v5276_v51 = vld [vmem:[%s10007_s7 + $0x3d8] sm:$0xf0] }
 0x248   : > { %3044 = vmatmul.bf16.vlgmr.msrb.gmra.mxu0 %v7849_v44  ;;  %3057 = vmatmul.bf16.vlgmr.msrb.gmra.mxu1 %v7851_v46  ;;  %v6478_v54 = vld [vmem:[%s10007_s7 + $0xac] sm:$0xf]  ;;  %v4876_v55 = vld [vmem:[%s10007_s7 + $0xb8] sm:$0xf0]  ;;  %v5279_v57 = vor.u32 %v6578_v50, %v5276_v51 }
 0x249   : > { %v6530_v50 = vld [vmem:[%s10007_s7 + $0x24c] sm:$0xf] }
 0x24a   : > { %3063 = vmatpush.bf16.msrb.mxu2 %v5403_v4  ;;  %3076 = vmatpush.bf16.msrb.mxu3 %v5531_v5  ;;  %v5578_v4 = vld [vmem:[%s10007_s7 + $0x628] sm:$0xf]  ;;  %v6656_v5 = vld [vmem:[%s10007_s7 + $0x634] sm:$0xf0] }
 0x24b   : > { %3089 = vmatpush.bf16.msra.mxu0 %v5659_v8  ;;  %3102 = vmatpush.bf16.msra.mxu1 %v5787_v9  ;;  %v5306_v8 = vld [vmem:[%s10007_s7 + $0x408] sm:$0xf]  ;;  %v5323_v9 = vor.u32 %v6592_v63, %v5322_v62  ;;  %v5579_v12 = vor.u32 %v6656_v5, %v5578_v4  ;;  %v6574_v62 = vld [vmem:[%s10007_s7 + $0x3ac] sm:$0xf]  ;;  %v5260_v63 = vld [vmem:[%s10007_s7 + $0x3b8] sm:$0xf0] }
 0x24c   : > { %v5307_v25 = vor.u32 %v6588_v11, %v5306_v8  ;;  %v6474_v5 = vld [vmem:[%s10007_s7 + $0x8c] sm:$0xf] }
 0x24d   : > { %v6538_v11 = vld [vmem:[%s10007_s7 + $0x28c] sm:$0xf] }
 0x24e   : > { %3064 = vmatpush.bf16.msrb.mxu2 %v5387_v16  ;;  %3077 = vmatpush.bf16.msrb.mxu3 %v5515_v17  ;;  %v5562_v16 = vld [vmem:[%s10007_s7 + $0x608] sm:$0xf]  ;;  %v6652_v17 = vld [vmem:[%s10007_s7 + $0x614] sm:$0xf0] }
 0x24f   : > { %3090 = vmatpush.bf16.msra.mxu0 %v5643_v20  ;;  %3103 = vmatpush.bf16.msra.mxu1 %v5771_v21  ;;  %v6486_v20 = vld [vmem:[%s10007_s7 + $0xec] sm:$0xf]  ;;  %v4908_v21 = vld [vmem:[%s10007_s7 + $0xf8] sm:$0xf0]  ;;  %v5563_v30 = vor.u32 %v6652_v17, %v5562_v16  ;;  %v4863_v16 = vor.u32 %v6474_v5, %v4860_v6 }
 0x250   : > { %v6558_v5 = vld [vmem:[%s10007_s7 + $0x32c] sm:$0xf]  ;;  %v5196_v6 = vld [vmem:[%s10007_s7 + $0x338] sm:$0xf0] }
 0x252   : > { %3065 = vmatpush.bf16.msrb.mxu2 %v5371_v28  ;;  %3078 = vmatpush.bf16.msrb.mxu3 %v5499_v29  ;;  %v6582_v28 = vld [vmem:[%s10007_s7 + $0x3ec] sm:$0xf]  ;;  %v5292_v29 = vld [vmem:[%s10007_s7 + $0x3f8] sm:$0xf0] }
 0x253   : > { %3091 = vmatpush.bf16.msra.mxu0 %v5627_v33  ;;  %3104 = vmatpush.bf16.msra.mxu1 %v5755_v34  ;;  %v4911_v33 = vor.u32 %v6486_v20, %v4908_v21  ;;  %v5039_v34 = vor.u32 %v6518_v22, %v5036_v23  ;;  %v5295_v41 = vor.u32 %v6582_v28, %v5292_v29  ;;  %v5100_v28 = vld [vmem:[%s10007_s7 + $0x278] sm:$0xf0]  ;;  %v6566_v29 = vld [vmem:[%s10007_s7 + $0x36c] sm:$0xf] }
 0x254   : > { %v5119_v20 = vor.u32 %v6538_v11, %v5116_v13  ;;  %v4796_v13 = vld [vmem:[%s10007_s7 + $0x18] sm:$0xf0] }
 0x256   : > { %3066 = vmatpush.bf16.msrb.mxu2 %v5355_v48  ;;  %3079 = vmatpush.bf16.msrb.mxu3 %v5483_v49  ;;  %v6546_v48 = vld [vmem:[%s10007_s7 + $0x2cc] sm:$0xf]  ;;  %v5148_v49 = vld [vmem:[%s10007_s7 + $0x2d8] sm:$0xf0] }
 0x257   : > { %3092 = vmatpush.bf16.msra.mxu0 %v5611_v52  ;;  %3105 = vmatpush.bf16.msra.mxu1 %v5739_v53  ;;  %v4895_v52 = vor.u32 %v6482_v36, %v4892_v37  ;;  %v5023_v53 = vor.u32 %v6514_v45, %v5020_v47  ;;  %v5151_v56 = vor.u32 %v6546_v48, %v5148_v49  ;;  %v6498_v48 = vld [vmem:[%s10007_s7 + $0x14c] sm:$0xf]  ;;  %v4956_v49 = vld [vmem:[%s10007_s7 + $0x158] sm:$0xf0] }
 0x25a   : > { %3067 = vmatpush.bf16.msrb.mxu2 %v5339_v60  ;;  %3080 = vmatpush.bf16.msrb.mxu3 %v5467_v61  ;;  %v6542_v60 = vld [vmem:[%s10007_s7 + $0x2ac] sm:$0xf]  ;;  %v5132_v61 = vld [vmem:[%s10007_s7 + $0x2b8] sm:$0xf0] }
 0x25b   : > { %3093 = vmatpush.bf16.msra.mxu0 %v5595_v0  ;;  %3106 = vmatpush.bf16.msra.mxu1 %v5723_v1  ;;  %v8708_v0 = vld [vmem:[%s10008_s8] sm:$0xf]  ;;  %v4879_v1 = vor.u32 %v6478_v54, %v4876_v55  ;;  %v5135_v8 = vor.u32 %v6542_v60, %v5132_v61  ;;  %v5212_v54 = vld [vmem:[%s10007_s7 + $0x358] sm:$0xf0] }
 0x25e   : > { %3068 = vmatpush.bf16.msrb.mxu2 %v5323_v9  ;;  %3081 = vmatpush.bf16.msrb.mxu3 %v5451_v10  ;;  %v5263_v9 = vor.u32 %v6574_v62, %v5260_v63  ;;  %v4988_v10 = vld [vmem:[%s10007_s7 + $0x198] sm:$0xf0] }
 0x25f   : > { %3094 = vmatpush.bf16.msra.mxu0 %v5579_v12  ;;  %3107 = vmatpush.bf16.msra.mxu1 %v5707_v15  ;;  %v5244_v12 = vld [vmem:[%s10007_s7 + $0x398] sm:$0xf0]  ;;  %v2794_v15 = vperm.slane %v8708_v0, 0  ;;  %v4991_v17 = vor.u32 %v6506_v7, %v4988_v10  ;;  %v6458_v7 = vld [vmem:[%s10007_s7 + $0xc] sm:$0xf] }
 0x260   : > { %v5247_v21 = vor.u32 %v6570_v14, %v5244_v12  ;;  %v6490_v14 = vld [vmem:[%s10007_s7 + $0x10c] sm:$0xf]  ;;  %v4924_v12 = vld [vmem:[%s10007_s7 + $0x118] sm:$0xf0] }
 0x262   : > { %3069 = vmatpush.bf16.msrb.mxu2 %v5307_v25  ;;  %3082 = vmatpush.bf16.msrb.mxu3 %v5435_v26  ;;  %v2837_v3 = vpop.f32.mrf.mxu0  ;;  %v2850_v4 = vpop.f32.mrf.mxu1  ;;  %v4972_v25 = vld [vmem:[%s10007_s7 + $0x178] sm:$0xf0]  ;;  %v6534_v26 = vld [vmem:[%s10007_s7 + $0x26c] sm:$0xf] }
 0x263   : > { %3095 = vmatpush.bf16.msra.mxu0 %v5563_v30  ;;  %3108 = vmatpush.bf16.msra.mxu1 %v5691_v32  ;;  %v5228_v30 = vld [vmem:[%s10007_s7 + $0x378] sm:$0xf0]  ;;  %v5103_v45 = vor.u32 %v6534_v26, %v5100_v28  ;;  %v4799_v26 = vor.u32 %v6458_v7, %v4796_v13  ;;  %v6602_v13 = vld [vmem:[%s10007_s7 + $0x48c] sm:$0xf] }
 0x264   : > { %v5231_v47 = vor.u32 %v6566_v29, %v5228_v30  ;;  %v5676_v28 = vld [vmem:[%s10007_s7 + $0x6f8] sm:$0xf0]  ;;  %v6710_v29 = vld [vmem:[%s10007_s7 + $0x7ec] sm:$0xf] }
 0x265   : > { %3070 = vmatmul.bf16.vlgmr.msrb.gmra.mxu2 %v7957_v31  ;;  %3083 = vmatmul.bf16.vlgmr.msrb.gmra.mxu3 %v7959_v35  ;;  %v5804_v30 = vld [vmem:[%s10007_s7 + $0x7f8] sm:$0xf0] }
 0x266   : > { %3114 = vmatpush.bf16.msra.mxu2 %v4911_v33  ;;  %3127 = vmatpush.bf16.msra.mxu3 %v5039_v34  ;;  %v4847_v33 = vor.u32 %v6470_v18, %v4844_v19  ;;  %v4975_v34 = vor.u32 %v6502_v24, %v4972_v25  ;;  %v5052_v18 = vld [vmem:[%s10007_s7 + $0x218] sm:$0xf0]  ;;  %v6554_v19 = vld [vmem:[%s10007_s7 + $0x30c] sm:$0xf] }
 0x267   : > { %3140 = vmatpush.bf16.msrb.mxu0 %v5167_v38  ;;  %3153 = vmatpush.bf16.msrb.mxu1 %v5295_v41  ;;  %v2811_v22 = vpop.f32.mrf.mxu2  ;;  %v2824_v23 = vpop.f32.mrf.mxu3  ;;  %v6466_v38 = vld [vmem:[%s10007_s7 + $0x4c] sm:$0xf]  ;;  %v4828_v41 = vld [vmem:[%s10007_s7 + $0x58] sm:$0xf0] }
 0x268   : > { %3096 = vmatmul.bf16.vlgmr.msra.gmra.mxu0 %v7967_v39  ;;  %3109 = vmatmul.bf16.vlgmr.msra.gmra.mxu1 %v7969_v40  ;;  %v2812_v27 = vadd.f32 %v2811_v22, %v2794_v15  ;;  %v4831_v55 = vor.u32 %v6466_v38, %v4828_v41  ;;  %v5420_v22 = vld [vmem:[%s10007_s7 + $0x4f8] sm:$0xf0]  ;;  %v6678_v25 = vld [vmem:[%s10007_s7 + $0x6ec] sm:$0xf] }
 0x269   : > { %v5548_v24 = vld [vmem:[%s10007_s7 + $0x5f8] sm:$0xf0] }
 0x26a   : > { %3115 = vmatpush.bf16.msra.mxu2 %v4895_v52  ;;  %3128 = vmatpush.bf16.msra.mxu3 %v5023_v53  ;;  %v2825_v32 = vadd.f32 %v2824_v23, %v2812_v27  ;;  %v2839_v36 = vpop.f32.mrf.mxu0  ;;  %v2852_v37 = vpop.f32.mrf.mxu1  ;;  %v5084_v52 = vld [vmem:[%s10007_s7 + $0x258] sm:$0xf0]  ;;  %v6562_v53 = vld [vmem:[%s10007_s7 + $0x34c] sm:$0xf]  ;;  %v4927_v27 = vor.u32 %v6490_v14, %v4924_v12 }
 0x26b   : > { %3141 = vmatpush.bf16.msrb.mxu0 %v5151_v56  ;;  %3154 = vmatpush.bf16.msrb.mxu1 %v5279_v57  ;;  %v4959_v56 = vor.u32 %v6498_v48, %v4956_v49  ;;  %v6462_v57 = vld [vmem:[%s10007_s7 + $0x2c] sm:$0xf]  ;;  %v5087_v60 = vor.u32 %v6530_v50, %v5084_v52  ;;  %v5215_v61 = vor.u32 %v6562_v53, %v5212_v54  ;;  %v5644_v7 = vld [vmem:[%s10007_s7 + $0x6b8] sm:$0xf0] }
 0x26c   : > { %v2838_v51 = vadd.f32 %v2837_v3, %v2825_v32  ;;  %v6526_v3 = vld [vmem:[%s10007_s7 + $0x22c] sm:$0xf]  ;;  %v5679_v48 = vor.u32 %v6678_v25, %v5676_v28  ;;  %v5807_v49 = vor.u32 %v6710_v29, %v5804_v30  ;;  %v5372_v14 = vld [vmem:[%s10007_s7 + $0x498] sm:$0xf0] }
 0x26d   : > { %v6646_v23 = vld [vmem:[%s10007_s7 + $0x5ec] sm:$0xf]  ;;  %v5356_v25 = vld [vmem:[%s10007_s7 + $0x478] sm:$0xf0] }
 0x26e   : > { %3116 = vmatpush.bf16.msra.mxu2 %v4879_v1  ;;  %3129 = vmatpush.bf16.msra.mxu3 %v5007_v2  ;;  %v2851_v59 = vadd.f32 %v2850_v4, %v2838_v51  ;;  %v6494_v1 = vld [vmem:[%s10007_s7 + $0x12c] sm:$0xf]  ;;  %v4940_v2 = vld [vmem:[%s10007_s7 + $0x138] sm:$0xf0]  ;;  %v5551_v38 = vor.u32 %v6646_v23, %v5548_v24 }
 0x26f   : > { %3142 = vmatpush.bf16.msrb.mxu0 %v5135_v8  ;;  %3155 = vmatpush.bf16.msrb.mxu1 %v5263_v9  ;;  %v2813_v62 = vpop.f32.mrf.mxu2  ;;  %v2826_v63 = vpop.f32.mrf.mxu3  ;;  %v5068_v4 = vld [vmem:[%s10007_s7 + $0x238] sm:$0xf0]  ;;  %v4815_v8 = vor.u32 %v6462_v57, %v4812_v58  ;;  %v4943_v9 = vor.u32 %v6494_v1, %v4940_v2  ;;  %v6642_v50 = vld [vmem:[%s10007_s7 + $0x5cc] sm:$0xf] }
 0x270   : > { %v5071_v15 = vor.u32 %v6526_v3, %v5068_v4  ;;  %v5532_v51 = vld [vmem:[%s10007_s7 + $0x5d8] sm:$0xf0]  ;;  %v6674_v52 = vld [vmem:[%s10007_s7 + $0x6cc] sm:$0xf] }
 0x271   : > { %v6706_v57 = vld [vmem:[%s10007_s7 + $0x7cc] sm:$0xf]  ;;  %v5788_v58 = vld [vmem:[%s10007_s7 + $0x7d8] sm:$0xf0] }
 0x272   : > { %3117 = vmatpush.bf16.msra.mxu2 %v4863_v16  ;;  %3130 = vmatpush.bf16.msra.mxu3 %v4991_v17  ;;  %v2889_v10 = vpop.f32.mrf.mxu0  ;;  %v8810_v11 = vpop.f32.mrf.mxu1  ;;  %v5199_v16 = vor.u32 %v6558_v5, %v5196_v6  ;;  %v6522_v17 = vld [vmem:[%s10007_s7 + $0x20c] sm:$0xf]  ;;  %v5388_v63 = vld [vmem:[%s10007_s7 + $0x4b8] sm:$0xf0]  ;;  %v5791_v2 = vor.u32 %v6706_v57, %v5788_v58 }
 0x273   : > { %3143 = vmatpush.bf16.msrb.mxu0 %v5119_v20  ;;  %3156 = vmatpush.bf16.msrb.mxu1 %v5247_v21  ;;  %v5180_v20 = vld [vmem:[%s10007_s7 + $0x318] sm:$0xf0]  ;;  %v6614_v21 = vld [vmem:[%s10007_s7 + $0x4ec] sm:$0xf]  ;;  %v5055_v32 = vor.u32 %v6522_v17, %v5052_v18 }
 0x274   : > { %v5423_v37 = vor.u32 %v6614_v21, %v5420_v22  ;;  %v6606_v62 = vld [vmem:[%s10007_s7 + $0x4ac] sm:$0xf]  ;;  %v5516_v4 = vld [vmem:[%s10007_s7 + $0x5b8] sm:$0xf0]  ;;  %v5375_v22 = vor.u32 %v6602_v13, %v5372_v14 }
 0x275   : > { %v6638_v3 = vld [vmem:[%s10007_s7 + $0x5ac] sm:$0xf]  ;;  %v5628_v17 = vld [vmem:[%s10007_s7 + $0x698] sm:$0xf0] }
 0x276   : > { %3118 = vmatpush.bf16.msra.mxu2 %v4847_v33  ;;  %3131 = vmatpush.bf16.msra.mxu3 %v4975_v34  ;;  %v5183_v33 = vor.u32 %v6554_v19, %v5180_v20  ;;  %v6670_v5 = vld [vmem:[%s10007_s7 + $0x6ac] sm:$0xf]  ;;  %v5756_v19 = vld [vmem:[%s10007_s7 + $0x798] sm:$0xf0] }
 0x277   : > { %3144 = vmatpush.bf16.msrb.mxu0 %v5103_v45  ;;  %3157 = vmatpush.bf16.msrb.mxu1 %v5231_v47  ;;  %v2863_v34 = vpop.f32.mrf.mxu2  ;;  %v2876_v36 = vpop.f32.mrf.mxu3  ;;  %v6610_v45 = vld [vmem:[%s10007_s7 + $0x4cc] sm:$0xf]  ;;  %v5404_v47 = vld [vmem:[%s10007_s7 + $0x4d8] sm:$0xf0]  ;;  %v5647_v12 = vor.u32 %v6670_v5, %v5644_v7 }
 0x278   : > { %v2864_v41 = vadd.f32 %v2863_v34, %v2851_v59  ;;  %v6698_v18 = vld [vmem:[%s10007_s7 + $0x78c] sm:$0xf]  ;;  %v5484_v29 = vld [vmem:[%s10007_s7 + $0x578] sm:$0xf0] }
 0x279   : > { %v6598_v24 = vld [vmem:[%s10007_s7 + $0x46c] sm:$0xf]  ;;  %v5740_v34 = vld [vmem:[%s10007_s7 + $0x778] sm:$0xf0] }
 0x27a   : > { %3119 = vmatpush.bf16.msra.mxu2 %v4831_v55  ;;  %3132 = vmatpush.bf16.msra.mxu3 %v4959_v56  ;;  %v2877_v53 = vadd.f32 %v2876_v36, %v2864_v41  ;;  %v2891_v54 = vpop.f32.mrf.mxu0  ;;  %v2904_v55 = vpop.f32.mrf.mxu1  ;;  %v5660_v56 = vld [vmem:[%s10007_s7 + $0x6d8] sm:$0xf0]  ;;  %v6630_v28 = vld [vmem:[%s10007_s7 + $0x56c] sm:$0xf]  ;;  %v5359_v36 = vor.u32 %v6598_v24, %v5356_v25 }
 0x27b   : > { %3145 = vmatpush.bf16.msrb.mxu0 %v5087_v60  ;;  %3158 = vmatpush.bf16.msrb.mxu1 %v5215_v61  ;;  %v5407_v60 = vor.u32 %v6610_v45, %v5404_v47  ;;  %v5535_v61 = vor.u32 %v6642_v50, %v5532_v51  ;;  %v5663_v1 = vor.u32 %v6674_v52, %v5660_v56  ;;  %v6662_v30 = vld [vmem:[%s10007_s7 + $0x66c] sm:$0xf]  ;;  %v5340_v41 = vld [vmem:[%s10007_s7 + $0x458] sm:$0xf0] }
 0x27c   : > { %v2890_v59 = vadd.f32 %v2889_v10, %v2877_v53  ;;  %v6626_v50 = vld [vmem:[%s10007_s7 + $0x54c] sm:$0xf]  ;;  %v5468_v51 = vld [vmem:[%s10007_s7 + $0x558] sm:$0xf0] }
 0x27d   : > { %v6658_v52 = vld [vmem:[%s10007_s7 + $0x64c] sm:$0xf]  ;;  %v5596_v53 = vld [vmem:[%s10007_s7 + $0x658] sm:$0xf0] }
 0x27e   : > { %3120 = vmatpush.bf16.msra.mxu2 %v4815_v8  ;;  %3133 = vmatpush.bf16.msra.mxu3 %v4943_v9  ;;  %v8897_v6 = vadd.f32 %v8810_v11, %v2890_v59  ;;  %v6702_v8 = vld [vmem:[%s10007_s7 + $0x7ac] sm:$0xf]  ;;  %v5772_v9 = vld [vmem:[%s10007_s7 + $0x7b8] sm:$0xf0]  ;;  %v5519_v11 = vor.u32 %v6638_v3, %v5516_v4  ;;  %v5471_v59 = vor.u32 %v6626_v50, %v5468_v51  ;;  %v6740_v50 = vld [vmem:[%s10009_s9 + $0xd4] sm:$0xf0] }
 0x27f   : > { %3146 = vmatpush.bf16.msrb.mxu0 %v5071_v15  ;;  %3159 = vmatpush.bf16.msrb.mxu1 %v5199_v16  ;;  %v2865_v10 = vpop.f32.mrf.mxu2  ;;  %v5500_v15 = vld [vmem:[%s10007_s7 + $0x598] sm:$0xf0]  ;;  %v6666_v16 = vld [vmem:[%s10007_s7 + $0x68c] sm:$0xf] }
 0x280   : > { %v6690_v54 = vld [vmem:[%s10007_s7 + $0x74c] sm:$0xf]  ;;  %v5724_v55 = vld [vmem:[%s10007_s7 + $0x758] sm:$0xf0] }
 0x281   : > { %v6654_v3 = vld [vmem:[%s10007_s7 + $0x62c] sm:$0xf]  ;;  %v5580_v4 = vld [vmem:[%s10007_s7 + $0x638] sm:$0xf0] }
 0x282   : > { %3121 = vmatpush.bf16.msra.mxu2 %v4799_v26  ;;  %3134 = vmatpush.bf16.msra.mxu3 %v4927_v27  ;;  %v5631_v26 = vor.u32 %v6666_v16, %v5628_v17  ;;  %v5759_v27 = vor.u32 %v6698_v18, %v5756_v19  ;;  %v6686_v5 = vld [vmem:[%s10007_s7 + $0x72c] sm:$0xf]  ;;  %v5708_v7 = vld [vmem:[%s10007_s7 + $0x738] sm:$0xf0]  ;;  %v5866_v18 = vld [vmem:[%s10009_s9 + $0x70] sm:$0xf] }
 0x283   : > { %3147 = vmatpush.bf16.msrb.mxu0 %v5055_v32  ;;  %3160 = vmatpush.bf16.msrb.mxu1 %v5183_v33  ;;  %v5612_v32 = vld [vmem:[%s10007_s7 + $0x678] sm:$0xf0]  ;;  %v6694_v33 = vld [vmem:[%s10007_s7 + $0x76c] sm:$0xf]  ;;  %v5711_v13 = vor.u32 %v6686_v5, %v5708_v7  ;;  %v6728_v19 = vld [vmem:[%s10009_s9 + $0x74] sm:$0xf0] }
 0x284   : > { %v5615_v45 = vor.u32 %v6662_v30, %v5612_v32  ;;  %v5743_v47 = vor.u32 %v6694_v33, %v5740_v34  ;;  %v6586_v10 = vld [vmem:[%s10007_s7 + $0x40c] sm:$0xf]  ;;  %v5692_v17 = vld [vmem:[%s10007_s7 + $0x718] sm:$0xf0]  ;;  %v5858_v32 = vld [vmem:[%s10009_s9 + $0x60] sm:$0xf] }
 0x285   : > { %3122 = vmatmul.bf16.vlgmr.msra.gmra.mxu2 %v7845_v42  ;;  %3135 = vmatmul.bf16.vlgmr.msra.gmra.mxu3 %v7847_v43  ;;  %v2878_v42 = vpop.f32.mrf.mxu3  ;;  %v5391_v43 = vor.u32 %v6606_v62, %v5388_v63  ;;  %v8936_v20 = vpop.f32.mrf.mxu0  ;;  %v5599_v62 = vor.u32 %v6658_v52, %v5596_v53  ;;  %v5727_v63 = vor.u32 %v6690_v54, %v5724_v55  ;;  %v6682_v16 = vld [vmem:[%s10007_s7 + $0x70c] sm:$0xf]  ;;  %v6726_v33 = vld [vmem:[%s10009_s9 + $0x64] sm:$0xf0]  ;;  %v5922_v34 = vld [vmem:[%s10009_s9 + $0xe0] sm:$0xf] }
 0x286   : > { %3166 = vmatpush.bf16.msrb.mxu2 %v5423_v37  ;;  %3179 = vmatpush.bf16.msrb.mxu3 %v5551_v38  ;;  %v8938_v21 = vpop.f32.mrf.mxu1  ;;  %v5487_v37 = vor.u32 %v6630_v28, %v5484_v29  ;;  %v6594_v38 = vld [vmem:[%s10007_s7 + $0x44c] sm:$0xf]  ;;  %v5308_v42 = vld [vmem:[%s10007_s7 + $0x418] sm:$0xf0]  ;;  %v2795_v28 = vperm.slane %v8708_v0, 1  ;;  %v5867_v29 = vor.u32 %v6728_v19, %v5866_v18 }
 0x287   : > { %3192 = vmatpush.bf16.msra.mxu0 %v5679_v48  ;;  %3205 = vmatpush.bf16.msra.mxu1 %v5807_v49  ;;  %v5343_v58 = vor.u32 %v6594_v38, %v5340_v41  ;;  %v5311_v24 = vor.u32 %v6586_v10, %v5308_v42  ;;  %v5859_v38 = vor.u32 %v6726_v33, %v5858_v32  ;;  %v5842_v52 = vld [vmem:[%s10009_s9 + $0x40] sm:$0xf]  ;;  %v6722_v53 = vld [vmem:[%s10009_s9 + $0x44] sm:$0xf0]  ;;  %v6732_v18 = vld [vmem:[%s10009_s9 + $0x94] sm:$0xf0] }
 0x288   : > { %3148 = vmatmul.bf16.vlgmr.msrb.gmra.mxu0 %v7849_v44  ;;  %3161 = vmatmul.bf16.vlgmr.msrb.gmra.mxu1 %v7851_v46  ;;  %v5775_v44 = vor.u32 %v6702_v8, %v5772_v9  ;;  %v6634_v46 = vld [vmem:[%s10007_s7 + $0x58c] sm:$0xf]  ;;  %v8970_v48 = vpop.f32.mrf.mxu2  ;;  %v6718_v5 = vld [vmem:[%s10009_s9 + $0x24] sm:$0xf0]  ;;  %v5890_v7 = vld [vmem:[%s10009_s9 + $0xa0] sm:$0xf] }
 0x289   : > { %v5503_v23 = vor.u32 %v6634_v46, %v5500_v15  ;;  %v6650_v46 = vld [vmem:[%s10007_s7 + $0x60c] sm:$0xf]  ;;  %v5564_v15 = vld [vmem:[%s10007_s7 + $0x618] sm:$0xf0]  ;;  %v6734_v10 = vld [vmem:[%s10009_s9 + $0xa4] sm:$0xf0] }
 0x28a   : > { %3167 = vmatpush.bf16.msrb.mxu2 %v5407_v60  ;;  %3180 = vmatpush.bf16.msrb.mxu3 %v5535_v61  ;;  %v6590_v60 = vld [vmem:[%s10007_s7 + $0x42c] sm:$0xf]  ;;  %v5324_v61 = vld [vmem:[%s10007_s7 + $0x438] sm:$0xf0]  ;;  %v6758_v42 = vld [vmem:[%s10009_s9 + $0x164] sm:$0xf0] }
 0x28b   : > { %3193 = vmatpush.bf16.msra.mxu0 %v5663_v1  ;;  %3206 = vmatpush.bf16.msra.mxu1 %v5791_v2  ;;  %v6622_v1 = vld [vmem:[%s10007_s7 + $0x52c] sm:$0xf]  ;;  %v5452_v2 = vld [vmem:[%s10007_s7 + $0x538] sm:$0xf0]  ;;  %v5327_v8 = vor.u32 %v6590_v60, %v5324_v61  ;;  %v5898_v60 = vld [vmem:[%s10009_s9 + $0xb0] sm:$0xf] }
 0x28c   : > { %v5455_v9 = vor.u32 %v6622_v1, %v5452_v2  ;;  %v5994_v61 = vld [vmem:[%s10009_s9 + $0x170] sm:$0xf]  ;;  %v6730_v32 = vld [vmem:[%s10009_s9 + $0x84] sm:$0xf0] }
 0x28d   : > { %v8972_v49 = vpop.f32.mrf.mxu3  ;;  %v2943_v56 = vpop.f32.mrf.mxu0  ;;  %v5978_v19 = vld [vmem:[%s10009_s9 + $0x150] sm:$0xf] }
 0x28e   : > { %3168 = vmatpush.bf16.msrb.mxu2 %v5391_v43  ;;  %3181 = vmatpush.bf16.msrb.mxu3 %v5519_v11  ;;  %v2956_v57 = vpop.f32.mrf.mxu1  ;;  %v6618_v43 = vld [vmem:[%s10007_s7 + $0x50c] sm:$0xf]  ;;  %v5583_v11 = vor.u32 %v6654_v3, %v5580_v4  ;;  %v5843_v56 = vor.u32 %v6722_v53, %v5842_v52  ;;  %v5826_v4 = vld [vmem:[%s10009_s9 + $0x20] sm:$0xf] }
 0x28f   : > { %3194 = vmatpush.bf16.msra.mxu0 %v5647_v12  ;;  %3207 = vmatpush.bf16.msra.mxu1 %v5775_v44  ;;  %v5436_v44 = vld [vmem:[%s10007_s7 + $0x518] sm:$0xf0] }
 0x290   : > { %v2917_v14 = vpop.f32.mrf.mxu2  ;;  %v5439_v25 = vor.u32 %v6618_v43, %v5436_v44  ;;  %v5827_v44 = vor.u32 %v6718_v5, %v5826_v4  ;;  %v5946_v4 = vld [vmem:[%s10009_s9 + $0x110] sm:$0xf]  ;;  %v6748_v5 = vld [vmem:[%s10009_s9 + $0x114] sm:$0xf0] }
 0x292   : > { %3169 = vmatpush.bf16.msrb.mxu2 %v5375_v22  ;;  %3182 = vmatpush.bf16.msrb.mxu3 %v5503_v23  ;;  %v5930_v22 = vld [vmem:[%s10009_s9 + $0xf0] sm:$0xf]  ;;  %v6744_v23 = vld [vmem:[%s10009_s9 + $0xf4] sm:$0xf0] }
 0x293   : > { %3195 = vmatpush.bf16.msra.mxu0 %v5631_v26  ;;  %3208 = vmatpush.bf16.msra.mxu1 %v5759_v27  ;;  %v5567_v26 = vor.u32 %v6650_v46, %v5564_v15  ;;  %v5695_v27 = vor.u32 %v6682_v16, %v5692_v17  ;;  %v5931_v30 = vor.u32 %v6744_v23, %v5930_v22  ;;  %v5818_v15 = vld [vmem:[%s10009_s9 + $0x10] sm:$0xf]  ;;  %v6716_v16 = vld [vmem:[%s10009_s9 + $0x14] sm:$0xf0] }
 0x294   : > { %v5891_v46 = vor.u32 %v6734_v10, %v5890_v7  ;;  %v5882_v17 = vld [vmem:[%s10009_s9 + $0x90] sm:$0xf]  ;;  %v6756_v22 = vld [vmem:[%s10009_s9 + $0x154] sm:$0xf0]  ;;  %v5844_v10 = vld [vmem:[%s10009_s9 + $0x48] sm:$0xf0] }
 0x295   : > { %v2930_v12 = vpop.f32.mrf.mxu3 }
 0x296   : > { %3170 = vmatpush.bf16.msrb.mxu2 %v5359_v36  ;;  %3183 = vmatpush.bf16.msrb.mxu3 %v5487_v37  ;;  %v6742_v36 = vld [vmem:[%s10009_s9 + $0xe4] sm:$0xf0]  ;;  %v2916_v37 = vadd.f32 %v8970_v48, %v2795_v28  ;;  %v5914_v48 = vld [vmem:[%s10009_s9 + $0xd0] sm:$0xf]  ;;  %v5883_v28 = vor.u32 %v6732_v18, %v5882_v17  ;;  %v5836_v18 = vld [vmem:[%s10009_s9 + $0x38] sm:$0xf0] }
 0x297   : > { %3196 = vmatpush.bf16.msra.mxu0 %v5615_v45  ;;  %3209 = vmatpush.bf16.msra.mxu1 %v5743_v47  ;;  %v5923_v41 = vor.u32 %v6742_v36, %v5922_v34  ;;  %v5850_v45 = vld [vmem:[%s10009_s9 + $0x50] sm:$0xf]  ;;  %v6724_v47 = vld [vmem:[%s10009_s9 + $0x54] sm:$0xf0]  ;;  %v5915_v51 = vor.u32 %v6740_v50, %v5914_v48  ;;  %v6727_v36 = vld [vmem:[%s10009_s9 + $0x74] sm:$0xf] }
 0x29a   : > { %3171 = vmatpush.bf16.msrb.mxu2 %v5343_v58  ;;  %3184 = vmatpush.bf16.msrb.mxu3 %v5471_v59  ;;  %v5834_v58 = vld [vmem:[%s10009_s9 + $0x30] sm:$0xf]  ;;  %v6720_v59 = vld [vmem:[%s10009_s9 + $0x34] sm:$0xf0] }
 0x29b   : > { %3197 = vmatpush.bf16.msra.mxu0 %v5599_v62  ;;  %3210 = vmatpush.bf16.msra.mxu1 %v5727_v63  ;;  %v6760_v62 = vld [vmem:[%s10009_s9 + $0x174] sm:$0xf0]  ;;  %v5835_v1 = vor.u32 %v6720_v59, %v5834_v58  ;;  %v5954_v58 = vld [vmem:[%s10009_s9 + $0x120] sm:$0xf]  ;;  %v6750_v59 = vld [vmem:[%s10009_s9 + $0x124] sm:$0xf0] }
 0x29c   : > { %v5995_v63 = vor.u32 %v6760_v62, %v5994_v61  ;;  %v6723_v62 = vld [vmem:[%s10009_s9 + $0x54] sm:$0xf] }
 0x29e   : > { %3172 = vmatpush.bf16.msrb.mxu2 %v5327_v8  ;;  %3185 = vmatpush.bf16.msrb.mxu3 %v5455_v9 }
 0x29f   : > { %3198 = vmatpush.bf16.msra.mxu0 %v5583_v11  ;;  %3211 = vmatpush.bf16.msra.mxu1 %v5711_v13 }
 0x2a2   : > { %3173 = vmatpush.bf16.msrb.mxu2 %v5311_v24  ;;  %3186 = vmatpush.bf16.msrb.mxu3 %v5439_v25  ;;  %v5979_v24 = vor.u32 %v6756_v22, %v5978_v19  ;;  %v5810_v25 = vld [vmem:[%s10009_s9] sm:$0xf]  ;;  %v6735_v19 = vld [vmem:[%s10009_s9 + $0xb4] sm:$0xf]  ;;  %v5900_v22 = vld [vmem:[%s10009_s9 + $0xb8] sm:$0xf0] }
 0x2a3   : > { %3199 = vmatpush.bf16.msra.mxu0 %v5567_v26  ;;  %3212 = vmatpush.bf16.msra.mxu1 %v5695_v27  ;;  %v5819_v27 = vor.u32 %v6716_v16, %v5818_v15  ;;  %v5996_v15 = vld [vmem:[%s10009_s9 + $0x178] sm:$0xf0] }
 0x2a5   : > { %3174 = vmatmul.bf16.vlgmr.msrb.gmra.mxu2 %v7957_v31  ;;  %3187 = vmatmul.bf16.vlgmr.msrb.gmra.mxu3 %v7959_v35  ;;  %v2929_v31 = vadd.f32 %v8972_v49, %v2916_v37  ;;  %v5851_v35 = vor.u32 %v6724_v47, %v5850_v45  ;;  %v2993_v54 = vpop.f32.mrf.mxu0  ;;  %v3006_v55 = vpop.f32.mrf.mxu1  ;;  %v5970_v37 = vld [vmem:[%s10009_s9 + $0x140] sm:$0xf]  ;;  %v6743_v45 = vld [vmem:[%s10009_s9 + $0xf4] sm:$0xf]  ;;  %v5932_v47 = vld [vmem:[%s10009_s9 + $0xf8] sm:$0xf0] }
 0x2a6   : > { %3616 = vmatpush.bf16.msra.mxu2 %v5867_v29  ;;  %3629 = vmatpush.bf16.msra.mxu3 %v5931_v30  ;;  %v6714_v29 = vld [vmem:[%s10009_s9 + $0x4] sm:$0xf0]  ;;  %v5874_v30 = vld [vmem:[%s10009_s9 + $0x80] sm:$0xf]  ;;  %v5935_v53 = vor.u32 %v6743_v45, %v5932_v47  ;;  %v6715_v45 = vld [vmem:[%s10009_s9 + $0x14] sm:$0xf] }
 0x2a7   : > { %3200 = vmatmul.bf16.vlgmr.msra.gmra.mxu0 %v7967_v39  ;;  %3213 = vmatmul.bf16.vlgmr.msra.gmra.mxu1 %v7969_v40  ;;  %v5906_v39 = vld [vmem:[%s10009_s9 + $0xc0] sm:$0xf]  ;;  %v6738_v40 = vld [vmem:[%s10009_s9 + $0xc4] sm:$0xf0]  ;;  %v2942_v49 = vadd.f32 %v8936_v20, %v2929_v31  ;;  %v6736_v20 = vld [vmem:[%s10009_s9 + $0xb4] sm:$0xf0] }
 0x2a8   : > { %v5907_v57 = vor.u32 %v6738_v40, %v5906_v39  ;;  %v5899_v2 = vor.u32 %v6736_v20, %v5898_v60  ;;  %v2967_v8 = vpop.f32.mrf.mxu2  ;;  %v2980_v9 = vpop.f32.mrf.mxu3  ;;  %3642 = vmatpush.bf16.msrb.mxu0 %v5995_v63  ;;  %v3218_v31 = vmax.f32 %v8897_v6, 0.0  ;;  %v6725_v39 = vld [vmem:[%s10009_s9 + $0x64] sm:$0xf]  ;;  %v5962_v40 = vld [vmem:[%s10009_s9 + $0x130] sm:$0xf] }
 0x2a9   : > { %v2955_v3 = vadd.f32 %v8938_v21, %v2942_v49  ;;  %v5986_v21 = vld [vmem:[%s10009_s9 + $0x160] sm:$0xf]  ;;  %v6752_v49 = vld [vmem:[%s10009_s9 + $0x134] sm:$0xf0]  ;;  %v5860_v6 = vld [vmem:[%s10009_s9 + $0x68] sm:$0xf0] }
 0x2aa   : > { %3617 = vmatpush.bf16.msra.mxu2 %v5859_v38  ;;  %3630 = vmatpush.bf16.msra.mxu3 %v5923_v41  ;;  %v5987_v11 = vor.u32 %v6758_v42, %v5986_v21  ;;  %v6754_v38 = vld [vmem:[%s10009_s9 + $0x144] sm:$0xf0]  ;;  %v5868_v41 = vld [vmem:[%s10009_s9 + $0x78] sm:$0xf0]  ;;  %v9208_v60 = vpack.c.bf16 %v3218_v31, %v3218_v31  ;;  %v5863_v20 = vor.u32 %v6725_v39, %v5860_v6  ;;  %v6737_v21 = vld [vmem:[%s10009_s9 + $0xc4] sm:$0xf] }
 0x2ab   : > { %v2968_v43 = vadd.f32 %v2967_v8, %v2955_v3  ;;  %v5971_v48 = vor.u32 %v6754_v38, %v5970_v37  ;;  %v5871_v52 = vor.u32 %v6727_v36, %v5868_v41  ;;  %v5852_v63 = vld [vmem:[%s10009_s9 + $0x58] sm:$0xf0]  ;;  %v5955_v3 = vor.u32 %v6750_v59, %v5954_v58  ;;  %v5908_v42 = vld [vmem:[%s10009_s9 + $0xc8] sm:$0xf0] }
 0x2ac   : > { %3643 = vmatpush.bf16.msrb.mxu0 %v5987_v11  ;;  %v5855_v7 = vor.u32 %v6723_v62, %v5852_v63  ;;  %v5938_v11 = vld [vmem:[%s10009_s9 + $0x100] sm:$0xf]  ;;  %v5820_v47 = vld [vmem:[%s10009_s9 + $0x18] sm:$0xf0]  ;;  %v5812_v6 = vld [vmem:[%s10009_s9 + $0x8] sm:$0xf0] }
 0x2ad   : > { %v2981_v13 = vadd.f32 %v2980_v9, %v2968_v43  ;;  %v2995_v14 = vpop.f32.mrf.mxu0  ;;  %v3008_v12 = vpop.f32.mrf.mxu1  ;;  %v6721_v9 = vld [vmem:[%s10009_s9 + $0x44] sm:$0xf]  ;;  %v5947_v43 = vor.u32 %v6748_v5, %v5946_v4  ;;  %v5823_v39 = vor.u32 %v6715_v45, %v5820_v47  ;;  %v5972_v58 = vld [vmem:[%s10009_s9 + $0x148] sm:$0xf0]  ;;  %v2796_v4 = vperm.slane %v8708_v0, 2 }
 0x2ae   : > { %3618 = vmatpush.bf16.msra.mxu2 %v5851_v35  ;;  %3631 = vmatpush.bf16.msra.mxu3 %v5915_v51  ;;  %v5811_v35 = vor.u32 %v6714_v29, %v5810_v25  ;;  %v5875_v51 = vor.u32 %v6730_v32, %v5874_v30  ;;  %v6759_v14 = vld [vmem:[%s10009_s9 + $0x174] sm:$0xf]  ;;  %v5847_v12 = vor.u32 %v6721_v9, %v5844_v10  ;;  %v6733_v29 = vld [vmem:[%s10009_s9 + $0xa4] sm:$0xf]  ;;  %v5892_v30 = vld [vmem:[%s10009_s9 + $0xa8] sm:$0xf0] }
 0x2af   : > { %v2994_v23 = vadd.f32 %v2993_v54, %v2981_v13  ;;  %v6741_v54 = vld [vmem:[%s10009_s9 + $0xe4] sm:$0xf]  ;;  %v6746_v13 = vld [vmem:[%s10009_s9 + $0x104] sm:$0xf0]  ;;  %v5895_v41 = vor.u32 %v6733_v29, %v5892_v30  ;;  %v6747_v0 = vld [vmem:[%s10009_s9 + $0x114] sm:$0xf] }
 0x2b0   : > { %v2969_v33 = vpop.f32.mrf.mxu2  ;;  %v2982_v34 = vpop.f32.mrf.mxu3  ;;  %3644 = vmatpush.bf16.msrb.mxu0 %v5979_v24  ;;  %v5999_v24 = vor.u32 %v6759_v14, %v5996_v15  ;;  %v6757_v32 = vld [vmem:[%s10009_s9 + $0x164] sm:$0xf]  ;;  %v5948_v10 = vld [vmem:[%s10009_s9 + $0x118] sm:$0xf0]  ;;  %v6050_v15 = vld [vmem:[%s10009_s9 + $0x1e0] sm:$0xf] }
 0x2b1   : > { %v3007_v26 = vadd.f32 %v3006_v55, %v2994_v23  ;;  %v5924_v55 = vld [vmem:[%s10009_s9 + $0xe8] sm:$0xf0]  ;;  %v5939_v23 = vor.u32 %v6746_v13, %v5938_v11  ;;  %v6749_v5 = vld [vmem:[%s10009_s9 + $0x124] sm:$0xf]  ;;  %v6776_v13 = vld [vmem:[%s10009_s9 + $0x1f4] sm:$0xf0] }
 0x2b2   : > { %3619 = vmatpush.bf16.msra.mxu2 %v5843_v56  ;;  %3632 = vmatpush.bf16.msra.mxu3 %v5907_v57  ;;  %v5963_v56 = vor.u32 %v6752_v49, %v5962_v40  ;;  %v5927_v61 = vor.u32 %v6741_v54, %v5924_v55  ;;  %v5988_v33 = vld [vmem:[%s10009_s9 + $0x168] sm:$0xf0]  ;;  %v6713_v49 = vld [vmem:[%s10009_s9 + $0x4] sm:$0xf] }
 0x2b3   : > { %v3219_v50 = vmax.f32 %v3007_v26, 0.0  ;;  %v5903_v26 = vor.u32 %v6735_v19, %v5900_v22  ;;  %v5991_v37 = vor.u32 %v6757_v32, %v5988_v33  ;;  %v6729_v54 = vld [vmem:[%s10009_s9 + $0x84] sm:$0xf]  ;;  %v5876_v55 = vld [vmem:[%s10009_s9 + $0x88] sm:$0xf0]  ;;  %v5815_v62 = vor.u32 %v6713_v49, %v5812_v6 }
 0x2b4   : > { %3645 = vmatpush.bf16.msrb.mxu0 %v5971_v48  ;;  %v6731_v48 = vld [vmem:[%s10009_s9 + $0x94] sm:$0xf]  ;;  %v5879_v63 = vor.u32 %v6729_v54, %v5876_v55  ;;  %v6770_v33 = vld [vmem:[%s10009_s9 + $0x1c4] sm:$0xf0]  ;;  %v6060_v55 = vld [vmem:[%s10009_s9 + $0x1f8] sm:$0xf0] }
 0x2b5   : > { %v9200_v57 = vpack.c.bf16 %v3219_v50, %v3219_v50  ;;  %v6762_v49 = vld [vmem:[%s10009_s9 + $0x184] sm:$0xf0]  ;;  %v6775_v6 = vld [vmem:[%s10009_s9 + $0x1f4] sm:$0xf] }
 0x2b6   : > { %3620 = vmatpush.bf16.msra.mxu2 %v5835_v1  ;;  %3633 = vmatpush.bf16.msra.mxu3 %v5899_v2  ;;  %v6739_v1 = vld [vmem:[%s10009_s9 + $0xd4] sm:$0xf]  ;;  %v5916_v2 = vld [vmem:[%s10009_s9 + $0xd8] sm:$0xf0] }
 0x2b7   : > { %v5919_v8 = vor.u32 %v6739_v1, %v5916_v2  ;;  %v6751_v1 = vld [vmem:[%s10009_s9 + $0x134] sm:$0xf]  ;;  %v5964_v2 = vld [vmem:[%s10009_s9 + $0x138] sm:$0xf0] }
 0x2b8   : > { %3646 = vmatpush.bf16.msrb.mxu0 %v5963_v56  ;;  %v6753_v56 = vld [vmem:[%s10009_s9 + $0x144] sm:$0xf] }
 0x2ba   : > { %3621 = vmatpush.bf16.msra.mxu2 %v5827_v44  ;;  %3634 = vmatpush.bf16.msra.mxu3 %v5891_v46  ;;  %v5911_v44 = vor.u32 %v6737_v21, %v5908_v42  ;;  %v6719_v46 = vld [vmem:[%s10009_s9 + $0x34] sm:$0xf]  ;;  %v5951_v21 = vor.u32 %v6747_v0, %v5948_v10 }
 0x2bb   : > { %v5839_v25 = vor.u32 %v6719_v46, %v5836_v18  ;;  %v6774_v18 = vld [vmem:[%s10009_s9 + $0x1e4] sm:$0xf0] }
 0x2bc   : > { %3647 = vmatpush.bf16.msrb.mxu0 %v5955_v3  ;;  %v5967_v3 = vor.u32 %v6751_v1, %v5964_v2  ;;  %v6051_v22 = vor.u32 %v6774_v18, %v6050_v15  ;;  %v6771_v2 = vld [vmem:[%s10009_s9 + $0x1d4] sm:$0xf] }
 0x2be   : > { %3622 = vmatpush.bf16.msra.mxu2 %v5819_v27  ;;  %3635 = vmatpush.bf16.msra.mxu3 %v5883_v28  ;;  %v6717_v27 = vld [vmem:[%s10009_s9 + $0x24] sm:$0xf]  ;;  %v5828_v28 = vld [vmem:[%s10009_s9 + $0x28] sm:$0xf0] }
 0x2bf   : > { %v5831_v38 = vor.u32 %v6717_v27, %v5828_v28 }
 0x2c0   : > { %3648 = vmatpush.bf16.msrb.mxu0 %v5947_v43  ;;  %v6745_v43 = vld [vmem:[%s10009_s9 + $0x104] sm:$0xf] }
 0x2c2   : > { %3623 = vmatpush.bf16.msra.mxu2 %v5811_v35  ;;  %3636 = vmatpush.bf16.msra.mxu3 %v5875_v51  ;;  %v5884_v35 = vld [vmem:[%s10009_s9 + $0x98] sm:$0xf0]  ;;  %v6755_v51 = vld [vmem:[%s10009_s9 + $0x154] sm:$0xf] }
 0x2c3   : > { %v5887_v40 = vor.u32 %v6731_v48, %v5884_v35 }
 0x2c4   : > { %3649 = vmatpush.bf16.msrb.mxu0 %v5939_v23 }
 0x2c5   : > { %3624 = vmatmul.bf16.vlgmr.msra.gmra.mxu2 %v9208_v60  ;;  %3637 = vmatmul.bf16.vlgmr.msra.gmra.mxu3 %v9200_v57  ;;  %v9257_v16 = vpop.f32.mrf.mxu0  ;;  %v9259_v17 = vpop.f32.mrf.mxu1 }
 0x2c6   : > { %3668 = vmatpush.bf16.msrb.mxu2 %v5871_v52  ;;  %3681 = vmatpush.bf16.msrb.mxu3 %v5935_v53  ;;  %v5980_v52 = vld [vmem:[%s10009_s9 + $0x158] sm:$0xf0] }
 0x2c7   : > { %v5983_v53 = vor.u32 %v6755_v51, %v5980_v52  ;;  %v6010_v52 = vld [vmem:[%s10009_s9 + $0x190] sm:$0xf] }
 0x2c8   : > { %v3019_v34 = vpop.f32.mrf.mxu2  ;;  %v3032_v36 = vpop.f32.mrf.mxu3  ;;  %3694 = vmatpush.bf16.msra.mxu0 %v5999_v24 }
 0x2c9   : > { %v3020_v9 = vadd.f32 %v3019_v34, %v2796_v4  ;;  %v6026_v34 = vld [vmem:[%s10009_s9 + $0x1b0] sm:$0xf] }
 0x2ca   : > { %3669 = vmatpush.bf16.msrb.mxu2 %v5863_v20  ;;  %3682 = vmatpush.bf16.msrb.mxu3 %v5927_v61  ;;  %v5975_v61 = vor.u32 %v6753_v56, %v5972_v58  ;;  %v6063_v56 = vor.u32 %v6775_v6, %v6060_v55  ;;  %v6186_v6 = vld [vmem:[%s10011_s11 + $0xf0] sm:$0xf] }
 0x2cb   : > { %v3033_v42 = vadd.f32 %v3032_v36, %v3020_v9  ;;  %v6036_v9 = vld [vmem:[%s10009_s9 + $0x1c8] sm:$0xf0] }
 0x2cc   : > { %3695 = vmatpush.bf16.msra.mxu0 %v5991_v37 }
 0x2cd   : > { %v3047_v50 = vpop.f32.mrf.mxu0  ;;  %v3060_v31 = vpop.f32.mrf.mxu1  ;;  %v3046_v14 = vadd.f32 %v9257_v16, %v3033_v42  ;;  %v6042_v16 = vld [vmem:[%s10009_s9 + $0x1d0] sm:$0xf]  ;;  %v6767_v42 = vld [vmem:[%s10009_s9 + $0x1b4] sm:$0xf] }
 0x2ce   : > { %3670 = vmatpush.bf16.msrb.mxu2 %v5855_v7  ;;  %3683 = vmatpush.bf16.msrb.mxu3 %v5919_v8  ;;  %v5956_v7 = vld [vmem:[%s10009_s9 + $0x128] sm:$0xf0]  ;;  %v6018_v50 = vld [vmem:[%s10009_s9 + $0x1a0] sm:$0xf]  ;;  %v6766_v31 = vld [vmem:[%s10009_s9 + $0x1a4] sm:$0xf0] }
 0x2cf   : > { %v5959_v8 = vor.u32 %v6749_v5, %v5956_v7  ;;  %v3059_v19 = vadd.f32 %v9259_v17, %v3046_v14  ;;  %v6034_v17 = vld [vmem:[%s10009_s9 + $0x1c0] sm:$0xf]  ;;  %v6019_v51 = vor.u32 %v6766_v31, %v6018_v50 }
 0x2d0   : > { %v3021_v59 = vpop.f32.mrf.mxu2  ;;  %v3034_v20 = vpop.f32.mrf.mxu3  ;;  %3696 = vmatpush.bf16.msra.mxu0 %v5983_v53  ;;  %v6035_v37 = vor.u32 %v6770_v33, %v6034_v17  ;;  %v6764_v53 = vld [vmem:[%s10009_s9 + $0x194] sm:$0xf0] }
 0x2d1   : > { %v6773_v20 = vld [vmem:[%s10009_s9 + $0x1e4] sm:$0xf] }
 0x2d2   : > { %3671 = vmatpush.bf16.msrb.mxu2 %v5847_v12  ;;  %3684 = vmatpush.bf16.msrb.mxu3 %v5911_v44 }
 0x2d4   : > { %3697 = vmatpush.bf16.msra.mxu0 %v5975_v61  ;;  %v6052_v61 = vld [vmem:[%s10009_s9 + $0x1e8] sm:$0xf0] }
 0x2d6   : > { %3672 = vmatpush.bf16.msrb.mxu2 %v5839_v25  ;;  %3685 = vmatpush.bf16.msrb.mxu3 %v5903_v26  ;;  %v6772_v26 = vld [vmem:[%s10009_s9 + $0x1d4] sm:$0xf0] }
 0x2d7   : > { %v6043_v30 = vor.u32 %v6772_v26, %v6042_v16 }
 0x2d8   : > { %3698 = vmatpush.bf16.msra.mxu0 %v5967_v3  ;;  %v6044_v3 = vld [vmem:[%s10009_s9 + $0x1d8] sm:$0xf0] }
 0x2d9   : > { %v6047_v4 = vor.u32 %v6771_v2, %v6044_v3  ;;  %v6146_v2 = vld [vmem:[%s10011_s11 + $0xa0] sm:$0xf]  ;;  %v6799_v3 = vld [vmem:[%s10011_s11 + $0xb0] sm:$0xf0] }
 0x2da   : > { %3673 = vmatpush.bf16.msrb.mxu2 %v5831_v38  ;;  %3686 = vmatpush.bf16.msrb.mxu3 %v5895_v41  ;;  %v6768_v38 = vld [vmem:[%s10009_s9 + $0x1b4] sm:$0xf0] }
 0x2db   : > { %v6027_v48 = vor.u32 %v6768_v38, %v6026_v34 }
 0x2dc   : > { %3699 = vmatpush.bf16.msra.mxu0 %v5959_v8  ;;  %v6769_v8 = vld [vmem:[%s10009_s9 + $0x1c4] sm:$0xf] }
 0x2dd   : > { %v6039_v0 = vor.u32 %v6769_v8, %v6036_v9 }
 0x2de   : > { %3674 = vmatpush.bf16.msrb.mxu2 %v5823_v39  ;;  %3687 = vmatpush.bf16.msrb.mxu3 %v5887_v40  ;;  %v6011_v39 = vor.u32 %v6764_v53, %v6010_v52  ;;  %v6002_v40 = vld [vmem:[%s10009_s9 + $0x180] sm:$0xf] }
 0x2df   : > { %v6003_v54 = vor.u32 %v6762_v49, %v6002_v40  ;;  %v6814_v40 = vld [vmem:[%s10011_s11 + $0x128] sm:$0xf0] }
 0x2e0   : > { %3700 = vmatpush.bf16.msra.mxu0 %v5951_v21 }
 0x2e2   : > { %3675 = vmatpush.bf16.msrb.mxu2 %v5815_v62  ;;  %3688 = vmatpush.bf16.msrb.mxu3 %v5879_v63  ;;  %v6055_v62 = vor.u32 %v6773_v20, %v6052_v61 }
 0x2e5   : > { %3676 = vmatmul.bf16.vlgmr.msrb.gmra.mxu2 %v9208_v60  ;;  %3689 = vmatmul.bf16.vlgmr.msrb.gmra.mxu3 %v9200_v57  ;;  %v5940_v60 = vld [vmem:[%s10009_s9 + $0x108] sm:$0xf0]  ;;  %v6058_v57 = vld [vmem:[%s10009_s9 + $0x1f0] sm:$0xf]  ;;  %v3097_v12 = vpop.f32.mrf.mxu0  ;;  %v3110_v44 = vpop.f32.mrf.mxu1 }
 0x2e6   : > { %v5943_v11 = vor.u32 %v6745_v43, %v5940_v60  ;;  %v6059_v46 = vor.u32 %v6776_v13, %v6058_v57  ;;  %v6028_v43 = vld [vmem:[%s10009_s9 + $0x1b8] sm:$0xf0]  ;;  %v6765_v57 = vld [vmem:[%s10009_s9 + $0x1a4] sm:$0xf]  ;;  %v6885_v13 = vld [vmem:[%s10008_s8] sm:$0xf] }
 0x2e7   : > { %v6031_v60 = vor.u32 %v6767_v42, %v6028_v43  ;;  %v2797_v14 = vperm.slane %v6885_v13, 3  ;;  %v6366_v42 = vld [vmem:[%s10011_s11 + $0x258] sm:$0xf] }
 0x2e8   : > { %3655 = vmatpush.bf16.msrb.mxu1 %v6059_v46  ;;  %3701 = vmatpush.bf16.msra.mxu0 %v5943_v11  ;;  %v3071_v23 = vpop.f32.mrf.mxu2  ;;  %v3084_v24 = vpop.f32.mrf.mxu3  ;;  %v6020_v11 = vld [vmem:[%s10009_s9 + $0x1a8] sm:$0xf0]  ;;  %v6012_v46 = vld [vmem:[%s10009_s9 + $0x198] sm:$0xf0] }
 0x2e9   : > { %v3072_v25 = vadd.f32 %v3071_v23, %v3059_v19  ;;  %v6761_v19 = vld [vmem:[%s10009_s9 + $0x184] sm:$0xf] }
 0x2eb   : > { %v3085_v27 = vadd.f32 %v3084_v24, %v3072_v25 }
 0x2ec   : > { %3656 = vmatpush.bf16.msrb.mxu1 %v6051_v22  ;;  %v6004_v22 = vld [vmem:[%s10009_s9 + $0x188] sm:$0xf0] }
 0x2ed   : > { %v3099_v28 = vpop.f32.mrf.mxu0  ;;  %v3112_v29 = vpop.f32.mrf.mxu1  ;;  %v3098_v32 = vadd.f32 %v3097_v12, %v3085_v27  ;;  %v6023_v12 = vor.u32 %v6765_v57, %v6020_v11  ;;  %v6007_v24 = vor.u32 %v6761_v19, %v6004_v22  ;;  %v6807_v57 = vld [vmem:[%s10011_s11 + $0xf4] sm:$0xf]  ;;  %v6188_v11 = vld [vmem:[%s10011_s11 + $0x104] sm:$0xf0]  ;;  %v6802_v19 = vld [vmem:[%s10011_s11 + $0xcc] sm:$0xf] }
 0x2ee   : > { %v6168_v22 = vld [vmem:[%s10011_s11 + $0xdc] sm:$0xf0] }
 0x2ef   : > { %v3111_v36 = vadd.f32 %v3110_v44, %v3098_v32  ;;  %v6763_v44 = vld [vmem:[%s10009_s9 + $0x194] sm:$0xf] }
 0x2f0   : > { %3657 = vmatpush.bf16.msrb.mxu1 %v6043_v30  ;;  %v3073_v41 = vpop.f32.mrf.mxu2  ;;  %v3086_v45 = vpop.f32.mrf.mxu3  ;;  %v6015_v18 = vor.u32 %v6763_v44, %v6012_v46  ;;  %v6789_v44 = vld [vmem:[%s10011_s11 + $0x60] sm:$0xf0]  ;;  %v6346_v46 = vld [vmem:[%s10011_s11 + $0x230] sm:$0xf] }
 0x2f1   : > { %v3220_v47 = vmax.f32 %v3111_v36, 0.0 }
 0x2f3   : > { %v3224_v35 = vpack.c.bf16 %v3220_v47, %v3220_v47  ;;  %v3290_v47 = vld [vmem:[%s10010_s10] sm:$0x3] }
 0x2f4   : > { %3658 = vmatpush.bf16.msrb.mxu1 %v6035_v37  ;;  %v3613_v55 = vperm.slane %v3290_v47, 1 }
 0x2f5   : > { %3650 = vmatmul.bf16.vlgmr.msrb.gmra.mxu0 %v3224_v35 }
 0x2f8   : > { %3659 = vmatpush.bf16.msrb.mxu1 %v6027_v48  ;;  %v3612_v48 = vperm.slane %v3290_v47, 0  ;;  %v6792_v47 = vld [vmem:[%s10011_s11 + $0x7c] sm:$0xf] }
 0x2fc   : > { %3660 = vmatpush.bf16.msrb.mxu1 %v6019_v51 }
 0x300   : > { %3661 = vmatpush.bf16.msrb.mxu1 %v6011_v39  ;;  %v6206_v39 = vld [vmem:[%s10011_s11 + $0x118] sm:$0xf] }
 0x301   : > { %v6207_v49 = vor.u32 %v6814_v40, %v6206_v39  ;;  %v6348_v39 = vld [vmem:[%s10011_s11 + $0x244] sm:$0xf0] }
 0x303   : > { %4248 = vmatpush.bf16.msra.mxu2 %v6207_v49 }
 0x304   : > { %3662 = vmatpush.bf16.msrb.mxu1 %v6003_v54  ;;  %v6809_v54 = vld [vmem:[%s10011_s11 + $0x100] sm:$0xf0] }
 0x305   : > { %v3149_v58 = vpop.f32.mrf.mxu0  ;;  %v3162_v59 = vpop.f32.mrf.mxu1  ;;  %3702 = vmatmul.bf16.vlgmr.msra.gmra.mxu0 %v3224_v35 }
 0x308   : > { %3707 = vmatpush.bf16.msra.mxu1 %v6063_v56  ;;  %v3123_v63 = vpop.f32.mrf.mxu2  ;;  %v3136_v1 = vpop.f32.mrf.mxu3  ;;  %v6187_v56 = vor.u32 %v6809_v54, %v6186_v6  ;;  %v6286_v6 = vld [vmem:[%s10011_s11 + $0x1b8] sm:$0xf]  ;;  %v6834_v54 = vld [vmem:[%s10011_s11 + $0x1c8] sm:$0xf0] }
 0x309   : > { %v3124_v15 = vadd.f32 %v3123_v63, %v2797_v14  ;;  %v6804_v63 = vld [vmem:[%s10011_s11 + $0xd8] sm:$0xf0]  ;;  %v6191_v14 = vor.u32 %v6807_v57, %v6188_v11  ;;  %v6246_v57 = vld [vmem:[%s10011_s11 + $0x168] sm:$0xf] }
 0x30a   : > { %4249 = vmatpush.bf16.msra.mxu2 %v6187_v56 }
 0x30b   : > { %v3137_v23 = vadd.f32 %v3136_v1, %v3124_v15 }
 0x30c   : > { %3708 = vmatpush.bf16.msra.mxu1 %v6055_v62  ;;  %v6166_v62 = vld [vmem:[%s10011_s11 + $0xc8] sm:$0xf] }
 0x30d   : > { %v3151_v5 = vpop.f32.mrf.mxu0  ;;  %v3164_v7 = vpop.f32.mrf.mxu1  ;;  %v3150_v25 = vadd.f32 %v3149_v58, %v3137_v23  ;;  %v6167_v1 = vor.u32 %v6804_v63, %v6166_v62  ;;  %v6328_v62 = vld [vmem:[%s10011_s11 + $0x21c] sm:$0xf0]  ;;  %v6194_v63 = vld [vmem:[%s10011_s11 + $0xf8] sm:$0xf] }
 0x30e   : > { %v6147_v5 = vor.u32 %v6799_v3, %v6146_v2  ;;  %v6208_v7 = vld [vmem:[%s10011_s11 + $0x12c] sm:$0xf0]  ;;  %v6287_v3 = vor.u32 %v6834_v54, %v6286_v6  ;;  %v6850_v6 = vld [vmem:[%s10011_s11 + $0x248] sm:$0xf0] }
 0x30f   : > { %v3163_v27 = vadd.f32 %v3162_v59, %v3150_v25  ;;  %4250 = vmatpush.bf16.msra.mxu2 %v6167_v1  ;;  %v6086_v25 = vld [vmem:[%s10011_s11 + $0x28] sm:$0xf]  ;;  %v6810_v1 = vld [vmem:[%s10011_s11 + $0x108] sm:$0xf0] }
 0x310   : > { %3709 = vmatpush.bf16.msra.mxu1 %v6047_v4  ;;  %v3125_v10 = vpop.f32.mrf.mxu2  ;;  %v3138_v21 = vpop.f32.mrf.mxu3  ;;  %v6812_v4 = vld [vmem:[%s10011_s11 + $0x11c] sm:$0xf] }
 0x311   : > { %v6211_v8 = vor.u32 %v6812_v4, %v6208_v7  ;;  %v6126_v10 = vld [vmem:[%s10011_s11 + $0x78] sm:$0xf]  ;;  %v6794_v21 = vld [vmem:[%s10011_s11 + $0x88] sm:$0xf0]  ;;  %v6837_v7 = vld [vmem:[%s10011_s11 + $0x1e4] sm:$0xf] }
 0x312   : > { %v6127_v43 = vor.u32 %v6794_v21, %v6126_v10  ;;  %v6829_v10 = vld [vmem:[%s10011_s11 + $0x1a0] sm:$0xf0]  ;;  %v6782_v21 = vld [vmem:[%s10011_s11 + $0x2c] sm:$0xf] }
 0x313   : > { %4274 = vmatpush.bf16.msrb.mxu0 %v6211_v8  ;;  %4251 = vmatpush.bf16.msra.mxu2 %v6147_v5  ;;  %v6266_v5 = vld [vmem:[%s10011_s11 + $0x190] sm:$0xf]  ;;  %v6308_v8 = vld [vmem:[%s10011_s11 + $0x1f4] sm:$0xf0] }
 0x314   : > { %3710 = vmatpush.bf16.msra.mxu1 %v6039_v0  ;;  %v6311_v11 = vor.u32 %v6837_v7, %v6308_v8 }
 0x317   : > { %4252 = vmatpush.bf16.msra.mxu2 %v6127_v43  ;;  %4275 = vmatpush.bf16.msrb.mxu0 %v6191_v14  ;;  %v6174_v43 = vld [vmem:[%s10011_s11 + $0xd0] sm:$0xf] }
 0x318   : > { %3711 = vmatpush.bf16.msra.mxu1 %v6031_v60  ;;  %v6854_v60 = vld [vmem:[%s10011_s11 + $0x268] sm:$0xf0] }
 0x319   : > { %v6367_v13 = vor.u32 %v6854_v60, %v6366_v42  ;;  %v6088_v42 = vld [vmem:[%s10011_s11 + $0x3c] sm:$0xf0]  ;;  %v6805_v60 = vld [vmem:[%s10011_s11 + $0xe0] sm:$0xf0] }
 0x31a   : > { %v6091_v14 = vor.u32 %v6782_v21, %v6088_v42  ;;  %v6817_v21 = vld [vmem:[%s10011_s11 + $0x144] sm:$0xf]  ;;  %v6228_v42 = vld [vmem:[%s10011_s11 + $0x154] sm:$0xf0] }
 0x31b   : > { %4261 = vmatpush.bf16.msra.mxu3 %v6367_v13  ;;  %v6267_v13 = vor.u32 %v6829_v10, %v6266_v5  ;;  %v6845_v5 = vld [vmem:[%s10011_s11 + $0x220] sm:$0xf0] }
 0x31c   : > { %3712 = vmatpush.bf16.msra.mxu1 %v6023_v12  ;;  %v6106_v12 = vld [vmem:[%s10011_s11 + $0x50] sm:$0xf] }
 0x31d   : > { %v6107_v15 = vor.u32 %v6789_v44, %v6106_v12  ;;  %v6824_v12 = vld [vmem:[%s10011_s11 + $0x178] sm:$0xf0] }
 0x31e   : > { %v6832_v44 = vld [vmem:[%s10011_s11 + $0x1bc] sm:$0xf] }
 0x31f   : > { %4253 = vmatpush.bf16.msra.mxu2 %v6107_v15  ;;  %v6175_v15 = vor.u32 %v6805_v60, %v6174_v43  ;;  %v6074_v43 = vld [vmem:[%s10011_s11 + $0x8] sm:$0xf]  ;;  %v6231_v60 = vor.u32 %v6817_v21, %v6228_v42 }
 0x320   : > { %3713 = vmatpush.bf16.msra.mxu1 %v6015_v18  ;;  %v6849_v18 = vld [vmem:[%s10011_s11 + $0x240] sm:$0xf0] }
 0x321   : > { %v6347_v23 = vor.u32 %v6849_v18, %v6346_v46  ;;  %v6288_v46 = vld [vmem:[%s10011_s11 + $0x1cc] sm:$0xf0]  ;;  %v6777_v18 = vld [vmem:[%s10011_s11 + $0x4] sm:$0xf] }
 0x323   : > { %4262 = vmatpush.bf16.msra.mxu3 %v6347_v23  ;;  %v6800_v23 = vld [vmem:[%s10011_s11 + $0xb8] sm:$0xf0] }
 0x324   : > { %v3201_v16 = vpop.f32.mrf.mxu0  ;;  %v3214_v26 = vpop.f32.mrf.mxu1  ;;  %3714 = vmatpush.bf16.msra.mxu1 %v6007_v24  ;;  %v6171_v24 = vor.u32 %v6802_v19, %v6168_v22  ;;  %v6068_v19 = vld [vmem:[%s10011_s11 + $0x14] sm:$0xf0]  ;;  %v6154_v22 = vld [vmem:[%s10011_s11 + $0xa8] sm:$0xf] }
 0x326   : > { %4276 = vmatpush.bf16.msrb.mxu0 %v6171_v24  ;;  %v6813_v24 = vld [vmem:[%s10011_s11 + $0x124] sm:$0xf] }
 0x328   : > { %v3175_v28 = vpop.f32.mrf.mxu2  ;;  %v3188_v29 = vpop.f32.mrf.mxu3 }
 0x329   : > { %v3176_v30 = vadd.f32 %v3175_v28, %v3163_v27  ;;  %v6844_v27 = vld [vmem:[%s10011_s11 + $0x218] sm:$0xf0]  ;;  %v6797_v28 = vld [vmem:[%s10011_s11 + $0xa4] sm:$0xf] }
 0x32b   : > { %v3189_v32 = vadd.f32 %v3188_v29, %v3176_v30  ;;  %v6148_v29 = vld [vmem:[%s10011_s11 + $0xb4] sm:$0xf0] }
 0x32c   : > { %v3203_v17 = vpop.f32.mrf.mxu0  ;;  %v3216_v33 = vpop.f32.mrf.mxu1 }
 0x32d   : > { %v3202_v34 = vadd.f32 %v3201_v16, %v3189_v32  ;;  %v6784_v16 = vld [vmem:[%s10011_s11 + $0x38] sm:$0xf0]  ;;  %v6066_v32 = vld [vmem:[%s10011_s11] sm:$0xf]  ;;  %v6779_v17 = vld [vmem:[%s10011_s11 + $0x10] sm:$0xf0] }
 0x32e   : > { %v6087_v30 = vor.u32 %v6784_v16, %v6086_v25  ;;  %v6216_v25 = vld [vmem:[%s10011_s11 + $0x134] sm:$0xf0]  ;;  %v6291_v16 = vor.u32 %v6832_v44, %v6288_v46  ;;  %v6793_v44 = vld [vmem:[%s10011_s11 + $0x84] sm:$0xf] }
 0x32f   : > { %v3215_v36 = vadd.f32 %v3214_v26, %v3202_v34  ;;  %v6326_v26 = vld [vmem:[%s10011_s11 + $0x208] sm:$0xf]  ;;  %v6151_v34 = vor.u32 %v6797_v28, %v6148_v29  ;;  %v6827_v28 = vld [vmem:[%s10011_s11 + $0x194] sm:$0xf]  ;;  %v6136_v46 = vld [vmem:[%s10011_s11 + $0x94] sm:$0xf0] }
 0x330   : > { %v3177_v37 = vpop.f32.mrf.mxu2  ;;  %v3190_v38 = vpop.f32.mrf.mxu3  ;;  %v6327_v33 = vor.u32 %v6844_v27, %v6326_v26  ;;  %4254 = vmatpush.bf16.msra.mxu2 %v6087_v30  ;;  %v6247_v26 = vor.u32 %v6824_v12, %v6246_v57  ;;  %v6071_v27 = vor.u32 %v6777_v18, %v6068_v19  ;;  %v6268_v29 = vld [vmem:[%s10011_s11 + $0x1a4] sm:$0xf0]  ;;  %v6780_v57 = vld [vmem:[%s10011_s11 + $0x18] sm:$0xf0]  ;;  %v6139_v18 = vor.u32 %v6793_v44, %v6136_v46  ;;  %v6376_v19 = vld [vmem:[%s10011_s11 + $0x274] sm:$0xf0] }
 0x331   : > { %v3221_v41 = vmax.f32 %v3215_v36, 0.0  ;;  %v6306_v36 = vld [vmem:[%s10011_s11 + $0x1e0] sm:$0xf]  ;;  %v6852_v37 = vld [vmem:[%s10011_s11 + $0x25c] sm:$0xf]  ;;  %4277 = vmatpush.bf16.msrb.mxu0 %v6151_v34 }
 0x332   : > { %v6368_v38 = vld [vmem:[%s10011_s11 + $0x26c] sm:$0xf0]  ;;  %4263 = vmatpush.bf16.msra.mxu3 %v6327_v33  ;;  %v6226_v33 = vld [vmem:[%s10011_s11 + $0x140] sm:$0xf]  ;;  %v6819_v34 = vld [vmem:[%s10011_s11 + $0x150] sm:$0xf0] }
 0x333   : > { %v3225_v45 = vpack.c.bf16 %v3221_v41, %v3221_v41  ;;  %v6162_v46 = vld [vmem:[%s10011_s11 + $0xb0] sm:$0xf] }
 0x335   : > { %3663 = vmatmul.bf16.vlgmr.msrb.gmra.mxu1 %v3225_v45 }
 0x345   : > { %3715 = vmatmul.bf16.vlgmr.msra.gmra.mxu1 %v3225_v45  ;;  %v6839_v45 = vld [vmem:[%s10011_s11 + $0x1f0] sm:$0xf0] }
 0x346   : > { %v6307_v40 = vor.u32 %v6839_v45, %v6306_v36  ;;  %v6134_v36 = vld [vmem:[%s10011_s11 + $0x80] sm:$0xf]  ;;  %v6855_v45 = vld [vmem:[%s10011_s11 + $0x270] sm:$0xf0] }
 0x348   : > { %v3625_v50 = vpop.f32.mrf.mxu2  ;;  %v3638_v31 = vpop.f32.mrf.mxu3  ;;  %4264 = vmatpush.bf16.msra.mxu3 %v6307_v40  ;;  %v6790_v40 = vld [vmem:[%s10011_s11 + $0x68] sm:$0xf0] }
 0x349   : > { %v3626_v35 = vadd.f32 %v3625_v50, %v3612_v48  ;;  %v6128_v48 = vld [vmem:[%s10011_s11 + $0x8c] sm:$0xf0]  ;;  %v6371_v50 = vor.u32 %v6852_v37, %v6368_v38  ;;  %v6795_v37 = vld [vmem:[%s10011_s11 + $0x90] sm:$0xf0]  ;;  %v6374_v38 = vld [vmem:[%s10011_s11 + $0x260] sm:$0xf] }
 0x34a   : > { %v6131_v49 = vor.u32 %v6792_v47, %v6128_v48  ;;  %v6808_v47 = vld [vmem:[%s10011_s11 + $0xfc] sm:$0xf]  ;;  %v6196_v48 = vld [vmem:[%s10011_s11 + $0x10c] sm:$0xf0] }
 0x34b   : > { %v9455_v51 = vadd.f32 %v3638_v31, %v3626_v35  ;;  %v6214_v31 = vld [vmem:[%s10011_s11 + $0x120] sm:$0xf]  ;;  %v6815_v35 = vld [vmem:[%s10011_s11 + $0x130] sm:$0xf0]  ;;  %4287 = vmatpush.bf16.msrb.mxu1 %v6371_v50  ;;  %v6271_v50 = vor.u32 %v6827_v28, %v6268_v29  ;;  %v6356_v28 = vld [vmem:[%s10011_s11 + $0x24c] sm:$0xf0] }
 0x34c   : > { %4278 = vmatpush.bf16.msrb.mxu0 %v6131_v49  ;;  %4265 = vmatpush.bf16.msra.mxu3 %v6287_v3  ;;  %v6354_v49 = vld [vmem:[%s10011_s11 + $0x238] sm:$0xf]  ;;  %v6785_v3 = vld [vmem:[%s10011_s11 + $0x40] sm:$0xf0] }
 0x350   : > { %v3627_v52 = vpop.f32.mrf.mxu2  ;;  %v3640_v53 = vpop.f32.mrf.mxu3  ;;  %4266 = vmatpush.bf16.msra.mxu3 %v6267_v13  ;;  %v6840_v13 = vld [vmem:[%s10011_s11 + $0x1f8] sm:$0xf0] }
 0x351   : > { %v6847_v52 = vld [vmem:[%s10011_s11 + $0x234] sm:$0xf]  ;;  %v6067_v53 = vor.u32 %v6779_v17, %v6066_v32  ;;  %v6155_v32 = vor.u32 %v6800_v23, %v6154_v22  ;;  %v6219_v17 = vor.u32 %v6813_v24, %v6216_v25  ;;  %v6294_v23 = vld [vmem:[%s10011_s11 + $0x1c0] sm:$0xf]  ;;  %v6788_v25 = vld [vmem:[%s10011_s11 + $0x5c] sm:$0xf] }
 0x352   : > { %v6351_v56 = vor.u32 %v6847_v52, %v6348_v39  ;;  %v6375_v52 = vor.u32 %v6855_v45, %v6374_v38  ;;  %v6199_v39 = vor.u32 %v6808_v47, %v6196_v48  ;;  %v6835_v24 = vld [vmem:[%s10011_s11 + $0x1d0] sm:$0xf0]  ;;  %v6336_v47 = vld [vmem:[%s10011_s11 + $0x224] sm:$0xf0] }
 0x353   : > { %4255 = vmatpush.bf16.msra.mxu2 %v6067_v53  ;;  %v6114_v53 = vld [vmem:[%s10011_s11 + $0x58] sm:$0xf]  ;;  %v6843_v38 = vld [vmem:[%s10011_s11 + $0x214] sm:$0xf] }
 0x354   : > { %4288 = vmatpush.bf16.msrb.mxu1 %v6351_v56  ;;  %4267 = vmatpush.bf16.msra.mxu3 %v6247_v26  ;;  %v6355_v56 = vor.u32 %v6850_v6, %v6354_v49  ;;  %v6116_v26 = vld [vmem:[%s10011_s11 + $0x6c] sm:$0xf0]  ;;  %v6339_v48 = vor.u32 %v6843_v38, %v6336_v47  ;;  %v6316_v49 = vld [vmem:[%s10011_s11 + $0x1fc] sm:$0xf0]  ;;  %v6102_v38 = vld [vmem:[%s10011_s11 + $0x38] sm:$0xf] }
 0x355   : > { %v6119_v29 = vor.u32 %v6788_v25, %v6116_v26  ;;  %v6796_v25 = vld [vmem:[%s10011_s11 + $0x98] sm:$0xf0]  ;;  %v6342_v47 = vld [vmem:[%s10011_s11 + $0x218] sm:$0xf] }
 0x368   : > { %v3677_v58 = vpop.f32.mrf.mxu2  ;;  %v3690_v59 = vpop.f32.mrf.mxu3 }
 0x369   : > { %v3678_v20 = vadd.f32 %v3677_v58, %v3613_v55  ;;  %v6787_v55 = vld [vmem:[%s10011_s11 + $0x54] sm:$0xf]  ;;  %v6215_v58 = vor.u32 %v6815_v35, %v6214_v31  ;;  %v6227_v31 = vor.u32 %v6819_v34, %v6226_v33  ;;  %v6135_v35 = vor.u32 %v6795_v37, %v6134_v36  ;;  %v6830_v33 = vld [vmem:[%s10011_s11 + $0x1a8] sm:$0xf0]  ;;  %v6096_v37 = vld [vmem:[%s10011_s11 + $0x44] sm:$0xf0] }
 0x36a   : > { %v6783_v36 = vld [vmem:[%s10011_s11 + $0x34] sm:$0xf] }
 0x36b   : > { %v9469_v61 = vadd.f32 %v3690_v59, %v3678_v20  ;;  %v6108_v59 = vld [vmem:[%s10011_s11 + $0x64] sm:$0xf0]  ;;  %v6842_v20 = vld [vmem:[%s10011_s11 + $0x20c] sm:$0xf]  ;;  %4300 = vmatpush.bf16.msrb.mxu2 %v6215_v58  ;;  %4268 = vmatpush.bf16.msra.mxu3 %v6227_v31  ;;  %v6803_v58 = vld [vmem:[%s10011_s11 + $0xd4] sm:$0xf]  ;;  %v6099_v45 = vor.u32 %v6783_v36, %v6096_v37 }
 0x36c   : > { %v6331_v2 = vor.u32 %v6842_v20, %v6328_v62  ;;  %v6111_v4 = vor.u32 %v6787_v55, %v6108_v59  ;;  %v6115_v55 = vor.u32 %v6790_v40, %v6114_v53  ;;  %v6176_v59 = vld [vmem:[%s10011_s11 + $0xe4] sm:$0xf0]  ;;  %v6822_v62 = vld [vmem:[%s10011_s11 + $0x16c] sm:$0xf]  ;;  %v6825_v31 = vld [vmem:[%s10011_s11 + $0x180] sm:$0xf0] }
 0x36d   : > { %v6179_v20 = vor.u32 %v6803_v58, %v6176_v59  ;;  %v6076_v53 = vld [vmem:[%s10011_s11 + $0x1c] sm:$0xf0]  ;;  %v6833_v58 = vld [vmem:[%s10011_s11 + $0x1c4] sm:$0xf]  ;;  %v6296_v59 = vld [vmem:[%s10011_s11 + $0x1d4] sm:$0xf0] }
 0x36e   : > { %4289 = vmatpush.bf16.msrb.mxu1 %v6331_v2  ;;  %4279 = vmatpush.bf16.msrb.mxu0 %v6111_v4  ;;  %v6334_v4 = vld [vmem:[%s10011_s11 + $0x210] sm:$0xf] }
 0x36f   : > { %4313 = vmatpush.bf16.msrb.mxu3 %v6375_v52  ;;  %v6335_v8 = vor.u32 %v6845_v5, %v6334_v4  ;;  %v6778_v52 = vld [vmem:[%s10011_s11 + $0xc] sm:$0xf] }
 0x370   : > { %v3679_v9 = vpop.f32.mrf.mxu2  ;;  %v3692_v0 = vpop.f32.mrf.mxu3  ;;  %v6079_v40 = vor.u32 %v6778_v52, %v6076_v53  ;;  %v6781_v52 = vld [vmem:[%s10011_s11 + $0x20] sm:$0xf0]  ;;  %v6322_v53 = vld [vmem:[%s10011_s11 + $0x1f0] sm:$0xf] }
 0x371   : > { %v6195_v0 = vor.u32 %v6810_v1, %v6194_v63  ;;  %v6248_v63 = vld [vmem:[%s10011_s11 + $0x17c] sm:$0xf0]  ;;  %v6094_v1 = vld [vmem:[%s10011_s11 + $0x30] sm:$0xf] }
 0x372   : > { %v9558_v41 = vpop.f32.mrf.mxu0  ;;  %4290 = vmatpush.bf16.msrb.mxu1 %v6311_v11  ;;  %4280 = vmatpush.bf16.msrb.mxu0 %v6091_v14  ;;  %v6251_v2 = vor.u32 %v6822_v62, %v6248_v63  ;;  %v6095_v7 = vor.u32 %v6785_v3, %v6094_v1  ;;  %v6314_v11 = vld [vmem:[%s10011_s11 + $0x1e8] sm:$0xf]  ;;  %v6075_v14 = vor.u32 %v6780_v57, %v6074_v43  ;;  %v6828_v62 = vld [vmem:[%s10011_s11 + $0x19c] sm:$0xf]  ;;  %v6276_v63 = vld [vmem:[%s10011_s11 + $0x1ac] sm:$0xf0] }
 0x373   : > { %4301 = vmatpush.bf16.msrb.mxu2 %v6195_v0  ;;  %4314 = vmatpush.bf16.msrb.mxu3 %v6355_v56  ;;  %v6156_v0 = vld [vmem:[%s10011_s11 + $0xbc] sm:$0xf0]  ;;  %v6315_v12 = vor.u32 %v6840_v13, %v6314_v11  ;;  %v6279_v1 = vor.u32 %v6828_v62, %v6276_v63  ;;  %v6256_v3 = vld [vmem:[%s10011_s11 + $0x184] sm:$0xf0]  ;;  %v3652_v4 = vadd.f32 %v9558_v41, %v9455_v51  ;;  %v6811_v57 = vld [vmem:[%s10011_s11 + $0x110] sm:$0xf0] }
 0x374   : > { %v6236_v51 = vld [vmem:[%s10011_s11 + $0x15c] sm:$0xf0]  ;;  %v6826_v62 = vld [vmem:[%s10011_s11 + $0x188] sm:$0xf0] }
 0x376   : > { %4291 = vmatpush.bf16.msrb.mxu1 %v6291_v16  ;;  %4281 = vmatpush.bf16.msrb.mxu0 %v6071_v27  ;;  %v6295_v16 = vor.u32 %v6835_v24, %v6294_v23  ;;  %v6848_v27 = vld [vmem:[%s10011_s11 + $0x23c] sm:$0xf]  ;;  %v6142_v24 = vld [vmem:[%s10011_s11 + $0x88] sm:$0xf] }
 0x377   : > { %4302 = vmatpush.bf16.msrb.mxu2 %v6175_v15  ;;  %4315 = vmatpush.bf16.msrb.mxu3 %v6335_v8  ;;  %v6853_v15 = vld [vmem:[%s10011_s11 + $0x264] sm:$0xf]  ;;  %v6222_v8 = vld [vmem:[%s10011_s11 + $0x128] sm:$0xf] }
 0x378   : > { %v6379_v22 = vor.u32 %v6853_v15, %v6376_v19  ;;  %v6801_v15 = vld [vmem:[%s10011_s11 + $0xc0] sm:$0xf0] }
 0x37a   : > { %v3653_v9 = vpop.f32.mrf.mxu0  ;;  %4326 = vmatpush.bf16.msra.mxu0 %v6219_v17  ;;  %4292 = vmatpush.bf16.msrb.mxu1 %v6271_v50  ;;  %v6274_v17 = vld [vmem:[%s10011_s11 + $0x198] sm:$0xf]  ;;  %v6254_v50 = vld [vmem:[%s10011_s11 + $0x170] sm:$0xf] }
 0x37b   : > { %4303 = vmatpush.bf16.msrb.mxu2 %v6155_v32  ;;  %v6798_v9 = vld [vmem:[%s10011_s11 + $0xac] sm:$0xf]  ;;  %4316 = vmatpush.bf16.msrb.mxu3 %v6315_v12  ;;  %v6359_v32 = vor.u32 %v6848_v27, %v6356_v28  ;;  %v6275_v34 = vor.u32 %v6830_v33, %v6274_v17  ;;  %v6143_v27 = vor.u32 %v6796_v25, %v6142_v24  ;;  %v6362_v17 = vld [vmem:[%s10011_s11 + $0x240] sm:$0xf]  ;;  %v6851_v33 = vld [vmem:[%s10011_s11 + $0x250] sm:$0xf0] }
 0x37c   : > { %v6159_v10 = vor.u32 %v6798_v9, %v6156_v0  ;;  %v6816_v0 = vld [vmem:[%s10011_s11 + $0x138] sm:$0xf0]  ;;  %v6806_v12 = vld [vmem:[%s10011_s11 + $0xe8] sm:$0xf0]  ;;  %v6363_v37 = vor.u32 %v6851_v33, %v6362_v17 }
 0x37d   : > { %v6223_v21 = vor.u32 %v6816_v0, %v6222_v8 }
 0x37e   : > { %4327 = vmatpush.bf16.msra.mxu0 %v6199_v39  ;;  %4293 = vmatpush.bf16.msrb.mxu1 %v6251_v2  ;;  %v6838_v39 = vld [vmem:[%s10011_s11 + $0x1ec] sm:$0xf]  ;;  %v6823_v2 = vld [vmem:[%s10011_s11 + $0x174] sm:$0xf] }
 0x37f   : > { %4304 = vmatpush.bf16.msrb.mxu2 %v6135_v35  ;;  %4317 = vmatpush.bf16.msrb.mxu3 %v6295_v16  ;;  %v6255_v35 = vor.u32 %v6825_v31, %v6254_v50  ;;  %v6319_v6 = vor.u32 %v6838_v39, %v6316_v49  ;;  %v6259_v5 = vor.u32 %v6823_v2, %v6256_v3  ;;  %v6382_v16 = vld [vmem:[%s10011_s11 + $0x268] sm:$0xf]  ;;  %v6841_v39 = vld [vmem:[%s10011_s11 + $0x200] sm:$0xf0] }
 0x380   : > { %v6323_v49 = vor.u32 %v6841_v39, %v6322_v53  ;;  %v6821_v2 = vld [vmem:[%s10011_s11 + $0x160] sm:$0xf0] }
 0x382   : > { %v9665_v30 = vpop.f32.mrf.mxu0  ;;  %4328 = vmatpush.bf16.msra.mxu0 %v6179_v20  ;;  %4294 = vmatpush.bf16.msrb.mxu1 %v6231_v60  ;;  %v6299_v20 = vor.u32 %v6833_v58, %v6296_v59  ;;  %v6202_v60 = vld [vmem:[%s10011_s11 + $0x100] sm:$0xf]  ;;  %v6831_v58 = vld [vmem:[%s10011_s11 + $0x1b0] sm:$0xf0] }
 0x383   : > { %4305 = vmatpush.bf16.msrb.mxu2 %v6115_v55  ;;  %4318 = vmatpush.bf16.msrb.mxu3 %v6275_v34  ;;  %v6820_v55 = vld [vmem:[%s10011_s11 + $0x158] sm:$0xf0]  ;;  %v6203_v13 = vor.u32 %v6811_v57, %v6202_v60 }
 0x386   : > { %4329 = vmatpush.bf16.msra.mxu0 %v6159_v10  ;;  %4339 = vmatpush.bf16.msra.mxu1 %v6379_v22  ;;  %v6818_v10 = vld [vmem:[%s10011_s11 + $0x14c] sm:$0xf]  ;;  %v6163_v22 = vor.u32 %v6801_v15, %v6162_v46 }
 0x387   : > { %4306 = vmatpush.bf16.msrb.mxu2 %v6095_v7  ;;  %4319 = vmatpush.bf16.msrb.mxu3 %v6255_v35  ;;  %v6239_v42 = vor.u32 %v6818_v10, %v6236_v51  ;;  %v6082_v35 = vld [vmem:[%s10011_s11 + $0x10] sm:$0xf] }
 0x38a   : > { %v3705_v54 = vpop.f32.mrf.mxu0  ;;  %4330 = vmatpush.bf16.msra.mxu0 %v6139_v18  ;;  %4340 = vmatpush.bf16.msra.mxu1 %v6359_v32  ;;  %v3704_v18 = vadd.f32 %v9665_v30, %v9469_v61  ;;  %v6856_v61 = vld [vmem:[%s10011_s11 + $0x278] sm:$0xf0]  ;;  %v6791_v32 = vld [vmem:[%s10011_s11 + $0x70] sm:$0xf0] }
 0x38b   : > { %4307 = vmatpush.bf16.msrb.mxu2 %v6075_v14  ;;  %v6234_v54 = vld [vmem:[%s10011_s11 + $0x148] sm:$0xf]  ;;  %v6182_v14 = vld [vmem:[%s10011_s11 + $0xd8] sm:$0xf]  ;;  %v6383_v28 = vor.u32 %v6856_v61, %v6382_v16 }
 0x38c   : > { %v6235_v56 = vor.u32 %v6820_v55, %v6234_v54  ;;  %v6183_v44 = vor.u32 %v6806_v12, %v6182_v14  ;;  %v6836_v54 = vld [vmem:[%s10011_s11 + $0x1d8] sm:$0xf0]  ;;  %v3820_v14 = vld [vmem:[%s10012_s12] sm:$0x1f] }
 0x38d   : > { %v4238_v12 = vperm.slane %v3820_v14, 0  ;;  %v4239_v46 = vperm.slane %v3820_v14, 1 }
 0x38e   : > { %4331 = vmatpush.bf16.msra.mxu0 %v6119_v29  ;;  %4341 = vmatpush.bf16.msra.mxu1 %v6339_v48  ;;  %v6122_v29 = vld [vmem:[%s10011_s11 + $0x60] sm:$0xf]  ;;  %v6846_v48 = vld [vmem:[%s10011_s11 + $0x228] sm:$0xf0] }
 0x38f   : > { %4320 = vmatpush.bf16.msrb.mxu3 %v6235_v56  ;;  %v6123_v36 = vor.u32 %v6791_v32, %v6122_v29  ;;  %v6343_v31 = vor.u32 %v6846_v48, %v6342_v47  ;;  %v6282_v56 = vld [vmem:[%s10011_s11 + $0x1a0] sm:$0xf] }
 0x390   : > { %v6283_v59 = vor.u32 %v6831_v58, %v6282_v56 }
 0x392   : > { %4332 = vmatpush.bf16.msra.mxu0 %v6099_v45  ;;  %4342 = vmatpush.bf16.msra.mxu1 %v6319_v6  ;;  %v6786_v45 = vld [vmem:[%s10011_s11 + $0x48] sm:$0xf0]  ;;  %v6302_v6 = vld [vmem:[%s10011_s11 + $0x1c8] sm:$0xf] }
 0x393   : > { %v6103_v50 = vor.u32 %v6786_v45, %v6102_v38  ;;  %v6303_v55 = vor.u32 %v6836_v54, %v6302_v6 }
 0x396   : > { %4333 = vmatpush.bf16.msra.mxu0 %v6079_v40  ;;  %4343 = vmatpush.bf16.msra.mxu1 %v6299_v20  ;;  %v6083_v40 = vor.u32 %v6781_v52, %v6082_v35  ;;  %v6262_v20 = vld [vmem:[%s10011_s11 + $0x178] sm:$0xf]  ;;  %v4425_v52 = vld [vmem:[%s466_s25] sm:$0x1f] }
 0x397   : > { %v6263_v63 = vor.u32 %v6826_v62, %v6262_v20 }
 0x39a   : > { %4344 = vmatpush.bf16.msra.mxu1 %v6279_v1  ;;  %v6242_v1 = vld [vmem:[%s10011_s11 + $0x150] sm:$0xf] }
 0x39b   : > { %v6243_v3 = vor.u32 %v6821_v2, %v6242_v1 }
 0x39e   : > { %4345 = vmatpush.bf16.msra.mxu1 %v6259_v5 }
 0x3a2   : > { %4346 = vmatpush.bf16.msra.mxu1 %v6239_v42 }
 0x3b2   : > { %v3664_v7 = vpop.f32.mrf.mxu1 }
 0x3b3   : > { %v3665_v9 = vadd.f32 %v3664_v7, %v3652_v4 }
 0x3b5   : > { %v3720_v41 = vmax.f32 %v3665_v9, 0.0 }
 0x3b7   : > { %v9855_v43 = vpack.c.bf16 %v3720_v41, %v3720_v41 }
 0x3b9   : > { %4256 = vmatmul.bf16.vlgmr.msra.gmra.mxu2 %v9855_v43  ;;  %4282 = vmatmul.bf16.vlgmr.msrb.gmra.mxu0 %v9855_v43 }
 0x3ba   : > { %v3666_v11 = vpop.f32.mrf.mxu1  ;;  %4352 = vmatpush.bf16.msra.mxu2 %v6223_v21 }
 0x3be   : > { %4353 = vmatpush.bf16.msra.mxu2 %v6203_v13 }
 0x3c2   : > { %v3716_v19 = vpop.f32.mrf.mxu1  ;;  %4354 = vmatpush.bf16.msra.mxu2 %v6183_v44  ;;  %v4240_v44 = vperm.slane %v3820_v14, 2 }
 0x3c3   : > { %v3717_v23 = vadd.f32 %v3716_v19, %v3704_v18  ;;  %v4241_v19 = vperm.slane %v3820_v14, 3 }
 0x3c5   : > { %v3721_v30 = vmax.f32 %v3717_v23, 0.0 }
 0x3c6   : > { %4355 = vmatpush.bf16.msra.mxu2 %v6163_v22 }
 0x3c7   : > { %v3723_v26 = vpack.c.bf16 %v3721_v30, %v3721_v30  ;;  %v4242_v30 = vperm.slane %v3820_v14, 4 }
 0x3c9   : > { %4269 = vmatmul.bf16.vlgmr.msra.gmra.mxu3 %v3723_v26  ;;  %4295 = vmatmul.bf16.vlgmr.msrb.gmra.mxu1 %v3723_v26 }
 0x3ca   : > { %4308 = vmatmul.bf16.vlgmr.msrb.gmra.mxu2 %v9855_v43  ;;  %4334 = vmatmul.bf16.vlgmr.msra.gmra.mxu0 %v9855_v43  ;;  %v3718_v34 = vpop.f32.mrf.mxu1 }
 0x3cb   : > { %4356 = vmatpush.bf16.msra.mxu2 %v6143_v27  ;;  %4365 = vmatpush.bf16.msra.mxu3 %v6383_v28 }
 0x3cf   : > { %4357 = vmatpush.bf16.msra.mxu2 %v6123_v36  ;;  %4366 = vmatpush.bf16.msra.mxu3 %v6363_v37 }
 0x3d3   : > { %4358 = vmatpush.bf16.msra.mxu2 %v6103_v50  ;;  %4367 = vmatpush.bf16.msra.mxu3 %v6343_v31 }
 0x3d7   : > { %4359 = vmatpush.bf16.msra.mxu2 %v6083_v40  ;;  %4368 = vmatpush.bf16.msra.mxu3 %v6323_v49 }
 0x3d9   : > { %4321 = vmatmul.bf16.vlgmr.msrb.gmra.mxu3 %v3723_v26  ;;  %4347 = vmatmul.bf16.vlgmr.msra.gmra.mxu1 %v3723_v26 }
 0x3da   : > { %4360 = vmatmul.bf16.vlgmr.msra.gmra.mxu2 %v9855_v43 }
 0x3db   : > { %4369 = vmatpush.bf16.msra.mxu3 %v6303_v55 }
 0x3df   : > { %4370 = vmatpush.bf16.msra.mxu3 %v6283_v59 }
 0x3e3   : > { %4371 = vmatpush.bf16.msra.mxu3 %v6263_v63 }
 0x3e7   : > { %4372 = vmatpush.bf16.msra.mxu3 %v6243_v3 }
 0x3ea   : > { %4373 = vmatmul.bf16.vlgmr.msra.gmra.mxu3 %v3723_v26 }
 0x436   : > { %v4283_v4 = vpop.f32.mrf.mxu0 }
 0x437   : > { %v4284_v16 = vadd.f32 %v4283_v4, %v4239_v46 }
 0x43c   : > { %v4257_v5 = vpop.f32.mrf.mxu2 }
 0x43d   : > { %v4258_v24 = vadd.f32 %v4257_v5, %v4238_v12 }
 0x43e   : > { %v4285_v7 = vpop.f32.mrf.mxu0 }
 0x444   : > { %v4259_v8 = vpop.f32.mrf.mxu2 }
 0x446   : > { %v4296_v9 = vpop.f32.mrf.mxu1 }
 0x447   : > { %v4335_v0 = vpop.f32.mrf.mxu0  ;;  %v4297_v28 = vadd.f32 %v4296_v9, %v4284_v16 }
 0x448   : > { %v4336_v26 = vadd.f32 %v4335_v0, %v4241_v19 }
 0x44c   : > { %v4270_v10 = vpop.f32.mrf.mxu3 }
 0x44d   : > { %v4309_v51 = vpop.f32.mrf.mxu2  ;;  %v4271_v61 = vadd.f32 %v4270_v10, %v4258_v24 }
 0x44e   : > { %v4298_v41 = vpop.f32.mrf.mxu1  ;;  %v4310_v25 = vadd.f32 %v4309_v51, %v4240_v44 }
 0x44f   : > { %v4337_v21 = vpop.f32.mrf.mxu0  ;;  %v4378_v32 = vpack.c.bf16 %v4297_v28, %v4271_v61 }
 0x451   : > { %v4384_v45 = vrot.slane %v4378_v32, 3 }
 0x453   : > { %v4392_v53 = vsel %vm1176_vm4, %v4378_v32, %v4384_v45 }
 0x454   : > { %v4272_v42 = vpop.f32.mrf.mxu3 }
 0x455   : > { %v4311_v43 = vpop.f32.mrf.mxu2 }
 0x456   : > { %v4348_v60 = vpop.f32.mrf.mxu1 }
 0x457   : > { %v4349_v29 = vadd.f32 %v4348_v60, %v4336_v26 }
 0x45c   : > { %v4322_v57 = vpop.f32.mrf.mxu3 }
 0x45d   : > { %v4361_v11 = vpop.f32.mrf.mxu2  ;;  %v4323_v27 = vadd.f32 %v4322_v57, %v4310_v25 }
 0x45e   : > { %v4350_v13 = vpop.f32.mrf.mxu1  ;;  %v4362_v17 = vadd.f32 %v4361_v11, %v4242_v30 }
 0x45f   : > { %v4379_v34 = vpack.c.bf16 %v4349_v29, %v4323_v27 }
 0x461   : > { %v4385_v48 = vrot.slane %v4379_v34, 6  ;;  %v4386_v50 = vrot.slane %v4379_v34, 1 }
 0x463   : > { %v4395_v40 = vsel %vm1180_vm6, %v4392_v53, %v4385_v48 }
 0x464   : > { %v4324_v15 = vpop.f32.mrf.mxu3 }
 0x465   : > { %v4363_v22 = vpop.f32.mrf.mxu2 }
 0x46d   : > { %v4374_v36 = vpop.f32.mrf.mxu3 }
 0x46e   : > { %v4375_v38 = vadd.f32 %v4374_v36, %v4362_v17 }
 0x470   : > { %v4380_v47 = vpack.c.bf16 %v4375_v38, %v4375_v38 }
 0x472   : > { %v4387_v31 = vrot.slane %v4380_v47, 4  ;;  %v4388_v35 = vrot.slane %v4380_v47, 7 }
 0x474   : > { %v4399_v39 = vsel %vm4396_vm2, %v4386_v50, %v4387_v31 }
 0x475   : > { %v4402_v49 = vsel %vm4400_vm12, %v4399_v39, %v4388_v35  ;;  %v4376_v6 = vpop.f32.mrf.mxu3 }
 0x476   : > { %v4404_v54 = vsel %vm4403_vm13, %v4395_v40, %v4402_v49 }
 0x477   : > { %v4426_v55 = vsel %vm4424_vm14, %v4404_v54, %v4425_v52 }
 0x478   : > { %4427 = vst [vmem:[%s466_s25] sm:$0x1f] %v4426_v55 }
 0x479 PF: > { %s23_s27 = sadd.s32 1, %s6908_s27   ;;  %s10022_s25 = smov %s6904_s26 }
 0x47a   : > { %p20_p5 = scmp.ge.s32.totalorder %s23_s27, 4   ;;  %s10023_s26 = smov %s10025_s28 }
 0x47c   :  { %22 = sbr.rel (!%p20_p5) target bundleno = 2 (0x2), region = 114 }

// kernel: pointnet_seg_forward.5
= control target key start
LH: loop header
LB: loop body
LE: loop exit
PB: predicated region body
PF: predicated region fallthrough
CT: control target
= control target key end

     0   :  { %s2103_s30 = smov 0   ;;  %s2105_s10 = smov 0   ;;  %s2731_s0 = inlined_call_operand.vmem [shape: bf16[2,16,64], index: 0, kind: input, shape index: {}]   ;;  %s2732_s1 = inlined_call_operand.vmem [shape: f32[2,1,512], index: 1, kind: input, shape index: {}]   ;;  %s2733_s2 = inlined_call_operand.vmem [shape: bf16[64,512], index: 2, kind: input, shape index: {}]   ;;  %s2734_s3 = inlined_call_operand.vmem [shape: bf16[512,256], index: 3, kind: input, shape index: {}]   ;;  %s2735_s4 = inlined_call_operand.vmem [shape: f32[1,256], index: 4, kind: input, shape index: {}]   ;;  %s2736_s5 = inlined_call_operand.vmem [shape: bf16[256,128], index: 5, kind: input, shape index: {}]   ;;  %s2737_s6 = inlined_call_operand.vmem [shape: f32[1,128], index: 6, kind: input, shape index: {}]   ;;  %s2738_s7 = inlined_call_operand.vmem [shape: bf16[128,13], index: 7, kind: input, shape index: {}]   ;;  %s2739_s8 = inlined_call_operand.vmem [shape: f32[1,13], index: 8, kind: input, shape index: {}]   ;;  %s2740_s9 = inlined_call_operand.vmem [shape: f32[2,16,13], index: 9, kind: output, shape index: {}]  }
   0x1   :  { %s2107_s11 = smov 0  }
   0x2 LB: > { %s31_s12 = sadd.s32 1, %s2047_s10  ;;  %p1456_p0 = scmp.ge.s32.totalorder %s2051_s11, 1  ;;  %s2051_s11 = sphi %s2107_s11, %s19_s11   ;;  %s2047_s10 = sphi %s2105_s10, %s2742_s10   ;;  %s2043_s30 = sphi %s2103_s30, %s2741_s30  }
   0x3   : > { %p33_p1 = scmp.ge.s32.totalorder %s31_s12, 2  ;;  %p317_p2 = scmp.lt.s32.totalorder %s2051_s11, 3 }
   0x5   : > { %s2744_s12 = smov (%p33_p1, %s31_s12), 0  ;;  %p318_p3 = pnand %p1456_p0, %p317_p2 }
   0x6   : > { %p366_p4 = scmp.lt.s32.totalorder (!%p318_p3), %s2043_s30, 1 }
   0x7   : > { %321 = sbr.rel (%p318_p3) target bundleno = 891 (0x37b), region = 56 }
   0xc   : > { %v1516_v0 = vld [vmem:[%s2733_s2 + $0x60] sm:$0xf]  ;;  %v1905_v1 = vld [vmem:[%s2733_s2 + $0x6c] sm:$0xf0]  ;;  %v1903_v2 = vld [vmem:[%s2733_s2 + $0x64] sm:$0xf] }
   0xd   : > { %v1517_v3 = vor.u32 %v1905_v1, %v1516_v0  ;;  %v1518_v4 = vld [vmem:[%s2733_s2 + $0x70] sm:$0xf0]  ;;  %v1524_v5 = vld [vmem:[%s2733_s2 + $0x68] sm:$0xf]  ;;  %v1906_v6 = vld [vmem:[%s2733_s2 + $0x74] sm:$0xf0] }
   0xe   : > { %v1521_v7 = vor.u32 %v1903_v2, %v1518_v4  ;;  %v1525_v8 = vor.u32 %v1906_v6, %v1524_v5  ;;  %v1500_v9 = vld [vmem:[%s2733_s2 + $0x40] sm:$0xf]  ;;  %v1901_v10 = vld [vmem:[%s2733_s2 + $0x4c] sm:$0xf0]  ;;  %v1899_v11 = vld [vmem:[%s2733_s2 + $0x44] sm:$0xf] }
   0xf   : > { %511 = vmatpush.bf16.msra.mxu3 %v1517_v3  ;;  %v1501_v12 = vor.u32 %v1901_v10, %v1500_v9  ;;  %v1502_v13 = vld [vmem:[%s2733_s2 + $0x50] sm:$0xf0]  ;;  %v1508_v14 = vld [vmem:[%s2733_s2 + $0x48] sm:$0xf]  ;;  %v1902_v15 = vld [vmem:[%s2733_s2 + $0x54] sm:$0xf0] }
  0x10   : > { %525 = vmatpush.bf16.msra.mxu1 %v1521_v7  ;;  %539 = vmatpush.bf16.msra.mxu2 %v1525_v8  ;;  %v1505_v16 = vor.u32 %v1899_v11, %v1502_v13  ;;  %v1509_v17 = vor.u32 %v1902_v15, %v1508_v14  ;;  %v1484_v18 = vld [vmem:[%s2733_s2 + $0x20] sm:$0xf]  ;;  %v1897_v19 = vld [vmem:[%s2733_s2 + $0x2c] sm:$0xf0]  ;;  %v1895_v20 = vld [vmem:[%s2733_s2 + $0x24] sm:$0xf] }
  0x11   : > { %v1486_v21 = vld [vmem:[%s2733_s2 + $0x30] sm:$0xf0]  ;;  %v1492_v22 = vld [vmem:[%s2733_s2 + $0x28] sm:$0xf]  ;;  %v1898_v23 = vld [vmem:[%s2733_s2 + $0x34] sm:$0xf0]  ;;  %v1485_v24 = vor.u32 %v1897_v19, %v1484_v18 }
  0x12   : > { %v1468_v25 = vld [vmem:[%s2733_s2] sm:$0xf]  ;;  %v1489_v26 = vor.u32 %v1895_v20, %v1486_v21  ;;  %v1493_v27 = vor.u32 %v1898_v23, %v1492_v22  ;;  %v1893_v28 = vld [vmem:[%s2733_s2 + $0xc] sm:$0xf0]  ;;  %v1891_v29 = vld [vmem:[%s2733_s2 + $0x4] sm:$0xf] }
  0x13   : > { %512 = vmatpush.bf16.msra.mxu3 %v1501_v12  ;;  %v1470_v30 = vld [vmem:[%s2733_s2 + $0x10] sm:$0xf0]  ;;  %v1476_v31 = vld [vmem:[%s2733_s2 + $0x8] sm:$0xf]  ;;  %v1894_v32 = vld [vmem:[%s2733_s2 + $0x14] sm:$0xf0]  ;;  %v1469_v35 = vor.u32 %v1893_v28, %v1468_v25 }
  0x14   : > { %526 = vmatpush.bf16.msra.mxu1 %v1505_v16  ;;  %540 = vmatpush.bf16.msra.mxu2 %v1509_v17  ;;  %s2746_s30 = smov (!%p366_p4, %s2043_s30), 1  ;;  %v1904_v33 = vld [vmem:[%s2733_s2 + $0x6c] sm:$0xf]  ;;  %v1526_v34 = vld [vmem:[%s2733_s2 + $0x78] sm:$0xf0]  ;;  %v1473_v38 = vor.u32 %v1891_v29, %v1470_v30  ;;  %v1477_v39 = vor.u32 %v1894_v32, %v1476_v31  ;;  %vm503_vm0 = vcmask 523264  }
  0x15   : > { %v1656_v36 = vld [vmem:[%s2734_s3 + $0xf0] sm:$0xf]  ;;  %v1938_v37 = vld [vmem:[%s2734_s3 + $0xf4] sm:$0xf0]  ;;  %s1888_s18 = sshll.u32 %s2746_s30, 3  ;;  %v1529_v43 = vor.u32 %v1904_v33, %v1526_v34  ;;  %s1459_s26 = sshll.u32 %s2746_s30, 2 }
  0x16   : > { %v1900_v40 = vld [vmem:[%s2733_s2 + $0x4c] sm:$0xf]  ;;  %v1510_v41 = vld [vmem:[%s2733_s2 + $0x58] sm:$0xf0]  ;;  %v1648_v42 = vld [vmem:[%s2734_s3 + $0xe0] sm:$0xf]  ;;  %s373_s27 = scalar_lea.vmem %s2731_s0, %s1888_s18  ;;  %v1657_v44 = vor.u32 %v1938_v37, %v1656_v36  ;;  %s378_s29 = scalar_lea.vmem %s2732_s1, %s1459_s26 }
  0x17   : > { %513 = vmatpush.bf16.msra.mxu3 %v1485_v24  ;;  %v1592_v45 = vld [vmem:[%s2734_s3 + $0x70] sm:$0xf]  ;;  %v1922_v46 = vld [vmem:[%s2734_s3 + $0x74] sm:$0xf0]  ;;  %v2233_v48 = vld [vmem:[%s373_s27] sm:$0xff]  ;;  %v1513_v55 = vor.u32 %v1900_v40, %v1510_v41  ;;  %vm1328_vm1 = vcmask 105472  }
  0x18   : > { %527 = vmatpush.bf16.msra.mxu1 %v1489_v26  ;;  %541 = vmatpush.bf16.msra.mxu2 %v1493_v27  ;;  %v1720_v47 = vld [vmem:[%s2734_s3 + $0x170] sm:$0xf]  ;;  %v1936_v49 = vld [vmem:[%s2734_s3 + $0xe4] sm:$0xf0]  ;;  %v1593_v50 = vor.u32 %v1922_v46, %v1592_v45  ;;  %v1954_v51 = vld [vmem:[%s2734_s3 + $0x174] sm:$0xf0] }
  0x19   : > { %v1584_v52 = vld [vmem:[%s2734_s3 + $0x60] sm:$0xf]  ;;  %v1920_v53 = vld [vmem:[%s2734_s3 + $0x64] sm:$0xf0]  ;;  %v1721_v54 = vor.u32 %v1954_v51, %v1720_v47  ;;  %v1896_v56 = vld [vmem:[%s2733_s2 + $0x2c] sm:$0xf]  ;;  %v1649_v57 = vor.u32 %v1936_v49, %v1648_v42 }
  0x1a   : > { %v1712_v58 = vld [vmem:[%s2734_s3 + $0x160] sm:$0xf]  ;;  %v1952_v59 = vld [vmem:[%s2734_s3 + $0x164] sm:$0xf0]  ;;  %v1494_v60 = vld [vmem:[%s2733_s2 + $0x38] sm:$0xf0]  ;;  %965 = vmatpush.bf16.msra.mxu0 %v1593_v50  ;;  %v1585_v63 = vor.u32 %v1920_v53, %v1584_v52 }
  0x1b   : > { %514 = vmatpush.bf16.msra.mxu3 %v1469_v35  ;;  %v1640_v61 = vld [vmem:[%s2734_s3 + $0xd0] sm:$0xf]  ;;  %v1934_v62 = vld [vmem:[%s2734_s3 + $0xd4] sm:$0xf0]  ;;  %v1892_v2 = vld [vmem:[%s2733_s2 + $0xc] sm:$0xf]  ;;  %v1713_v3 = vor.u32 %v1952_v59, %v1712_v58  ;;  %v1497_v4 = vor.u32 %v1896_v56, %v1494_v60 }
  0x1c   : > { %528 = vmatpush.bf16.msra.mxu1 %v1473_v38  ;;  %542 = vmatpush.bf16.msra.mxu2 %v1477_v39  ;;  %v1576_v0 = vld [vmem:[%s2734_s3 + $0x50] sm:$0xf]  ;;  %v1918_v1 = vld [vmem:[%s2734_s3 + $0x54] sm:$0xf0]  ;;  %v1478_v5 = vld [vmem:[%s2733_s2 + $0x18] sm:$0xf0]  ;;  %v1641_v6 = vor.u32 %v1934_v62, %v1640_v61 }
  0x1d   : > { %v1704_v7 = vld [vmem:[%s2734_s3 + $0x150] sm:$0xf]  ;;  %v1950_v8 = vld [vmem:[%s2734_s3 + $0x154] sm:$0xf0]  ;;  %v1632_v9 = vld [vmem:[%s2734_s3 + $0xc0] sm:$0xf]  ;;  %v1577_v11 = vor.u32 %v1918_v1, %v1576_v0  ;;  %v1481_v17 = vor.u32 %v1892_v2, %v1478_v5 }
  0x1e   : > { %1530 = vmatmul.msk.bf16.vlgmr.msra.gmra.mxu3 %vm503_vm0, %v2233_v48  ;;  %966 = vmatpush.bf16.msra.mxu0 %v1585_v63  ;;  %v1932_v10 = vld [vmem:[%s2734_s3 + $0xc4] sm:$0xf0]  ;;  %v1568_v12 = vld [vmem:[%s2734_s3 + $0x40] sm:$0xf]  ;;  %v1784_v14 = vld [vmem:[%s2734_s3 + $0x1f0] sm:$0xf]  ;;  %v1705_v16 = vor.u32 %v1950_v8, %v1704_v7 }
  0x1f   : > { %553 = vmatpush.bf16.msrb.mxu3 %v1529_v43  ;;  %1531 = vmatmul.msk.bf16.vlgmr.msra.gmra.mxu1 %vm503_vm0, %v2233_v48  ;;  %v1916_v13 = vld [vmem:[%s2734_s3 + $0x44] sm:$0xf0]  ;;  %v1970_v15 = vld [vmem:[%s2734_s3 + $0x1f4] sm:$0xf0]  ;;  %v1633_v18 = vor.u32 %v1932_v10, %v1632_v9  ;;  %v1696_v19 = vld [vmem:[%s2734_s3 + $0x140] sm:$0xf] }
  0x20   : > { %979 = vmatpush.bf16.msrb.mxu1 %v1657_v44  ;;  %1532 = vmatmul.msk.bf16.vlgmr.msra.gmra.mxu2 %vm503_vm0, %v2233_v48  ;;  %v1948_v20 = vld [vmem:[%s2734_s3 + $0x144] sm:$0xf0]  ;;  %v1624_v21 = vld [vmem:[%s2734_s3 + $0xb0] sm:$0xf]  ;;  %v1930_v22 = vld [vmem:[%s2734_s3 + $0xb4] sm:$0xf0]  ;;  %v1569_v23 = vor.u32 %v1916_v13, %v1568_v12  ;;  %v1785_v25 = vor.u32 %v1970_v15, %v1784_v14 }
  0x21   : > { %993 = vmatpush.bf16.msrb.mxu2 %v1721_v54  ;;  %v1560_v24 = vld [vmem:[%s2734_s3 + $0x30] sm:$0xf]  ;;  %v1914_v26 = vld [vmem:[%s2734_s3 + $0x34] sm:$0xf0]  ;;  %v1697_v27 = vor.u32 %v1948_v20, %v1696_v19  ;;  %v1776_v28 = vld [vmem:[%s2734_s3 + $0x1e0] sm:$0xf]  ;;  %v1625_v30 = vor.u32 %v1930_v22, %v1624_v21 }
  0x22   : > { %967 = vmatpush.bf16.msra.mxu0 %v1577_v11  ;;  %v1968_v29 = vld [vmem:[%s2734_s3 + $0x1e4] sm:$0xf0]  ;;  %v1688_v31 = vld [vmem:[%s2734_s3 + $0x130] sm:$0xf]  ;;  %v1946_v32 = vld [vmem:[%s2734_s3 + $0x134] sm:$0xf0]  ;;  %v1561_v35 = vor.u32 %v1914_v26, %v1560_v24 }
  0x23   : > { %554 = vmatpush.bf16.msrb.mxu3 %v1513_v55  ;;  %v1616_v33 = vld [vmem:[%s2734_s3 + $0xa0] sm:$0xf]  ;;  %v1928_v34 = vld [vmem:[%s2734_s3 + $0xa4] sm:$0xf0]  ;;  %v1777_v38 = vor.u32 %v1968_v29, %v1776_v28  ;;  %v1689_v39 = vor.u32 %v1946_v32, %v1688_v31  ;;  %v1608_v43 = vld [vmem:[%s2734_s3 + $0x90] sm:$0xf] }
  0x24   : > { %980 = vmatpush.bf16.msrb.mxu1 %v1649_v57  ;;  %v1552_v36 = vld [vmem:[%s2734_s3 + $0x20] sm:$0xf]  ;;  %v1912_v37 = vld [vmem:[%s2734_s3 + $0x24] sm:$0xf0]  ;;  %v1617_v40 = vor.u32 %v1928_v34, %v1616_v33  ;;  %v1926_v44 = vld [vmem:[%s2734_s3 + $0x94] sm:$0xf0] }
  0x25   : > { %994 = vmatpush.bf16.msrb.mxu2 %v1713_v3  ;;  %v1680_v41 = vld [vmem:[%s2734_s3 + $0x120] sm:$0xf]  ;;  %v1944_v42 = vld [vmem:[%s2734_s3 + $0x124] sm:$0xf0]  ;;  %v1553_v45 = vor.u32 %v1912_v37, %v1552_v36  ;;  %v1609_v47 = vor.u32 %v1926_v44, %v1608_v43  ;;  %v1937_v51 = vld [vmem:[%s2734_s3 + $0xf4] sm:$0xf] }
  0x26   : > { %968 = vmatpush.bf16.msra.mxu0 %v1569_v23  ;;  %v1681_v46 = vor.u32 %v1944_v42, %v1680_v41  ;;  %v1924_v49 = vld [vmem:[%s2734_s3 + $0x84] sm:$0xf0]  ;;  %v1658_v52 = vld [vmem:[%s2734_s3 + $0xf8] sm:$0xf0]  ;;  %v1544_v54 = vld [vmem:[%s2734_s3 + $0x10] sm:$0xf] }
  0x27   : > { %555 = vmatpush.bf16.msrb.mxu3 %v1497_v4  ;;  %v1661_v53 = vor.u32 %v1937_v51, %v1658_v52  ;;  %v1910_v55 = vld [vmem:[%s2734_s3 + $0x14] sm:$0xf0]  ;;  %v1672_v56 = vld [vmem:[%s2734_s3 + $0x110] sm:$0xf]  ;;  %v1935_v63 = vld [vmem:[%s2734_s3 + $0xe4] sm:$0xf] }
  0x28   : > { %981 = vmatpush.bf16.msrb.mxu1 %v1641_v6  ;;  %v1545_v57 = vor.u32 %v1910_v55, %v1544_v54  ;;  %v1942_v58 = vld [vmem:[%s2734_s3 + $0x114] sm:$0xf0]  ;;  %v1768_v59 = vld [vmem:[%s2734_s3 + $0x1d0] sm:$0xf]  ;;  %v1650_v0 = vld [vmem:[%s2734_s3 + $0xe8] sm:$0xf0] }
  0x29   : > { %995 = vmatpush.bf16.msrb.mxu2 %v1705_v16  ;;  %v1966_v60 = vld [vmem:[%s2734_s3 + $0x1d4] sm:$0xf0]  ;;  %v1673_v61 = vor.u32 %v1942_v58, %v1672_v56  ;;  %v1653_v1 = vor.u32 %v1935_v63, %v1650_v0  ;;  %v1536_v2 = vld [vmem:[%s2734_s3] sm:$0xf]  ;;  %v1908_v3 = vld [vmem:[%s2734_s3 + $0x4] sm:$0xf0] }
  0x2a   : > { %969 = vmatpush.bf16.msra.mxu0 %v1561_v35  ;;  %v1769_v62 = vor.u32 %v1966_v60, %v1768_v59  ;;  %v1664_v4 = vld [vmem:[%s2734_s3 + $0x100] sm:$0xf]  ;;  %v1537_v5 = vor.u32 %v1908_v3, %v1536_v2  ;;  %v1940_v6 = vld [vmem:[%s2734_s3 + $0x104] sm:$0xf0]  ;;  %v1921_v11 = vld [vmem:[%s2734_s3 + $0x74] sm:$0xf] }
  0x2b   : > { %556 = vmatpush.bf16.msrb.mxu3 %v1481_v17  ;;  %v1760_v7 = vld [vmem:[%s2734_s3 + $0x1c0] sm:$0xf]  ;;  %v1964_v8 = vld [vmem:[%s2734_s3 + $0x1c4] sm:$0xf0]  ;;  %v1665_v9 = vor.u32 %v1940_v6, %v1664_v4  ;;  %v1594_v12 = vld [vmem:[%s2734_s3 + $0x78] sm:$0xf0] }
  0x2c   : > { %982 = vmatpush.bf16.msrb.mxu1 %v1633_v18  ;;  %v1761_v10 = vor.u32 %v1964_v8, %v1760_v7  ;;  %v1597_v13 = vor.u32 %v1921_v11, %v1594_v12  ;;  %v1953_v14 = vld [vmem:[%s2734_s3 + $0x174] sm:$0xf]  ;;  %v1722_v15 = vld [vmem:[%s2734_s3 + $0x178] sm:$0xf0]  ;;  %v1752_v19 = vld [vmem:[%s2734_s3 + $0x1b0] sm:$0xf] }
  0x2d   : > { %996 = vmatpush.bf16.msrb.mxu2 %v1697_v27  ;;  %v1933_v16 = vld [vmem:[%s2734_s3 + $0xd4] sm:$0xf]  ;;  %v1725_v17 = vor.u32 %v1953_v14, %v1722_v15  ;;  %v1642_v18 = vld [vmem:[%s2734_s3 + $0xd8] sm:$0xf0]  ;;  %v1962_v20 = vld [vmem:[%s2734_s3 + $0x1b4] sm:$0xf0] }
  0x2e   : > { %1533 = vmatmul.msk.bf16.vlgmr.msrb.gmra.mxu3 %vm503_vm0, %v2233_v48  ;;  %970 = vmatpush.bf16.msra.mxu0 %v1553_v45  ;;  %v1600_v48 = vld [vmem:[%s2734_s3 + $0x80] sm:$0xf]  ;;  %v1645_v21 = vor.u32 %v1933_v16, %v1642_v18  ;;  %v1753_v22 = vor.u32 %v1962_v20, %v1752_v19  ;;  %v1919_v23 = vld [vmem:[%s2734_s3 + $0x64] sm:$0xf]  ;;  %v1586_v24 = vld [vmem:[%s2734_s3 + $0x68] sm:$0xf0] }
  0x2f   : > { %1007 = vmatpush.bf16.msra.mxu3 %v1785_v25  ;;  %v1601_v50 = vor.u32 %v1924_v49, %v1600_v48  ;;  %v1951_v25 = vld [vmem:[%s2734_s3 + $0x164] sm:$0xf]  ;;  %v1589_v26 = vor.u32 %v1919_v23, %v1586_v24  ;;  %v1714_v27 = vld [vmem:[%s2734_s3 + $0x168] sm:$0xf0]  ;;  %v1744_v32 = vld [vmem:[%s2734_s3 + $0x1a0] sm:$0xf] }
  0x30   : > { %983 = vmatpush.bf16.msrb.mxu1 %v1625_v30  ;;  %v1717_v28 = vor.u32 %v1951_v25, %v1714_v27  ;;  %v1931_v29 = vld [vmem:[%s2734_s3 + $0xc4] sm:$0xf]  ;;  %v1634_v30 = vld [vmem:[%s2734_s3 + $0xc8] sm:$0xf0]  ;;  %v1960_v33 = vld [vmem:[%s2734_s3 + $0x1a4] sm:$0xf0] }
  0x31   : > { %997 = vmatpush.bf16.msrb.mxu2 %v1689_v39  ;;  %v1637_v31 = vor.u32 %v1931_v29, %v1634_v30  ;;  %v1745_v34 = vor.u32 %v1960_v33, %v1744_v32  ;;  %v1917_v35 = vld [vmem:[%s2734_s3 + $0x54] sm:$0xf]  ;;  %v1578_v36 = vld [vmem:[%s2734_s3 + $0x58] sm:$0xf0]  ;;  %v1736_v44 = vld [vmem:[%s2734_s3 + $0x190] sm:$0xf] }
  0x32   : > { %971 = vmatpush.bf16.msra.mxu0 %v1545_v57  ;;  %v1949_v37 = vld [vmem:[%s2734_s3 + $0x154] sm:$0xf]  ;;  %v1706_v39 = vld [vmem:[%s2734_s3 + $0x158] sm:$0xf0]  ;;  %v1958_v45 = vld [vmem:[%s2734_s3 + $0x194] sm:$0xf0] }
  0x33   : > { %1008 = vmatpush.bf16.msra.mxu3 %v1777_v38  ;;  %v1581_v38 = vor.u32 %v1917_v35, %v1578_v36  ;;  %v1929_v41 = vld [vmem:[%s2734_s3 + $0xb4] sm:$0xf]  ;;  %v1626_v42 = vld [vmem:[%s2734_s3 + $0xb8] sm:$0xf0]  ;;  %v1570_v48 = vld [vmem:[%s2734_s3 + $0x48] sm:$0xf0] }
  0x34   : > { %984 = vmatpush.bf16.msrb.mxu1 %v1617_v40  ;;  %v1709_v40 = vor.u32 %v1949_v37, %v1706_v39  ;;  %v1629_v43 = vor.u32 %v1929_v41, %v1626_v42  ;;  %v1947_v49 = vld [vmem:[%s2734_s3 + $0x144] sm:$0xf]  ;;  %v1698_v51 = vld [vmem:[%s2734_s3 + $0x148] sm:$0xf0]  ;;  %v1728_v56 = vld [vmem:[%s2734_s3 + $0x180] sm:$0xf] }
  0x35   : > { %998 = vmatpush.bf16.msrb.mxu2 %v1681_v46  ;;  %v1737_v46 = vor.u32 %v1958_v45, %v1736_v44  ;;  %v1701_v52 = vor.u32 %v1947_v49, %v1698_v51  ;;  %v1618_v54 = vld [vmem:[%s2734_s3 + $0xa8] sm:$0xf0]  ;;  %v1956_v57 = vld [vmem:[%s2734_s3 + $0x184] sm:$0xf0]  ;;  %v1913_v59 = vld [vmem:[%s2734_s3 + $0x34] sm:$0xf] }
  0x36   : > { %972 = vmatpush.bf16.msra.mxu0 %v1537_v5  ;;  %v1729_v58 = vor.u32 %v1956_v57, %v1728_v56  ;;  %v1562_v60 = vld [vmem:[%s2734_s3 + $0x38] sm:$0xf0]  ;;  %v1969_v0 = vld [vmem:[%s2734_s3 + $0x1f4] sm:$0xf]  ;;  %v1911_v7 = vld [vmem:[%s2734_s3 + $0x24] sm:$0xf] }
  0x37   : > { %1009 = vmatpush.bf16.msra.mxu3 %v1769_v62  ;;  %v1565_v62 = vor.u32 %v1913_v59, %v1562_v60  ;;  %v1690_v63 = vld [vmem:[%s2734_s3 + $0x138] sm:$0xf0]  ;;  %v1925_v4 = vld [vmem:[%s2734_s3 + $0x94] sm:$0xf]  ;;  %v1554_v8 = vld [vmem:[%s2734_s3 + $0x28] sm:$0xf0] }
  0x38   : > { %985 = vmatpush.bf16.msrb.mxu1 %v1609_v47  ;;  %v1915_v47 = vld [vmem:[%s2734_s3 + $0x44] sm:$0xf]  ;;  %v1610_v5 = vld [vmem:[%s2734_s3 + $0x98] sm:$0xf0]  ;;  %v1682_v11 = vld [vmem:[%s2734_s3 + $0x128] sm:$0xf0] }
  0x39   : > { %999 = vmatpush.bf16.msrb.mxu2 %v1673_v61  ;;  %v1945_v61 = vld [vmem:[%s2734_s3 + $0x134] sm:$0xf]  ;;  %v1613_v6 = vor.u32 %v1925_v4, %v1610_v5  ;;  %v1967_v12 = vld [vmem:[%s2734_s3 + $0x1e4] sm:$0xf]  ;;  %v1546_v20 = vld [vmem:[%s2734_s3 + $0x18] sm:$0xf0] }
  0x3a   : > { %1021 = vmatpush.bf16.msrb.mxu0 %v1597_v13  ;;  %v1693_v2 = vor.u32 %v1945_v61, %v1690_v63  ;;  %v1778_v13 = vld [vmem:[%s2734_s3 + $0x1e8] sm:$0xf0]  ;;  %v1923_v16 = vld [vmem:[%s2734_s3 + $0x84] sm:$0xf]  ;;  %v1909_v19 = vld [vmem:[%s2734_s3 + $0x14] sm:$0xf] }
  0x3b   : > { %1010 = vmatpush.bf16.msra.mxu3 %v1761_v10  ;;  %v1557_v10 = vor.u32 %v1911_v7, %v1554_v8  ;;  %v1781_v15 = vor.u32 %v1967_v12, %v1778_v13  ;;  %v1674_v23 = vld [vmem:[%s2734_s3 + $0x118] sm:$0xf0]  ;;  %v1965_v24 = vld [vmem:[%s2734_s3 + $0x1d4] sm:$0xf]  ;;  %v1907_v29 = vld [vmem:[%s2734_s3 + $0x4] sm:$0xf] }
  0x3c   : > { %986 = vmatpush.bf16.msrb.mxu1 %v1601_v50  ;;  %v1573_v50 = vor.u32 %v1915_v47, %v1570_v48  ;;  %v1770_v25 = vld [vmem:[%s2734_s3 + $0x1d8] sm:$0xf0]  ;;  %v1538_v30 = vld [vmem:[%s2734_s3 + $0x8] sm:$0xf0]  ;;  %v1963_v35 = vld [vmem:[%s2734_s3 + $0x1c4] sm:$0xf] }
  0x3d   : > { %1000 = vmatpush.bf16.msrb.mxu2 %v1665_v9  ;;  %v1943_v9 = vld [vmem:[%s2734_s3 + $0x124] sm:$0xf]  ;;  %v1773_v27 = vor.u32 %v1965_v24, %v1770_v25  ;;  %v1541_v33 = vor.u32 %v1907_v29, %v1538_v30  ;;  %v1762_v36 = vld [vmem:[%s2734_s3 + $0x1c8] sm:$0xf0]  ;;  %v1754_v41 = vld [vmem:[%s2734_s3 + $0x1b8] sm:$0xf0] }
  0x3e   : > { %1022 = vmatpush.bf16.msrb.mxu0 %v1589_v26  ;;  %v1685_v14 = vor.u32 %v1943_v9, %v1682_v11  ;;  %v1765_v39 = vor.u32 %v1963_v35, %v1762_v36  ;;  %v1959_v45 = vld [vmem:[%s2734_s3 + $0x1a4] sm:$0xf]  ;;  %v1730_v61 = vld [vmem:[%s2734_s3 + $0x188] sm:$0xf0]  ;;  %v1973_v24 = vld [vmem:[%s2736_s5 + $0x10] sm:$0xff]  ;;  %s1889_s21 = sshll.u32 %s2746_s30, 4 }
  0x3f   : > { %1011 = vmatpush.bf16.msra.mxu3 %v1753_v22  ;;  %v1549_v22 = vor.u32 %v1909_v19, %v1546_v20  ;;  %v1955_v60 = vld [vmem:[%s2734_s3 + $0x184] sm:$0xf]  ;;  %v1977_v19 = vld [vmem:[%s2736_s5 + $0x30] sm:$0xff]  ;;  %v1976_v20 = vld [vmem:[%s2736_s5 + $0x28] sm:$0xff]  ;;  %s387_s24 = scalar_lea.vmem %s2740_s9, %s1889_s21 }
  0x40   : > { %1035 = vmatpush.bf16.msra.mxu1 %v1661_v53  ;;  %v1927_v53 = vld [vmem:[%s2734_s3 + $0xa4] sm:$0xf]  ;;  %v1733_v4 = vor.u32 %v1955_v60, %v1730_v61  ;;  %v1985_v25 = vld [vmem:[%s2736_s5 + $0x70] sm:$0xff]  ;;  %v1982_v30 = vld [vmem:[%s2736_s5 + $0x58] sm:$0xff] }
  0x41   : > { %1049 = vmatpush.bf16.msra.mxu2 %v1725_v17  ;;  %v1621_v55 = vor.u32 %v1927_v53, %v1618_v54  ;;  %v1602_v17 = vld [vmem:[%s2734_s3 + $0x88] sm:$0xf0]  ;;  %v1738_v53 = vld [vmem:[%s2734_s3 + $0x198] sm:$0xf0]  ;;  %v1983_v29 = vld [vmem:[%s2736_s5 + $0x60] sm:$0xff] }
  0x42   : > { %1023 = vmatpush.bf16.msrb.mxu0 %v1581_v38  ;;  %v1605_v18 = vor.u32 %v1923_v16, %v1602_v17  ;;  %v1980_v35 = vld [vmem:[%s2736_s5 + $0x48] sm:$0xff]  ;;  %v639_v36 = vld [vmem:[%s2735_s4] sm:$0x3] }
  0x43   : > { %1012 = vmatpush.bf16.msra.mxu3 %v1745_v34  ;;  %v1666_v34 = vld [vmem:[%s2734_s3 + $0x108] sm:$0xf0] }
  0x44   : > { %1036 = vmatpush.bf16.msra.mxu1 %v1653_v1  ;;  %v1786_v1 = vld [vmem:[%s2734_s3 + $0x1f8] sm:$0xf0] }
  0x45   : > { %1050 = vmatpush.bf16.msra.mxu2 %v1717_v28  ;;  %v1789_v3 = vor.u32 %v1969_v0, %v1786_v1  ;;  %v2583_v28 = vld [vmem:[%s378_s29] sm:$0xf] }
  0x46   : > { %1024 = vmatpush.bf16.msrb.mxu0 %v1573_v50  ;;  %v411_v37 = vperm.slane %v2583_v28, 1  ;;  %v412_v48 = vperm.slane %v2583_v28, 2  ;;  %v410_v50 = vperm.slane %v2583_v28, 0  ;;  %v413_v11 = vperm.slane %v2583_v28, 3  ;;  %v1971_v28 = vld [vmem:[%s2736_s5] sm:$0xff] }
  0x47   : > { %1013 = vmatpush.bf16.msra.mxu3 %v1737_v46  ;;  %v1746_v46 = vld [vmem:[%s2734_s3 + $0x1a8] sm:$0xf0] }
  0x48   : > { %1037 = vmatpush.bf16.msra.mxu1 %v1645_v21  ;;  %v1941_v21 = vld [vmem:[%s2734_s3 + $0x114] sm:$0xf]  ;;  %v1749_v49 = vor.u32 %v1959_v45, %v1746_v46 }
  0x49   : > { %1051 = vmatpush.bf16.msra.mxu2 %v1709_v40  ;;  %v1677_v26 = vor.u32 %v1941_v21, %v1674_v23  ;;  %v1961_v40 = vld [vmem:[%s2734_s3 + $0x1b4] sm:$0xf]  ;;  %v1975_v21 = vld [vmem:[%s2736_s5 + $0x20] sm:$0xff]  ;;  %v1986_v23 = vld [vmem:[%s2736_s5 + $0x78] sm:$0xff] }
  0x4a   : > { %1025 = vmatpush.bf16.msrb.mxu0 %v1565_v62  ;;  %v1757_v42 = vor.u32 %v1961_v40, %v1754_v41 }
  0x4b   : > { %1014 = vmatpush.bf16.msra.mxu3 %v1729_v58 }
  0x4c   : > { %1038 = vmatpush.bf16.msra.mxu1 %v1637_v31  ;;  %v1939_v31 = vld [vmem:[%s2734_s3 + $0x104] sm:$0xf] }
  0x4d   : > { %1052 = vmatpush.bf16.msra.mxu2 %v1701_v52  ;;  %v1669_v38 = vor.u32 %v1939_v31, %v1666_v34  ;;  %v1957_v52 = vld [vmem:[%s2734_s3 + $0x194] sm:$0xf] }
  0x4e   : > { %1026 = vmatpush.bf16.msrb.mxu0 %v1557_v10  ;;  %v1741_v58 = vor.u32 %v1957_v52, %v1738_v53 }
  0x4f   : > { %1063 = vmatpush.bf16.msrb.mxu3 %v1789_v3 }
  0x50   : > { %1039 = vmatpush.bf16.msra.mxu1 %v1629_v43 }
  0x51   : > { %1053 = vmatpush.bf16.msra.mxu2 %v1693_v2 }
  0x52   : > { %1027 = vmatpush.bf16.msrb.mxu0 %v1549_v22  ;;  %v1974_v22 = vld [vmem:[%s2736_s5 + $0x18] sm:$0xff] }
  0x53   : > { %1064 = vmatpush.bf16.msrb.mxu3 %v1781_v15 }
  0x54   : > { %1040 = vmatpush.bf16.msra.mxu1 %v1621_v55 }
  0x55   : > { %1054 = vmatpush.bf16.msra.mxu2 %v1685_v14 }
  0x56   : > { %1028 = vmatpush.bf16.msrb.mxu0 %v1541_v33 }
  0x57   : > { %1065 = vmatpush.bf16.msrb.mxu3 %v1773_v27  ;;  %v1984_v27 = vld [vmem:[%s2736_s5 + $0x68] sm:$0xff] }
  0x58   : > { %1041 = vmatpush.bf16.msra.mxu1 %v1613_v6 }
  0x59   : > { %1055 = vmatpush.bf16.msra.mxu2 %v1677_v26  ;;  %v1972_v26 = vld [vmem:[%s2736_s5 + $0x8] sm:$0xff] }
  0x5b   : > { %1066 = vmatpush.bf16.msrb.mxu3 %v1765_v39  ;;  %v1979_v39 = vld [vmem:[%s2736_s5 + $0x40] sm:$0xff] }
  0x5c   : > { %1042 = vmatpush.bf16.msra.mxu1 %v1605_v18  ;;  %v1978_v18 = vld [vmem:[%s2736_s5 + $0x38] sm:$0xff] }
  0x5d   : > { %1056 = vmatpush.bf16.msra.mxu2 %v1669_v38  ;;  %v641_v38 = vperm.slane %v639_v36, 0 }
  0x5f   : > { %1067 = vmatpush.bf16.msrb.mxu3 %v1757_v42 }
  0x63   : > { %1068 = vmatpush.bf16.msrb.mxu3 %v1749_v49 }
  0x67   : > { %1069 = vmatpush.bf16.msrb.mxu3 %v1741_v58 }
  0x6b   : > { %1070 = vmatpush.bf16.msrb.mxu3 %v1733_v4 }
  0x9c   : > { %v530_v32 = vpop.f32.mrf.mxu1 }
  0x9d   : > { %v531_v43 = vadd.f32 %v530_v32, %v411_v37  ;;  %v1981_v32 = vld [vmem:[%s2736_s5 + $0x50] sm:$0xff] }
  0x9f   : > { %v564_v54 = vmax.f32 %v531_v43, 0.0 }
  0xa1   : > { %v516_v44 = vpop.f32.mrf.mxu3 }
  0xa2   : > { %v517_v59 = vadd.f32 %v516_v44, %v410_v50 }
  0xa3   : > { %v544_v47 = vpop.f32.mrf.mxu2 }
  0xa4   : > { %v532_v51 = vpop.f32.mrf.mxu1  ;;  %v545_v56 = vadd.f32 %v544_v47, %v412_v48  ;;  %v563_v5 = vmax.f32 %v517_v59, 0.0 }
  0xa5   : > { %v533_v55 = vadd.f32 %v532_v51, %v411_v37 }
  0xa6   : > { %v565_v2 = vmax.f32 %v545_v56, 0.0 }
  0xa7   : > { %v568_v57 = vmax.f32 %v533_v55, 0.0  ;;  %v642_v55 = vperm.slane %v639_v36, 1 }
  0xa9   : > { %v572_v62 = vpack.c.bf16 %v568_v57, %v564_v54  ;;  %v518_v63 = vpop.f32.mrf.mxu3 }
  0xaa   : > { %v519_v0 = vadd.f32 %v518_v63, %v410_v50 }
  0xab   : > { %v546_v1 = vpop.f32.mrf.mxu2  ;;  %987 = vmatmul.bf16.vlgmr.msrb.gmra.mxu1 %v572_v62 }
  0xac   : > { %v547_v3 = vadd.f32 %v546_v1, %v412_v48  ;;  %v567_v6 = vmax.f32 %v519_v0, 0.0  ;;  %1229 = vmatpush.bf16.msrb.mxu1 %v1986_v23 }
  0xae   : > { %v569_v7 = vmax.f32 %v547_v3, 0.0  ;;  %v571_v8 = vpack.c.bf16 %v567_v6, %v563_v5 }
  0xb0   : > { %v573_v9 = vpack.c.bf16 %v569_v7, %v565_v2  ;;  %973 = vmatmul.bf16.vlgmr.msra.gmra.mxu0 %v571_v8  ;;  %1230 = vmatpush.bf16.msrb.mxu1 %v1985_v25 }
  0xb1   : > { %v558_v10 = vpop.f32.mrf.mxu3  ;;  %1215 = vmatpush.bf16.msra.mxu0 %v1978_v18  ;;  %v1987_v18 = vld [vmem:[%s2738_s7] sm:$0xff] }
  0xb2   : > { %1001 = vmatmul.bf16.vlgmr.msrb.gmra.mxu2 %v573_v9  ;;  %v559_v12 = vadd.f32 %v558_v10, %v413_v11 }
  0xb4   : > { %v566_v15 = vmax.f32 %v559_v12, 0.0  ;;  %1231 = vmatpush.bf16.msrb.mxu1 %v1984_v27  ;;  %v1993_v12 = vld [vmem:[%s2738_s7 + $0x30] sm:$0xff] }
  0xb5   : > { %1216 = vmatpush.bf16.msra.mxu0 %v1977_v19 }
  0xb8   : > { %1232 = vmatpush.bf16.msrb.mxu1 %v1983_v29 }
  0xb9   : > { %v560_v13 = vpop.f32.mrf.mxu3  ;;  %1217 = vmatpush.bf16.msra.mxu0 %v1976_v20 }
  0xba   : > { %v561_v14 = vadd.f32 %v560_v13, %v413_v11  ;;  %v1994_v11 = vld [vmem:[%s2738_s7 + $0x38] sm:$0xff]  ;;  %v1992_v13 = vld [vmem:[%s2738_s7 + $0x28] sm:$0xff] }
  0xbb   : > { %1043 = vmatmul.bf16.vlgmr.msra.gmra.mxu1 %v572_v62  ;;  %1314 = vmatpush.bf16.msrb.mxu2 %v1994_v11 }
  0xbc   : > { %v570_v16 = vmax.f32 %v561_v14, 0.0  ;;  %1233 = vmatpush.bf16.msrb.mxu1 %v1982_v30  ;;  %v1991_v14 = vld [vmem:[%s2738_s7 + $0x20] sm:$0xff] }
  0xbd   : > { %1218 = vmatpush.bf16.msra.mxu0 %v1975_v21  ;;  %v2019_v21 = vld [vmem:[%s2737_s6] ss:$0 sm:$0xff] }
  0xbe   : > { %v574_v17 = vpack.c.bf16 %v570_v16, %v566_v15  ;;  %v1990_v15 = vld [vmem:[%s2738_s7 + $0x18] sm:$0xff]  ;;  %v1989_v16 = vld [vmem:[%s2738_s7 + $0x10] sm:$0xff] }
  0xbf   : > { %1315 = vmatpush.bf16.msrb.mxu2 %v1993_v12 }
  0xc0   : > { %1015 = vmatmul.bf16.vlgmr.msra.gmra.mxu3 %v574_v17  ;;  %1029 = vmatmul.bf16.vlgmr.msrb.gmra.mxu0 %v571_v8 }
  0xc1   : > { %1219 = vmatpush.bf16.msra.mxu0 %v1974_v22  ;;  %1234 = vmatpush.bf16.msrb.mxu1 %v1981_v32 }
  0xc2   : > { %1057 = vmatmul.bf16.vlgmr.msra.gmra.mxu2 %v573_v9 }
  0xc3   : > { %1316 = vmatpush.bf16.msrb.mxu2 %v1992_v13 }
  0xc5   : > { %1220 = vmatpush.bf16.msra.mxu0 %v1973_v24  ;;  %1235 = vmatpush.bf16.msrb.mxu1 %v1980_v35 }
  0xc7   : > { %1317 = vmatpush.bf16.msrb.mxu2 %v1991_v14 }
  0xc9   : > { %1221 = vmatpush.bf16.msra.mxu0 %v1972_v26  ;;  %1236 = vmatpush.bf16.msrb.mxu1 %v1979_v39 }
  0xcb   : > { %1318 = vmatpush.bf16.msrb.mxu2 %v1990_v15 }
  0xcd   : > { %1222 = vmatpush.bf16.msra.mxu0 %v1971_v28 }
  0xcf   : > { %1319 = vmatpush.bf16.msrb.mxu2 %v1989_v16 }
  0xd0   : > { %1071 = vmatmul.bf16.vlgmr.msrb.gmra.mxu3 %v574_v17  ;;  %v1988_v17 = vld [vmem:[%s2738_s7 + $0x8] sm:$0xff] }
  0xd3   : > { %1320 = vmatpush.bf16.msrb.mxu2 %v1988_v17 }
  0xd7   : > { %1321 = vmatpush.bf16.msrb.mxu2 %v1987_v18 }
 0x128   : > { %v988_v33 = vpop.f32.mrf.mxu1 }
 0x12d   : > { %v974_v31 = vpop.f32.mrf.mxu0 }
 0x12e   : > { %v975_v40 = vadd.f32 %v974_v31, %v641_v38  ;;  %v2020_v31 = vld [vmem:[%s2739_s8] ss:$0 sm:$0xff] }
 0x130   : > { %v990_v41 = vpop.f32.mrf.mxu1  ;;  %v989_v45 = vadd.f32 %v988_v33, %v975_v40 }
 0x135   : > { %v1002_v34 = vpop.f32.mrf.mxu2  ;;  %v976_v37 = vpop.f32.mrf.mxu0 }
 0x136   : > { %v977_v44 = vadd.f32 %v976_v37, %v641_v38  ;;  %v1003_v47 = vadd.f32 %v1002_v34, %v989_v45 }
 0x138   : > { %v991_v48 = vadd.f32 %v990_v41, %v977_v44  ;;  %v1044_v53 = vpop.f32.mrf.mxu1 }
 0x13d   : > { %v1004_v42 = vpop.f32.mrf.mxu2  ;;  %v1030_v46 = vpop.f32.mrf.mxu0 }
 0x13e   : > { %v1005_v49 = vadd.f32 %v1004_v42, %v991_v48  ;;  %v1031_v60 = vadd.f32 %v1030_v46, %v642_v55 }
 0x140   : > { %v1045_v63 = vadd.f32 %v1044_v53, %v1031_v60  ;;  %v1046_v0 = vpop.f32.mrf.mxu1 }
 0x143   : > { %v1016_v43 = vpop.f32.mrf.mxu3 }
 0x144   : > { %v1017_v50 = vadd.f32 %v1016_v43, %v1003_v47 }
 0x145   : > { %v1058_v54 = vpop.f32.mrf.mxu2  ;;  %v1032_v59 = vpop.f32.mrf.mxu0 }
 0x146   : > { %v1077_v56 = vmax.f32 %v1017_v50, 0.0  ;;  %v1033_v62 = vadd.f32 %v1032_v59, %v642_v55  ;;  %v1059_v2 = vadd.f32 %v1058_v54, %v1045_v63 }
 0x148   : > { %v1047_v3 = vadd.f32 %v1046_v0, %v1033_v62 }
 0x14b   : > { %v1018_v51 = vpop.f32.mrf.mxu3 }
 0x14c   : > { %v1019_v52 = vadd.f32 %v1018_v51, %v1005_v49 }
 0x14d   : > { %v1060_v1 = vpop.f32.mrf.mxu2 }
 0x14e   : > { %v1079_v57 = vmax.f32 %v1019_v52, 0.0  ;;  %v1061_v4 = vadd.f32 %v1060_v1, %v1047_v3 }
 0x150   : > { %v1081_v58 = vpack.c.bf16 %v1079_v57, %v1077_v56 }
 0x152   : > { %1223 = vmatmul.bf16.vlgmr.msra.gmra.mxu0 %v1081_v58 }
 0x153   : > { %v1072_v61 = vpop.f32.mrf.mxu3 }
 0x154   : > { %v1073_v5 = vadd.f32 %v1072_v61, %v1059_v2 }
 0x156   : > { %v1078_v8 = vmax.f32 %v1073_v5, 0.0 }
 0x15b   : > { %v1074_v6 = vpop.f32.mrf.mxu3 }
 0x15c   : > { %v1075_v7 = vadd.f32 %v1074_v6, %v1061_v4 }
 0x15e   : > { %v1080_v9 = vmax.f32 %v1075_v7, 0.0 }
 0x160   : > { %v1082_v10 = vpack.c.bf16 %v1080_v9, %v1078_v8 }
 0x162   : > { %1237 = vmatmul.bf16.vlgmr.msrb.gmra.mxu1 %v1082_v10 }
 0x1cf   : > { %v1224_v19 = vpop.f32.mrf.mxu0 }
 0x1d0   : > { %v1225_v23 = vadd.f32 %v2019_v21, %v1224_v19 }
 0x1d7   : > { %v1226_v22 = vpop.f32.mrf.mxu0 }
 0x1d8   : > { %v1227_v24 = vadd.f32 %v2019_v21, %v1226_v22 }
 0x1df   : > { %v1238_v20 = vpop.f32.mrf.mxu1 }
 0x1e0   : > { %v1239_v25 = vadd.f32 %v1238_v20, %v1225_v23 }
 0x1e2   : > { %v1243_v28 = vmax.f32 %v1239_v25, 0.0 }
 0x1e7   : > { %v1240_v26 = vpop.f32.mrf.mxu1 }
 0x1e8   : > { %v1241_v27 = vadd.f32 %v1240_v26, %v1227_v24 }
 0x1ea   : > { %v1244_v29 = vmax.f32 %v1241_v27, 0.0 }
 0x1ec   : > { %v1245_v30 = vpack.c.bf16 %v1244_v29, %v1243_v28 }
 0x1ee   : > { %1322 = vmatmul.bf16.vlgmr.msrb.gmra.mxu2 %v1245_v30 }
 0x271   : > { %v1323_v32 = vpop.f32.mrf.mxu2 }
 0x272   : > { %v1324_v33 = vadd.f32 %v2020_v31, %v1323_v32 }
 0x274   : > { %v1329_v34 = vsel %vm1328_vm1, %v1324_v33, -inf }
 0x275   : > { %1330 = vmax.xlane.f32.xlu0 %v1329_v34 }
 0x279   : > { %v1325_v35 = vpop.f32.mrf.mxu2 }
 0x27a   : > { %v1326_v36 = vadd.f32 %v2020_v31, %v1325_v35 }
 0x27c   : > { %v1332_v37 = vsel %vm1328_vm1, %v1326_v36, -inf }
 0x27d   : > { %1333 = vmax.xlane.f32.xlu0 %v1332_v37 }
 0x2e8   : > { %v1331_v38 = vpop.xlane.xlu0 %1330 }
 0x2e9   : > { %v1335_v39 = vsub.f32 %v1324_v33, %v1331_v38 }
 0x2eb   : > { %v1337_v40 = vmul.f32 1.442695, %v1335_v39 }
 0x2ed   : > { %2021 = vpow2.f32 %v1337_v40 }
 0x2f0   : > { %v1334_v41 = vpop.xlane.xlu0 %1333 }
 0x2f1   : > { %v1336_v42 = vsub.f32 %v1326_v36, %v1334_v41 }
 0x2f3   : > { %v2022_v43 = vpop.eup %2021  ;;  %v1339_v44 = vmul.f32 1.442695, %v1336_v42 }
 0x2f4   : > { %v1341_v45 = vsel %vm1328_vm1, %v2022_v43, 0.0 }
 0x2f5   : > { %2023 = vpow2.f32 %v1339_v44  ;;  %1342 = vadd.xlane.f32.xlu1 %v1341_v45 }
 0x2fb   : > { %v2024_v46 = vpop.eup %2023 }
 0x2fc   : > { %v1344_v47 = vsel %vm1328_vm1, %v2024_v46, 0.0 }
 0x2fd   : > { %1345 = vadd.xlane.f32.xlu1 %v1344_v47 }
 0x368   : > { %v1343_v48 = vpop.xlane.xlu1 %1342 }
 0x369   : > { %2025 = vrcp.f32 %v1343_v48 }
 0x36f   : > { %v2026_v49 = vpop.eup %2025 }
 0x370   : > { %v1349_v50 = vmul.f32 %v2026_v49, %v2022_v43  ;;  %v1346_v51 = vpop.xlane.xlu1 %1345 }
 0x371   : > { %2027 = vrcp.f32 %v1346_v51 }
 0x372   : > { %1351 = vst.msk [vmem:[%s387_s24] sm:$0xff] %vm1328_vm1, %v1349_v50 }
 0x377   : > { %v2028_v52 = vpop.eup %2027 }
 0x378   : > { %v1350_v53 = vmul.f32 %v2028_v52, %v2024_v46 }
 0x37a   : > { %1352 = vst.msk [vmem:[%s387_s24 + $0x8] sm:$0xff] %vm1328_vm1, %v1350_v53 }
 0x37b PF: > { %s19_s11 = sadd.s32 1, %s2051_s11   ;;  %s2741_s30 = smov %s2047_s10 }
 0x37c   : > { %p16_p5 = scmp.ge.s32.totalorder %s19_s11, 4   ;;  %s2742_s10 = smov %s2744_s12 }
 0x37e   :  { %18 = sbr.rel (!%p16_p5) target bundleno = 2 (0x2), region = 89 }

</bundles_post_ra>
